<compile_context>
chip_gen: v7x
topology: tpu7x:2x2x1
jax: 0.10.0
libtpu: 0.0.40
codegen_flags: <defaults>
</compile_context>

<pallas_src>
import numpy as np

import jax
import jax.numpy as jnp
from jax.experimental import pallas as pl
from jax.experimental.pallas import tpu as pltpu


_LANES = 128   # feature lanes (all channel dims zero-padded to <=128)
_K = 5         # every conv in LeNet-5 is 5x5


# ------------------------------ fused kernel --------------------------------

def _sigmoid(x):
    # Stable sigmoid as a single EUP transcendental (tanh), no divide.
    return 0.5 * jnp.tanh(0.5 * x) + 0.5


def _lenet5_kernel(taps_ref, w1_ref, b1_ref, w3_ref, b3_ref, s2_ref,
                   wt_ref, bt_ref, o_ref, p1_ref):
    f32 = jnp.float32

    # ---- stage 1: conv1 (1 -> 6, k=5) as ONE MXU matmul ----------------------
    # taps_ref: (800, 32) im2col built in the wrapper; w1_ref: (32, 128).
    y1 = _sigmoid(jnp.dot(taps_ref[...], w1_ref[...],
                          preferred_element_type=f32) + b1_ref[...])  # (800,128)

    # ---- pool1: rows are grouped by 2x2-pooling phase -> 3 aligned VPU adds --
    # Blocks of 200 rows (196 valid + 4 pad), each in (ho, wo) row-major order.
    p1 = 0.25 * (y1[0:200] + y1[200:400] + y1[400:600] + y1[600:800])  # (200,128)

    # Keep the 6 real channels (+2 pad lanes whose conv3 weights are zero) in a
    # tiny VMEM scratch so conv3 can read shifted narrow-K row windows.
    p1_ref[...] = p1[:, :8]                                            # (200, 8)

    # ---- stage 2: conv3 (6 -> 16, k=5): 25 shifted narrow-K (K=8) MXU dots ---
    # Rows r = oh*14 + ow over the 14x14 grid; rows with ow >= 10 are garbage
    # and are dropped by the pool2 selection matmul below.
    acc3 = jnp.zeros((136, _LANES), f32)
    for i in range(_K):
        for j in range(_K):
            off = 14 * i + j
            t = _K * i + j
            acc3 = acc3 + jnp.dot(p1_ref[pl.ds(off, 136), :], w3_ref[t],
                                  preferred_element_type=f32)
    y3 = _sigmoid(acc3 + b3_ref[...])                                  # (136,128)

    # ---- pool2 + valid-row compaction: tiny 0.25-selection matmul ------------
    p2 = jnp.dot(s2_ref[...], y3, preferred_element_type=f32)          # (25,128)

    # ---- tail: conv5 -> fc6 -> output folded; single valid spatial position --
    # 25 narrow (1,16)x(16,128) dots against the folded (25,16,10) weights.
    acc5 = jnp.zeros((1, _LANES), f32)
    for t in range(_K * _K):
        acc5 = acc5 + jnp.dot(p2[t:t + 1, :16], wt_ref[t],
                              preferred_element_type=f32)
    out = acc5 + bt_ref[...]                                           # (1,128)
    o_ref[...] = jnp.broadcast_to(out, (8, _LANES)).astype(o_ref.dtype)


# ---------------------- host-side one-time preparation ----------------------

def prepare_lenet5(params):
    """Fold / transpose / zero-pad all weights once, outside jit.

    Batch-size independent (no O(B^2) selection matrices)."""
    f32 = jnp.float32

    # conv1: (6,1,5,5) -> (32, 128); row 5*i+j, col co = w[co,0,i,j].
    w1 = jnp.transpose(params["conv1_w"][:, 0], (1, 2, 0)).reshape(25, 6)
    w1p = jnp.zeros((32, _LANES), f32).at[:25, :6].set(w1.astype(f32))
    b1p = jnp.zeros((1, _LANES), f32).at[0, :6].set(params["conv1_b"].astype(f32))

    # conv3: (16,6,5,5) -> (25, 8, 128); [tap, ci, co].  Rows ci=6,7 MUST stay
    # zero (they absorb the sigmoid(0)=0.5 padding lanes of p1).
    w3 = jnp.transpose(params["conv3_w"], (2, 3, 1, 0)).reshape(25, 6, 16)
    w3p = jnp.zeros((25, 8, _LANES), f32).at[:, :6, :16].set(w3.astype(f32))
    b3p = jnp.zeros((1, _LANES), f32).at[0, :16].set(params["conv3_b"].astype(f32))

    # pool2 + valid-row compaction selection matrix: (25, 136), entries 0.25.
    s2 = np.zeros((25, 136), np.float32)
    for po in range(5):
        for qo in range(5):
            ro = po * 5 + qo
            for dh in (0, 1):
                for dw in (0, 1):
                    s2[ro, (2 * po + dh) * 14 + (2 * qo + dw)] = 0.25

    # tail: conv5 -> fc6 -> output folded (all linear, no activation between).
    tail = params["fc6_w"].T.astype(f32) @ params["out_w"].T.astype(f32)  # (120,10)
    w5 = jnp.transpose(params["conv5_w"], (2, 3, 1, 0)).reshape(25, 16, 120)
    wt = jnp.einsum("kcf,fd->kcd", w5.astype(f32), tail)                  # (25,16,10)
    wtp = jnp.zeros((25, 16, _LANES), f32).at[:, :, :10].set(wt)
    bt = (params["conv5_b"].astype(f32) @ tail
          + params["fc6_b"].astype(f32) @ params["out_w"].T.astype(f32)
          + params["out_b"].astype(f32))                                  # (10,)
    btp = jnp.zeros((1, _LANES), f32).at[0, :10].set(bt)

    return {"w1": w1p, "b1": b1p, "w3": w3p, "b3": b3p,
            "s2": jnp.asarray(s2), "wt": wtp, "bt": btp}


# ------------------------------- forward pass -------------------------------

def _build_conv1_taps(x_nchw):
    """Wrapper-side (XLA) im2col for conv1, rows grouped by 2x2-pool phase.

    Returns (B, 800, 32): 4 phase blocks of 200 rows (196 valid (ho,wo)
    row-major + 4 zero pad), lane t = 5*i+j holds the padded input at
    (2*ho+dh+i, 2*wo+dw+j)."""
    B = x_nchw.shape[0]
    xp = jnp.pad(x_nchw[:, 0].astype(jnp.float32), ((0, 0), (2, 2), (2, 2)))
    cols = [xp[:, i:i + 28, j:j + 28] for i in range(_K) for j in range(_K)]
    pat = jnp.stack(cols, axis=-1)                       # (B,28,28,25)
    pat = pat.reshape(B, 14, 2, 14, 2, 25)               # (B,ho,dh,wo,dw,t)
    pat = pat.transpose(0, 2, 4, 1, 3, 5)                # (B,dh,dw,ho,wo,t)
    pat = pat.reshape(B, 4, 196, 25)
    pat = jnp.pad(pat, ((0, 0), (0, 0), (0, 4), (0, 7)))  # (B,4,200,32)
    return pat.reshape(B, 800, 32)


@jax.jit
def lenet5_forward(x_nchw, prep):
    """x_nchw: (B, 1, 28, 28) float32 -> logits (B, 10)."""
    B = x_nchw.shape[0]
    taps1 = _build_conv1_taps(x_nchw)                    # only input-side glue

    out = pl.pallas_call(
        _lenet5_kernel,
        grid=(B,),
        out_shape=jax.ShapeDtypeStruct((B, 8, _LANES), jnp.float32),
        in_specs=[
            pl.BlockSpec((None, 800, 32), lambda b: (b, 0, 0)),    # taps (per-batch)
            pl.BlockSpec((32, _LANES), lambda b: (0, 0)),          # w1
            pl.BlockSpec((1, _LANES), lambda b: (0, 0)),           # b1
            pl.BlockSpec((25, 8, _LANES), lambda b: (0, 0, 0)),    # w3 (packed K)
            pl.BlockSpec((1, _LANES), lambda b: (0, 0)),           # b3
            pl.BlockSpec((25, 136), lambda b: (0, 0)),             # pool2 selection
            pl.BlockSpec((25, 16, _LANES), lambda b: (0, 0, 0)),   # folded tail
            pl.BlockSpec((1, _LANES), lambda b: (0, 0)),           # folded tail bias
        ],
        out_specs=pl.BlockSpec((None, 8, _LANES), lambda b: (b, 0, 0)),
        scratch_shapes=[pltpu.VMEM((200, 8), jnp.float32)],        # pooled p1
        compiler_params=pltpu.CompilerParams(
            dimension_semantics=("parallel",),
            vmem_limit_bytes=16 * 1024 * 1024),
    )(taps1, prep["w1"], prep["b1"], prep["w3"], prep["b3"],
      prep["s2"], prep["wt"], prep["bt"])
    return out[:, 0, :10]


# ----------------------------- params & reference ---------------------------

def init_params(key):
    ks = jax.random.split(key, 10)

    def w(k, shape, fan_in):
        return jax.random.normal(k, shape, jnp.float32) / jnp.sqrt(float(fan_in))

    return {
        "conv1_w": w(ks[0], (6, 1, 5, 5), 25),
        "conv1_b": w(ks[1], (6,), 25),
        "conv3_w": w(ks[2], (16, 6, 5, 5), 150),
        "conv3_b": w(ks[3], (16,), 150),
        "conv5_w": w(ks[4], (120, 16, 5, 5), 400),
        "conv5_b": w(ks[5], (120,), 400),
        "fc6_w": w(ks[6], (84, 120), 120),
        "fc6_b": w(ks[7], (84,), 120),
        "out_w": w(ks[8], (10, 84), 84),
        "out_b": w(ks[9], (10,), 84),
    }


def reference_forward(x_nchw, params):
    """Pure-JAX reference used only as a correctness check."""
    def conv(x, w, b, pad):
        y = jax.lax.conv_general_dilated(
            x, w, (1, 1), [(pad, pad), (pad, pad)],
            dimension_numbers=("NCHW", "OIHW", "NCHW"))
        return y + b.reshape(1, -1, 1, 1)

    def pool(x):
        s = jax.lax.reduce_window(x, 0.0, jax.lax.add, (1, 1, 2, 2),
                                  (1, 1, 2, 2), "VALID")
        return s / 4.0

    sig = jax.nn.sigmoid
    y = sig(conv(x_nchw, params["conv1_w"], params["conv1_b"], 2))
    y = pool(y)
    y = sig(conv(y, params["conv3_w"], params["conv3_b"], 0))
    y = pool(y)
    y = conv(y, params["conv5_w"], params["conv5_b"], 0)
    y = y.reshape(y.shape[0], -1)
    y = y @ params["fc6_w"].T + params["fc6_b"]
    y = y @ params["out_w"].T + params["out_b"]
    return y


if __name__ == "__main__":
    key = jax.random.PRNGKey(0)
    k_x, k_p = jax.random.split(key)
    x = jax.random.normal(k_x, (2, 1, 28, 28), jnp.float32)
    params = init_params(k_p)

    prep = prepare_lenet5(params)          # one-time, outside jit

    out = jax.block_until_ready(lenet5_forward(x, prep))
    assert out.shape == (2, 10), out.shape

    ref = jax.block_until_ready(reference_forward(x, params))
    err = float(jnp.max(jnp.abs(out - ref)))
    assert jnp.allclose(out, ref, atol=2e-3, rtol=2e-3), err

    print("KERNEL_OK")
</pallas_src>

<mosaic_0001>
module attributes {stable_mosaic.version = 11 : i64} {
  func.func @_lenet5_kernel(%arg0: i32, %arg1: memref<1x800x32xf32, #tpu.memory_space<vmem>>, %arg2: memref<32x128xf32, #tpu.memory_space<vmem>>, %arg3: memref<1x128xf32, #tpu.memory_space<vmem>>, %arg4: memref<25x8x128xf32, #tpu.memory_space<vmem>>, %arg5: memref<1x128xf32, #tpu.memory_space<vmem>>, %arg6: memref<25x136xf32, #tpu.memory_space<vmem>>, %arg7: memref<25x16x128xf32, #tpu.memory_space<vmem>>, %arg8: memref<1x128xf32, #tpu.memory_space<vmem>>, %arg9: memref<1x8x128xf32, #tpu.memory_space<vmem>>, %arg10: memref<200x8xf32, #tpu.memory_space<vmem>>) attributes {dimension_semantics = [#tpu.dimension_semantics<parallel>], iteration_bounds = array<i64: 2>, scalar_prefetch = 0 : i64, scratch_operands = 1 : i64, tpu.core_type = #tpu.core_type<tc>, window_params = [{transform_indices = @transform_0, window_bounds = array<i64: 1, 800, 32>}, {pipeline_mode = #tpu.pipeline_mode<synchronous>, transform_indices = @transform_1, window_bounds = array<i64: 32, 128>}, {pipeline_mode = #tpu.pipeline_mode<synchronous>, transform_indices = @transform_2, window_bounds = array<i64: 1, 128>}, {pipeline_mode = #tpu.pipeline_mode<synchronous>, transform_indices = @transform_3, window_bounds = array<i64: 25, 8, 128>}, {pipeline_mode = #tpu.pipeline_mode<synchronous>, transform_indices = @transform_4, window_bounds = array<i64: 1, 128>}, {pipeline_mode = #tpu.pipeline_mode<synchronous>, transform_indices = @transform_5, window_bounds = array<i64: 25, 136>}, {pipeline_mode = #tpu.pipeline_mode<synchronous>, transform_indices = @transform_6, window_bounds = array<i64: 25, 16, 128>}, {pipeline_mode = #tpu.pipeline_mode<synchronous>, transform_indices = @transform_7, window_bounds = array<i64: 1, 128>}, {transform_indices = @transform_8, window_bounds = array<i64: 1, 8, 128>}]} {
    %c0 = arith.constant 0 : index
    %c0_0 = arith.constant 0 : index
    %c0_1 = arith.constant 0 : index
    %0 = vector.load %arg1[%c0, %c0_0, %c0_1] : memref<1x800x32xf32, #tpu.memory_space<vmem>>, vector<1x800x32xf32>
    %1 = vector.shape_cast %0 : vector<1x800x32xf32> to vector<800x32xf32>
    %c0_2 = arith.constant 0 : index
    %c0_3 = arith.constant 0 : index
    %2 = vector.load %arg2[%c0_2, %c0_3] : memref<32x128xf32, #tpu.memory_space<vmem>>, vector<32x128xf32>
    %cst = arith.constant dense<0.000000e+00> : vector<800x128xf32>
    %3 = tpu.matmul %1, %2, %cst {dimension_numbers = #tpu.dot_dimension_numbers<[1], [0], [0], [1], [0, 0, 1, 1], [], []>} : vector<800x32xf32>, vector<32x128xf32>, vector<800x128xf32> -> vector<800x128xf32>
    %c0_4 = arith.constant 0 : index
    %c0_5 = arith.constant 0 : index
    %4 = vector.load %arg3[%c0_4, %c0_5] : memref<1x128xf32, #tpu.memory_space<vmem>>, vector<1x128xf32>
    %5 = vector.broadcast %4 : vector<1x128xf32> to vector<800x128xf32>
    %6 = arith.addf %3, %5 : vector<800x128xf32>
    %cst_6 = arith.constant 5.000000e-01 : f32
    %7 = vector.broadcast %cst_6 : f32 to vector<800x128xf32>
    %8 = arith.mulf %7, %6 : vector<800x128xf32>
    %9 = math.tanh %8 : vector<800x128xf32>
    %cst_7 = arith.constant 5.000000e-01 : f32
    %10 = vector.broadcast %cst_7 : f32 to vector<800x128xf32>
    %11 = arith.mulf %10, %9 : vector<800x128xf32>
    %cst_8 = arith.constant 5.000000e-01 : f32
    %12 = vector.broadcast %cst_8 : f32 to vector<800x128xf32>
    %13 = arith.addf %11, %12 : vector<800x128xf32>
    %14 = vector.extract_strided_slice %13 {offsets = [0, 0], sizes = [200, 128], strides = [1, 1]} : vector<800x128xf32> to vector<200x128xf32>
    %15 = vector.extract_strided_slice %13 {offsets = [200, 0], sizes = [200, 128], strides = [1, 1]} : vector<800x128xf32> to vector<200x128xf32>
    %16 = arith.addf %14, %15 : vector<200x128xf32>
    %17 = vector.extract_strided_slice %13 {offsets = [400, 0], sizes = [200, 128], strides = [1, 1]} : vector<800x128xf32> to vector<200x128xf32>
    %18 = arith.addf %16, %17 : vector<200x128xf32>
    %19 = vector.extract_strided_slice %13 {offsets = [600, 0], sizes = [200, 128], strides = [1, 1]} : vector<800x128xf32> to vector<200x128xf32>
    %20 = arith.addf %18, %19 : vector<200x128xf32>
    %cst_9 = arith.constant 2.500000e-01 : f32
    %21 = vector.broadcast %cst_9 : f32 to vector<200x128xf32>
    %22 = arith.mulf %21, %20 : vector<200x128xf32>
    %23 = vector.extract_strided_slice %22 {offsets = [0, 0], sizes = [200, 8], strides = [1, 1]} : vector<200x128xf32> to vector<200x8xf32>
    %c0_10 = arith.constant 0 : index
    %c0_11 = arith.constant 0 : index
    %24 = vector.load %arg10[%c0_10, %c0_11] : memref<200x8xf32, #tpu.memory_space<vmem>>, vector<200x8xf32>
    tpu.vector_store %arg10[%c0_10, %c0_11], %23 {strides = array<i32>} : memref<200x8xf32, #tpu.memory_space<vmem>>, vector<200x8xf32>,
    %cst_12 = arith.constant 0.000000e+00 : f32
    %25 = vector.broadcast %cst_12 : f32 to vector<136x128xf32>
    %c0_13 = arith.constant 0 : index
    %c0_14 = arith.constant 0 : index
    %26 = vector.load %arg10[%c0_13, %c0_14] : memref<200x8xf32, #tpu.memory_space<vmem>>, vector<136x8xf32>
    %c0_15 = arith.constant 0 : index
    %c0_16 = arith.constant 0 : index
    %c0_17 = arith.constant 0 : index
    %27 = vector.load %arg4[%c0_15, %c0_16, %c0_17] : memref<25x8x128xf32, #tpu.memory_space<vmem>>, vector<1x8x128xf32>
    %28 = vector.shape_cast %27 : vector<1x8x128xf32> to vector<8x128xf32>
    %cst_18 = arith.constant dense<0.000000e+00> : vector<136x128xf32>
    %29 = tpu.matmul %26, %28, %cst_18 {dimension_numbers = #tpu.dot_dimension_numbers<[1], [0], [0], [1], [0, 0, 1, 1], [], []>} : vector<136x8xf32>, vector<8x128xf32>, vector<136x128xf32> -> vector<136x128xf32>
    %30 = arith.addf %25, %29 : vector<136x128xf32>
    %c1 = arith.constant 1 : index
    %c0_19 = arith.constant 0 : index
    %31 = vector.load %arg10[%c1, %c0_19] : memref<200x8xf32, #tpu.memory_space<vmem>>, vector<136x8xf32>
    %c1_20 = arith.constant 1 : index
    %c0_21 = arith.constant 0 : index
    %c0_22 = arith.constant 0 : index
    %32 = vector.load %arg4[%c1_20, %c0_21, %c0_22] : memref<25x8x128xf32, #tpu.memory_space<vmem>>, vector<1x8x128xf32>
    %33 = vector.shape_cast %32 : vector<1x8x128xf32> to vector<8x128xf32>
    %cst_23 = arith.constant dense<0.000000e+00> : vector<136x128xf32>
    %34 = tpu.matmul %31, %33, %cst_23 {dimension_numbers = #tpu.dot_dimension_numbers<[1], [0], [0], [1], [0, 0, 1, 1], [], []>} : vector<136x8xf32>, vector<8x128xf32>, vector<136x128xf32> -> vector<136x128xf32>
    %35 = arith.addf %30, %34 : vector<136x128xf32>
    %c2 = arith.constant 2 : index
    %c0_24 = arith.constant 0 : index
    %36 = vector.load %arg10[%c2, %c0_24] : memref<200x8xf32, #tpu.memory_space<vmem>>, vector<136x8xf32>
    %c2_25 = arith.constant 2 : index
    %c0_26 = arith.constant 0 : index
    %c0_27 = arith.constant 0 : index
    %37 = vector.load %arg4[%c2_25, %c0_26, %c0_27] : memref<25x8x128xf32, #tpu.memory_space<vmem>>, vector<1x8x128xf32>
    %38 = vector.shape_cast %37 : vector<1x8x128xf32> to vector<8x128xf32>
    %cst_28 = arith.constant dense<0.000000e+00> : vector<136x128xf32>
    %39 = tpu.matmul %36, %38, %cst_28 {dimension_numbers = #tpu.dot_dimension_numbers<[1], [0], [0], [1], [0, 0, 1, 1], [], []>} : vector<136x8xf32>, vector<8x128xf32>, vector<136x128xf32> -> vector<136x128xf32>
    %40 = arith.addf %35, %39 : vector<136x128xf32>
    %c3 = arith.constant 3 : index
    %c0_29 = arith.constant 0 : index
    %41 = vector.load %arg10[%c3, %c0_29] : memref<200x8xf32, #tpu.memory_space<vmem>>, vector<136x8xf32>
    %c3_30 = arith.constant 3 : index
    %c0_31 = arith.constant 0 : index
    %c0_32 = arith.constant 0 : index
    %42 = vector.load %arg4[%c3_30, %c0_31, %c0_32] : memref<25x8x128xf32, #tpu.memory_space<vmem>>, vector<1x8x128xf32>
    %43 = vector.shape_cast %42 : vector<1x8x128xf32> to vector<8x128xf32>
    %cst_33 = arith.constant dense<0.000000e+00> : vector<136x128xf32>
    %44 = tpu.matmul %41, %43, %cst_33 {dimension_numbers = #tpu.dot_dimension_numbers<[1], [0], [0], [1], [0, 0, 1, 1], [], []>} : vector<136x8xf32>, vector<8x128xf32>, vector<136x128xf32> -> vector<136x128xf32>
    %45 = arith.addf %40, %44 : vector<136x128xf32>
    %c4 = arith.constant 4 : index
    %c0_34 = arith.constant 0 : index
    %46 = vector.load %arg10[%c4, %c0_34] : memref<200x8xf32, #tpu.memory_space<vmem>>, vector<136x8xf32>
    %c4_35 = arith.constant 4 : index
    %c0_36 = arith.constant 0 : index
    %c0_37 = arith.constant 0 : index
    %47 = vector.load %arg4[%c4_35, %c0_36, %c0_37] : memref<25x8x128xf32, #tpu.memory_space<vmem>>, vector<1x8x128xf32>
    %48 = vector.shape_cast %47 : vector<1x8x128xf32> to vector<8x128xf32>
    %cst_38 = arith.constant dense<0.000000e+00> : vector<136x128xf32>
    %49 = tpu.matmul %46, %48, %cst_38 {dimension_numbers = #tpu.dot_dimension_numbers<[1], [0], [0], [1], [0, 0, 1, 1], [], []>} : vector<136x8xf32>, vector<8x128xf32>, vector<136x128xf32> -> vector<136x128xf32>
    %50 = arith.addf %45, %49 : vector<136x128xf32>
    %c14 = arith.constant 14 : index
    %c0_39 = arith.constant 0 : index
    %51 = vector.load %arg10[%c14, %c0_39] : memref<200x8xf32, #tpu.memory_space<vmem>>, vector<136x8xf32>
    %c5 = arith.constant 5 : index
    %c0_40 = arith.constant 0 : index
    %c0_41 = arith.constant 0 : index
    %52 = vector.load %arg4[%c5, %c0_40, %c0_41] : memref<25x8x128xf32, #tpu.memory_space<vmem>>, vector<1x8x128xf32>
    %53 = vector.shape_cast %52 : vector<1x8x128xf32> to vector<8x128xf32>
    %cst_42 = arith.constant dense<0.000000e+00> : vector<136x128xf32>
    %54 = tpu.matmul %51, %53, %cst_42 {dimension_numbers = #tpu.dot_dimension_numbers<[1], [0], [0], [1], [0, 0, 1, 1], [], []>} : vector<136x8xf32>, vector<8x128xf32>, vector<136x128xf32> -> vector<136x128xf32>
    %55 = arith.addf %50, %54 : vector<136x128xf32>
    %c15 = arith.constant 15 : index
    %c0_43 = arith.constant 0 : index
    %56 = vector.load %arg10[%c15, %c0_43] : memref<200x8xf32, #tpu.memory_space<vmem>>, vector<136x8xf32>
    %c6 = arith.constant 6 : index
    %c0_44 = arith.constant 0 : index
    %c0_45 = arith.constant 0 : index
    %57 = vector.load %arg4[%c6, %c0_44, %c0_45] : memref<25x8x128xf32, #tpu.memory_space<vmem>>, vector<1x8x128xf32>
    %58 = vector.shape_cast %57 : vector<1x8x128xf32> to vector<8x128xf32>
    %cst_46 = arith.constant dense<0.000000e+00> : vector<136x128xf32>
    %59 = tpu.matmul %56, %58, %cst_46 {dimension_numbers = #tpu.dot_dimension_numbers<[1], [0], [0], [1], [0, 0, 1, 1], [], []>} : vector<136x8xf32>, vector<8x128xf32>, vector<136x128xf32> -> vector<136x128xf32>
    %60 = arith.addf %55, %59 : vector<136x128xf32>
    %c16 = arith.constant 16 : index
    %c0_47 = arith.constant 0 : index
    %61 = vector.load %arg10[%c16, %c0_47] : memref<200x8xf32, #tpu.memory_space<vmem>>, vector<136x8xf32>
    %c7 = arith.constant 7 : index
    %c0_48 = arith.constant 0 : index
    %c0_49 = arith.constant 0 : index
    %62 = vector.load %arg4[%c7, %c0_48, %c0_49] : memref<25x8x128xf32, #tpu.memory_space<vmem>>, vector<1x8x128xf32>
    %63 = vector.shape_cast %62 : vector<1x8x128xf32> to vector<8x128xf32>
    %cst_50 = arith.constant dense<0.000000e+00> : vector<136x128xf32>
    %64 = tpu.matmul %61, %63, %cst_50 {dimension_numbers = #tpu.dot_dimension_numbers<[1], [0], [0], [1], [0, 0, 1, 1], [], []>} : vector<136x8xf32>, vector<8x128xf32>, vector<136x128xf32> -> vector<136x128xf32>
    %65 = arith.addf %60, %64 : vector<136x128xf32>
    %c17 = arith.constant 17 : index
    %c0_51 = arith.constant 0 : index
    %66 = vector.load %arg10[%c17, %c0_51] : memref<200x8xf32, #tpu.memory_space<vmem>>, vector<136x8xf32>
    %c8 = arith.constant 8 : index
    %c0_52 = arith.constant 0 : index
    %c0_53 = arith.constant 0 : index
    %67 = vector.load %arg4[%c8, %c0_52, %c0_53] : memref<25x8x128xf32, #tpu.memory_space<vmem>>, vector<1x8x128xf32>
    %68 = vector.shape_cast %67 : vector<1x8x128xf32> to vector<8x128xf32>
    %cst_54 = arith.constant dense<0.000000e+00> : vector<136x128xf32>
    %69 = tpu.matmul %66, %68, %cst_54 {dimension_numbers = #tpu.dot_dimension_numbers<[1], [0], [0], [1], [0, 0, 1, 1], [], []>} : vector<136x8xf32>, vector<8x128xf32>, vector<136x128xf32> -> vector<136x128xf32>
    %70 = arith.addf %65, %69 : vector<136x128xf32>
    %c18 = arith.constant 18 : index
    %c0_55 = arith.constant 0 : index
    %71 = vector.load %arg10[%c18, %c0_55] : memref<200x8xf32, #tpu.memory_space<vmem>>, vector<136x8xf32>
    %c9 = arith.constant 9 : index
    %c0_56 = arith.constant 0 : index
    %c0_57 = arith.constant 0 : index
    %72 = vector.load %arg4[%c9, %c0_56, %c0_57] : memref<25x8x128xf32, #tpu.memory_space<vmem>>, vector<1x8x128xf32>
    %73 = vector.shape_cast %72 : vector<1x8x128xf32> to vector<8x128xf32>
    %cst_58 = arith.constant dense<0.000000e+00> : vector<136x128xf32>
    %74 = tpu.matmul %71, %73, %cst_58 {dimension_numbers = #tpu.dot_dimension_numbers<[1], [0], [0], [1], [0, 0, 1, 1], [], []>} : vector<136x8xf32>, vector<8x128xf32>, vector<136x128xf32> -> vector<136x128xf32>
    %75 = arith.addf %70, %74 : vector<136x128xf32>
    %c28 = arith.constant 28 : index
    %c0_59 = arith.constant 0 : index
    %76 = vector.load %arg10[%c28, %c0_59] : memref<200x8xf32, #tpu.memory_space<vmem>>, vector<136x8xf32>
    %c10 = arith.constant 10 : index
    %c0_60 = arith.constant 0 : index
    %c0_61 = arith.constant 0 : index
    %77 = vector.load %arg4[%c10, %c0_60, %c0_61] : memref<25x8x128xf32, #tpu.memory_space<vmem>>, vector<1x8x128xf32>
    %78 = vector.shape_cast %77 : vector<1x8x128xf32> to vector<8x128xf32>
    %cst_62 = arith.constant dense<0.000000e+00> : vector<136x128xf32>
    %79 = tpu.matmul %76, %78, %cst_62 {dimension_numbers = #tpu.dot_dimension_numbers<[1], [0], [0], [1], [0, 0, 1, 1], [], []>} : vector<136x8xf32>, vector<8x128xf32>, vector<136x128xf32> -> vector<136x128xf32>
    %80 = arith.addf %75, %79 : vector<136x128xf32>
    %c29 = arith.constant 29 : index
    %c0_63 = arith.constant 0 : index
    %81 = vector.load %arg10[%c29, %c0_63] : memref<200x8xf32, #tpu.memory_space<vmem>>, vector<136x8xf32>
    %c11 = arith.constant 11 : index
    %c0_64 = arith.constant 0 : index
    %c0_65 = arith.constant 0 : index
    %82 = vector.load %arg4[%c11, %c0_64, %c0_65] : memref<25x8x128xf32, #tpu.memory_space<vmem>>, vector<1x8x128xf32>
    %83 = vector.shape_cast %82 : vector<1x8x128xf32> to vector<8x128xf32>
    %cst_66 = arith.constant dense<0.000000e+00> : vector<136x128xf32>
    %84 = tpu.matmul %81, %83, %cst_66 {dimension_numbers = #tpu.dot_dimension_numbers<[1], [0], [0], [1], [0, 0, 1, 1], [], []>} : vector<136x8xf32>, vector<8x128xf32>, vector<136x128xf32> -> vector<136x128xf32>
    %85 = arith.addf %80, %84 : vector<136x128xf32>
    %c30 = arith.constant 30 : index
    %c0_67 = arith.constant 0 : index
    %86 = vector.load %arg10[%c30, %c0_67] : memref<200x8xf32, #tpu.memory_space<vmem>>, vector<136x8xf32>
    %c12 = arith.constant 12 : index
    %c0_68 = arith.constant 0 : index
    %c0_69 = arith.constant 0 : index
    %87 = vector.load %arg4[%c12, %c0_68, %c0_69] : memref<25x8x128xf32, #tpu.memory_space<vmem>>, vector<1x8x128xf32>
    %88 = vector.shape_cast %87 : vector<1x8x128xf32> to vector<8x128xf32>
    %cst_70 = arith.constant dense<0.000000e+00> : vector<136x128xf32>
    %89 = tpu.matmul %86, %88, %cst_70 {dimension_numbers = #tpu.dot_dimension_numbers<[1], [0], [0], [1], [0, 0, 1, 1], [], []>} : vector<136x8xf32>, vector<8x128xf32>, vector<136x128xf32> -> vector<136x128xf32>
    %90 = arith.addf %85, %89 : vector<136x128xf32>
    %c31 = arith.constant 31 : index
    %c0_71 = arith.constant 0 : index
    %91 = vector.load %arg10[%c31, %c0_71] : memref<200x8xf32, #tpu.memory_space<vmem>>, vector<136x8xf32>
    %c13 = arith.constant 13 : index
    %c0_72 = arith.constant 0 : index
    %c0_73 = arith.constant 0 : index
    %92 = vector.load %arg4[%c13, %c0_72, %c0_73] : memref<25x8x128xf32, #tpu.memory_space<vmem>>, vector<1x8x128xf32>
    %93 = vector.shape_cast %92 : vector<1x8x128xf32> to vector<8x128xf32>
    %cst_74 = arith.constant dense<0.000000e+00> : vector<136x128xf32>
    %94 = tpu.matmul %91, %93, %cst_74 {dimension_numbers = #tpu.dot_dimension_numbers<[1], [0], [0], [1], [0, 0, 1, 1], [], []>} : vector<136x8xf32>, vector<8x128xf32>, vector<136x128xf32> -> vector<136x128xf32>
    %95 = arith.addf %90, %94 : vector<136x128xf32>
    %c32 = arith.constant 32 : index
    %c0_75 = arith.constant 0 : index
    %96 = vector.load %arg10[%c32, %c0_75] : memref<200x8xf32, #tpu.memory_space<vmem>>, vector<136x8xf32>
    %c14_76 = arith.constant 14 : index
    %c0_77 = arith.constant 0 : index
    %c0_78 = arith.constant 0 : index
    %97 = vector.load %arg4[%c14_76, %c0_77, %c0_78] : memref<25x8x128xf32, #tpu.memory_space<vmem>>, vector<1x8x128xf32>
    %98 = vector.shape_cast %97 : vector<1x8x128xf32> to vector<8x128xf32>
    %cst_79 = arith.constant dense<0.000000e+00> : vector<136x128xf32>
    %99 = tpu.matmul %96, %98, %cst_79 {dimension_numbers = #tpu.dot_dimension_numbers<[1], [0], [0], [1], [0, 0, 1, 1], [], []>} : vector<136x8xf32>, vector<8x128xf32>, vector<136x128xf32> -> vector<136x128xf32>
    %100 = arith.addf %95, %99 : vector<136x128xf32>
    %c42 = arith.constant 42 : index
    %c0_80 = arith.constant 0 : index
    %101 = vector.load %arg10[%c42, %c0_80] : memref<200x8xf32, #tpu.memory_space<vmem>>, vector<136x8xf32>
    %c15_81 = arith.constant 15 : index
    %c0_82 = arith.constant 0 : index
    %c0_83 = arith.constant 0 : index
    %102 = vector.load %arg4[%c15_81, %c0_82, %c0_83] : memref<25x8x128xf32, #tpu.memory_space<vmem>>, vector<1x8x128xf32>
    %103 = vector.shape_cast %102 : vector<1x8x128xf32> to vector<8x128xf32>
    %cst_84 = arith.constant dense<0.000000e+00> : vector<136x128xf32>
    %104 = tpu.matmul %101, %103, %cst_84 {dimension_numbers = #tpu.dot_dimension_numbers<[1], [0], [0], [1], [0, 0, 1, 1], [], []>} : vector<136x8xf32>, vector<8x128xf32>, vector<136x128xf32> -> vector<136x128xf32>
    %105 = arith.addf %100, %104 : vector<136x128xf32>
    %c43 = arith.constant 43 : index
    %c0_85 = arith.constant 0 : index
    %106 = vector.load %arg10[%c43, %c0_85] : memref<200x8xf32, #tpu.memory_space<vmem>>, vector<136x8xf32>
    %c16_86 = arith.constant 16 : index
    %c0_87 = arith.constant 0 : index
    %c0_88 = arith.constant 0 : index
    %107 = vector.load %arg4[%c16_86, %c0_87, %c0_88] : memref<25x8x128xf32, #tpu.memory_space<vmem>>, vector<1x8x128xf32>
    %108 = vector.shape_cast %107 : vector<1x8x128xf32> to vector<8x128xf32>
    %cst_89 = arith.constant dense<0.000000e+00> : vector<136x128xf32>
    %109 = tpu.matmul %106, %108, %cst_89 {dimension_numbers = #tpu.dot_dimension_numbers<[1], [0], [0], [1], [0, 0, 1, 1], [], []>} : vector<136x8xf32>, vector<8x128xf32>, vector<136x128xf32> -> vector<136x128xf32>
    %110 = arith.addf %105, %109 : vector<136x128xf32>
    %c44 = arith.constant 44 : index
    %c0_90 = arith.constant 0 : index
    %111 = vector.load %arg10[%c44, %c0_90] : memref<200x8xf32, #tpu.memory_space<vmem>>, vector<136x8xf32>
    %c17_91 = arith.constant 17 : index
    %c0_92 = arith.constant 0 : index
    %c0_93 = arith.constant 0 : index
    %112 = vector.load %arg4[%c17_91, %c0_92, %c0_93] : memref<25x8x128xf32, #tpu.memory_space<vmem>>, vector<1x8x128xf32>
    %113 = vector.shape_cast %112 : vector<1x8x128xf32> to vector<8x128xf32>
    %cst_94 = arith.constant dense<0.000000e+00> : vector<136x128xf32>
    %114 = tpu.matmul %111, %113, %cst_94 {dimension_numbers = #tpu.dot_dimension_numbers<[1], [0], [0], [1], [0, 0, 1, 1], [], []>} : vector<136x8xf32>, vector<8x128xf32>, vector<136x128xf32> -> vector<136x128xf32>
    %115 = arith.addf %110, %114 : vector<136x128xf32>
    %c45 = arith.constant 45 : index
    %c0_95 = arith.constant 0 : index
    %116 = vector.load %arg10[%c45, %c0_95] : memref<200x8xf32, #tpu.memory_space<vmem>>, vector<136x8xf32>
    %c18_96 = arith.constant 18 : index
    %c0_97 = arith.constant 0 : index
    %c0_98 = arith.constant 0 : index
    %117 = vector.load %arg4[%c18_96, %c0_97, %c0_98] : memref<25x8x128xf32, #tpu.memory_space<vmem>>, vector<1x8x128xf32>
    %118 = vector.shape_cast %117 : vector<1x8x128xf32> to vector<8x128xf32>
    %cst_99 = arith.constant dense<0.000000e+00> : vector<136x128xf32>
    %119 = tpu.matmul %116, %118, %cst_99 {dimension_numbers = #tpu.dot_dimension_numbers<[1], [0], [0], [1], [0, 0, 1, 1], [], []>} : vector<136x8xf32>, vector<8x128xf32>, vector<136x128xf32> -> vector<136x128xf32>
    %120 = arith.addf %115, %119 : vector<136x128xf32>
    %c46 = arith.constant 46 : index
    %c0_100 = arith.constant 0 : index
    %121 = vector.load %arg10[%c46, %c0_100] : memref<200x8xf32, #tpu.memory_space<vmem>>, vector<136x8xf32>
    %c19 = arith.constant 19 : index
    %c0_101 = arith.constant 0 : index
    %c0_102 = arith.constant 0 : index
    %122 = vector.load %arg4[%c19, %c0_101, %c0_102] : memref<25x8x128xf32, #tpu.memory_space<vmem>>, vector<1x8x128xf32>
    %123 = vector.shape_cast %122 : vector<1x8x128xf32> to vector<8x128xf32>
    %cst_103 = arith.constant dense<0.000000e+00> : vector<136x128xf32>
    %124 = tpu.matmul %121, %123, %cst_103 {dimension_numbers = #tpu.dot_dimension_numbers<[1], [0], [0], [1], [0, 0, 1, 1], [], []>} : vector<136x8xf32>, vector<8x128xf32>, vector<136x128xf32> -> vector<136x128xf32>
    %125 = arith.addf %120, %124 : vector<136x128xf32>
    %c56 = arith.constant 56 : index
    %c0_104 = arith.constant 0 : index
    %126 = vector.load %arg10[%c56, %c0_104] : memref<200x8xf32, #tpu.memory_space<vmem>>, vector<136x8xf32>
    %c20 = arith.constant 20 : index
    %c0_105 = arith.constant 0 : index
    %c0_106 = arith.constant 0 : index
    %127 = vector.load %arg4[%c20, %c0_105, %c0_106] : memref<25x8x128xf32, #tpu.memory_space<vmem>>, vector<1x8x128xf32>
    %128 = vector.shape_cast %127 : vector<1x8x128xf32> to vector<8x128xf32>
    %cst_107 = arith.constant dense<0.000000e+00> : vector<136x128xf32>
    %129 = tpu.matmul %126, %128, %cst_107 {dimension_numbers = #tpu.dot_dimension_numbers<[1], [0], [0], [1], [0, 0, 1, 1], [], []>} : vector<136x8xf32>, vector<8x128xf32>, vector<136x128xf32> -> vector<136x128xf32>
    %130 = arith.addf %125, %129 : vector<136x128xf32>
    %c57 = arith.constant 57 : index
    %c0_108 = arith.constant 0 : index
    %131 = vector.load %arg10[%c57, %c0_108] : memref<200x8xf32, #tpu.memory_space<vmem>>, vector<136x8xf32>
    %c21 = arith.constant 21 : index
    %c0_109 = arith.constant 0 : index
    %c0_110 = arith.constant 0 : index
    %132 = vector.load %arg4[%c21, %c0_109, %c0_110] : memref<25x8x128xf32, #tpu.memory_space<vmem>>, vector<1x8x128xf32>
    %133 = vector.shape_cast %132 : vector<1x8x128xf32> to vector<8x128xf32>
    %cst_111 = arith.constant dense<0.000000e+00> : vector<136x128xf32>
    %134 = tpu.matmul %131, %133, %cst_111 {dimension_numbers = #tpu.dot_dimension_numbers<[1], [0], [0], [1], [0, 0, 1, 1], [], []>} : vector<136x8xf32>, vector<8x128xf32>, vector<136x128xf32> -> vector<136x128xf32>
    %135 = arith.addf %130, %134 : vector<136x128xf32>
    %c58 = arith.constant 58 : index
    %c0_112 = arith.constant 0 : index
    %136 = vector.load %arg10[%c58, %c0_112] : memref<200x8xf32, #tpu.memory_space<vmem>>, vector<136x8xf32>
    %c22 = arith.constant 22 : index
    %c0_113 = arith.constant 0 : index
    %c0_114 = arith.constant 0 : index
    %137 = vector.load %arg4[%c22, %c0_113, %c0_114] : memref<25x8x128xf32, #tpu.memory_space<vmem>>, vector<1x8x128xf32>
    %138 = vector.shape_cast %137 : vector<1x8x128xf32> to vector<8x128xf32>
    %cst_115 = arith.constant dense<0.000000e+00> : vector<136x128xf32>
    %139 = tpu.matmul %136, %138, %cst_115 {dimension_numbers = #tpu.dot_dimension_numbers<[1], [0], [0], [1], [0, 0, 1, 1], [], []>} : vector<136x8xf32>, vector<8x128xf32>, vector<136x128xf32> -> vector<136x128xf32>
    %140 = arith.addf %135, %139 : vector<136x128xf32>
    %c59 = arith.constant 59 : index
    %c0_116 = arith.constant 0 : index
    %141 = vector.load %arg10[%c59, %c0_116] : memref<200x8xf32, #tpu.memory_space<vmem>>, vector<136x8xf32>
    %c23 = arith.constant 23 : index
    %c0_117 = arith.constant 0 : index
    %c0_118 = arith.constant 0 : index
    %142 = vector.load %arg4[%c23, %c0_117, %c0_118] : memref<25x8x128xf32, #tpu.memory_space<vmem>>, vector<1x8x128xf32>
    %143 = vector.shape_cast %142 : vector<1x8x128xf32> to vector<8x128xf32>
    %cst_119 = arith.constant dense<0.000000e+00> : vector<136x128xf32>
    %144 = tpu.matmul %141, %143, %cst_119 {dimension_numbers = #tpu.dot_dimension_numbers<[1], [0], [0], [1], [0, 0, 1, 1], [], []>} : vector<136x8xf32>, vector<8x128xf32>, vector<136x128xf32> -> vector<136x128xf32>
    %145 = arith.addf %140, %144 : vector<136x128xf32>
    %c60 = arith.constant 60 : index
    %c0_120 = arith.constant 0 : index
    %146 = vector.load %arg10[%c60, %c0_120] : memref<200x8xf32, #tpu.memory_space<vmem>>, vector<136x8xf32>
    %c24 = arith.constant 24 : index
    %c0_121 = arith.constant 0 : index
    %c0_122 = arith.constant 0 : index
    %147 = vector.load %arg4[%c24, %c0_121, %c0_122] : memref<25x8x128xf32, #tpu.memory_space<vmem>>, vector<1x8x128xf32>
    %148 = vector.shape_cast %147 : vector<1x8x128xf32> to vector<8x128xf32>
    %cst_123 = arith.constant dense<0.000000e+00> : vector<136x128xf32>
    %149 = tpu.matmul %146, %148, %cst_123 {dimension_numbers = #tpu.dot_dimension_numbers<[1], [0], [0], [1], [0, 0, 1, 1], [], []>} : vector<136x8xf32>, vector<8x128xf32>, vector<136x128xf32> -> vector<136x128xf32>
    %150 = arith.addf %145, %149 : vector<136x128xf32>
    %c0_124 = arith.constant 0 : index
    %c0_125 = arith.constant 0 : index
    %151 = vector.load %arg5[%c0_124, %c0_125] : memref<1x128xf32, #tpu.memory_space<vmem>>, vector<1x128xf32>
    %152 = vector.broadcast %151 : vector<1x128xf32> to vector<136x128xf32>
    %153 = arith.addf %150, %152 : vector<136x128xf32>
    %cst_126 = arith.constant 5.000000e-01 : f32
    %154 = vector.broadcast %cst_126 : f32 to vector<136x128xf32>
    %155 = arith.mulf %154, %153 : vector<136x128xf32>
    %156 = math.tanh %155 : vector<136x128xf32>
    %cst_127 = arith.constant 5.000000e-01 : f32
    %157 = vector.broadcast %cst_127 : f32 to vector<136x128xf32>
    %158 = arith.mulf %157, %156 : vector<136x128xf32>
    %cst_128 = arith.constant 5.000000e-01 : f32
    %159 = vector.broadcast %cst_128 : f32 to vector<136x128xf32>
    %160 = arith.addf %158, %159 : vector<136x128xf32>
    %c0_129 = arith.constant 0 : index
    %c0_130 = arith.constant 0 : index
    %161 = vector.load %arg6[%c0_129, %c0_130] : memref<25x136xf32, #tpu.memory_space<vmem>>, vector<25x136xf32>
    %cst_131 = arith.constant dense<0.000000e+00> : vector<25x128xf32>
    %162 = tpu.matmul %161, %160, %cst_131 {dimension_numbers = #tpu.dot_dimension_numbers<[1], [0], [0], [1], [0, 0, 1, 1], [], []>} : vector<25x136xf32>, vector<136x128xf32>, vector<25x128xf32> -> vector<25x128xf32>
    %cst_132 = arith.constant 0.000000e+00 : f32
    %163 = vector.broadcast %cst_132 : f32 to vector<1x128xf32>
    %164 = vector.extract_strided_slice %162 {offsets = [0, 0], sizes = [1, 16], strides = [1, 1]} : vector<25x128xf32> to vector<1x16xf32>
    %c0_133 = arith.constant 0 : index
    %c0_134 = arith.constant 0 : index
    %c0_135 = arith.constant 0 : index
    %165 = vector.load %arg7[%c0_133, %c0_134, %c0_135] : memref<25x16x128xf32, #tpu.memory_space<vmem>>, vector<1x16x128xf32>
    %166 = vector.shape_cast %165 : vector<1x16x128xf32> to vector<16x128xf32>
    %cst_136 = arith.constant dense<0.000000e+00> : vector<1x128xf32>
    %167 = tpu.matmul %164, %166, %cst_136 {dimension_numbers = #tpu.dot_dimension_numbers<[1], [0], [0], [1], [0, 0, 1, 1], [], []>} : vector<1x16xf32>, vector<16x128xf32>, vector<1x128xf32> -> vector<1x128xf32>
    %168 = arith.addf %163, %167 : vector<1x128xf32>
    %169 = vector.extract_strided_slice %162 {offsets = [1, 0], sizes = [1, 16], strides = [1, 1]} : vector<25x128xf32> to vector<1x16xf32>
    %c1_137 = arith.constant 1 : index
    %c0_138 = arith.constant 0 : index
    %c0_139 = arith.constant 0 : index
    %170 = vector.load %arg7[%c1_137, %c0_138, %c0_139] : memref<25x16x128xf32, #tpu.memory_space<vmem>>, vector<1x16x128xf32>
    %171 = vector.shape_cast %170 : vector<1x16x128xf32> to vector<16x128xf32>
    %cst_140 = arith.constant dense<0.000000e+00> : vector<1x128xf32>
    %172 = tpu.matmul %169, %171, %cst_140 {dimension_numbers = #tpu.dot_dimension_numbers<[1], [0], [0], [1], [0, 0, 1, 1], [], []>} : vector<1x16xf32>, vector<16x128xf32>, vector<1x128xf32> -> vector<1x128xf32>
    %173 = arith.addf %168, %172 : vector<1x128xf32>
    %174 = vector.extract_strided_slice %162 {offsets = [2, 0], sizes = [1, 16], strides = [1, 1]} : vector<25x128xf32> to vector<1x16xf32>
    %c2_141 = arith.constant 2 : index
    %c0_142 = arith.constant 0 : index
    %c0_143 = arith.constant 0 : index
    %175 = vector.load %arg7[%c2_141, %c0_142, %c0_143] : memref<25x16x128xf32, #tpu.memory_space<vmem>>, vector<1x16x128xf32>
    %176 = vector.shape_cast %175 : vector<1x16x128xf32> to vector<16x128xf32>
    %cst_144 = arith.constant dense<0.000000e+00> : vector<1x128xf32>
    %177 = tpu.matmul %174, %176, %cst_144 {dimension_numbers = #tpu.dot_dimension_numbers<[1], [0], [0], [1], [0, 0, 1, 1], [], []>} : vector<1x16xf32>, vector<16x128xf32>, vector<1x128xf32> -> vector<1x128xf32>
    %178 = arith.addf %173, %177 : vector<1x128xf32>
    %179 = vector.extract_strided_slice %162 {offsets = [3, 0], sizes = [1, 16], strides = [1, 1]} : vector<25x128xf32> to vector<1x16xf32>
    %c3_145 = arith.constant 3 : index
    %c0_146 = arith.constant 0 : index
    %c0_147 = arith.constant 0 : index
    %180 = vector.load %arg7[%c3_145, %c0_146, %c0_147] : memref<25x16x128xf32, #tpu.memory_space<vmem>>, vector<1x16x128xf32>
    %181 = vector.shape_cast %180 : vector<1x16x128xf32> to vector<16x128xf32>
    %cst_148 = arith.constant dense<0.000000e+00> : vector<1x128xf32>
    %182 = tpu.matmul %179, %181, %cst_148 {dimension_numbers = #tpu.dot_dimension_numbers<[1], [0], [0], [1], [0, 0, 1, 1], [], []>} : vector<1x16xf32>, vector<16x128xf32>, vector<1x128xf32> -> vector<1x128xf32>
    %183 = arith.addf %178, %182 : vector<1x128xf32>
    %184 = vector.extract_strided_slice %162 {offsets = [4, 0], sizes = [1, 16], strides = [1, 1]} : vector<25x128xf32> to vector<1x16xf32>
    %c4_149 = arith.constant 4 : index
    %c0_150 = arith.constant 0 : index
    %c0_151 = arith.constant 0 : index
    %185 = vector.load %arg7[%c4_149, %c0_150, %c0_151] : memref<25x16x128xf32, #tpu.memory_space<vmem>>, vector<1x16x128xf32>
    %186 = vector.shape_cast %185 : vector<1x16x128xf32> to vector<16x128xf32>
    %cst_152 = arith.constant dense<0.000000e+00> : vector<1x128xf32>
    %187 = tpu.matmul %184, %186, %cst_152 {dimension_numbers = #tpu.dot_dimension_numbers<[1], [0], [0], [1], [0, 0, 1, 1], [], []>} : vector<1x16xf32>, vector<16x128xf32>, vector<1x128xf32> -> vector<1x128xf32>
    %188 = arith.addf %183, %187 : vector<1x128xf32>
    %189 = vector.extract_strided_slice %162 {offsets = [5, 0], sizes = [1, 16], strides = [1, 1]} : vector<25x128xf32> to vector<1x16xf32>
    %c5_153 = arith.constant 5 : index
    %c0_154 = arith.constant 0 : index
    %c0_155 = arith.constant 0 : index
    %190 = vector.load %arg7[%c5_153, %c0_154, %c0_155] : memref<25x16x128xf32, #tpu.memory_space<vmem>>, vector<1x16x128xf32>
    %191 = vector.shape_cast %190 : vector<1x16x128xf32> to vector<16x128xf32>
    %cst_156 = arith.constant dense<0.000000e+00> : vector<1x128xf32>
    %192 = tpu.matmul %189, %191, %cst_156 {dimension_numbers = #tpu.dot_dimension_numbers<[1], [0], [0], [1], [0, 0, 1, 1], [], []>} : vector<1x16xf32>, vector<16x128xf32>, vector<1x128xf32> -> vector<1x128xf32>
    %193 = arith.addf %188, %192 : vector<1x128xf32>
    %194 = vector.extract_strided_slice %162 {offsets = [6, 0], sizes = [1, 16], strides = [1, 1]} : vector<25x128xf32> to vector<1x16xf32>
    %c6_157 = arith.constant 6 : index
    %c0_158 = arith.constant 0 : index
    %c0_159 = arith.constant 0 : index
    %195 = vector.load %arg7[%c6_157, %c0_158, %c0_159] : memref<25x16x128xf32, #tpu.memory_space<vmem>>, vector<1x16x128xf32>
    %196 = vector.shape_cast %195 : vector<1x16x128xf32> to vector<16x128xf32>
    %cst_160 = arith.constant dense<0.000000e+00> : vector<1x128xf32>
    %197 = tpu.matmul %194, %196, %cst_160 {dimension_numbers = #tpu.dot_dimension_numbers<[1], [0], [0], [1], [0, 0, 1, 1], [], []>} : vector<1x16xf32>, vector<16x128xf32>, vector<1x128xf32> -> vector<1x128xf32>
    %198 = arith.addf %193, %197 : vector<1x128xf32>
    %199 = vector.extract_strided_slice %162 {offsets = [7, 0], sizes = [1, 16], strides = [1, 1]} : vector<25x128xf32> to vector<1x16xf32>
    %c7_161 = arith.constant 7 : index
    %c0_162 = arith.constant 0 : index
    %c0_163 = arith.constant 0 : index
    %200 = vector.load %arg7[%c7_161, %c0_162, %c0_163] : memref<25x16x128xf32, #tpu.memory_space<vmem>>, vector<1x16x128xf32>
    %201 = vector.shape_cast %200 : vector<1x16x128xf32> to vector<16x128xf32>
    %cst_164 = arith.constant dense<0.000000e+00> : vector<1x128xf32>
    %202 = tpu.matmul %199, %201, %cst_164 {dimension_numbers = #tpu.dot_dimension_numbers<[1], [0], [0], [1], [0, 0, 1, 1], [], []>} : vector<1x16xf32>, vector<16x128xf32>, vector<1x128xf32> -> vector<1x128xf32>
    %203 = arith.addf %198, %202 : vector<1x128xf32>
    %204 = vector.extract_strided_slice %162 {offsets = [8, 0], sizes = [1, 16], strides = [1, 1]} : vector<25x128xf32> to vector<1x16xf32>
    %c8_165 = arith.constant 8 : index
    %c0_166 = arith.constant 0 : index
    %c0_167 = arith.constant 0 : index
    %205 = vector.load %arg7[%c8_165, %c0_166, %c0_167] : memref<25x16x128xf32, #tpu.memory_space<vmem>>, vector<1x16x128xf32>
    %206 = vector.shape_cast %205 : vector<1x16x128xf32> to vector<16x128xf32>
    %cst_168 = arith.constant dense<0.000000e+00> : vector<1x128xf32>
    %207 = tpu.matmul %204, %206, %cst_168 {dimension_numbers = #tpu.dot_dimension_numbers<[1], [0], [0], [1], [0, 0, 1, 1], [], []>} : vector<1x16xf32>, vector<16x128xf32>, vector<1x128xf32> -> vector<1x128xf32>
    %208 = arith.addf %203, %207 : vector<1x128xf32>
    %209 = vector.extract_strided_slice %162 {offsets = [9, 0], sizes = [1, 16], strides = [1, 1]} : vector<25x128xf32> to vector<1x16xf32>
    %c9_169 = arith.constant 9 : index
    %c0_170 = arith.constant 0 : index
    %c0_171 = arith.constant 0 : index
    %210 = vector.load %arg7[%c9_169, %c0_170, %c0_171] : memref<25x16x128xf32, #tpu.memory_space<vmem>>, vector<1x16x128xf32>
    %211 = vector.shape_cast %210 : vector<1x16x128xf32> to vector<16x128xf32>
    %cst_172 = arith.constant dense<0.000000e+00> : vector<1x128xf32>
    %212 = tpu.matmul %209, %211, %cst_172 {dimension_numbers = #tpu.dot_dimension_numbers<[1], [0], [0], [1], [0, 0, 1, 1], [], []>} : vector<1x16xf32>, vector<16x128xf32>, vector<1x128xf32> -> vector<1x128xf32>
    %213 = arith.addf %208, %212 : vector<1x128xf32>
    %214 = vector.extract_strided_slice %162 {offsets = [10, 0], sizes = [1, 16], strides = [1, 1]} : vector<25x128xf32> to vector<1x16xf32>
    %c10_173 = arith.constant 10 : index
    %c0_174 = arith.constant 0 : index
    %c0_175 = arith.constant 0 : index
    %215 = vector.load %arg7[%c10_173, %c0_174, %c0_175] : memref<25x16x128xf32, #tpu.memory_space<vmem>>, vector<1x16x128xf32>
    %216 = vector.shape_cast %215 : vector<1x16x128xf32> to vector<16x128xf32>
    %cst_176 = arith.constant dense<0.000000e+00> : vector<1x128xf32>
    %217 = tpu.matmul %214, %216, %cst_176 {dimension_numbers = #tpu.dot_dimension_numbers<[1], [0], [0], [1], [0, 0, 1, 1], [], []>} : vector<1x16xf32>, vector<16x128xf32>, vector<1x128xf32> -> vector<1x128xf32>
    %218 = arith.addf %213, %217 : vector<1x128xf32>
    %219 = vector.extract_strided_slice %162 {offsets = [11, 0], sizes = [1, 16], strides = [1, 1]} : vector<25x128xf32> to vector<1x16xf32>
    %c11_177 = arith.constant 11 : index
    %c0_178 = arith.constant 0 : index
    %c0_179 = arith.constant 0 : index
    %220 = vector.load %arg7[%c11_177, %c0_178, %c0_179] : memref<25x16x128xf32, #tpu.memory_space<vmem>>, vector<1x16x128xf32>
    %221 = vector.shape_cast %220 : vector<1x16x128xf32> to vector<16x128xf32>
    %cst_180 = arith.constant dense<0.000000e+00> : vector<1x128xf32>
    %222 = tpu.matmul %219, %221, %cst_180 {dimension_numbers = #tpu.dot_dimension_numbers<[1], [0], [0], [1], [0, 0, 1, 1], [], []>} : vector<1x16xf32>, vector<16x128xf32>, vector<1x128xf32> -> vector<1x128xf32>
    %223 = arith.addf %218, %222 : vector<1x128xf32>
    %224 = vector.extract_strided_slice %162 {offsets = [12, 0], sizes = [1, 16], strides = [1, 1]} : vector<25x128xf32> to vector<1x16xf32>
    %c12_181 = arith.constant 12 : index
    %c0_182 = arith.constant 0 : index
    %c0_183 = arith.constant 0 : index
    %225 = vector.load %arg7[%c12_181, %c0_182, %c0_183] : memref<25x16x128xf32, #tpu.memory_space<vmem>>, vector<1x16x128xf32>
    %226 = vector.shape_cast %225 : vector<1x16x128xf32> to vector<16x128xf32>
    %cst_184 = arith.constant dense<0.000000e+00> : vector<1x128xf32>
    %227 = tpu.matmul %224, %226, %cst_184 {dimension_numbers = #tpu.dot_dimension_numbers<[1], [0], [0], [1], [0, 0, 1, 1], [], []>} : vector<1x16xf32>, vector<16x128xf32>, vector<1x128xf32> -> vector<1x128xf32>
    %228 = arith.addf %223, %227 : vector<1x128xf32>
    %229 = vector.extract_strided_slice %162 {offsets = [13, 0], sizes = [1, 16], strides = [1, 1]} : vector<25x128xf32> to vector<1x16xf32>
    %c13_185 = arith.constant 13 : index
    %c0_186 = arith.constant 0 : index
    %c0_187 = arith.constant 0 : index
    %230 = vector.load %arg7[%c13_185, %c0_186, %c0_187] : memref<25x16x128xf32, #tpu.memory_space<vmem>>, vector<1x16x128xf32>
    %231 = vector.shape_cast %230 : vector<1x16x128xf32> to vector<16x128xf32>
    %cst_188 = arith.constant dense<0.000000e+00> : vector<1x128xf32>
    %232 = tpu.matmul %229, %231, %cst_188 {dimension_numbers = #tpu.dot_dimension_numbers<[1], [0], [0], [1], [0, 0, 1, 1], [], []>} : vector<1x16xf32>, vector<16x128xf32>, vector<1x128xf32> -> vector<1x128xf32>
    %233 = arith.addf %228, %232 : vector<1x128xf32>
    %234 = vector.extract_strided_slice %162 {offsets = [14, 0], sizes = [1, 16], strides = [1, 1]} : vector<25x128xf32> to vector<1x16xf32>
    %c14_189 = arith.constant 14 : index
    %c0_190 = arith.constant 0 : index
    %c0_191 = arith.constant 0 : index
    %235 = vector.load %arg7[%c14_189, %c0_190, %c0_191] : memref<25x16x128xf32, #tpu.memory_space<vmem>>, vector<1x16x128xf32>
    %236 = vector.shape_cast %235 : vector<1x16x128xf32> to vector<16x128xf32>
    %cst_192 = arith.constant dense<0.000000e+00> : vector<1x128xf32>
    %237 = tpu.matmul %234, %236, %cst_192 {dimension_numbers = #tpu.dot_dimension_numbers<[1], [0], [0], [1], [0, 0, 1, 1], [], []>} : vector<1x16xf32>, vector<16x128xf32>, vector<1x128xf32> -> vector<1x128xf32>
    %238 = arith.addf %233, %237 : vector<1x128xf32>
    %239 = vector.extract_strided_slice %162 {offsets = [15, 0], sizes = [1, 16], strides = [1, 1]} : vector<25x128xf32> to vector<1x16xf32>
    %c15_193 = arith.constant 15 : index
    %c0_194 = arith.constant 0 : index
    %c0_195 = arith.constant 0 : index
    %240 = vector.load %arg7[%c15_193, %c0_194, %c0_195] : memref<25x16x128xf32, #tpu.memory_space<vmem>>, vector<1x16x128xf32>
    %241 = vector.shape_cast %240 : vector<1x16x128xf32> to vector<16x128xf32>
    %cst_196 = arith.constant dense<0.000000e+00> : vector<1x128xf32>
    %242 = tpu.matmul %239, %241, %cst_196 {dimension_numbers = #tpu.dot_dimension_numbers<[1], [0], [0], [1], [0, 0, 1, 1], [], []>} : vector<1x16xf32>, vector<16x128xf32>, vector<1x128xf32> -> vector<1x128xf32>
    %243 = arith.addf %238, %242 : vector<1x128xf32>
    %244 = vector.extract_strided_slice %162 {offsets = [16, 0], sizes = [1, 16], strides = [1, 1]} : vector<25x128xf32> to vector<1x16xf32>
    %c16_197 = arith.constant 16 : index
    %c0_198 = arith.constant 0 : index
    %c0_199 = arith.constant 0 : index
    %245 = vector.load %arg7[%c16_197, %c0_198, %c0_199] : memref<25x16x128xf32, #tpu.memory_space<vmem>>, vector<1x16x128xf32>
    %246 = vector.shape_cast %245 : vector<1x16x128xf32> to vector<16x128xf32>
    %cst_200 = arith.constant dense<0.000000e+00> : vector<1x128xf32>
    %247 = tpu.matmul %244, %246, %cst_200 {dimension_numbers = #tpu.dot_dimension_numbers<[1], [0], [0], [1], [0, 0, 1, 1], [], []>} : vector<1x16xf32>, vector<16x128xf32>, vector<1x128xf32> -> vector<1x128xf32>
    %248 = arith.addf %243, %247 : vector<1x128xf32>
    %249 = vector.extract_strided_slice %162 {offsets = [17, 0], sizes = [1, 16], strides = [1, 1]} : vector<25x128xf32> to vector<1x16xf32>
    %c17_201 = arith.constant 17 : index
    %c0_202 = arith.constant 0 : index
    %c0_203 = arith.constant 0 : index
    %250 = vector.load %arg7[%c17_201, %c0_202, %c0_203] : memref<25x16x128xf32, #tpu.memory_space<vmem>>, vector<1x16x128xf32>
    %251 = vector.shape_cast %250 : vector<1x16x128xf32> to vector<16x128xf32>
    %cst_204 = arith.constant dense<0.000000e+00> : vector<1x128xf32>
    %252 = tpu.matmul %249, %251, %cst_204 {dimension_numbers = #tpu.dot_dimension_numbers<[1], [0], [0], [1], [0, 0, 1, 1], [], []>} : vector<1x16xf32>, vector<16x128xf32>, vector<1x128xf32> -> vector<1x128xf32>
    %253 = arith.addf %248, %252 : vector<1x128xf32>
    %254 = vector.extract_strided_slice %162 {offsets = [18, 0], sizes = [1, 16], strides = [1, 1]} : vector<25x128xf32> to vector<1x16xf32>
    %c18_205 = arith.constant 18 : index
    %c0_206 = arith.constant 0 : index
    %c0_207 = arith.constant 0 : index
    %255 = vector.load %arg7[%c18_205, %c0_206, %c0_207] : memref<25x16x128xf32, #tpu.memory_space<vmem>>, vector<1x16x128xf32>
    %256 = vector.shape_cast %255 : vector<1x16x128xf32> to vector<16x128xf32>
    %cst_208 = arith.constant dense<0.000000e+00> : vector<1x128xf32>
    %257 = tpu.matmul %254, %256, %cst_208 {dimension_numbers = #tpu.dot_dimension_numbers<[1], [0], [0], [1], [0, 0, 1, 1], [], []>} : vector<1x16xf32>, vector<16x128xf32>, vector<1x128xf32> -> vector<1x128xf32>
    %258 = arith.addf %253, %257 : vector<1x128xf32>
    %259 = vector.extract_strided_slice %162 {offsets = [19, 0], sizes = [1, 16], strides = [1, 1]} : vector<25x128xf32> to vector<1x16xf32>
    %c19_209 = arith.constant 19 : index
    %c0_210 = arith.constant 0 : index
    %c0_211 = arith.constant 0 : index
    %260 = vector.load %arg7[%c19_209, %c0_210, %c0_211] : memref<25x16x128xf32, #tpu.memory_space<vmem>>, vector<1x16x128xf32>
    %261 = vector.shape_cast %260 : vector<1x16x128xf32> to vector<16x128xf32>
    %cst_212 = arith.constant dense<0.000000e+00> : vector<1x128xf32>
    %262 = tpu.matmul %259, %261, %cst_212 {dimension_numbers = #tpu.dot_dimension_numbers<[1], [0], [0], [1], [0, 0, 1, 1], [], []>} : vector<1x16xf32>, vector<16x128xf32>, vector<1x128xf32> -> vector<1x128xf32>
    %263 = arith.addf %258, %262 : vector<1x128xf32>
    %264 = vector.extract_strided_slice %162 {offsets = [20, 0], sizes = [1, 16], strides = [1, 1]} : vector<25x128xf32> to vector<1x16xf32>
    %c20_213 = arith.constant 20 : index
    %c0_214 = arith.constant 0 : index
    %c0_215 = arith.constant 0 : index
    %265 = vector.load %arg7[%c20_213, %c0_214, %c0_215] : memref<25x16x128xf32, #tpu.memory_space<vmem>>, vector<1x16x128xf32>
    %266 = vector.shape_cast %265 : vector<1x16x128xf32> to vector<16x128xf32>
    %cst_216 = arith.constant dense<0.000000e+00> : vector<1x128xf32>
    %267 = tpu.matmul %264, %266, %cst_216 {dimension_numbers = #tpu.dot_dimension_numbers<[1], [0], [0], [1], [0, 0, 1, 1], [], []>} : vector<1x16xf32>, vector<16x128xf32>, vector<1x128xf32> -> vector<1x128xf32>
    %268 = arith.addf %263, %267 : vector<1x128xf32>
    %269 = vector.extract_strided_slice %162 {offsets = [21, 0], sizes = [1, 16], strides = [1, 1]} : vector<25x128xf32> to vector<1x16xf32>
    %c21_217 = arith.constant 21 : index
    %c0_218 = arith.constant 0 : index
    %c0_219 = arith.constant 0 : index
    %270 = vector.load %arg7[%c21_217, %c0_218, %c0_219] : memref<25x16x128xf32, #tpu.memory_space<vmem>>, vector<1x16x128xf32>
    %271 = vector.shape_cast %270 : vector<1x16x128xf32> to vector<16x128xf32>
    %cst_220 = arith.constant dense<0.000000e+00> : vector<1x128xf32>
    %272 = tpu.matmul %269, %271, %cst_220 {dimension_numbers = #tpu.dot_dimension_numbers<[1], [0], [0], [1], [0, 0, 1, 1], [], []>} : vector<1x16xf32>, vector<16x128xf32>, vector<1x128xf32> -> vector<1x128xf32>
    %273 = arith.addf %268, %272 : vector<1x128xf32>
    %274 = vector.extract_strided_slice %162 {offsets = [22, 0], sizes = [1, 16], strides = [1, 1]} : vector<25x128xf32> to vector<1x16xf32>
    %c22_221 = arith.constant 22 : index
    %c0_222 = arith.constant 0 : index
    %c0_223 = arith.constant 0 : index
    %275 = vector.load %arg7[%c22_221, %c0_222, %c0_223] : memref<25x16x128xf32, #tpu.memory_space<vmem>>, vector<1x16x128xf32>
    %276 = vector.shape_cast %275 : vector<1x16x128xf32> to vector<16x128xf32>
    %cst_224 = arith.constant dense<0.000000e+00> : vector<1x128xf32>
    %277 = tpu.matmul %274, %276, %cst_224 {dimension_numbers = #tpu.dot_dimension_numbers<[1], [0], [0], [1], [0, 0, 1, 1], [], []>} : vector<1x16xf32>, vector<16x128xf32>, vector<1x128xf32> -> vector<1x128xf32>
    %278 = arith.addf %273, %277 : vector<1x128xf32>
    %279 = vector.extract_strided_slice %162 {offsets = [23, 0], sizes = [1, 16], strides = [1, 1]} : vector<25x128xf32> to vector<1x16xf32>
    %c23_225 = arith.constant 23 : index
    %c0_226 = arith.constant 0 : index
    %c0_227 = arith.constant 0 : index
    %280 = vector.load %arg7[%c23_225, %c0_226, %c0_227] : memref<25x16x128xf32, #tpu.memory_space<vmem>>, vector<1x16x128xf32>
    %281 = vector.shape_cast %280 : vector<1x16x128xf32> to vector<16x128xf32>
    %cst_228 = arith.constant dense<0.000000e+00> : vector<1x128xf32>
    %282 = tpu.matmul %279, %281, %cst_228 {dimension_numbers = #tpu.dot_dimension_numbers<[1], [0], [0], [1], [0, 0, 1, 1], [], []>} : vector<1x16xf32>, vector<16x128xf32>, vector<1x128xf32> -> vector<1x128xf32>
    %283 = arith.addf %278, %282 : vector<1x128xf32>
    %284 = vector.extract_strided_slice %162 {offsets = [24, 0], sizes = [1, 16], strides = [1, 1]} : vector<25x128xf32> to vector<1x16xf32>
    %c24_229 = arith.constant 24 : index
    %c0_230 = arith.constant 0 : index
    %c0_231 = arith.constant 0 : index
    %285 = vector.load %arg7[%c24_229, %c0_230, %c0_231] : memref<25x16x128xf32, #tpu.memory_space<vmem>>, vector<1x16x128xf32>
    %286 = vector.shape_cast %285 : vector<1x16x128xf32> to vector<16x128xf32>
    %cst_232 = arith.constant dense<0.000000e+00> : vector<1x128xf32>
    %287 = tpu.matmul %284, %286, %cst_232 {dimension_numbers = #tpu.dot_dimension_numbers<[1], [0], [0], [1], [0, 0, 1, 1], [], []>} : vector<1x16xf32>, vector<16x128xf32>, vector<1x128xf32> -> vector<1x128xf32>
    %288 = arith.addf %283, %287 : vector<1x128xf32>
    %c0_233 = arith.constant 0 : index
    %c0_234 = arith.constant 0 : index
    %289 = vector.load %arg8[%c0_233, %c0_234] : memref<1x128xf32, #tpu.memory_space<vmem>>, vector<1x128xf32>
    %290 = arith.addf %288, %289 : vector<1x128xf32>
    %291 = vector.shape_cast %290 : vector<1x128xf32> to vector<1x128xf32>
    %292 = vector.broadcast %291 : vector<1x128xf32> to vector<8x128xf32>
    %c0_235 = arith.constant 0 : index
    %c0_236 = arith.constant 0 : index
    %c0_237 = arith.constant 0 : index
    %293 = vector.load %arg9[%c0_235, %c0_236, %c0_237] : memref<1x8x128xf32, #tpu.memory_space<vmem>>, vector<1x8x128xf32>
    %294 = vector.shape_cast %293 : vector<1x8x128xf32> to vector<8x128xf32>
    %295 = vector.shape_cast %292 : vector<8x128xf32> to vector<1x8x128xf32>
    tpu.vector_store %arg9[%c0_235, %c0_236, %c0_237], %295 {strides = array<i32>} : memref<1x8x128xf32, #tpu.memory_space<vmem>>, vector<1x8x128xf32>,
    return
  }
  func.func @transform_0(%arg0: i32) -> (i32, i32, i32) {
    %c0_i32 = arith.constant 0 : i32
    %c0_i32_0 = arith.constant 0 : i32
    %c0_i32_1 = arith.constant 0 : i32
    return %arg0, %c0_i32, %c0_i32_0 : i32, i32, i32
  }
  func.func @transform_1(%arg0: i32) -> (i32, i32) {
    %c0_i32 = arith.constant 0 : i32
    %c0_i32_0 = arith.constant 0 : i32
    %c0_i32_1 = arith.constant 0 : i32
    return %c0_i32, %c0_i32_0 : i32, i32
  }
  func.func @transform_2(%arg0: i32) -> (i32, i32) {
    %c0_i32 = arith.constant 0 : i32
    %c0_i32_0 = arith.constant 0 : i32
    %c0_i32_1 = arith.constant 0 : i32
    return %c0_i32, %c0_i32_0 : i32, i32
  }
  func.func @transform_3(%arg0: i32) -> (i32, i32, i32) {
    %c0_i32 = arith.constant 0 : i32
    %c0_i32_0 = arith.constant 0 : i32
    %c0_i32_1 = arith.constant 0 : i32
    %c0_i32_2 = arith.constant 0 : i32
    return %c0_i32, %c0_i32_0, %c0_i32_1 : i32, i32, i32
  }
  func.func @transform_4(%arg0: i32) -> (i32, i32) {
    %c0_i32 = arith.constant 0 : i32
    %c0_i32_0 = arith.constant 0 : i32
    %c0_i32_1 = arith.constant 0 : i32
    return %c0_i32, %c0_i32_0 : i32, i32
  }
  func.func @transform_5(%arg0: i32) -> (i32, i32) {
    %c0_i32 = arith.constant 0 : i32
    %c0_i32_0 = arith.constant 0 : i32
    %c0_i32_1 = arith.constant 0 : i32
    return %c0_i32, %c0_i32_0 : i32, i32
  }
  func.func @transform_6(%arg0: i32) -> (i32, i32, i32) {
    %c0_i32 = arith.constant 0 : i32
    %c0_i32_0 = arith.constant 0 : i32
    %c0_i32_1 = arith.constant 0 : i32
    %c0_i32_2 = arith.constant 0 : i32
    return %c0_i32, %c0_i32_0, %c0_i32_1 : i32, i32, i32
  }
  func.func @transform_7(%arg0: i32) -> (i32, i32) {
    %c0_i32 = arith.constant 0 : i32
    %c0_i32_0 = arith.constant 0 : i32
    %c0_i32_1 = arith.constant 0 : i32
    return %c0_i32, %c0_i32_0 : i32, i32
  }
  func.func @transform_8(%arg0: i32) -> (i32, i32, i32) {
    %c0_i32 = arith.constant 0 : i32
    %c0_i32_0 = arith.constant 0 : i32
    %c0_i32_1 = arith.constant 0 : i32
    return %arg0, %c0_i32, %c0_i32_0 : i32, i32, i32
  }
}

</mosaic_0001>

<bundles_post_ra>
// kernel: lenet5_forward.1
= control target key start
LH: loop header
LB: loop body
LE: loop exit
PB: predicated region body
PF: predicated region fallthrough
CT: control target
= control target key end

     0   :  { %s13211_s27 = smov 0   ;;  %s16886_s0 = inlined_call_operand.vmem [shape: f32[2,800,32], index: 0, kind: input, shape index: {}]   ;;  %s16887_s1 = inlined_call_operand.vmem [shape: f32[32,128], index: 1, kind: input, shape index: {}]   ;;  %s16888_s2 = inlined_call_operand.vmem [shape: f32[1,128], index: 2, kind: input, shape index: {}]   ;;  %s16889_s3 = inlined_call_operand.vmem [shape: f32[25,8,128], index: 3, kind: input, shape index: {}]   ;;  %s16890_s4 = inlined_call_operand.vmem [shape: f32[1,128], index: 4, kind: input, shape index: {}]   ;;  %s16891_s5 = inlined_call_operand.vmem [shape: f32[25,136], index: 5, kind: input, shape index: {}]   ;;  %s16892_s6 = inlined_call_operand.vmem [shape: f32[25,16,128], index: 6, kind: input, shape index: {}]   ;;  %s16893_s7 = inlined_call_operand.vmem [shape: f32[1,128], index: 7, kind: input, shape index: {}]   ;;  %s16894_s8 = inlined_call_operand.vmem [shape: f32[2,8,128], index: 8, kind: output, shape index: {}]  }
   0x1 LB: > { %s9877_s28 = sadd.s32 4294967295, %s13161_s27   ;;  %p9881_p0 = scmp.ge.s32.totalorder %s13161_s27, 1  ;;  %s13161_s27 = sphi %s13211_s27, %s18_s27  }
   0x2   : > { %p262_p1 = scmp.lt.s32.totalorder %s13161_s27, 3 }
   0x4   : > { %p263_p2 = pnand %p9881_p0, %p262_p1 }
   0x6   : > { %266 = sbr.rel (%p263_p2) target bundleno = 2093 (0x82d), region = 52 }
   0xd   : > { %v404_v0 = vld [vmem:[%s16887_s1] sm:$0xff]  ;;  %v405_v1 = vld [vmem:[%s16887_s1 + $0x8] sm:$0xff]  ;;  %v406_v2 = vld [vmem:[%s16887_s1 + $0x10] sm:$0xff]  ;;  %p295_p3 = scmp.lt.s32.totalorder %s9877_s28, 1  ;;  %vm415_vm0 = vcmask 261120   ;;  %vm13164_vm1 = vmmov 0  }
   0xe   : > { %v12801_v3 = vpack.c.bf16 %v405_v1, %v404_v0  ;;  %v407_v4 = vld [vmem:[%s16887_s1 + $0x18] sm:$0xff]  ;;  %vm1781_vm2 = vcmask 64512   ;;  %vm7901_vm3 = vcmask 130048  }
   0xf   : > { %v12805_v5 = vpack.c.bf16 %v407_v4, %v406_v2  ;;  %s17009_s28 = smov (!%p295_p3, %s9877_s28), 1 }
  0x10   : > { %12802 = vmatprep.subr.bf16.mxu0 %v12801_v3  ;;  %s12908_s15 = smul.u32 800, %s17009_s28  ;;  %s9883_s13 = sshll.u32 %s17009_s28, 3 }
  0x11   : > { %12804 = vmatpush3.bf16.msra.mxu0 %v12801_v3  ;;  %s303_s16 = scalar_lea.vmem %s16894_s8, %s9883_s13 }
  0x12   : > { %12806 = vmatprep.subr.bf16.mxu0 %v12805_v5  ;;  %s13237_s18 = scalar_lea.vmem %s16886_s0, %s12908_s15 }
  0x13   : > { %v304_v6 = vld [vmem:[%s13237_s18] sm:$0xff]  ;;  %v305_v7 = vld [vmem:[%s13237_s18 + $0x8] sm:$0xff]  ;;  %v306_v8 = vld [vmem:[%s13237_s18 + $0x10] sm:$0xff] }
  0x14   : > { %11151 = vmatprep.mubr.msk.f32.mxu0 %vm415_vm0, %v304_v6  ;;  %v307_v9 = vld [vmem:[%s13237_s18 + $0x18] sm:$0xff]  ;;  %v308_v10 = vld [vmem:[%s13237_s18 + $0x20] sm:$0xff]  ;;  %v309_v11 = vld [vmem:[%s13237_s18 + $0x28] sm:$0xff] }
  0x15   : > { %12808 = vmatpush3.bf16.msra.mxu0 %v12805_v5  ;;  %v310_v12 = vld [vmem:[%s13237_s18 + $0x30] sm:$0xff]  ;;  %v311_v13 = vld [vmem:[%s13237_s18 + $0x38] sm:$0xff]  ;;  %v312_v14 = vld [vmem:[%s13237_s18 + $0x40] sm:$0xff] }
  0x16   : > { %v313_v15 = vld [vmem:[%s13237_s18 + $0x48] sm:$0xff]  ;;  %v314_v16 = vld [vmem:[%s13237_s18 + $0x50] sm:$0xff]  ;;  %v315_v17 = vld [vmem:[%s13237_s18 + $0x58] sm:$0xff] }
  0x17   : > { %v316_v18 = vld [vmem:[%s13237_s18 + $0x60] sm:$0xff]  ;;  %v317_v19 = vld [vmem:[%s13237_s18 + $0x68] sm:$0xff]  ;;  %v318_v20 = vld [vmem:[%s13237_s18 + $0x70] sm:$0xff] }
  0x18   : > { %11152 = vmatmul.mubr.msk.f32.vlgmr.msra.gmra.mrb[0].mxu0 %vm415_vm0, %v305_v7  ;;  %v319_v21 = vld [vmem:[%s13237_s18 + $0x78] sm:$0xff]  ;;  %v320_v22 = vld [vmem:[%s13237_s18 + $0x80] sm:$0xff]  ;;  %v321_v23 = vld [vmem:[%s13237_s18 + $0x88] sm:$0xff] }
  0x19   : > { %11154 = vmatprep.mubr.msk.f32.mxu0 %vm415_vm0, %v306_v8  ;;  %v322_v24 = vld [vmem:[%s13237_s18 + $0x90] sm:$0xff]  ;;  %v323_v25 = vld [vmem:[%s13237_s18 + $0x98] sm:$0xff]  ;;  %v324_v26 = vld [vmem:[%s13237_s18 + $0xa0] sm:$0xff] }
  0x1a   : > { %v325_v27 = vld [vmem:[%s13237_s18 + $0xa8] sm:$0xff]  ;;  %v326_v28 = vld [vmem:[%s13237_s18 + $0xb0] sm:$0xff]  ;;  %v327_v29 = vld [vmem:[%s13237_s18 + $0xb8] sm:$0xff] }
  0x1b   : > { %v328_v30 = vld [vmem:[%s13237_s18 + $0xc0] sm:$0xff]  ;;  %v329_v31 = vld [vmem:[%s13237_s18 + $0xc8] sm:$0xff]  ;;  %v330_v32 = vld [vmem:[%s13237_s18 + $0xd0] sm:$0xff] }
  0x1c   : > { %11155 = vmatmul.mubr.msk.f32.gmra.mrb[2].mxu0 %vm415_vm0, %v307_v9  ;;  %v331_v33 = vld [vmem:[%s13237_s18 + $0xd8] sm:$0xff]  ;;  %v332_v34 = vld [vmem:[%s13237_s18 + $0xe0] sm:$0xff]  ;;  %v333_v35 = vld [vmem:[%s13237_s18 + $0xe8] sm:$0xff] }
  0x1d   : > { %11157 = vmatprep.mubr.msk.f32.mxu0 %vm415_vm0, %v308_v10  ;;  %v334_v36 = vld [vmem:[%s13237_s18 + $0xf0] sm:$0xff]  ;;  %v335_v37 = vld [vmem:[%s13237_s18 + $0xf8] sm:$0xff]  ;;  %v336_v38 = vld [vmem:[%s13237_s18 + $0x100] sm:$0xff] }
  0x1e   : > { %v337_v39 = vld [vmem:[%s13237_s18 + $0x108] sm:$0xff]  ;;  %v338_v40 = vld [vmem:[%s13237_s18 + $0x110] sm:$0xff]  ;;  %v339_v41 = vld [vmem:[%s13237_s18 + $0x118] sm:$0xff] }
  0x1f   : > { %v340_v42 = vld [vmem:[%s13237_s18 + $0x120] sm:$0xff]  ;;  %v341_v43 = vld [vmem:[%s13237_s18 + $0x128] sm:$0xff]  ;;  %v342_v44 = vld [vmem:[%s13237_s18 + $0x130] sm:$0xff] }
  0x20   : > { %11158 = vmatmul.mubr.msk.f32.gmra.mrb[4].mxu0 %vm415_vm0, %v309_v11  ;;  %v343_v45 = vld [vmem:[%s13237_s18 + $0x138] sm:$0xff]  ;;  %v344_v46 = vld [vmem:[%s13237_s18 + $0x140] sm:$0xff]  ;;  %v345_v47 = vld [vmem:[%s13237_s18 + $0x148] sm:$0xff] }
  0x21   : > { %11160 = vmatprep.mubr.msk.f32.mxu0 %vm415_vm0, %v310_v12  ;;  %v346_v48 = vld [vmem:[%s13237_s18 + $0x150] sm:$0xff]  ;;  %v347_v49 = vld [vmem:[%s13237_s18 + $0x158] sm:$0xff]  ;;  %v348_v50 = vld [vmem:[%s13237_s18 + $0x160] sm:$0xff] }
  0x22   : > { %v349_v51 = vld [vmem:[%s13237_s18 + $0x168] sm:$0xff]  ;;  %v350_v52 = vld [vmem:[%s13237_s18 + $0x170] sm:$0xff]  ;;  %v351_v53 = vld [vmem:[%s13237_s18 + $0x178] sm:$0xff] }
  0x23   : > { %v352_v54 = vld [vmem:[%s13237_s18 + $0x180] sm:$0xff]  ;;  %v353_v55 = vld [vmem:[%s13237_s18 + $0x188] sm:$0xff]  ;;  %v354_v56 = vld [vmem:[%s13237_s18 + $0x190] sm:$0xff] }
  0x24   : > { %11161 = vmatmul.mubr.msk.f32.gmra.mrb[6].mxu0 %vm415_vm0, %v311_v13  ;;  %v355_v57 = vld [vmem:[%s13237_s18 + $0x198] sm:$0xff]  ;;  %v356_v58 = vld [vmem:[%s13237_s18 + $0x1a0] sm:$0xff]  ;;  %v357_v59 = vld [vmem:[%s13237_s18 + $0x1a8] sm:$0xff] }
  0x25   : > { %11163 = vmatprep.mubr.msk.f32.mxu0 %vm415_vm0, %v312_v14  ;;  %v358_v60 = vld [vmem:[%s13237_s18 + $0x1b0] sm:$0xff]  ;;  %v359_v61 = vld [vmem:[%s13237_s18 + $0x1b8] sm:$0xff]  ;;  %v360_v62 = vld [vmem:[%s13237_s18 + $0x1c0] sm:$0xff] }
  0x26   : > { %v361_v63 = vld [vmem:[%s13237_s18 + $0x1c8] sm:$0xff]  ;;  %v362_v0 = vld [vmem:[%s13237_s18 + $0x1d0] sm:$0xff]  ;;  %v363_v1 = vld [vmem:[%s13237_s18 + $0x1d8] sm:$0xff] }
  0x27   : > { %v364_v2 = vld [vmem:[%s13237_s18 + $0x1e0] sm:$0xff]  ;;  %v365_v3 = vld [vmem:[%s13237_s18 + $0x1e8] sm:$0xff]  ;;  %v366_v4 = vld [vmem:[%s13237_s18 + $0x1f0] sm:$0xff] }
  0x28   : > { %11164 = vmatmul.mubr.msk.f32.gmra.mrb[8].mxu0 %vm415_vm0, %v313_v15  ;;  %v367_v5 = vld [vmem:[%s13237_s18 + $0x1f8] sm:$0xff]  ;;  %v368_v6 = vld [vmem:[%s13237_s18 + $0x200] sm:$0xff]  ;;  %v369_v7 = vld [vmem:[%s13237_s18 + $0x208] sm:$0xff] }
  0x29   : > { %11166 = vmatprep.mubr.msk.f32.mxu0 %vm415_vm0, %v314_v16  ;;  %v370_v8 = vld [vmem:[%s13237_s18 + $0x210] sm:$0xff]  ;;  %v371_v9 = vld [vmem:[%s13237_s18 + $0x218] sm:$0xff]  ;;  %v372_v10 = vld [vmem:[%s13237_s18 + $0x220] sm:$0xff] }
  0x2a   : > { %v373_v11 = vld [vmem:[%s13237_s18 + $0x228] sm:$0xff]  ;;  %v374_v12 = vld [vmem:[%s13237_s18 + $0x230] sm:$0xff]  ;;  %v375_v13 = vld [vmem:[%s13237_s18 + $0x238] sm:$0xff] }
  0x2b   : > { %v376_v14 = vld [vmem:[%s13237_s18 + $0x240] sm:$0xff]  ;;  %v377_v15 = vld [vmem:[%s13237_s18 + $0x248] sm:$0xff]  ;;  %v378_v16 = vld [vmem:[%s13237_s18 + $0x250] sm:$0xff] }
  0x2c   : > { %11167 = vmatmul.mubr.msk.f32.gmra.mrb[10].mxu0 %vm415_vm0, %v315_v17  ;;  %v379_v17 = vld [vmem:[%s13237_s18 + $0x258] sm:$0xff] }
  0x2d   : > { %11169 = vmatprep.mubr.msk.f32.mxu0 %vm415_vm0, %v316_v18  ;;  %v380_v18 = vld [vmem:[%s13237_s18 + $0x260] sm:$0xff] }
  0x30   : > { %11170 = vmatmul.mubr.msk.f32.gmra.mrb[12].mxu0 %vm415_vm0, %v317_v19  ;;  %v381_v19 = vld [vmem:[%s13237_s18 + $0x268] sm:$0xff] }
  0x31   : > { %11172 = vmatprep.mubr.msk.f32.mxu0 %vm415_vm0, %v318_v20  ;;  %v382_v20 = vld [vmem:[%s13237_s18 + $0x270] sm:$0xff] }
  0x34   : > { %11173 = vmatmul.mubr.msk.f32.gmra.mrb[14].mxu0 %vm415_vm0, %v319_v21  ;;  %v383_v21 = vld [vmem:[%s13237_s18 + $0x278] sm:$0xff] }
  0x35   : > { %11175 = vmatprep.mubr.msk.f32.mxu0 %vm415_vm0, %v320_v22  ;;  %v384_v22 = vld [vmem:[%s13237_s18 + $0x280] sm:$0xff] }
  0x38   : > { %11176 = vmatmul.mubr.msk.f32.gmra.mrb[16].mxu0 %vm415_vm0, %v321_v23  ;;  %v385_v23 = vld [vmem:[%s13237_s18 + $0x288] sm:$0xff] }
  0x39   : > { %11178 = vmatprep.mubr.msk.f32.mxu0 %vm415_vm0, %v322_v24  ;;  %v386_v24 = vld [vmem:[%s13237_s18 + $0x290] sm:$0xff] }
  0x3c   : > { %11179 = vmatmul.mubr.msk.f32.gmra.mrb[18].mxu0 %vm415_vm0, %v323_v25  ;;  %v387_v25 = vld [vmem:[%s13237_s18 + $0x298] sm:$0xff] }
  0x3d   : > { %11181 = vmatprep.mubr.msk.f32.mxu0 %vm415_vm0, %v324_v26  ;;  %v388_v26 = vld [vmem:[%s13237_s18 + $0x2a0] sm:$0xff] }
  0x40   : > { %11182 = vmatmul.mubr.msk.f32.gmra.mrb[20].mxu0 %vm415_vm0, %v325_v27  ;;  %v389_v27 = vld [vmem:[%s13237_s18 + $0x2a8] sm:$0xff] }
  0x41   : > { %11184 = vmatprep.mubr.msk.f32.mxu0 %vm415_vm0, %v326_v28  ;;  %v390_v28 = vld [vmem:[%s13237_s18 + $0x2b0] sm:$0xff] }
  0x44   : > { %11185 = vmatmul.mubr.msk.f32.gmra.mrb[22].mxu0 %vm415_vm0, %v327_v29  ;;  %v391_v29 = vld [vmem:[%s13237_s18 + $0x2b8] sm:$0xff] }
  0x45   : > { %11187 = vmatprep.mubr.msk.f32.mxu0 %vm415_vm0, %v328_v30  ;;  %v392_v30 = vld [vmem:[%s13237_s18 + $0x2c0] sm:$0xff] }
  0x48   : > { %11188 = vmatmul.mubr.msk.f32.gmra.mrb[24].mxu0 %vm415_vm0, %v329_v31  ;;  %v393_v31 = vld [vmem:[%s13237_s18 + $0x2c8] sm:$0xff] }
  0x49   : > { %11190 = vmatprep.mubr.msk.f32.mxu0 %vm415_vm0, %v330_v32  ;;  %v394_v32 = vld [vmem:[%s13237_s18 + $0x2d0] sm:$0xff] }
  0x4c   : > { %11191 = vmatmul.mubr.msk.f32.gmra.mrb[26].mxu0 %vm415_vm0, %v331_v33  ;;  %v395_v33 = vld [vmem:[%s13237_s18 + $0x2d8] sm:$0xff] }
  0x4d   : > { %11193 = vmatprep.mubr.msk.f32.mxu0 %vm415_vm0, %v332_v34  ;;  %v396_v34 = vld [vmem:[%s13237_s18 + $0x2e0] sm:$0xff] }
  0x50   : > { %11194 = vmatmul.mubr.msk.f32.gmra.mrb[28].mxu0 %vm415_vm0, %v333_v35  ;;  %v397_v35 = vld [vmem:[%s13237_s18 + $0x2e8] sm:$0xff] }
  0x51   : > { %11196 = vmatprep.mubr.msk.f32.mxu0 %vm415_vm0, %v334_v36  ;;  %v398_v36 = vld [vmem:[%s13237_s18 + $0x2f0] sm:$0xff] }
  0x54   : > { %11197 = vmatmul.mubr.msk.f32.gmra.mrb[30].mxu0 %vm415_vm0, %v335_v37  ;;  %v399_v37 = vld [vmem:[%s13237_s18 + $0x2f8] sm:$0xff] }
  0x55   : > { %11199 = vmatprep.mubr.msk.f32.mxu0 %vm415_vm0, %v336_v38  ;;  %v400_v38 = vld [vmem:[%s13237_s18 + $0x300] sm:$0xff] }
  0x58   : > { %11200 = vmatmul.mubr.msk.f32.gmra.mrb[32].mxu0 %vm415_vm0, %v337_v39  ;;  %v401_v39 = vld [vmem:[%s13237_s18 + $0x308] sm:$0xff] }
  0x59   : > { %11202 = vmatprep.mubr.msk.f32.mxu0 %vm415_vm0, %v338_v40  ;;  %v402_v40 = vld [vmem:[%s13237_s18 + $0x310] sm:$0xff] }
  0x5c   : > { %11203 = vmatmul.mubr.msk.f32.gmra.mrb[34].mxu0 %vm415_vm0, %v339_v41  ;;  %v403_v41 = vld [vmem:[%s13237_s18 + $0x318] sm:$0xff] }
  0x5d   : > { %11205 = vmatprep.mubr.msk.f32.mxu0 %vm415_vm0, %v340_v42 }
  0x60   : > { %11206 = vmatmul.mubr.msk.f32.gmra.mrb[36].mxu0 %vm415_vm0, %v341_v43 }
  0x61   : > { %11208 = vmatprep.mubr.msk.f32.mxu0 %vm415_vm0, %v342_v44 }
  0x64   : > { %11209 = vmatmul.mubr.msk.f32.gmra.mrb[38].mxu0 %vm415_vm0, %v343_v45 }
  0x65   : > { %11211 = vmatprep.mubr.msk.f32.mxu0 %vm415_vm0, %v344_v46 }
  0x68   : > { %11212 = vmatmul.mubr.msk.f32.gmra.mrb[40].mxu0 %vm415_vm0, %v345_v47 }
  0x69   : > { %11214 = vmatprep.mubr.msk.f32.mxu0 %vm415_vm0, %v346_v48 }
  0x6c   : > { %11215 = vmatmul.mubr.msk.f32.gmra.mrb[42].mxu0 %vm415_vm0, %v347_v49 }
  0x6d   : > { %11217 = vmatprep.mubr.msk.f32.mxu0 %vm415_vm0, %v348_v50 }
  0x70   : > { %11218 = vmatmul.mubr.msk.f32.gmra.mrb[44].mxu0 %vm415_vm0, %v349_v51 }
  0x71   : > { %11220 = vmatprep.mubr.msk.f32.mxu0 %vm415_vm0, %v350_v52 }
  0x74   : > { %11221 = vmatmul.mubr.msk.f32.gmra.mrb[46].mxu0 %vm415_vm0, %v351_v53 }
  0x75   : > { %11223 = vmatprep.mubr.msk.f32.mxu0 %vm415_vm0, %v352_v54  ;;  %v13442_v54 = vld [vmem:[%s16888_s2] ss:$0 sm:$0xff] }
  0x78   : > { %11224 = vmatmul.mubr.msk.f32.gmra.mrb[48].mxu0 %vm415_vm0, %v353_v55 }
  0x79   : > { %11226 = vmatprep.mubr.msk.f32.mxu0 %vm415_vm0, %v354_v56 }
  0x7c   : > { %11227 = vmatmul.mubr.msk.f32.gmra.mrb[50].mxu0 %vm415_vm0, %v355_v57 }
  0x7d   : > { %11229 = vmatprep.mubr.msk.f32.mxu0 %vm415_vm0, %v356_v58 }
  0x80   : > { %11230 = vmatmul.mubr.msk.f32.gmra.mrb[52].mxu0 %vm415_vm0, %v357_v59 }
  0x81   : > { %11232 = vmatprep.mubr.msk.f32.mxu0 %vm415_vm0, %v358_v60 }
  0x84   : > { %11233 = vmatmul.mubr.msk.f32.gmra.mrb[54].mxu0 %vm415_vm0, %v359_v61 }
  0x85   : > { %11235 = vmatprep.mubr.msk.f32.mxu0 %vm415_vm0, %v360_v62 }
  0x88   : > { %11236 = vmatmul.mubr.msk.f32.gmra.mrb[56].mxu0 %vm415_vm0, %v361_v63 }
  0x89   : > { %11238 = vmatprep.mubr.msk.f32.mxu0 %vm415_vm0, %v362_v0 }
  0x8c   : > { %11239 = vmatmul.mubr.msk.f32.gmra.mrb[58].mxu0 %vm415_vm0, %v363_v1 }
  0x8d   : > { %11241 = vmatprep.mubr.msk.f32.mxu0 %vm415_vm0, %v364_v2 }
  0x90   : > { %11242 = vmatmul.mubr.msk.f32.gmra.mrb[60].mxu0 %vm415_vm0, %v365_v3 }
  0x91   : > { %11244 = vmatprep.mubr.msk.f32.mxu0 %vm415_vm0, %v366_v4 }
  0x94   : > { %11245 = vmatmul.mubr.msk.f32.gmra.mrb[62].mxu0 %vm415_vm0, %v367_v5 }
  0x95   : > { %11247 = vmatprep.mubr.msk.f32.mxu0 %vm415_vm0, %v368_v6 }
  0x98   : > { %11248 = vmatmul.mubr.msk.f32.gmra.mrb[64].mxu0 %vm415_vm0, %v369_v7 }
  0x99   : > { %11250 = vmatprep.mubr.msk.f32.mxu0 %vm415_vm0, %v370_v8 }
  0x9c   : > { %11251 = vmatmul.mubr.msk.f32.gmra.mrb[66].mxu0 %vm415_vm0, %v371_v9 }
  0x9d   : > { %11253 = vmatprep.mubr.msk.f32.mxu0 %vm415_vm0, %v372_v10 }
  0xa0   : > { %11254 = vmatmul.mubr.msk.f32.gmra.mrb[68].mxu0 %vm415_vm0, %v373_v11 }
  0xa1   : > { %11256 = vmatprep.mubr.msk.f32.mxu0 %vm415_vm0, %v374_v12 }
  0xa4   : > { %11257 = vmatmul.mubr.msk.f32.gmra.mrb[70].mxu0 %vm415_vm0, %v375_v13 }
  0xa5   : > { %11259 = vmatprep.mubr.msk.f32.mxu0 %vm415_vm0, %v376_v14 }
  0xa8   : > { %11260 = vmatmul.mubr.msk.f32.gmra.mrb[72].mxu0 %vm415_vm0, %v377_v15 }
  0xa9   : > { %11262 = vmatprep.mubr.msk.f32.mxu0 %vm415_vm0, %v378_v16 }
  0xac   : > { %11263 = vmatmul.mubr.msk.f32.gmra.mrb[74].mxu0 %vm415_vm0, %v379_v17 }
  0xad   : > { %11265 = vmatprep.mubr.msk.f32.mxu0 %vm415_vm0, %v380_v18 }
  0xb0   : > { %11266 = vmatmul.mubr.msk.f32.gmra.mrb[76].mxu0 %vm415_vm0, %v381_v19 }
  0xb1   : > { %11268 = vmatprep.mubr.msk.f32.mxu0 %vm415_vm0, %v382_v20 }
  0xb4   : > { %11269 = vmatmul.mubr.msk.f32.gmra.mrb[78].mxu0 %vm415_vm0, %v383_v21 }
  0xb5   : > { %11271 = vmatprep.mubr.msk.f32.mxu0 %vm415_vm0, %v384_v22 }
  0xb8   : > { %11272 = vmatmul.mubr.msk.f32.gmra.mrb[80].mxu0 %vm415_vm0, %v385_v23 }
  0xb9   : > { %11274 = vmatprep.mubr.msk.f32.mxu0 %vm415_vm0, %v386_v24 }
  0xbc   : > { %11275 = vmatmul.mubr.msk.f32.gmra.mrb[82].mxu0 %vm415_vm0, %v387_v25 }
  0xbd   : > { %11277 = vmatprep.mubr.msk.f32.mxu0 %vm415_vm0, %v388_v26 }
  0xc0   : > { %11278 = vmatmul.mubr.msk.f32.gmra.mrb[84].mxu0 %vm415_vm0, %v389_v27 }
  0xc1   : > { %11280 = vmatprep.mubr.msk.f32.mxu0 %vm415_vm0, %v390_v28 }
  0xc4   : > { %11281 = vmatmul.mubr.msk.f32.gmra.mrb[86].mxu0 %vm415_vm0, %v391_v29 }
  0xc5   : > { %11283 = vmatprep.mubr.msk.f32.mxu0 %vm415_vm0, %v392_v30 }
  0xc8   : > { %11284 = vmatmul.mubr.msk.f32.gmra.mrb[88].mxu0 %vm415_vm0, %v393_v31 }
  0xc9   : > { %11286 = vmatprep.mubr.msk.f32.mxu0 %vm415_vm0, %v394_v32 }
  0xcc   : > { %11287 = vmatmul.mubr.msk.f32.gmra.mrb[90].mxu0 %vm415_vm0, %v395_v33 }
  0xcd   : > { %11289 = vmatprep.mubr.msk.f32.mxu0 %vm415_vm0, %v396_v34 }
  0xd0   : > { %11290 = vmatmul.mubr.msk.f32.gmra.mrb[92].mxu0 %vm415_vm0, %v397_v35 }
  0xd1   : > { %11292 = vmatprep.mubr.msk.f32.mxu0 %vm415_vm0, %v398_v36 }
  0xd4   : > { %11293 = vmatmul.mubr.msk.f32.gmra.mrb[94].mxu0 %vm415_vm0, %v399_v37 }
  0xd5   : > { %11295 = vmatprep.mubr.msk.f32.mxu0 %vm415_vm0, %v400_v38 }
  0xd8   : > { %11296 = vmatmul.mubr.msk.f32.gmra.mrb[96].mxu0 %vm415_vm0, %v401_v39 }
  0xd9   : > { %11298 = vmatprep.mubr.msk.f32.mxu0 %vm415_vm0, %v402_v40 }
  0xdc   : > { %11299 = vmatmul.mubr.msk.f32.gmra.mrb[98].mxu0 %vm415_vm0, %v403_v41 }
  0xeb   : > { %v11153_v42 = vpop.f32.mrb[0].mxu0 }
  0xec   : > { %v782_v43 = vpop.f32.mrb[1].mxu0  ;;  %v788_v57 = vadd.f32 %v11153_v42, %v13442_v54 }
  0xed   : > { %v783_v58 = vadd.f32 %v13442_v54, %v782_v43 }
  0xee   : > { %v1282_v62 = vmul.f32 0.5, %v788_v57 }
  0xef   : > { %v11156_v44 = vpop.f32.mrb[2].mxu0  ;;  %v1281_v63 = vmul.f32 0.5, %v783_v58 }
  0xf0   : > { %v792_v45 = vpop.f32.mrb[3].mxu0  ;;  %v798_v60 = vadd.f32 %v11156_v44, %v13442_v54  ;;  %12920 = vtanh.f32 %v1282_v62  ;;  %v10056_v62 = vld [vmem:[%s16889_s3 + $0x20] sm:$0xff] }
  0xf1   : > { %v793_v0 = vadd.f32 %v13442_v54, %v792_v45  ;;  %12922 = vtanh.f32 %v1281_v63 }
  0xf2   : > { %v1284_v2 = vmul.f32 0.5, %v798_v60  ;;  %v9985_v60 = vld [vmem:[%s16889_s3 + $0x8] sm:$0xff] }
  0xf3   : > { %v11159_v46 = vpop.f32.mrb[4].mxu0  ;;  %v1283_v6 = vmul.f32 0.5, %v793_v0 }
  0xf4   : > { %v802_v47 = vpop.f32.mrb[5].mxu0  ;;  %v808_v3 = vadd.f32 %v11159_v46, %v13442_v54  ;;  %12924 = vtanh.f32 %v1284_v2 }
  0xf5   : > { %v803_v5 = vadd.f32 %v13442_v54, %v802_v47  ;;  %12926 = vtanh.f32 %v1283_v6 }
  0xf6   : > { %v1286_v9 = vmul.f32 0.5, %v808_v3 }
  0xf7   : > { %v11162_v48 = vpop.f32.mrb[6].mxu0  ;;  %v1285_v12 = vmul.f32 0.5, %v803_v5 }
  0xf8   : > { %v812_v49 = vpop.f32.mrb[7].mxu0  ;;  %v818_v7 = vadd.f32 %v11162_v48, %v13442_v54  ;;  %12928 = vtanh.f32 %v1286_v9 }
  0xf9   : > { %v813_v10 = vadd.f32 %v13442_v54, %v812_v49  ;;  %12930 = vtanh.f32 %v1285_v12 }
  0xfa   : > { %v1288_v13 = vmul.f32 0.5, %v818_v7  ;;  %v12921_v23 = vpop.eup %12920 }
  0xfb   : > { %v11165_v50 = vpop.f32.mrb[8].mxu0  ;;  %v1287_v16 = vmul.f32 0.5, %v813_v10  ;;  %v12923_v25 = vpop.eup %12922  ;;  %v1482_v29 = vmul.f32 0.5, %v12921_v23 }
  0xfc   : > { %v822_v51 = vpop.f32.mrb[9].mxu0  ;;  %v828_v14 = vadd.f32 %v11165_v50, %v13442_v54  ;;  %12932 = vtanh.f32 %v1288_v13  ;;  %v1481_v33 = vmul.f32 0.5, %v12923_v25 }
  0xfd   : > { %v823_v18 = vadd.f32 %v13442_v54, %v822_v51  ;;  %12934 = vtanh.f32 %v1287_v16  ;;  %v13479_v41 = vadd.f32 0.5, %v1482_v29 }
  0xfe   : > { %v1290_v20 = vmul.f32 0.5, %v828_v14  ;;  %v12925_v27 = vpop.eup %12924  ;;  %v13482_v46 = vadd.f32 0.5, %v1481_v33 }
  0xff   : > { %v11168_v52 = vpop.f32.mrb[10].mxu0  ;;  %v1289_v26 = vmul.f32 0.5, %v823_v18  ;;  %v12927_v36 = vpop.eup %12926  ;;  %v1484_v37 = vmul.f32 0.5, %v12925_v27 }
 0x100   : > { %v832_v53 = vpop.f32.mrb[11].mxu0  ;;  %v838_v19 = vadd.f32 %v11168_v52, %v13442_v54  ;;  %12936 = vtanh.f32 %v1290_v20  ;;  %v1483_v47 = vmul.f32 0.5, %v12927_v36 }
 0x101   : > { %v833_v21 = vadd.f32 %v13442_v54, %v832_v53  ;;  %12938 = vtanh.f32 %v1289_v26  ;;  %v13485_v51 = vadd.f32 0.5, %v1484_v37 }
 0x102   : > { %v1292_v28 = vmul.f32 0.5, %v838_v19  ;;  %v12929_v38 = vpop.eup %12928  ;;  %v13502_v3 = vadd.f32 0.5, %v1483_v47 }
 0x103   : > { %v11171_v55 = vpop.f32.mrb[12].mxu0  ;;  %v1291_v30 = vmul.f32 0.5, %v833_v21  ;;  %v12931_v45 = vpop.eup %12930  ;;  %v1486_v52 = vmul.f32 0.5, %v12929_v38 }
 0x104   : > { %v842_v56 = vpop.f32.mrb[13].mxu0  ;;  %v848_v31 = vadd.f32 %v11171_v55, %v13442_v54  ;;  %12940 = vtanh.f32 %v1292_v28  ;;  %v1485_v5 = vmul.f32 0.5, %v12931_v45 }
 0x105   : > { %v843_v39 = vadd.f32 %v13442_v54, %v842_v56  ;;  %12942 = vtanh.f32 %v1291_v30  ;;  %v13512_v19 = vadd.f32 0.5, %v1486_v52 }
 0x106   : > { %v1294_v42 = vmul.f32 0.5, %v848_v31  ;;  %v12933_v50 = vpop.eup %12932  ;;  %v13514_v26 = vadd.f32 0.5, %v1485_v5 }
 0x107   : > { %v11174_v59 = vpop.f32.mrb[14].mxu0  ;;  %v12935_v55 = vpop.eup %12934  ;;  %v1293_v56 = vmul.f32 0.5, %v843_v39 }
 0x108   : > { %v13447_v61 = vpop.f32.mrb[15].mxu0  ;;  %v858_v43 = vadd.f32 %v11174_v59, %v13442_v54  ;;  %v16895_v59 = vmov 0.0   ;;  %v1487_v10 = vmul.f32 0.5, %v12935_v55 }
 0x109   : > { %v853_v57 = vadd.f32 %v13442_v54, %v13447_v61  ;;  %11301 = vmatprep.subr.mxu1 %v16895_v59  ;;  %11513 = vmatprep.subr.mxu0 %v16895_v59 }
 0x10a   : > { %v1296_v63 = vmul.f32 0.5, %v858_v43  ;;  %11302 = vmatpush3.msra.mxu1 %v9985_v60  ;;  %11303 = vmatprep.mubr.msk.f32.mxu1 %vm13164_vm1, %v16895_v59  ;;  %v12937_v9 = vpop.eup %12936 }
 0x10b   : > { %v13450_v1 = vpop.f32.mrb[16].mxu0  ;;  %11514 = vmatpush3.msra.mxu0 %v10056_v62  ;;  %11515 = vmatprep.mubr.msk.f32.mxu0 %vm13164_vm1, %v16895_v59  ;;  %v1295_v13 = vmul.f32 0.5, %v853_v57  ;;  %v12939_v18 = vpop.eup %12938  ;;  %v1490_v27 = vmul.f32 0.5, %v12937_v9 }
 0x10c   : > { %v13453_v4 = vpop.f32.mrb[17].mxu0  ;;  %v868_v0 = vadd.f32 %v13450_v1, %v13442_v54  ;;  %v1488_v1 = vmul.f32 0.5, %v12933_v50  ;;  %11354 = vmatprep.subr.mxu1 %v16895_v59  ;;  %11619 = vmatprep.subr.mxu0 %v16895_v59 }
 0x10d   : > { %v863_v14 = vadd.f32 %v13442_v54, %v13453_v4  ;;  %v13519_v4 = vadd.f32 0.5, %v1487_v10  ;;  %v13524_v43 = vadd.f32 0.5, %v1490_v27 }
 0x10e   : > { %v1298_v20 = vmul.f32 0.5, %v868_v0  ;;  %v12941_v25 = vpop.eup %12940  ;;  %v13517_v31 = vadd.f32 0.5, %v1488_v1 }
 0x10f   : > { %v13457_v8 = vpop.f32.mrb[18].mxu0  ;;  %v12943_v30 = vpop.eup %12942  ;;  %v1297_v36 = vmul.f32 0.5, %v863_v14 }
 0x110   : > { %v13460_v11 = vpop.f32.mrb[19].mxu0  ;;  %v878_v38 = vadd.f32 %v13457_v8, %v13442_v54 }
 0x111   : > { %v873_v8 = vadd.f32 %v13442_v54, %v13460_v11 }
 0x113   : > { %v13463_v15 = vpop.f32.mrb[20].mxu0 }
 0x114   : > { %v13465_v17 = vpop.f32.mrb[21].mxu0 }
 0x117   : > { %v13470_v22 = vpop.f32.mrb[22].mxu0 }
 0x118   : > { %v13472_v24 = vpop.f32.mrb[23].mxu0 }
 0x11b   : > { %v11189_v32 = vpop.f32.mrb[24].mxu0 }
 0x11c   : > { %v908_v34 = vadd.f32 %v11189_v32, %v13442_v54  ;;  %v13476_v35 = vpop.f32.mrb[25].mxu0 }
 0x11e   : > { %v1306_v40 = vmul.f32 0.5, %v908_v34  ;;  %v1489_v34 = vmul.f32 0.5, %v12939_v18 }
 0x11f   : > { %v11192_v44 = vpop.f32.mrb[26].mxu0 }
 0x120   : > { %12944 = vtanh.f32 %v1306_v40  ;;  %v918_v48 = vadd.f32 %v11192_v44, %v13442_v54  ;;  %v912_v49 = vpop.f32.mrb[27].mxu0  ;;  %v1492_v44 = vmul.f32 0.5, %v12941_v25  ;;  %v13528_v55 = vadd.f32 0.5, %v1489_v34 }
 0x121   : > { %v913_v53 = vadd.f32 %v13442_v54, %v912_v49  ;;  %12946 = vtanh.f32 %v1294_v42  ;;  %v1491_v49 = vmul.f32 0.5, %v12943_v30 }
 0x122   : > { %v1308_v58 = vmul.f32 0.5, %v918_v48 }
 0x123   : > { %v1307_v61 = vmul.f32 0.5, %v913_v53  ;;  %v11195_v2 = vpop.f32.mrb[28].mxu0  ;;  %v13538_v1 = vadd.f32 0.5, %v1491_v49 }
 0x124   : > { %12948 = vtanh.f32 %v1308_v58  ;;  %v928_v6 = vadd.f32 %v11195_v2, %v13442_v54  ;;  %v922_v7 = vpop.f32.mrb[29].mxu0  ;;  %v1300_v58 = vmul.f32 0.5, %v878_v38  ;;  %v13535_v2 = vadd.f32 0.5, %v1492_v44 }
 0x125   : > { %12950 = vtanh.f32 %v1307_v61  ;;  %v923_v12 = vadd.f32 %v13442_v54, %v922_v7 }
 0x126   : > { %12952 = vtanh.f32 %v1293_v56  ;;  %v1310_v16 = vmul.f32 0.5, %v928_v6 }
 0x127   : > { %12954 = vtanh.f32 %v1296_v63  ;;  %v1309_v21 = vmul.f32 0.5, %v923_v12  ;;  %v11198_v23 = vpop.f32.mrb[30].mxu0 }
 0x128   : > { %12956 = vtanh.f32 %v1310_v16  ;;  %v938_v28 = vadd.f32 %v11198_v23, %v13442_v54  ;;  %v932_v29 = vpop.f32.mrb[31].mxu0 }
 0x129   : > { %12958 = vtanh.f32 %v1309_v21  ;;  %v933_v32 = vadd.f32 %v13442_v54, %v932_v29 }
 0x12a   : > { %v12945_v33 = vpop.eup %12944  ;;  %12960 = vtanh.f32 %v1295_v13  ;;  %v1312_v37 = vmul.f32 0.5, %v938_v28  ;;  %v1299_v13 = vmul.f32 0.5, %v873_v8  ;;  %v883_v8 = vadd.f32 %v13442_v54, %v13465_v17 }
 0x12b   : > { %12962 = vtanh.f32 %v1298_v20  ;;  %v1506_v39 = vmul.f32 0.5, %v12945_v33  ;;  %v1311_v40 = vmul.f32 0.5, %v933_v32  ;;  %v11201_v42 = vpop.f32.mrb[32].mxu0  ;;  %v12947_v48 = vpop.eup %12946 }
 0x12c   : > { %12964 = vtanh.f32 %v1312_v37  ;;  %v948_v45 = vadd.f32 %v11201_v42, %v13442_v54  ;;  %v942_v47 = vpop.f32.mrb[33].mxu0  ;;  %v1494_v12 = vmul.f32 0.5, %v12947_v48 }
 0x12d   : > { %v1606_v50 = vadd.f32 0.5, %v1506_v39  ;;  %12966 = vtanh.f32 %v1311_v40  ;;  %v943_v52 = vadd.f32 %v13442_v54, %v942_v47  ;;  %v888_v39 = vadd.f32 %v13463_v15, %v13442_v54 }
 0x12e   : > { %v12949_v53 = vpop.eup %12948  ;;  %12968 = vtanh.f32 %v1297_v36  ;;  %v1314_v56 = vmul.f32 0.5, %v948_v45  ;;  %v13551_v38 = vadd.f32 0.5, %v1494_v12 }
 0x12f   : > { %v12951_v57 = vpop.eup %12950  ;;  %v13533_v60 = vadd.f32 %v1606_v50, %v13482_v46  ;;  %v1508_v62 = vmul.f32 0.5, %v12949_v53  ;;  %v1313_v63 = vmul.f32 0.5, %v943_v52  ;;  %v11204_v0 = vpop.f32.mrb[34].mxu0 }
 0x130   : > { %v12953_v61 = vpop.eup %12952  ;;  %v1507_v5 = vmul.f32 0.5, %v12951_v57  ;;  %12970 = vtanh.f32 %v1314_v56  ;;  %v958_v6 = vadd.f32 %v11204_v0, %v13442_v54  ;;  %v952_v7 = vpop.f32.mrb[35].mxu0 }
 0x131   : > { %v12955_v9 = vpop.eup %12954  ;;  %v1608_v11 = vadd.f32 0.5, %v1508_v62  ;;  %12972 = vtanh.f32 %v1313_v63  ;;  %v953_v10 = vadd.f32 %v13442_v54, %v952_v7  ;;  %v1493_v34 = vmul.f32 0.5, %v12953_v61 }
 0x132   : > { %v12957_v46 = vpop.eup %12956  ;;  %v1607_v14 = vadd.f32 0.5, %v1507_v5  ;;  %v1316_v16 = vmul.f32 0.5, %v958_v6  ;;  %12974 = vtanh.f32 %v1300_v58  ;;  %v1302_v62 = vmul.f32 0.5, %v888_v39 }
 0x133   : > { %v12959_v18 = vpop.eup %12958  ;;  %v13542_v20 = vadd.f32 %v1608_v11, %v13502_v3  ;;  %v1510_v21 = vmul.f32 0.5, %v12957_v46  ;;  %v1315_v23 = vmul.f32 0.5, %v953_v10  ;;  %v11207_v25 = vpop.f32.mrb[36].mxu0  ;;  %v13567_v58 = vadd.f32 0.5, %v1493_v34 }
 0x134   : > { %v12961_v27 = vpop.eup %12960  ;;  %v13545_v28 = vadd.f32 %v1607_v14, %v13479_v41  ;;  %v1509_v29 = vmul.f32 0.5, %v12959_v18  ;;  %12976 = vtanh.f32 %v1316_v16  ;;  %v968_v30 = vadd.f32 %v11207_v25, %v13442_v54  ;;  %v962_v32 = vpop.f32.mrb[37].mxu0 }
 0x135   : > { %v13548_v33 = vpop.eup %12962  ;;  %v1610_v36 = vadd.f32 0.5, %v1510_v21  ;;  %12978 = vtanh.f32 %v1315_v23  ;;  %v963_v3 = vadd.f32 %v13442_v54, %v962_v32  ;;  %v13569_v61 = vmul.f32 0.5, %v12955_v9 }
 0x136   : > { %v12965_v37 = vpop.eup %12964  ;;  %v1609_v41 = vadd.f32 0.5, %v1509_v29  ;;  %v1318_v40 = vmul.f32 0.5, %v968_v30  ;;  %12980 = vtanh.f32 %v1299_v13  ;;  %v1301_v14 = vmul.f32 0.5, %v883_v8 }
 0x137   : > { %v12967_v42 = vpop.eup %12966  ;;  %v13556_v44 = vadd.f32 %v1610_v36, %v13514_v26  ;;  %v1512_v45 = vmul.f32 0.5, %v12965_v37  ;;  %v1317_v47 = vmul.f32 0.5, %v963_v3  ;;  %v11210_v48 = vpop.f32.mrb[38].mxu0  ;;  %v1495_v18 = vmul.f32 0.5, %v12961_v27 }
 0x138   : > { %v13558_v49 = vpop.eup %12968  ;;  %v13561_v50 = vadd.f32 %v1609_v41, %v13485_v51  ;;  %v1511_v52 = vmul.f32 0.5, %v12967_v42  ;;  %12982 = vtanh.f32 %v1318_v40  ;;  %v978_v53 = vadd.f32 %v11210_v48, %v13442_v54  ;;  %v972_v15 = vpop.f32.mrb[39].mxu0 }
 0x139   : > { %v1612_v56 = vadd.f32 0.5, %v1512_v45  ;;  %12984 = vtanh.f32 %v1317_v47  ;;  %v973_v26 = vadd.f32 %v13442_v54, %v972_v15  ;;  %v893_v21 = vadd.f32 %v13442_v54, %v13472_v24 }
 0x13a   : > { %v12971_v57 = vpop.eup %12970  ;;  %v1611_v63 = vadd.f32 0.5, %v1511_v52  ;;  %v1320_v0 = vmul.f32 0.5, %v978_v53  ;;  %v898_v24 = vadd.f32 %v13470_v22, %v13442_v54  ;;  %v903_v48 = vadd.f32 %v13442_v54, %v13476_v35 }
 0x13b   : > { %v12973_v51 = vpop.eup %12972  ;;  %v13572_v5 = vadd.f32 %v1612_v56, %v13519_v4  ;;  %v1514_v6 = vmul.f32 0.5, %v12971_v57  ;;  %v1319_v7 = vmul.f32 0.5, %v973_v26  ;;  %v11213_v11 = vpop.f32.mrb[40].mxu0  ;;  %v1303_v42 = vmul.f32 0.5, %v893_v21 }
 0x13c   : > { %v13575_v17 = vadd.f32 %v1611_v63, %v13512_v19  ;;  %v1513_v10 = vmul.f32 0.5, %v12973_v51  ;;  %12986 = vtanh.f32 %v1320_v0  ;;  %v988_v46 = vadd.f32 %v11213_v11, %v13442_v54  ;;  %v982_v12 = vpop.f32.mrb[41].mxu0  ;;  %v13578_v13 = vpop.eup %12974 }
 0x13d   : > { %v1614_v16 = vadd.f32 0.5, %v1514_v6  ;;  %12988 = vtanh.f32 %v1319_v7  ;;  %v983_v9 = vadd.f32 %v13442_v54, %v982_v12  ;;  %v1304_v51 = vmul.f32 0.5, %v898_v24 }
 0x13e   : > { %v12977_v4 = vpop.eup %12976  ;;  %v1613_v23 = vadd.f32 0.5, %v1513_v10  ;;  %v1322_v19 = vmul.f32 0.5, %v988_v46  ;;  %12990 = vtanh.f32 %v1302_v62  ;;  %v1595_v62 = vadd.f32 0.5, %v1495_v18 }
 0x13f   : > { %v12979_v25 = vpop.eup %12978  ;;  %v13584_v29 = vadd.f32 %v1614_v16, %v13528_v55  ;;  %v1516_v30 = vmul.f32 0.5, %v12977_v4  ;;  %v1321_v32 = vmul.f32 0.5, %v983_v9  ;;  %v11216_v34 = vpop.f32.mrb[42].mxu0  ;;  %v1305_v11 = vmul.f32 0.5, %v903_v48 }
 0x140   : > { %v13587_v36 = vadd.f32 %v1613_v23, %v13517_v31  ;;  %v1515_v3 = vmul.f32 0.5, %v12979_v25  ;;  %12992 = vtanh.f32 %v1322_v19  ;;  %v998_v27 = vadd.f32 %v11216_v34, %v13442_v54  ;;  %v992_v37 = vpop.f32.mrb[43].mxu0  ;;  %v12981_v39 = vpop.eup %12980 }
 0x141   : > { %v1616_v41 = vadd.f32 0.5, %v1516_v30  ;;  %12994 = vtanh.f32 %v1321_v32  ;;  %v993_v55 = vadd.f32 %v13442_v54, %v992_v37  ;;  %v1497_v21 = vmul.f32 0.5, %v13558_v49 }
 0x142   : > { %v12983_v40 = vpop.eup %12982  ;;  %12996 = vtanh.f32 %v1301_v14  ;;  %v1615_v45 = vadd.f32 0.5, %v1515_v3  ;;  %v1324_v47 = vmul.f32 0.5, %v998_v27  ;;  %v1499_v25 = vmul.f32 0.5, %v12981_v39 }
 0x143   : > { %v12985_v31 = vpop.eup %12984  ;;  %v13596_v52 = vadd.f32 %v1616_v41, %v13538_v1  ;;  %v1518_v53 = vmul.f32 0.5, %v12983_v40  ;;  %v1323_v15 = vmul.f32 0.5, %v993_v55  ;;  %v11219_v8 = vpop.f32.mrb[44].mxu0  ;;  %v1597_v39 = vadd.f32 0.5, %v1497_v21 }
 0x144   : > { %v13599_v22 = vadd.f32 %v1615_v45, %v13524_v43  ;;  %v1517_v56 = vmul.f32 0.5, %v12985_v31  ;;  %12998 = vtanh.f32 %v1324_v47  ;;  %v1008_v26 = vadd.f32 %v11219_v8, %v13442_v54  ;;  %v1002_v57 = vpop.f32.mrb[45].mxu0 }
 0x145   : > { %v1618_v63 = vadd.f32 0.5, %v1518_v53  ;;  %13000 = vtanh.f32 %v1323_v15  ;;  %v1003_v0 = vadd.f32 %v13442_v54, %v1002_v57  ;;  %v1596_v31 = vadd.f32 0.5, %v13569_v61 }
 0x146   : > { %v12987_v35 = vpop.eup %12986  ;;  %13002 = vtanh.f32 %v1303_v42  ;;  %v1617_v1 = vadd.f32 0.5, %v1517_v56  ;;  %v1326_v6 = vmul.f32 0.5, %v1008_v26  ;;  %v1498_v48 = vmul.f32 0.5, %v13548_v33 }
 0x147   : > { %v12989_v7 = vpop.eup %12988  ;;  %v13604_v43 = vadd.f32 %v1618_v63, %v13567_v58  ;;  %v1520_v10 = vmul.f32 0.5, %v12987_v35  ;;  %v1325_v46 = vmul.f32 0.5, %v1003_v0  ;;  %v11222_v12 = vpop.f32.mrb[46].mxu0 }
 0x148   : > { %v13607_v14 = vadd.f32 %v1617_v1, %v13535_v2  ;;  %v1519_v16 = vmul.f32 0.5, %v12989_v7  ;;  %13004 = vtanh.f32 %v1326_v6  ;;  %v1018_v9 = vadd.f32 %v11222_v12, %v13442_v54  ;;  %v1012_v4 = vpop.f32.mrb[47].mxu0  ;;  %v13610_v18 = vpop.eup %12990 }
 0x149   : > { %v1620_v23 = vadd.f32 0.5, %v1520_v10  ;;  %13006 = vtanh.f32 %v1325_v46  ;;  %v1013_v58 = vadd.f32 %v13442_v54, %v1012_v4  ;;  %v1500_v10 = vmul.f32 0.5, %v13578_v13 }
 0x14a   : > { %v12993_v19 = vpop.eup %12992  ;;  %13008 = vtanh.f32 %v1304_v51  ;;  %v1619_v30 = vadd.f32 0.5, %v1519_v16  ;;  %v1328_v32 = vmul.f32 0.5, %v1018_v9 }
 0x14b   : > { %v12995_v2 = vpop.eup %12994  ;;  %13010 = vtanh.f32 %v1305_v11  ;;  %v13614_v34 = vadd.f32 %v1620_v23, %v1595_v62  ;;  %v1522_v3 = vmul.f32 0.5, %v12993_v19  ;;  %v1327_v27 = vmul.f32 0.5, %v1013_v58  ;;  %v11225_v37 = vpop.f32.mrb[48].mxu0 }
 0x14c   : > { %v12997_v24 = vpop.eup %12996  ;;  %v13617_v41 = vadd.f32 %v1619_v30, %v13551_v38  ;;  %v1521_v49 = vmul.f32 0.5, %v12995_v2  ;;  %13012 = vtanh.f32 %v1328_v32  ;;  %v1028_v55 = vadd.f32 %v11225_v37, %v13442_v54  ;;  %v1022_v40 = vpop.f32.mrb[49].mxu0 }
 0x14d   : > { %v1622_v42 = vadd.f32 0.5, %v1522_v3  ;;  %13014 = vtanh.f32 %v1327_v27  ;;  %v1023_v45 = vadd.f32 %v13442_v54, %v1022_v40  ;;  %v1599_v38 = vadd.f32 0.5, %v1499_v25 }
 0x14e   : > { %v12999_v47 = vpop.eup %12998  ;;  %v1621_v53 = vadd.f32 0.5, %v1521_v49  ;;  %v1330_v15 = vmul.f32 0.5, %v1028_v55  ;;  %v1501_v61 = vmul.f32 0.5, %v12997_v24  ;;  %v1598_v11 = vadd.f32 0.5, %v1498_v48 }
 0x14f   : > { %v13001_v8 = vpop.eup %13000  ;;  %v13623_v56 = vadd.f32 %v1622_v42, %v1597_v39  ;;  %v1524_v26 = vmul.f32 0.5, %v12999_v47  ;;  %v1329_v57 = vmul.f32 0.5, %v1023_v45  ;;  %v11228_v62 = vpop.f32.mrb[50].mxu0  ;;  %v1600_v49 = vadd.f32 0.5, %v1500_v10 }
 0x150   : > { %v13003_v63 = vpop.eup %13002  ;;  %v13625_v0 = vadd.f32 %v1621_v53, %v1596_v31  ;;  %v1523_v35 = vmul.f32 0.5, %v13001_v8  ;;  %13016 = vtanh.f32 %v1330_v15  ;;  %v1038_v51 = vadd.f32 %v11228_v62, %v13442_v54  ;;  %v1032_v1 = vpop.f32.mrb[51].mxu0 }
 0x151   : > { %v1624_v6 = vadd.f32 0.5, %v1524_v26  ;;  %13018 = vtanh.f32 %v1329_v57  ;;  %v1033_v33 = vadd.f32 %v13442_v54, %v1032_v1  ;;  %v1503_v9 = vmul.f32 0.5, %v13003_v63 }
 0x152   : > { %v13005_v7 = vpop.eup %13004  ;;  %v1623_v46 = vadd.f32 0.5, %v1523_v35  ;;  %v1332_v12 = vmul.f32 0.5, %v1038_v51  ;;  %v1601_v27 = vadd.f32 0.5, %v1501_v61  ;;  %v1502_v55 = vmul.f32 0.5, %v13610_v18 }
 0x153   : > { %v13007_v16 = vpop.eup %13006  ;;  %v13630_v4 = vadd.f32 %v1624_v6, %v1599_v38  ;;  %v1526_v21 = vmul.f32 0.5, %v13005_v7  ;;  %v1331_v23 = vmul.f32 0.5, %v1033_v33  ;;  %v11231_v58 = vpop.f32.mrb[52].mxu0  ;;  %v1603_v45 = vadd.f32 0.5, %v1503_v9 }
 0x154   : > { %v13009_v19 = vpop.eup %13008  ;;  %v13632_v25 = vadd.f32 %v1623_v46, %v1598_v11  ;;  %v1525_v30 = vmul.f32 0.5, %v13007_v16  ;;  %13020 = vtanh.f32 %v1332_v12  ;;  %v1048_v32 = vadd.f32 %v11231_v58, %v13442_v54  ;;  %v1042_v2 = vpop.f32.mrb[53].mxu0 }
 0x155   : > { %v13011_v3 = vpop.eup %13010  ;;  %v1626_v13 = vadd.f32 0.5, %v1526_v21  ;;  %13022 = vtanh.f32 %v1331_v23  ;;  %v1043_v37 = vadd.f32 %v13442_v54, %v1042_v2  ;;  %v1602_v35 = vadd.f32 0.5, %v1502_v55 }
 0x156   : > { %v13013_v24 = vpop.eup %13012  ;;  %v1625_v40 = vadd.f32 0.5, %v1525_v30  ;;  %v1334_v39 = vmul.f32 0.5, %v1048_v32  ;;  %v1505_v57 = vmul.f32 0.5, %v13011_v3  ;;  %v1504_v51 = vmul.f32 0.5, %v13009_v19 }
 0x157   : > { %v13015_v42 = vpop.eup %13014  ;;  %v13637_v47 = vadd.f32 %v1626_v13, %v1601_v27  ;;  %v1528_v31 = vmul.f32 0.5, %v13013_v24  ;;  %v1333_v48 = vmul.f32 0.5, %v1043_v37  ;;  %v11234_v53 = vpop.f32.mrb[54].mxu0 }
 0x158   : > { %v13639_v15 = vadd.f32 %v1625_v40, %v1600_v49  ;;  %v1527_v8 = vmul.f32 0.5, %v13015_v42  ;;  %13024 = vtanh.f32 %v1334_v39  ;;  %v1058_v38 = vadd.f32 %v11234_v53, %v13442_v54  ;;  %v1052_v26 = vpop.f32.mrb[55].mxu0 }
 0x159   : > { %v1628_v62 = vadd.f32 0.5, %v1528_v31  ;;  %13026 = vtanh.f32 %v1333_v48  ;;  %v1053_v18 = vadd.f32 %v13442_v54, %v1052_v26  ;;  %v1605_v21 = vadd.f32 0.5, %v1505_v57 }
 0x15a   : > { %v13017_v63 = vpop.eup %13016  ;;  %v1627_v1 = vadd.f32 0.5, %v1527_v8  ;;  %v1336_v61 = vmul.f32 0.5, %v1058_v38  ;;  %v1604_v30 = vadd.f32 0.5, %v1504_v51 }
 0x15b   : > { %v13019_v6 = vpop.eup %13018  ;;  %v13643_v33 = vadd.f32 %v1628_v62, %v1603_v45  ;;  %v1530_v7 = vmul.f32 0.5, %v13017_v63  ;;  %v1335_v11 = vmul.f32 0.5, %v1053_v18  ;;  %v11237_v10 = vpop.f32.mrb[56].mxu0 }
 0x15c   : > { %v13645_v46 = vadd.f32 %v1627_v1, %v1602_v35  ;;  %v1529_v12 = vmul.f32 0.5, %v13019_v6  ;;  %13028 = vtanh.f32 %v1336_v61  ;;  %v1068_v16 = vadd.f32 %v11237_v10, %v13442_v54  ;;  %v1062_v9 = vpop.f32.mrb[57].mxu0 }
 0x15d   : > { %v1630_v23 = vadd.f32 0.5, %v1530_v7  ;;  %13030 = vtanh.f32 %v1335_v11  ;;  %v1063_v58 = vadd.f32 %v13442_v54, %v1062_v9 }
 0x15e   : > { %v13021_v19 = vpop.eup %13020  ;;  %v1629_v32 = vadd.f32 0.5, %v1529_v12  ;;  %v1338_v2 = vmul.f32 0.5, %v1068_v16 }
 0x15f   : > { %v13023_v3 = vpop.eup %13022  ;;  %v13649_v27 = vadd.f32 %v1630_v23, %v1605_v21  ;;  %v1532_v13 = vmul.f32 0.5, %v13021_v19  ;;  %v1337_v37 = vmul.f32 0.5, %v1063_v58  ;;  %v11240_v24 = vpop.f32.mrb[58].mxu0 }
 0x160   : > { %v13651_v49 = vadd.f32 %v1629_v32, %v1604_v30  ;;  %v1531_v55 = vmul.f32 0.5, %v13023_v3  ;;  %13032 = vtanh.f32 %v1338_v2  ;;  %v1078_v40 = vadd.f32 %v11240_v24, %v13442_v54  ;;  %v1072_v39 = vpop.f32.mrb[59].mxu0 }
 0x161   : > { %v1632_v42 = vadd.f32 0.5, %v1532_v13  ;;  %13034 = vtanh.f32 %v1337_v37  ;;  %v1073_v45 = vadd.f32 %v13442_v54, %v1072_v39 }
 0x162   : > { %v13025_v31 = vpop.eup %13024  ;;  %v1631_v48 = vadd.f32 0.5, %v1531_v55  ;;  %v1340_v53 = vmul.f32 0.5, %v1078_v40 }
 0x163   : > { %v13027_v8 = vpop.eup %13026  ;;  %v13656_v38 = vadd.f32 %v13545_v28, %v1632_v42  ;;  %v1534_v26 = vmul.f32 0.5, %v13025_v31  ;;  %v1339_v57 = vmul.f32 0.5, %v1073_v45  ;;  %v11243_v62 = vpop.f32.mrb[60].mxu0 }
 0x164   : > { %v13659_v18 = vadd.f32 %v13533_v60, %v1631_v48  ;;  %v1533_v63 = vmul.f32 0.5, %v13027_v8  ;;  %13036 = vtanh.f32 %v1340_v53  ;;  %v1088_v35 = vadd.f32 %v11243_v62, %v13442_v54  ;;  %v1082_v51 = vpop.f32.mrb[61].mxu0 }
 0x165   : > { %v1634_v1 = vadd.f32 0.5, %v1534_v26  ;;  %13038 = vtanh.f32 %v1339_v57  ;;  %v1083_v61 = vadd.f32 %v13442_v54, %v1082_v51 }
 0x166   : > { %v13029_v6 = vpop.eup %13028  ;;  %v1633_v7 = vadd.f32 0.5, %v1533_v63  ;;  %v1342_v11 = vmul.f32 0.5, %v1088_v35 }
 0x167   : > { %v13031_v28 = vpop.eup %13030  ;;  %v13664_v10 = vadd.f32 %v13561_v50, %v1634_v1  ;;  %v1536_v12 = vmul.f32 0.5, %v13029_v6  ;;  %v1341_v16 = vmul.f32 0.5, %v1083_v61  ;;  %v11246_v60 = vpop.f32.mrb[62].mxu0 }
 0x168   : > { %v13667_v9 = vadd.f32 %v13542_v20, %v1633_v7  ;;  %v1535_v21 = vmul.f32 0.5, %v13031_v28  ;;  %13040 = vtanh.f32 %v1342_v11  ;;  %v1098_v23 = vadd.f32 %v11246_v60, %v13442_v54  ;;  %v1092_v58 = vpop.f32.mrb[63].mxu0 }
 0x169   : > { %v1636_v19 = vadd.f32 0.5, %v1536_v12  ;;  %13042 = vtanh.f32 %v1341_v16  ;;  %v1093_v30 = vadd.f32 %v13442_v54, %v1092_v58 }
 0x16a   : > { %v13033_v32 = vpop.eup %13032  ;;  %v1635_v2 = vadd.f32 0.5, %v1535_v21  ;;  %v1344_v3 = vmul.f32 0.5, %v1098_v23 }
 0x16b   : > { %v13035_v50 = vpop.eup %13034  ;;  %v13672_v13 = vadd.f32 %v13575_v17, %v1636_v19  ;;  %v1538_v37 = vmul.f32 0.5, %v13033_v32  ;;  %v1343_v24 = vmul.f32 0.5, %v1093_v30  ;;  %v11249_v20 = vpop.f32.mrb[64].mxu0 }
 0x16c   : > { %v13675_v55 = vadd.f32 %v13556_v44, %v1635_v2  ;;  %v1537_v40 = vmul.f32 0.5, %v13035_v50  ;;  %13044 = vtanh.f32 %v1344_v3  ;;  %v1108_v39 = vadd.f32 %v11249_v20, %v13442_v54  ;;  %v1102_v42 = vpop.f32.mrb[65].mxu0 }
 0x16d   : > { %v1638_v45 = vadd.f32 0.5, %v1538_v37  ;;  %13046 = vtanh.f32 %v1343_v24  ;;  %v1103_v31 = vadd.f32 %v13442_v54, %v1102_v42 }
 0x16e   : > { %v13037_v48 = vpop.eup %13036  ;;  %v1637_v53 = vadd.f32 0.5, %v1537_v40  ;;  %v1346_v8 = vmul.f32 0.5, %v1108_v39 }
 0x16f   : > { %v13039_v17 = vpop.eup %13038  ;;  %v13680_v26 = vadd.f32 %v13587_v36, %v1638_v45  ;;  %v1540_v57 = vmul.f32 0.5, %v13037_v48  ;;  %v1345_v62 = vmul.f32 0.5, %v1103_v31  ;;  %v11252_v44 = vpop.f32.mrb[66].mxu0  ;;  %v13705_v48 = vld [vmem:[%s16888_s2] ss:$0 sm:$0xff] }
 0x170   : > { %v13683_v63 = vadd.f32 %v13572_v5, %v1637_v53  ;;  %v1539_v35 = vmul.f32 0.5, %v13039_v17  ;;  %13048 = vtanh.f32 %v1346_v8  ;;  %v1118_v51 = vadd.f32 %v11252_v44, %v13442_v54  ;;  %v1112_v1 = vpop.f32.mrb[67].mxu0 }
 0x171   : > { %v1640_v61 = vadd.f32 0.5, %v1540_v57  ;;  %13050 = vtanh.f32 %v1345_v62  ;;  %v1113_v6 = vadd.f32 %v13442_v54, %v1112_v1 }
 0x172   : > { %v13041_v7 = vpop.eup %13040  ;;  %v1639_v11 = vadd.f32 0.5, %v1539_v35  ;;  %v1348_v28 = vmul.f32 0.5, %v1118_v51 }
 0x173   : > { %v13043_v36 = vpop.eup %13042  ;;  %v13688_v12 = vadd.f32 %v13599_v22, %v1640_v61  ;;  %v1542_v16 = vmul.f32 0.5, %v13041_v7  ;;  %v1347_v60 = vmul.f32 0.5, %v1113_v6  ;;  %v11255_v5 = vpop.f32.mrb[68].mxu0 }
 0x174   : > { %v13691_v21 = vadd.f32 %v13584_v29, %v1639_v11  ;;  %v1541_v23 = vmul.f32 0.5, %v13043_v36  ;;  %13052 = vtanh.f32 %v1348_v28  ;;  %v1128_v58 = vadd.f32 %v11255_v5, %v13442_v54  ;;  %v1122_v19 = vpop.f32.mrb[69].mxu0 }
 0x175   : > { %v1642_v30 = vadd.f32 0.5, %v1542_v16  ;;  %13054 = vtanh.f32 %v1347_v60  ;;  %v1123_v32 = vadd.f32 %v13442_v54, %v1122_v19 }
 0x176   : > { %v13045_v2 = vpop.eup %13044  ;;  %v1641_v3 = vadd.f32 0.5, %v1541_v23  ;;  %v1350_v50 = vmul.f32 0.5, %v1128_v58 }
 0x177   : > { %v13047_v22 = vpop.eup %13046  ;;  %v13696_v37 = vadd.f32 %v13607_v14, %v1642_v30  ;;  %v1544_v24 = vmul.f32 0.5, %v13045_v2  ;;  %v1349_v20 = vmul.f32 0.5, %v1123_v32  ;;  %v11258_v29 = vpop.f32.mrb[70].mxu0 }
 0x178   : > { %v13699_v40 = vadd.f32 %v13596_v52, %v1641_v3  ;;  %v1543_v39 = vmul.f32 0.5, %v13047_v22  ;;  %13056 = vtanh.f32 %v1350_v50  ;;  %v1138_v42 = vadd.f32 %v11258_v29, %v13442_v54  ;;  %v1132_v45 = vpop.f32.mrb[71].mxu0 }
 0x179   : > { %v1644_v31 = vadd.f32 0.5, %v1544_v24  ;;  %13058 = vtanh.f32 %v1349_v20  ;;  %v1133_v14 = vadd.f32 %v13705_v48, %v1132_v45 }
 0x17a   : > { %v13049_v53 = vpop.eup %13048  ;;  %v1643_v8 = vadd.f32 0.5, %v1543_v39  ;;  %v1352_v17 = vmul.f32 0.5, %v1138_v42 }
 0x17b   : > { %v13051_v57 = vpop.eup %13050  ;;  %v13709_v52 = vadd.f32 %v13617_v41, %v1644_v31  ;;  %v1546_v62 = vmul.f32 0.5, %v13049_v53  ;;  %v1351_v44 = vmul.f32 0.5, %v1133_v14  ;;  %v11261_v54 = vpop.f32.mrb[72].mxu0 }
 0x17c   : > { %v13712_v35 = vadd.f32 %v13604_v43, %v1643_v8  ;;  %v1545_v51 = vmul.f32 0.5, %v13051_v57  ;;  %13060 = vtanh.f32 %v1352_v17  ;;  %v1148_v1 = vadd.f32 %v13705_v48, %v11261_v54  ;;  %v1142_v61 = vpop.f32.mrb[73].mxu0 }
 0x17d   : > { %v1646_v6 = vadd.f32 0.5, %v1546_v62  ;;  %13062 = vtanh.f32 %v1351_v44  ;;  %v1143_v7 = vadd.f32 %v13705_v48, %v1142_v61 }
 0x17e   : > { %v13053_v11 = vpop.eup %13052  ;;  %v1645_v28 = vadd.f32 0.5, %v1545_v51  ;;  %v1354_v36 = vmul.f32 0.5, %v1148_v1 }
 0x17f   : > { %v13055_v41 = vpop.eup %13054  ;;  %v13717_v16 = vadd.f32 %v13625_v0, %v1646_v6  ;;  %v1548_v60 = vmul.f32 0.5, %v13053_v11  ;;  %v1353_v5 = vmul.f32 0.5, %v1143_v7  ;;  %v11264_v43 = vpop.f32.mrb[74].mxu0 }
 0x180   : > { %v13720_v23 = vadd.f32 %v13614_v34, %v1645_v28  ;;  %v1547_v58 = vmul.f32 0.5, %v13055_v41  ;;  %13064 = vtanh.f32 %v1354_v36  ;;  %v1158_v19 = vadd.f32 %v13705_v48, %v11264_v43  ;;  %v1152_v30 = vpop.f32.mrb[75].mxu0 }
 0x181   : > { %v1648_v32 = vadd.f32 0.5, %v1548_v60  ;;  %13066 = vtanh.f32 %v1353_v5  ;;  %v1153_v2 = vadd.f32 %v13705_v48, %v1152_v30 }
 0x182   : > { %v13057_v3 = vpop.eup %13056  ;;  %v1647_v50 = vadd.f32 0.5, %v1547_v58  ;;  %v1356_v22 = vmul.f32 0.5, %v1158_v19 }
 0x183   : > { %v13059_v0 = vpop.eup %13058  ;;  %v13725_v24 = vadd.f32 %v13632_v25, %v1648_v32  ;;  %v1550_v20 = vmul.f32 0.5, %v13057_v3  ;;  %v1355_v29 = vmul.f32 0.5, %v1153_v2  ;;  %v11267_v34 = vpop.f32.mrb[76].mxu0 }
 0x184   : > { %v13728_v39 = vadd.f32 %v13623_v56, %v1647_v50  ;;  %v1549_v42 = vmul.f32 0.5, %v13059_v0  ;;  %13068 = vtanh.f32 %v1356_v22  ;;  %v1168_v45 = vadd.f32 %v13705_v48, %v11267_v34  ;;  %v1162_v31 = vpop.f32.mrb[77].mxu0 }
 0x185   : > { %v1650_v14 = vadd.f32 0.5, %v1550_v20  ;;  %13070 = vtanh.f32 %v1355_v29  ;;  %v1163_v53 = vadd.f32 %v13705_v48, %v1162_v31 }
 0x186   : > { %v13061_v8 = vpop.eup %13060  ;;  %v1649_v17 = vadd.f32 0.5, %v1549_v42  ;;  %v1358_v57 = vmul.f32 0.5, %v1168_v45 }
 0x187   : > { %v13063_v25 = vpop.eup %13062  ;;  %v13733_v62 = vadd.f32 %v13639_v15, %v1650_v14  ;;  %v1552_v44 = vmul.f32 0.5, %v13061_v8  ;;  %v1357_v54 = vmul.f32 0.5, %v1163_v53  ;;  %v11270_v56 = vpop.f32.mrb[78].mxu0 }
 0x188   : > { %v13736_v51 = vadd.f32 %v13630_v4, %v1649_v17  ;;  %v1551_v1 = vmul.f32 0.5, %v13063_v25  ;;  %13072 = vtanh.f32 %v1358_v57  ;;  %v1178_v61 = vadd.f32 %v13705_v48, %v11270_v56  ;;  %v1172_v6 = vpop.f32.mrb[79].mxu0 }
 0x189   : > { %v1652_v7 = vadd.f32 0.5, %v1552_v44  ;;  %13074 = vtanh.f32 %v1357_v54  ;;  %v1173_v11 = vadd.f32 %v13705_v48, %v1172_v6 }
 0x18a   : > { %v13065_v28 = vpop.eup %13064  ;;  %v1651_v36 = vadd.f32 0.5, %v1551_v1  ;;  %v1360_v41 = vmul.f32 0.5, %v1178_v61 }
 0x18b   : > { %v13067_v15 = vpop.eup %13066  ;;  %v13741_v60 = vadd.f32 %v13645_v46, %v1652_v7  ;;  %v1554_v5 = vmul.f32 0.5, %v13065_v28  ;;  %v1359_v43 = vmul.f32 0.5, %v1173_v11  ;;  %v11273_v4 = vpop.f32.mrb[80].mxu0 }
 0x18c   : > { %v13744_v58 = vadd.f32 %v13637_v47, %v1651_v36  ;;  %v1553_v19 = vmul.f32 0.5, %v13067_v15  ;;  %13076 = vtanh.f32 %v1360_v41  ;;  %v1188_v30 = vadd.f32 %v13705_v48, %v11273_v4  ;;  %v1182_v32 = vpop.f32.mrb[81].mxu0 }
 0x18d   : > { %v1654_v2 = vadd.f32 0.5, %v1554_v5  ;;  %13078 = vtanh.f32 %v1359_v43  ;;  %v1183_v3 = vadd.f32 %v13705_v48, %v1182_v32 }
 0x18e   : > { %v13069_v50 = vpop.eup %13068  ;;  %v1653_v22 = vadd.f32 0.5, %v1553_v19  ;;  %v1362_v0 = vmul.f32 0.5, %v1188_v30 }
 0x18f   : > { %v13071_v46 = vpop.eup %13070  ;;  %v13749_v20 = vadd.f32 %v13651_v49, %v1654_v2  ;;  %v1556_v29 = vmul.f32 0.5, %v13069_v50  ;;  %v1361_v34 = vmul.f32 0.5, %v1183_v3  ;;  %v11276_v47 = vpop.f32.mrb[82].mxu0 }
 0x190   : > { %v13752_v42 = vadd.f32 %v13643_v33, %v1653_v22  ;;  %v1555_v45 = vmul.f32 0.5, %v13071_v46  ;;  %13080 = vtanh.f32 %v1362_v0  ;;  %v1198_v31 = vadd.f32 %v13705_v48, %v11276_v47  ;;  %v1192_v14 = vpop.f32.mrb[83].mxu0 }
 0x191   : > { %v1656_v53 = vadd.f32 0.5, %v1556_v29  ;;  %13082 = vtanh.f32 %v1361_v34  ;;  %v1193_v8 = vadd.f32 %v13705_v48, %v1192_v14 }
 0x192   : > { %v13073_v17 = vpop.eup %13072  ;;  %v1655_v57 = vadd.f32 0.5, %v1555_v45  ;;  %v1364_v25 = vmul.f32 0.5, %v1198_v31 }
 0x193   : > { %v13075_v49 = vpop.eup %13074  ;;  %v1731_v44 = vadd.f32 %v13659_v18, %v1656_v53  ;;  %v1558_v54 = vmul.f32 0.5, %v13073_v17  ;;  %v1363_v56 = vmul.f32 0.5, %v1193_v8  ;;  %v11279_v33 = vpop.f32.mrb[84].mxu0 }
 0x194   : > { %v13758_v1 = vadd.f32 %v13649_v27, %v1655_v57  ;;  %v1557_v61 = vmul.f32 0.5, %v13075_v49  ;;  %13084 = vtanh.f32 %v1364_v25  ;;  %v1208_v6 = vadd.f32 %v13705_v48, %v11279_v33  ;;  %v1202_v7 = vpop.f32.mrb[85].mxu0 }
 0x195   : > { %v1756_v11 = vmul.f32 0.25, %v1731_v44  ;;  %v1658_v28 = vadd.f32 0.5, %v1558_v54  ;;  %13086 = vtanh.f32 %v1363_v56  ;;  %v1203_v36 = vadd.f32 %v13705_v48, %v1202_v7 }
 0x196   : > { %v13077_v41 = vpop.eup %13076  ;;  %v1657_v15 = vadd.f32 0.5, %v1557_v61  ;;  %v1366_v18 = vmul.f32 0.5, %v1208_v6 }
 0x197   : > { %v13079_v5 = vpop.eup %13078  ;;  %1782 = vst.msk [vmem:[#allocation2] sm:$0xff] %vm1781_vm2, %v1756_v11  ;;  %v1733_v43 = vadd.f32 %v13667_v9, %v1658_v28  ;;  %v1560_v27 = vmul.f32 0.5, %v13077_v41  ;;  %v1365_v4 = vmul.f32 0.5, %v1203_v36  ;;  %v11282_v19 = vpop.f32.mrb[86].mxu0 }
 0x198   : > { %v1732_v30 = vadd.f32 %v13656_v38, %v1657_v15  ;;  %v1559_v32 = vmul.f32 0.5, %v13079_v5  ;;  %13088 = vtanh.f32 %v1366_v18  ;;  %v1218_v2 = vadd.f32 %v13705_v48, %v11282_v19  ;;  %v1212_v3 = vpop.f32.mrb[87].mxu0 }
 0x199   : > { %v1758_v50 = vmul.f32 0.25, %v1733_v43  ;;  %v1660_v22 = vadd.f32 0.5, %v1560_v27  ;;  %13090 = vtanh.f32 %v1365_v4  ;;  %v1213_v0 = vadd.f32 %v13705_v48, %v1212_v3 }
 0x19a   : > { %v13081_v46 = vpop.eup %13080  ;;  %v1757_v29 = vmul.f32 0.25, %v1732_v30  ;;  %v1659_v34 = vadd.f32 0.5, %v1559_v32  ;;  %v1368_v47 = vmul.f32 0.5, %v1218_v2  ;;  %v1824_v30 = vld [vmem:[%s16889_s3] sm:$0xff] }
 0x19b   : > { %v13083_v9 = vpop.eup %13082  ;;  %1784 = vst.msk [vmem:[#allocation2 + $0x10] sm:$0xff] %vm1781_vm2, %v1758_v50  ;;  %v1735_v45 = vadd.f32 %v13675_v55, %v1660_v22  ;;  %v1562_v38 = vmul.f32 0.5, %v13081_v46  ;;  %v1367_v31 = vmul.f32 0.5, %v1213_v0  ;;  %v11285_v14 = vpop.f32.mrb[88].mxu0  ;;  %v10092_v46 = vld [vmem:[%s16889_s3 + $0x30] sm:$0xff] }
 0x19c   : > { %1783 = vst.msk [vmem:[#allocation2 + $0x8] sm:$0xff] %vm1781_vm2, %v1757_v29  ;;  %v1734_v53 = vadd.f32 %v13664_v10, %v1659_v34  ;;  %v1561_v8 = vmul.f32 0.5, %v13083_v9  ;;  %13092 = vtanh.f32 %v1368_v47  ;;  %v1228_v17 = vadd.f32 %v13705_v48, %v11285_v14  ;;  %v1222_v57 = vpop.f32.mrb[89].mxu0 }
 0x19d   : > { %v1760_v25 = vmul.f32 0.25, %v1735_v45  ;;  %v1662_v49 = vadd.f32 0.5, %v1562_v38  ;;  %13094 = vtanh.f32 %v1367_v31  ;;  %v1223_v44 = vadd.f32 %v13705_v48, %v1222_v57 }
 0x19e   : > { %v13085_v54 = vpop.eup %13084  ;;  %v1759_v56 = vmul.f32 0.25, %v1734_v53  ;;  %v1661_v55 = vadd.f32 0.5, %v1561_v8  ;;  %v1370_v33 = vmul.f32 0.5, %v1228_v17 }
 0x19f   : > { %v13087_v61 = vpop.eup %13086  ;;  %1786 = vst.msk [vmem:[#allocation2 + $0x20] sm:$0xff] %vm1781_vm2, %v1760_v25  ;;  %v1737_v6 = vadd.f32 %v13683_v63, %v1662_v49  ;;  %v1564_v10 = vmul.f32 0.5, %v13085_v54  ;;  %v1369_v7 = vmul.f32 0.5, %v1223_v44  ;;  %v11288_v11 = vpop.f32.mrb[90].mxu0 }
 0x1a0   : > { %1785 = vst.msk [vmem:[#allocation2 + $0x18] sm:$0xff] %vm1781_vm2, %v1759_v56  ;;  %v1736_v28 = vadd.f32 %v13672_v13, %v1661_v55  ;;  %v1563_v36 = vmul.f32 0.5, %v13087_v61  ;;  %13096 = vtanh.f32 %v1370_v33  ;;  %v1238_v41 = vadd.f32 %v13705_v48, %v11288_v11  ;;  %v1232_v15 = vpop.f32.mrb[91].mxu0 }
 0x1a1   : > { %v1762_v18 = vmul.f32 0.25, %v1737_v6  ;;  %v1664_v5 = vadd.f32 0.5, %v1564_v10  ;;  %13098 = vtanh.f32 %v1369_v7  ;;  %v1233_v43 = vadd.f32 %v13705_v48, %v1232_v15 }
 0x1a2   : > { %v13089_v27 = vpop.eup %13088  ;;  %v1761_v4 = vmul.f32 0.25, %v1736_v28  ;;  %v1663_v63 = vadd.f32 0.5, %v1563_v36  ;;  %v1372_v19 = vmul.f32 0.5, %v1238_v41 }
 0x1a3   : > { %v13091_v32 = vpop.eup %13090  ;;  %1788 = vst.msk [vmem:[#allocation2 + $0x30] sm:$0xff] %vm1781_vm2, %v1762_v18  ;;  %v1739_v13 = vadd.f32 %v13691_v21, %v1664_v5  ;;  %v1566_v2 = vmul.f32 0.5, %v13089_v27  ;;  %v1371_v3 = vmul.f32 0.5, %v1233_v43  ;;  %v11291_v50 = vpop.f32.mrb[92].mxu0  ;;  %v1825_v22 = vld [vmem:[#allocation2 + $0x1] sm:$0xff]  ;;  %v1826_v44 = vld [vmem:[#allocation2 + $0x9] sm:$0xff] }
 0x1a4   : > { %v2720_v0 = vld [vmem:[#allocation2 + $0x4] sm:$0xff]  ;;  %1787 = vst.msk [vmem:[#allocation2 + $0x28] sm:$0xff] %vm1781_vm2, %v1761_v4  ;;  %v1738_v29 = vadd.f32 %v13680_v26, %v1663_v63  ;;  %v1565_v34 = vmul.f32 0.5, %v13091_v32  ;;  %13100 = vtanh.f32 %v1372_v19  ;;  %v1248_v47 = vadd.f32 %v13705_v48, %v11291_v50  ;;  %v1242_v9 = vpop.f32.mrb[93].mxu0  ;;  %11304 = vmatmul.mubr.msk.f32.vlgmr.msra.gmra.mrb[0].mxu1 %vm1781_vm2, %v1825_v22  ;;  %v2721_v54 = vld [vmem:[#allocation2 + $0xc] sm:$0xff] }
 0x1a5   : > { %11516 = vmatmul.mubr.msk.f32.vlgmr.msra.gmra.mrb[100].mxu0 %vm1781_vm2, %v2720_v0  ;;  %v1764_v21 = vmul.f32 0.25, %v1739_v13  ;;  %v1666_v45 = vadd.f32 0.5, %v1566_v2  ;;  %13102 = vtanh.f32 %v1371_v3  ;;  %v1243_v38 = vadd.f32 %v13705_v48, %v1242_v9  ;;  %11306 = vmatprep.mubr.msk.f32.mxu1 %vm13164_vm1, %v16895_v59 }
 0x1a6   : > { %11518 = vmatprep.mubr.msk.f32.mxu0 %vm13164_vm1, %v16895_v59  ;;  %v13093_v26 = vpop.eup %13092  ;;  %v1763_v31 = vmul.f32 0.25, %v1738_v29  ;;  %v1665_v14 = vadd.f32 0.5, %v1565_v34  ;;  %v1374_v53 = vmul.f32 0.5, %v1248_v47  ;;  %11355 = vmatpush3.msra.mxu1 %v1824_v30 }
 0x1a7   : > { %11620 = vmatpush3.msra.mxu0 %v10092_v46  ;;  %v13095_v8 = vpop.eup %13094  ;;  %1790 = vst.msk [vmem:[#allocation2 + $0x40] sm:$0xff] %vm1781_vm2, %v1764_v21  ;;  %v1741_v17 = vadd.f32 %v13699_v40, %v1666_v45  ;;  %v1568_v57 = vmul.f32 0.5, %v13093_v26  ;;  %v1373_v25 = vmul.f32 0.5, %v1243_v38  ;;  %v11294_v49 = vpop.f32.mrb[94].mxu0  ;;  %11407 = vmatprep.subr.mxu1 %v16895_v59  ;;  %v13813_v43 = vld [vmem:[#allocation2 + $0x11] sm:$0xff]  ;;  %v13828_v47 = vld [vmem:[#allocation2 + $0x19] sm:$0xff] }
 0x1a8   : > { %11725 = vmatprep.subr.mxu0 %v16895_v59  ;;  %1789 = vst.msk [vmem:[#allocation2 + $0x38] sm:$0xff] %vm1781_vm2, %v1763_v31  ;;  %v1740_v56 = vadd.f32 %v13688_v12, %v1665_v14  ;;  %v1567_v55 = vmul.f32 0.5, %v13095_v8  ;;  %13104 = vtanh.f32 %v1374_v53  ;;  %v1258_v33 = vadd.f32 %v13705_v48, %v11294_v49  ;;  %v1252_v61 = vpop.f32.mrb[95].mxu0  ;;  %11307 = vmatmul.mubr.msk.f32.gmra.mrb[2].mxu1 %vm1781_vm2, %v1826_v44  ;;  %v2722_v27 = vld [vmem:[#allocation2 + $0x14] sm:$0xff]  ;;  %v13830_v9 = vld [vmem:[#allocation2 + $0x1c] sm:$0xff] }
 0x1a9   : > { %11519 = vmatmul.mubr.msk.f32.gmra.mrb[102].mxu0 %vm1781_vm2, %v2721_v54  ;;  %v1766_v40 = vmul.f32 0.25, %v1741_v17  ;;  %v1668_v6 = vadd.f32 0.5, %v1568_v57  ;;  %13106 = vtanh.f32 %v1373_v25  ;;  %v1253_v10 = vadd.f32 %v13705_v48, %v1252_v61  ;;  %11309 = vmatprep.mubr.msk.f32.mxu1 %vm13164_vm1, %v16895_v59 }
 0x1aa   : > { %11521 = vmatprep.mubr.msk.f32.mxu0 %vm13164_vm1, %v16895_v59  ;;  %v13097_v12 = vpop.eup %13096  ;;  %v1765_v7 = vmul.f32 0.25, %v1740_v56  ;;  %v1667_v11 = vadd.f32 0.5, %v1567_v55  ;;  %v1376_v28 = vmul.f32 0.5, %v1258_v33 }
 0x1ab   : > { %v13099_v36 = vpop.eup %13098  ;;  %1792 = vst.msk [vmem:[#allocation2 + $0x50] sm:$0xff] %vm1781_vm2, %v1766_v40  ;;  %v1743_v41 = vadd.f32 %v13712_v35, %v1668_v6  ;;  %v1570_v15 = vmul.f32 0.5, %v13097_v12  ;;  %v1375_v18 = vmul.f32 0.5, %v1253_v10  ;;  %v11297_v5 = vpop.f32.mrb[96].mxu0  ;;  %v13846_v54 = vld [vmem:[#allocation2 + $0x21] sm:$0xff] }
 0x1ac   : > { %1791 = vst.msk [vmem:[#allocation2 + $0x48] sm:$0xff] %vm1781_vm2, %v1765_v7  ;;  %v1742_v4 = vadd.f32 %v13696_v37, %v1667_v11  ;;  %v1569_v63 = vmul.f32 0.5, %v13099_v36  ;;  %13108 = vtanh.f32 %v1376_v28  ;;  %v1268_v19 = vadd.f32 %v13705_v48, %v11297_v5  ;;  %v1262_v30 = vpop.f32.mrb[97].mxu0  ;;  %11310 = vmatmul.mubr.msk.f32.gmra.mrb[4].mxu1 %vm1781_vm2, %v13813_v43  ;;  %v13862_v7 = vld [vmem:[#allocation2 + $0x29] sm:$0xff] }
 0x1ad   : > { %11522 = vmatmul.mubr.msk.f32.gmra.mrb[104].mxu0 %vm1781_vm2, %v2722_v27  ;;  %v1768_v35 = vmul.f32 0.25, %v1743_v41  ;;  %v1670_v32 = vadd.f32 0.5, %v1570_v15  ;;  %13110 = vtanh.f32 %v1375_v18  ;;  %v1263_v13 = vadd.f32 %v13705_v48, %v1262_v30  ;;  %11312 = vmatprep.mubr.msk.f32.mxu1 %vm13164_vm1, %v16895_v59  ;;  %v13864_v11 = vld [vmem:[#allocation2 + $0x2c] sm:$0xff] }
 0x1ae   : > { %11524 = vmatprep.mubr.msk.f32.mxu0 %vm13164_vm1, %v16895_v59  ;;  %v13101_v37 = vpop.eup %13100  ;;  %v1767_v2 = vmul.f32 0.25, %v1742_v4  ;;  %v1669_v3 = vadd.f32 0.5, %v1569_v63  ;;  %v1378_v50 = vmul.f32 0.5, %v1268_v19 }
 0x1af   : > { %v13103_v22 = vpop.eup %13102  ;;  %1794 = vst.msk [vmem:[#allocation2 + $0x60] sm:$0xff] %vm1781_vm2, %v1768_v35  ;;  %v1745_v0 = vadd.f32 %v13720_v23, %v1670_v32  ;;  %v1572_v46 = vmul.f32 0.5, %v13101_v37  ;;  %v1377_v29 = vmul.f32 0.5, %v1263_v13  ;;  %v11300_v34 = vpop.f32.mrb[98].mxu0  ;;  %v13878_v63 = vld [vmem:[#allocation2 + $0x31] sm:$0xff] }
 0x1b0   : > { %1793 = vst.msk [vmem:[#allocation2 + $0x58] sm:$0xff] %vm1781_vm2, %v1767_v2  ;;  %v1744_v21 = vadd.f32 %v13709_v52, %v1669_v3  ;;  %v1571_v45 = vmul.f32 0.5, %v13103_v22  ;;  %13112 = vtanh.f32 %v1378_v50  ;;  %v1278_v38 = vadd.f32 %v13705_v48, %v11300_v34  ;;  %v1272_v26 = vpop.f32.mrb[99].mxu0  ;;  %11313 = vmatmul.mubr.msk.f32.gmra.mrb[6].mxu1 %vm1781_vm2, %v13828_v47  ;;  %v13880_v19 = vld [vmem:[#allocation2 + $0x34] sm:$0xff] }
 0x1b1   : > { %11525 = vmatmul.mubr.msk.f32.gmra.mrb[106].mxu0 %vm1781_vm2, %v13830_v9  ;;  %v1770_v23 = vmul.f32 0.25, %v1745_v0  ;;  %v1672_v31 = vadd.f32 0.5, %v1572_v46  ;;  %13114 = vtanh.f32 %v1377_v29  ;;  %v1273_v14 = vadd.f32 %v13705_v48, %v1272_v26  ;;  %11315 = vmatprep.mubr.msk.f32.mxu1 %vm13164_vm1, %v16895_v59  ;;  %v13848_v48 = vld [vmem:[#allocation2 + $0x24] sm:$0xff]  ;;  %v13894_v22 = vld [vmem:[#allocation2 + $0x39] sm:$0xff] }
 0x1b2   : > { %11527 = vmatprep.mubr.msk.f32.mxu0 %vm13164_vm1, %v16895_v59  ;;  %v13105_v52 = vpop.eup %13104  ;;  %v1769_v53 = vmul.f32 0.25, %v1744_v21  ;;  %v1671_v8 = vadd.f32 0.5, %v1571_v45  ;;  %v1380_v17 = vmul.f32 0.5, %v1278_v38  ;;  %v13896_v0 = vld [vmem:[#allocation2 + $0x3c] sm:$0xff] }
 0x1b3   : > { %v13107_v57 = vpop.eup %13106  ;;  %1796 = vst.msk [vmem:[#allocation2 + $0x70] sm:$0xff] %vm1781_vm2, %v1770_v23  ;;  %v1747_v25 = vadd.f32 %v13728_v39, %v1672_v31  ;;  %v1574_v49 = vmul.f32 0.5, %v13105_v52  ;;  %v1379_v44 = vmul.f32 0.5, %v1273_v14  ;;  %v13910_v38 = vld [vmem:[#allocation2 + $0x41] sm:$0xff]  ;;  %v13925_v14 = vld [vmem:[#allocation2 + $0x49] sm:$0xff] }
 0x1b4   : > { %1795 = vst.msk [vmem:[#allocation2 + $0x68] sm:$0xff] %vm1781_vm2, %v1769_v53  ;;  %v1746_v56 = vadd.f32 %v13717_v16, %v1671_v8  ;;  %v1573_v55 = vmul.f32 0.5, %v13107_v57  ;;  %13116 = vtanh.f32 %v1380_v17  ;;  %11316 = vmatmul.mubr.msk.f32.gmra.mrb[8].mxu1 %vm1781_vm2, %v13846_v54  ;;  %v13912_v26 = vld [vmem:[#allocation2 + $0x44] sm:$0xff]  ;;  %v13927_v52 = vld [vmem:[#allocation2 + $0x4c] sm:$0xff] }
 0x1b5   : > { %11528 = vmatmul.mubr.msk.f32.gmra.mrb[108].mxu0 %vm1781_vm2, %v13848_v48  ;;  %v1772_v33 = vmul.f32 0.25, %v1747_v25  ;;  %v1674_v39 = vadd.f32 0.5, %v1574_v49  ;;  %13118 = vtanh.f32 %v1379_v44  ;;  %11318 = vmatprep.mubr.msk.f32.mxu1 %vm13164_vm1, %v16895_v59 }
 0x1b6   : > { %11530 = vmatprep.mubr.msk.f32.mxu0 %vm13164_vm1, %v16895_v59  ;;  %v13109_v61 = vpop.eup %13108  ;;  %v1771_v40 = vmul.f32 0.25, %v1746_v56  ;;  %v1673_v16 = vadd.f32 0.5, %v1573_v55 }
 0x1b7   : > { %v13111_v6 = vpop.eup %13110  ;;  %1798 = vst.msk [vmem:[#allocation2 + $0x80] sm:$0xff] %vm1781_vm2, %v1772_v33  ;;  %v1749_v10 = vadd.f32 %v13736_v51, %v1674_v39  ;;  %v1576_v12 = vmul.f32 0.5, %v13109_v61  ;;  %v13940_v53 = vld [vmem:[#allocation2 + $0x54] sm:$0xff]  ;;  %v13952_v17 = vld [vmem:[#allocation2 + $0x5c] sm:$0xff] }
 0x1b8   : > { %1797 = vst.msk [vmem:[#allocation2 + $0x78] sm:$0xff] %vm1781_vm2, %v1771_v40  ;;  %v1748_v28 = vadd.f32 %v13725_v24, %v1673_v16  ;;  %v1575_v36 = vmul.f32 0.5, %v13111_v6  ;;  %11319 = vmatmul.mubr.msk.f32.gmra.mrb[10].mxu1 %vm1781_vm2, %v13862_v7  ;;  %v13950_v8 = vld [vmem:[#allocation2 + $0x59] sm:$0xff]  ;;  %v10020_v16 = vld [vmem:[%s16889_s3 + $0x10] sm:$0xff] }
 0x1b9   : > { %11531 = vmatmul.mubr.msk.f32.gmra.mrb[110].mxu0 %vm1781_vm2, %v13864_v11  ;;  %v1774_v41 = vmul.f32 0.25, %v1749_v10  ;;  %v1676_v15 = vadd.f32 0.5, %v1576_v12  ;;  %11321 = vmatprep.mubr.msk.f32.mxu1 %vm13164_vm1, %v16895_v59  ;;  %v1807_v6 = vld [vmem:[#allocation2] sm:$0xff]  ;;  %v3194_v10 = vld [vmem:[#allocation2 + $0xf] sm:$0xff] }
 0x1ba   : > { %11533 = vmatprep.mubr.msk.f32.mxu0 %vm13164_vm1, %v16895_v59  ;;  %v13113_v51 = vpop.eup %13112  ;;  %v1773_v18 = vmul.f32 0.25, %v1748_v28  ;;  %v1675_v5 = vadd.f32 0.5, %v1575_v36  ;;  %v10128_v12 = vld [vmem:[%s16889_s3 + $0x40] sm:$0xff]  ;;  %v1808_v28 = vld [vmem:[#allocation2 + $0x8] sm:$0xff]  ;;  %v3195_v36 = vld [vmem:[#allocation2 + $0x17] sm:$0xff] }
 0x1bb   : > { %v13115_v27 = vpop.eup %13114  ;;  %1800 = vst.msk [vmem:[#allocation2 + $0x90] sm:$0xff] %vm1781_vm2, %v1774_v41  ;;  %v1751_v24 = vadd.f32 %v13744_v58, %v1676_v15  ;;  %v1578_v4 = vmul.f32 0.5, %v13113_v51  ;;  %v13962_v57 = vld [vmem:[#allocation2 + $0x61] sm:$0xff]  ;;  %v13974_v49 = vld [vmem:[#allocation2 + $0x69] sm:$0xff]  ;;  %v1810_v51 = vld [vmem:[#allocation2 + $0x18] sm:$0xff] }
 0x1bc   : > { %1799 = vst.msk [vmem:[#allocation2 + $0x88] sm:$0xff] %vm1781_vm2, %v1773_v18  ;;  %v1750_v30 = vadd.f32 %v13733_v62, %v1675_v5  ;;  %v1577_v35 = vmul.f32 0.5, %v13115_v27  ;;  %11322 = vmatmul.mubr.msk.f32.gmra.mrb[12].mxu1 %vm1781_vm2, %v13878_v63  ;;  %v13964_v25 = vld [vmem:[#allocation2 + $0x64] sm:$0xff]  ;;  %v13976_v44 = vld [vmem:[#allocation2 + $0x6c] sm:$0xff] }
 0x1bd   : > { %11534 = vmatmul.mubr.msk.f32.gmra.mrb[112].mxu0 %vm1781_vm2, %v13880_v19  ;;  %v1776_v32 = vmul.f32 0.25, %v1751_v24  ;;  %v1678_v13 = vadd.f32 0.5, %v1578_v4  ;;  %11324 = vmatprep.mubr.msk.f32.mxu1 %vm13164_vm1, %v16895_v59  ;;  %v1809_v41 = vld [vmem:[#allocation2 + $0x10] sm:$0xff]  ;;  %v3196_v15 = vld [vmem:[#allocation2 + $0x1f] sm:$0xff]  ;;  %v3197_v18 = vld [vmem:[#allocation2 + $0x27] sm:$0xff] }
 0x1be   : > { %11536 = vmatprep.mubr.msk.f32.mxu0 %vm13164_vm1, %v16895_v59  ;;  %v13117_v58 = vpop.eup %13116  ;;  %v1775_v37 = vmul.f32 0.25, %v1750_v30  ;;  %v1677_v2 = vadd.f32 0.5, %v1577_v35  ;;  %v1811_v5 = vld [vmem:[#allocation2 + $0x20] sm:$0xff]  ;;  %v3198_v27 = vld [vmem:[#allocation2 + $0x2f] sm:$0xff]  ;;  %v3199_v4 = vld [vmem:[#allocation2 + $0x37] sm:$0xff] }
 0x1bf   : > { %v13119_v3 = vpop.eup %13118  ;;  %1802 = vst.msk [vmem:[#allocation2 + $0xa0] sm:$0xff] %vm1781_vm2, %v1776_v32  ;;  %v1753_v62 = vadd.f32 %v13752_v42, %v1678_v13  ;;  %v1580_v50 = vmul.f32 0.5, %v13117_v58  ;;  %v13986_v56 = vld [vmem:[#allocation2 + $0x71] sm:$0xff]  ;;  %v13998_v33 = vld [vmem:[#allocation2 + $0x79] sm:$0xff]  ;;  %v1812_v24 = vld [vmem:[#allocation2 + $0x28] sm:$0xff] }
 0x1c0   : > { %1801 = vst.msk [vmem:[#allocation2 + $0x98] sm:$0xff] %vm1781_vm2, %v1775_v37  ;;  %v1752_v46 = vadd.f32 %v13741_v60, %v1677_v2  ;;  %v1579_v29 = vmul.f32 0.5, %v13119_v3  ;;  %11325 = vmatmul.mubr.msk.f32.gmra.mrb[14].mxu1 %vm1781_vm2, %v13894_v22  ;;  %v13988_v55 = vld [vmem:[#allocation2 + $0x74] sm:$0xff]  ;;  %v14000_v39 = vld [vmem:[#allocation2 + $0x7c] sm:$0xff]  ;;  %v3201_v13 = vld [vmem:[#allocation2 + $0x47] sm:$0xff] }
 0x1c1   : > { %11537 = vmatmul.mubr.msk.f32.gmra.mrb[114].mxu0 %vm1781_vm2, %v13896_v0  ;;  %v1778_v34 = vmul.f32 0.25, %v1753_v62  ;;  %v1680_v21 = vadd.f32 0.5, %v1580_v50  ;;  %11327 = vmatprep.mubr.msk.f32.mxu1 %vm13164_vm1, %v16895_v59  ;;  %v1813_v30 = vld [vmem:[#allocation2 + $0x30] sm:$0xff]  ;;  %v3200_v35 = vld [vmem:[#allocation2 + $0x3f] sm:$0xff]  ;;  %v1816_v2 = vld [vmem:[#allocation2 + $0x48] sm:$0xff] }
 0x1c2   : > { %11539 = vmatprep.mubr.msk.f32.mxu0 %vm13164_vm1, %v16895_v59  ;;  %v1777_v42 = vmul.f32 0.25, %v1752_v46  ;;  %v1679_v45 = vadd.f32 0.5, %v1579_v29  ;;  %v1814_v32 = vld [vmem:[#allocation2 + $0x38] sm:$0xff]  ;;  %v1815_v58 = vld [vmem:[#allocation2 + $0x40] sm:$0xff]  ;;  %v3202_v37 = vld [vmem:[#allocation2 + $0x4f] sm:$0xff] }
 0x1c3   : > { %1804 = vst.msk [vmem:[#allocation2 + $0xb0] sm:$0xff] %vm1781_vm2, %v1778_v34  ;;  %v1755_v60 = vadd.f32 %v13758_v1, %v1680_v21  ;;  %v14010_v61 = vld [vmem:[#allocation2 + $0x81] sm:$0xff]  ;;  %v3203_v3 = vld [vmem:[#allocation2 + $0x57] sm:$0xff]  ;;  %v3206_v21 = vld [vmem:[#allocation2 + $0x6f] sm:$0xff] }
 0x1c4   : > { %1803 = vst.msk [vmem:[#allocation2 + $0xa8] sm:$0xff] %vm1781_vm2, %v1777_v42  ;;  %v1754_v23 = vadd.f32 %v13749_v20, %v1679_v45  ;;  %11328 = vmatmul.mubr.msk.f32.gmra.mrb[16].mxu1 %vm1781_vm2, %v13910_v38  ;;  %v13938_v20 = vld [vmem:[#allocation2 + $0x51] sm:$0xff]  ;;  %v14012_v40 = vld [vmem:[#allocation2 + $0x84] sm:$0xff] }
 0x1c5   : > { %11540 = vmatmul.mubr.msk.f32.gmra.mrb[116].mxu0 %vm1781_vm2, %v13912_v26  ;;  %v1780_v31 = vmul.f32 0.25, %v1755_v60  ;;  %11330 = vmatprep.mubr.msk.f32.mxu1 %vm13164_vm1, %v16895_v59  ;;  %v1817_v62 = vld [vmem:[#allocation2 + $0x50] sm:$0xff]  ;;  %v3204_v50 = vld [vmem:[#allocation2 + $0x5f] sm:$0xff]  ;;  %v3205_v29 = vld [vmem:[#allocation2 + $0x67] sm:$0xff] }
 0x1c6   : > { %11542 = vmatprep.mubr.msk.f32.mxu0 %vm13164_vm1, %v16895_v59  ;;  %v1779_v1 = vmul.f32 0.25, %v1754_v23  ;;  %v1818_v46 = vld [vmem:[#allocation2 + $0x58] sm:$0xff]  ;;  %v1819_v34 = vld [vmem:[#allocation2 + $0x60] sm:$0xff]  ;;  %v1820_v42 = vld [vmem:[#allocation2 + $0x68] sm:$0xff] }
 0x1c7   : > { %1806 = vst.msk [vmem:[#allocation2 + $0xc0] sm:$0xff] %vm1781_vm2, %v1780_v31  ;;  %v3207_v45 = vld [vmem:[#allocation2 + $0x77] sm:$0xff]  ;;  %v3208_v23 = vld [vmem:[#allocation2 + $0x7f] sm:$0xff] }
 0x1c8   : > { %1805 = vst.msk [vmem:[#allocation2 + $0xb8] sm:$0xff] %vm1781_vm2, %v1779_v1  ;;  %11331 = vmatmul.mubr.msk.f32.gmra.mrb[18].mxu1 %vm1781_vm2, %v13925_v14  ;;  %v1821_v60 = vld [vmem:[#allocation2 + $0x70] sm:$0xff]  ;;  %v1822_v31 = vld [vmem:[#allocation2 + $0x78] sm:$0xff]  ;;  %v3209_v1 = vld [vmem:[#allocation2 + $0x87] sm:$0xff] }
 0x1c9   : > { %11543 = vmatmul.mubr.msk.f32.gmra.mrb[118].mxu0 %vm1781_vm2, %v13927_v52  ;;  %11333 = vmatprep.mubr.msk.f32.mxu1 %vm13164_vm1, %v16895_v59 }
 0x1ca   : > { %11545 = vmatprep.mubr.msk.f32.mxu0 %vm13164_vm1, %v16895_v59 }
 0x1cc   : > { %11334 = vmatmul.mubr.msk.f32.gmra.mrb[20].mxu1 %vm1781_vm2, %v13938_v20 }
 0x1cd   : > { %11546 = vmatmul.mubr.msk.f32.gmra.mrb[120].mxu0 %vm1781_vm2, %v13940_v53  ;;  %11336 = vmatprep.mubr.msk.f32.mxu1 %vm13164_vm1, %v16895_v59 }
 0x1ce   : > { %11548 = vmatprep.mubr.msk.f32.mxu0 %vm13164_vm1, %v16895_v59 }
 0x1d0   : > { %11337 = vmatmul.mubr.msk.f32.gmra.mrb[22].mxu1 %vm1781_vm2, %v13950_v8 }
 0x1d1   : > { %11549 = vmatmul.mubr.msk.f32.gmra.mrb[122].mxu0 %vm1781_vm2, %v13952_v17  ;;  %11339 = vmatprep.mubr.msk.f32.mxu1 %vm13164_vm1, %v16895_v59 }
 0x1d2   : > { %11551 = vmatprep.mubr.msk.f32.mxu0 %vm13164_vm1, %v16895_v59 }
 0x1d4   : > { %11340 = vmatmul.mubr.msk.f32.gmra.mrb[24].mxu1 %vm1781_vm2, %v13962_v57 }
 0x1d5   : > { %11552 = vmatmul.mubr.msk.f32.gmra.mrb[124].mxu0 %vm1781_vm2, %v13964_v25  ;;  %11342 = vmatprep.mubr.msk.f32.mxu1 %vm13164_vm1, %v16895_v59 }
 0x1d6   : > { %11554 = vmatprep.mubr.msk.f32.mxu0 %vm13164_vm1, %v16895_v59 }
 0x1d8   : > { %11343 = vmatmul.mubr.msk.f32.gmra.mrb[26].mxu1 %vm1781_vm2, %v13974_v49 }
 0x1d9   : > { %11555 = vmatmul.mubr.msk.f32.gmra.mrb[126].mxu0 %vm1781_vm2, %v13976_v44  ;;  %11345 = vmatprep.mubr.msk.f32.mxu1 %vm13164_vm1, %v16895_v59 }
 0x1da   : > { %11557 = vmatprep.mubr.msk.f32.mxu0 %vm13164_vm1, %v16895_v59 }
 0x1dc   : > { %11346 = vmatmul.mubr.msk.f32.gmra.mrb[28].mxu1 %vm1781_vm2, %v13986_v56 }
 0x1dd   : > { %11558 = vmatmul.mubr.msk.f32.gmra.mrb[128].mxu0 %vm1781_vm2, %v13988_v55  ;;  %11348 = vmatprep.mubr.msk.f32.mxu1 %vm13164_vm1, %v16895_v59 }
 0x1de   : > { %11560 = vmatprep.mubr.msk.f32.mxu0 %vm13164_vm1, %v16895_v59 }
 0x1e0   : > { %11349 = vmatmul.mubr.msk.f32.gmra.mrb[30].mxu1 %vm1781_vm2, %v13998_v33 }
 0x1e1   : > { %11561 = vmatmul.mubr.msk.f32.gmra.mrb[130].mxu0 %vm1781_vm2, %v14000_v39  ;;  %11351 = vmatprep.mubr.msk.f32.mxu1 %vm13164_vm1, %v16895_v59 }
 0x1e2   : > { %11563 = vmatprep.mubr.msk.f32.mxu0 %vm13164_vm1, %v16895_v59 }
 0x1e4   : > { %11352 = vmatmul.mubr.msk.f32.gmra.mrb[32].mxu1 %vm1781_vm2, %v14010_v61 }
 0x1e5   : > { %11564 = vmatmul.mubr.msk.f32.gmra.mrb[132].mxu0 %vm1781_vm2, %v14012_v40  ;;  %11356 = vmatprep.mubr.msk.f32.mxu1 %vm13164_vm1, %v16895_v59 }
 0x1e6   : > { %11621 = vmatprep.mubr.msk.f32.mxu0 %vm13164_vm1, %v16895_v59 }
 0x1e8   : > { %11357 = vmatmul.mubr.msk.f32.vlgmr.msra.gmra.mrb[34].mxu1 %vm1781_vm2, %v1807_v6  ;;  %v3210_v6 = vld [vmem:[#allocation2 + $0x8f] sm:$0xff] }
 0x1e9   : > { %11622 = vmatmul.mubr.msk.f32.vlgmr.msra.gmra.mrb[134].mxu0 %vm1781_vm2, %v3194_v10  ;;  %11359 = vmatprep.mubr.msk.f32.mxu1 %vm13164_vm1, %v16895_v59  ;;  %v2246_v10 = vld [vmem:[#allocation2 + $0x2] sm:$0xff] }
 0x1ea   : > { %11624 = vmatprep.mubr.msk.f32.mxu0 %vm13164_vm1, %v16895_v59  ;;  %11408 = vmatpush3.msra.mxu1 %v10020_v16  ;;  %v1823_v16 = vld [vmem:[#allocation2 + $0x80] sm:$0xff] }
 0x1eb   : > { %11726 = vmatpush3.msra.mxu0 %v10128_v12  ;;  %11460 = vmatprep.subr.mxu1 %v16895_v59  ;;  %v10038_v12 = vld [vmem:[%s16889_s3 + $0x18] sm:$0xff] }
 0x1ec   : > { %11831 = vmatprep.subr.mxu0 %v16895_v59  ;;  %11360 = vmatmul.mubr.msk.f32.gmra.mrb[36].mxu1 %vm1781_vm2, %v1808_v28  ;;  %v10164_v28 = vld [vmem:[%s16889_s3 + $0x50] sm:$0xff] }
 0x1ed   : > { %11625 = vmatmul.mubr.msk.f32.gmra.mrb[136].mxu0 %vm1781_vm2, %v3195_v36  ;;  %11362 = vmatprep.mubr.msk.f32.mxu1 %vm13164_vm1, %v16895_v59  ;;  %v2247_v36 = vld [vmem:[#allocation2 + $0xa] sm:$0xff] }
 0x1ee   : > { %11627 = vmatprep.mubr.msk.f32.mxu0 %vm13164_vm1, %v16895_v59 }
 0x1f0   : > { %11363 = vmatmul.mubr.msk.f32.gmra.mrb[38].mxu1 %vm1781_vm2, %v1809_v41  ;;  %v2249_v41 = vld [vmem:[#allocation2 + $0x1a] sm:$0xff] }
 0x1f1   : > { %11628 = vmatmul.mubr.msk.f32.gmra.mrb[138].mxu0 %vm1781_vm2, %v3196_v15  ;;  %11365 = vmatprep.mubr.msk.f32.mxu1 %vm13164_vm1, %v16895_v59  ;;  %v2262_v15 = vld [vmem:[#allocation2 + $0x82] sm:$0xff] }
 0x1f2   : > { %11630 = vmatprep.mubr.msk.f32.mxu0 %vm13164_vm1, %v16895_v59 }
 0x1f4   : > { %11366 = vmatmul.mubr.msk.f32.gmra.mrb[40].mxu1 %vm1781_vm2, %v1810_v51  ;;  %v2483_v51 = vld [vmem:[#allocation2 + $0x3] sm:$0xff] }
 0x1f5   : > { %11631 = vmatmul.mubr.msk.f32.gmra.mrb[140].mxu0 %vm1781_vm2, %v3197_v18  ;;  %11368 = vmatprep.mubr.msk.f32.mxu1 %vm13164_vm1, %v16895_v59  ;;  %v10074_v18 = vld [vmem:[%s16889_s3 + $0x28] sm:$0xff] }
 0x1f6   : > { %11633 = vmatprep.mubr.msk.f32.mxu0 %vm13164_vm1, %v16895_v59 }
 0x1f8   : > { %11369 = vmatmul.mubr.msk.f32.gmra.mrb[42].mxu1 %vm1781_vm2, %v1811_v5  ;;  %v10200_v5 = vld [vmem:[%s16889_s3 + $0x60] sm:$0xff] }
 0x1f9   : > { %11634 = vmatmul.mubr.msk.f32.gmra.mrb[142].mxu0 %vm1781_vm2, %v3198_v27  ;;  %11371 = vmatprep.mubr.msk.f32.mxu1 %vm13164_vm1, %v16895_v59  ;;  %v2484_v27 = vld [vmem:[#allocation2 + $0xb] sm:$0xff] }
 0x1fa   : > { %11636 = vmatprep.mubr.msk.f32.mxu0 %vm13164_vm1, %v16895_v59 }
 0x1fc   : > { %11372 = vmatmul.mubr.msk.f32.gmra.mrb[44].mxu1 %vm1781_vm2, %v1812_v24 }
 0x1fd   : > { %11637 = vmatmul.mubr.msk.f32.gmra.mrb[144].mxu0 %vm1781_vm2, %v3199_v4  ;;  %11374 = vmatprep.mubr.msk.f32.mxu1 %vm13164_vm1, %v16895_v59  ;;  %v2485_v4 = vld [vmem:[#allocation2 + $0x13] sm:$0xff] }
 0x1fe   : > { %11639 = vmatprep.mubr.msk.f32.mxu0 %vm13164_vm1, %v16895_v59 }
 0x200   : > { %11375 = vmatmul.mubr.msk.f32.gmra.mrb[46].mxu1 %vm1781_vm2, %v1813_v30 }
 0x201   : > { %11640 = vmatmul.mubr.msk.f32.gmra.mrb[146].mxu0 %vm1781_vm2, %v3200_v35  ;;  %11377 = vmatprep.mubr.msk.f32.mxu1 %vm13164_vm1, %v16895_v59 }
 0x202   : > { %11642 = vmatprep.mubr.msk.f32.mxu0 %vm13164_vm1, %v16895_v59 }
 0x204   : > { %11378 = vmatmul.mubr.msk.f32.gmra.mrb[48].mxu1 %vm1781_vm2, %v1814_v32 }
 0x205   : > { %11643 = vmatmul.mubr.msk.f32.gmra.mrb[148].mxu0 %vm1781_vm2, %v3201_v13  ;;  %11380 = vmatprep.mubr.msk.f32.mxu1 %vm13164_vm1, %v16895_v59  ;;  %v2486_v13 = vld [vmem:[#allocation2 + $0x1b] sm:$0xff] }
 0x206   : > { %11645 = vmatprep.mubr.msk.f32.mxu0 %vm13164_vm1, %v16895_v59 }
 0x208   : > { %11381 = vmatmul.mubr.msk.f32.gmra.mrb[50].mxu1 %vm1781_vm2, %v1815_v58 }
 0x209   : > { %11646 = vmatmul.mubr.msk.f32.gmra.mrb[150].mxu0 %vm1781_vm2, %v3202_v37  ;;  %11383 = vmatprep.mubr.msk.f32.mxu1 %vm13164_vm1, %v16895_v59 }
 0x20a   : > { %11648 = vmatprep.mubr.msk.f32.mxu0 %vm13164_vm1, %v16895_v59 }
 0x20c   : > { %11384 = vmatmul.mubr.msk.f32.gmra.mrb[52].mxu1 %vm1781_vm2, %v1816_v2 }
 0x20d   : > { %11649 = vmatmul.mubr.msk.f32.gmra.mrb[152].mxu0 %vm1781_vm2, %v3203_v3  ;;  %11386 = vmatprep.mubr.msk.f32.mxu1 %vm13164_vm1, %v16895_v59  ;;  %v2487_v3 = vld [vmem:[#allocation2 + $0x23] sm:$0xff] }
 0x20e   : > { %11651 = vmatprep.mubr.msk.f32.mxu0 %vm13164_vm1, %v16895_v59 }
 0x210   : > { %11387 = vmatmul.mubr.msk.f32.gmra.mrb[54].mxu1 %vm1781_vm2, %v1817_v62 }
 0x211   : > { %11652 = vmatmul.mubr.msk.f32.gmra.mrb[154].mxu0 %vm1781_vm2, %v3204_v50  ;;  %11389 = vmatprep.mubr.msk.f32.mxu1 %vm13164_vm1, %v16895_v59 }
 0x212   : > { %11654 = vmatprep.mubr.msk.f32.mxu0 %vm13164_vm1, %v16895_v59 }
 0x214   : > { %11390 = vmatmul.mubr.msk.f32.gmra.mrb[56].mxu1 %vm1781_vm2, %v1818_v46 }
 0x215   : > { %11655 = vmatmul.mubr.msk.f32.gmra.mrb[156].mxu0 %vm1781_vm2, %v3205_v29  ;;  %11392 = vmatprep.mubr.msk.f32.mxu1 %vm13164_vm1, %v16895_v59  ;;  %v14316_v29 = vld [vmem:[#allocation2 + $0x2b] sm:$0xff] }
 0x216   : > { %11657 = vmatprep.mubr.msk.f32.mxu0 %vm13164_vm1, %v16895_v59 }
 0x218   : > { %11393 = vmatmul.mubr.msk.f32.gmra.mrb[58].mxu1 %vm1781_vm2, %v1819_v34 }
 0x219   : > { %11658 = vmatmul.mubr.msk.f32.gmra.mrb[158].mxu0 %vm1781_vm2, %v3206_v21  ;;  %11395 = vmatprep.mubr.msk.f32.mxu1 %vm13164_vm1, %v16895_v59 }
 0x21a   : > { %11660 = vmatprep.mubr.msk.f32.mxu0 %vm13164_vm1, %v16895_v59 }
 0x21c   : > { %11396 = vmatmul.mubr.msk.f32.gmra.mrb[60].mxu1 %vm1781_vm2, %v1820_v42 }
 0x21d   : > { %11661 = vmatmul.mubr.msk.f32.gmra.mrb[160].mxu0 %vm1781_vm2, %v3207_v45  ;;  %11398 = vmatprep.mubr.msk.f32.mxu1 %vm13164_vm1, %v16895_v59  ;;  %v14330_v45 = vld [vmem:[#allocation2 + $0x33] sm:$0xff] }
 0x21e   : > { %11663 = vmatprep.mubr.msk.f32.mxu0 %vm13164_vm1, %v16895_v59 }
 0x220   : > { %11399 = vmatmul.mubr.msk.f32.gmra.mrb[62].mxu1 %vm1781_vm2, %v1821_v60 }
 0x221   : > { %11664 = vmatmul.mubr.msk.f32.gmra.mrb[162].mxu0 %vm1781_vm2, %v3208_v23  ;;  %11401 = vmatprep.mubr.msk.f32.mxu1 %vm13164_vm1, %v16895_v59 }
 0x222   : > { %11666 = vmatprep.mubr.msk.f32.mxu0 %vm13164_vm1, %v16895_v59 }
 0x224   : > { %11402 = vmatmul.mubr.msk.f32.gmra.mrb[64].mxu1 %vm1781_vm2, %v1822_v31 }
 0x225   : > { %11667 = vmatmul.mubr.msk.f32.gmra.mrb[164].mxu0 %vm1781_vm2, %v3209_v1  ;;  %11404 = vmatprep.mubr.msk.f32.mxu1 %vm13164_vm1, %v16895_v59  ;;  %v2490_v1 = vld [vmem:[#allocation2 + $0x3b] sm:$0xff] }
 0x226   : > { %11669 = vmatprep.mubr.msk.f32.mxu0 %vm13164_vm1, %v16895_v59 }
 0x228   : > { %11405 = vmatmul.mubr.msk.f32.gmra.mrb[66].mxu1 %vm1781_vm2, %v1823_v16 }
 0x229   : > { %11670 = vmatmul.mubr.msk.f32.gmra.mrb[166].mxu0 %vm1781_vm2, %v3210_v6  ;;  %11409 = vmatprep.mubr.msk.f32.mxu1 %vm13164_vm1, %v16895_v59 }
 0x22a   : > { %11727 = vmatprep.mubr.msk.f32.mxu0 %vm13164_vm1, %v16895_v59 }
 0x22c   : > { %11410 = vmatmul.mubr.msk.f32.vlgmr.msra.gmra.mrb[68].mxu1 %vm1781_vm2, %v2246_v10 }
 0x22d   : > { %11728 = vmatmul.mubr.msk.f32.vlgmr.msra.gmra.mrb[168].mxu0 %vm1781_vm2, %v13813_v43  ;;  %11412 = vmatprep.mubr.msk.f32.mxu1 %vm13164_vm1, %v16895_v59  ;;  %v2248_v43 = vld [vmem:[#allocation2 + $0x12] sm:$0xff] }
 0x22e   : > { %11730 = vmatprep.mubr.msk.f32.mxu0 %vm13164_vm1, %v16895_v59  ;;  %11461 = vmatpush3.msra.mxu1 %v10038_v12  ;;  %v2491_v12 = vld [vmem:[#allocation2 + $0x43] sm:$0xff] }
 0x22f   : > { %11832 = vmatpush3.msra.mxu0 %v10164_v28  ;;  %11566 = vmatprep.subr.mxu1 %v16895_v59 }
 0x230   : > { %11937 = vmatprep.subr.mxu0 %v16895_v59  ;;  %11413 = vmatmul.mubr.msk.f32.gmra.mrb[70].mxu1 %vm1781_vm2, %v2247_v36 }
 0x231   : > { %11731 = vmatmul.mubr.msk.f32.gmra.mrb[170].mxu0 %vm1781_vm2, %v13828_v47  ;;  %11415 = vmatprep.mubr.msk.f32.mxu1 %vm13164_vm1, %v16895_v59  ;;  %v2250_v47 = vld [vmem:[#allocation2 + $0x22] sm:$0xff] }
 0x232   : > { %11733 = vmatprep.mubr.msk.f32.mxu0 %vm13164_vm1, %v16895_v59 }
 0x234   : > { %11416 = vmatmul.mubr.msk.f32.gmra.mrb[72].mxu1 %vm1781_vm2, %v2248_v43 }
 0x235   : > { %11734 = vmatmul.mubr.msk.f32.gmra.mrb[172].mxu0 %vm1781_vm2, %v13846_v54  ;;  %11418 = vmatprep.mubr.msk.f32.mxu1 %vm13164_vm1, %v16895_v59  ;;  %v2251_v54 = vld [vmem:[#allocation2 + $0x2a] sm:$0xff] }
 0x236   : > { %11736 = vmatprep.mubr.msk.f32.mxu0 %vm13164_vm1, %v16895_v59 }
 0x238   : > { %11419 = vmatmul.mubr.msk.f32.gmra.mrb[74].mxu1 %vm1781_vm2, %v2249_v41  ;;  %v2492_v41 = vld [vmem:[#allocation2 + $0x4b] sm:$0xff] }
 0x239   : > { %11737 = vmatmul.mubr.msk.f32.gmra.mrb[174].mxu0 %vm1781_vm2, %v13862_v7  ;;  %11421 = vmatprep.mubr.msk.f32.mxu1 %vm13164_vm1, %v16895_v59  ;;  %v2252_v7 = vld [vmem:[#allocation2 + $0x32] sm:$0xff] }
 0x23a   : > { %11739 = vmatprep.mubr.msk.f32.mxu0 %vm13164_vm1, %v16895_v59 }
 0x23c   : > { %11422 = vmatmul.mubr.msk.f32.gmra.mrb[76].mxu1 %vm1781_vm2, %v2250_v47 }
 0x23d   : > { %11740 = vmatmul.mubr.msk.f32.gmra.mrb[176].mxu0 %vm1781_vm2, %v13878_v63  ;;  %11424 = vmatprep.mubr.msk.f32.mxu1 %vm13164_vm1, %v16895_v59  ;;  %v2253_v63 = vld [vmem:[#allocation2 + $0x3a] sm:$0xff] }
 0x23e   : > { %11742 = vmatprep.mubr.msk.f32.mxu0 %vm13164_vm1, %v16895_v59 }
 0x240   : > { %11425 = vmatmul.mubr.msk.f32.gmra.mrb[78].mxu1 %vm1781_vm2, %v2251_v54 }
 0x241   : > { %11743 = vmatmul.mubr.msk.f32.gmra.mrb[178].mxu0 %vm1781_vm2, %v13894_v22  ;;  %11427 = vmatprep.mubr.msk.f32.mxu1 %vm13164_vm1, %v16895_v59  ;;  %v2254_v22 = vld [vmem:[#allocation2 + $0x42] sm:$0xff] }
 0x242   : > { %11745 = vmatprep.mubr.msk.f32.mxu0 %vm13164_vm1, %v16895_v59 }
 0x244   : > { %11428 = vmatmul.mubr.msk.f32.gmra.mrb[80].mxu1 %vm1781_vm2, %v2252_v7 }
 0x245   : > { %11746 = vmatmul.mubr.msk.f32.gmra.mrb[180].mxu0 %vm1781_vm2, %v13910_v38  ;;  %11430 = vmatprep.mubr.msk.f32.mxu1 %vm13164_vm1, %v16895_v59  ;;  %v2255_v38 = vld [vmem:[#allocation2 + $0x4a] sm:$0xff] }
 0x246   : > { %11748 = vmatprep.mubr.msk.f32.mxu0 %vm13164_vm1, %v16895_v59 }
 0x248   : > { %11431 = vmatmul.mubr.msk.f32.gmra.mrb[82].mxu1 %vm1781_vm2, %v2253_v63  ;;  %v2493_v63 = vld [vmem:[#allocation2 + $0x53] sm:$0xff] }
 0x249   : > { %11749 = vmatmul.mubr.msk.f32.gmra.mrb[182].mxu0 %vm1781_vm2, %v13925_v14  ;;  %11433 = vmatprep.mubr.msk.f32.mxu1 %vm13164_vm1, %v16895_v59  ;;  %v2256_v14 = vld [vmem:[#allocation2 + $0x52] sm:$0xff] }
 0x24a   : > { %11751 = vmatprep.mubr.msk.f32.mxu0 %vm13164_vm1, %v16895_v59 }
 0x24c   : > { %11434 = vmatmul.mubr.msk.f32.gmra.mrb[84].mxu1 %vm1781_vm2, %v2254_v22 }
 0x24d   : > { %11752 = vmatmul.mubr.msk.f32.gmra.mrb[184].mxu0 %vm1781_vm2, %v13938_v20  ;;  %11436 = vmatprep.mubr.msk.f32.mxu1 %vm13164_vm1, %v16895_v59  ;;  %v2257_v20 = vld [vmem:[#allocation2 + $0x5a] sm:$0xff] }
 0x24e   : > { %11754 = vmatprep.mubr.msk.f32.mxu0 %vm13164_vm1, %v16895_v59 }
 0x250   : > { %11437 = vmatmul.mubr.msk.f32.gmra.mrb[86].mxu1 %vm1781_vm2, %v2255_v38 }
 0x251   : > { %11755 = vmatmul.mubr.msk.f32.gmra.mrb[186].mxu0 %vm1781_vm2, %v13950_v8  ;;  %11439 = vmatprep.mubr.msk.f32.mxu1 %vm13164_vm1, %v16895_v59  ;;  %v2258_v8 = vld [vmem:[#allocation2 + $0x62] sm:$0xff] }
 0x252   : > { %11757 = vmatprep.mubr.msk.f32.mxu0 %vm13164_vm1, %v16895_v59 }
 0x254   : > { %11440 = vmatmul.mubr.msk.f32.gmra.mrb[88].mxu1 %vm1781_vm2, %v2256_v14 }
 0x255   : > { %11758 = vmatmul.mubr.msk.f32.gmra.mrb[188].mxu0 %vm1781_vm2, %v13962_v57  ;;  %11442 = vmatprep.mubr.msk.f32.mxu1 %vm13164_vm1, %v16895_v59  ;;  %v2259_v57 = vld [vmem:[#allocation2 + $0x6a] sm:$0xff] }
 0x256   : > { %11760 = vmatprep.mubr.msk.f32.mxu0 %vm13164_vm1, %v16895_v59 }
 0x258   : > { %11443 = vmatmul.mubr.msk.f32.gmra.mrb[90].mxu1 %vm1781_vm2, %v2257_v20  ;;  %v2494_v20 = vld [vmem:[#allocation2 + $0x5b] sm:$0xff] }
 0x259   : > { %11761 = vmatmul.mubr.msk.f32.gmra.mrb[190].mxu0 %vm1781_vm2, %v13974_v49  ;;  %11445 = vmatprep.mubr.msk.f32.mxu1 %vm13164_vm1, %v16895_v59  ;;  %v2260_v49 = vld [vmem:[#allocation2 + $0x72] sm:$0xff] }
 0x25a   : > { %11763 = vmatprep.mubr.msk.f32.mxu0 %vm13164_vm1, %v16895_v59 }
 0x25c   : > { %11446 = vmatmul.mubr.msk.f32.gmra.mrb[92].mxu1 %vm1781_vm2, %v2258_v8 }
 0x25d   : > { %11764 = vmatmul.mubr.msk.f32.gmra.mrb[192].mxu0 %vm1781_vm2, %v13986_v56  ;;  %11448 = vmatprep.mubr.msk.f32.mxu1 %vm13164_vm1, %v16895_v59  ;;  %v2261_v56 = vld [vmem:[#allocation2 + $0x7a] sm:$0xff] }
 0x25e   : > { %11766 = vmatprep.mubr.msk.f32.mxu0 %vm13164_vm1, %v16895_v59 }
 0x260   : > { %11449 = vmatmul.mubr.msk.f32.gmra.mrb[94].mxu1 %vm1781_vm2, %v2259_v57 }
 0x261   : > { %11767 = vmatmul.mubr.msk.f32.gmra.mrb[194].mxu0 %vm1781_vm2, %v13998_v33  ;;  %11451 = vmatprep.mubr.msk.f32.mxu1 %vm13164_vm1, %v16895_v59  ;;  %v3683_v33 = vld [vmem:[#allocation2 + $0x89] sm:$0xff] }
 0x262   : > { %11769 = vmatprep.mubr.msk.f32.mxu0 %vm13164_vm1, %v16895_v59 }
 0x264   : > { %11452 = vmatmul.mubr.msk.f32.gmra.mrb[96].mxu1 %vm1781_vm2, %v2260_v49 }
 0x265   : > { %11770 = vmatmul.mubr.msk.f32.gmra.mrb[196].mxu0 %vm1781_vm2, %v14010_v61  ;;  %11454 = vmatprep.mubr.msk.f32.mxu1 %vm13164_vm1, %v16895_v59  ;;  %v3684_v61 = vld [vmem:[#allocation2 + $0x91] sm:$0xff] }
 0x266   : > { %11772 = vmatprep.mubr.msk.f32.mxu0 %vm13164_vm1, %v16895_v59 }
 0x268   : > { %11455 = vmatmul.mubr.msk.f32.gmra.mrb[98].mxu1 %vm1781_vm2, %v2261_v56  ;;  %v2495_v56 = vld [vmem:[#allocation2 + $0x63] sm:$0xff] }
 0x269   : > { %11773 = vmatmul.mubr.msk.f32.gmra.mrb[198].mxu0 %vm1781_vm2, %v3683_v33  ;;  %11457 = vmatprep.mubr.msk.f32.mxu1 %vm13164_vm1, %v16895_v59 }
 0x26a   : > { %11775 = vmatprep.mubr.msk.f32.mxu0 %vm13164_vm1, %v16895_v59 }
 0x26c   : > { %11458 = vmatmul.mubr.msk.f32.gmra.mrb[100].mxu1 %vm1781_vm2, %v2262_v15 }
 0x26d   : > { %11776 = vmatmul.mubr.msk.f32.gmra.mrb[200].mxu0 %vm1781_vm2, %v3684_v61  ;;  %11462 = vmatprep.mubr.msk.f32.mxu1 %vm13164_vm1, %v16895_v59 }
 0x26e   : > { %11833 = vmatprep.mubr.msk.f32.mxu0 %vm13164_vm1, %v16895_v59 }
 0x270   : > { %11463 = vmatmul.mubr.msk.f32.vlgmr.msra.gmra.mrb[102].mxu1 %vm1781_vm2, %v2483_v51  ;;  %v2496_v51 = vld [vmem:[#allocation2 + $0x6b] sm:$0xff] }
 0x271   : > { %11834 = vmatmul.mubr.msk.f32.vlgmr.msra.gmra.mrb[202].mxu0 %vm1781_vm2, %v13830_v9  ;;  %11465 = vmatprep.mubr.msk.f32.mxu1 %vm13164_vm1, %v16895_v59 }
 0x272   : > { %11836 = vmatprep.mubr.msk.f32.mxu0 %vm13164_vm1, %v16895_v59  ;;  %11567 = vmatpush3.msra.mxu1 %v10074_v18 }
 0x273   : > { %11938 = vmatpush3.msra.mxu0 %v10200_v5  ;;  %11672 = vmatprep.subr.mxu1 %v16895_v59 }
 0x274   : > { %12043 = vmatprep.subr.mxu0 %v16895_v59  ;;  %11466 = vmatmul.mubr.msk.f32.gmra.mrb[104].mxu1 %vm1781_vm2, %v2484_v27 }
 0x275   : > { %11837 = vmatmul.mubr.msk.f32.gmra.mrb[204].mxu0 %vm1781_vm2, %v13848_v48  ;;  %11468 = vmatprep.mubr.msk.f32.mxu1 %vm13164_vm1, %v16895_v59 }
 0x276   : > { %11839 = vmatprep.mubr.msk.f32.mxu0 %vm13164_vm1, %v16895_v59 }
 0x277   : > { %v14279_v9 = vpop.f32.mrb[0].mxu1 }
 0x278   : > { %v14281_v24 = vpop.f32.mrb[100].mxu0  ;;  %v11305_v30 = vpop.f32.mrb[1].mxu1  ;;  %11469 = vmatmul.mubr.msk.f32.gmra.mrb[106].mxu1 %vm1781_vm2, %v2485_v4  ;;  %v2497_v4 = vld [vmem:[#allocation2 + $0x73] sm:$0xff] }
 0x279   : > { %v11517_v35 = vpop.f32.mrb[101].mxu0  ;;  %11840 = vmatmul.mubr.msk.f32.gmra.mrb[206].mxu0 %vm1781_vm2, %v13864_v11  ;;  %11471 = vmatprep.mubr.msk.f32.mxu1 %vm13164_vm1, %v16895_v59  ;;  %v4156_v30 = vld [vmem:[#allocation2 + $0x8c] sm:$0xff] }
 0x27a   : > { %11842 = vmatprep.mubr.msk.f32.mxu0 %vm13164_vm1, %v16895_v59 }
 0x27b   : > { %v14290_v48 = vpop.f32.mrb[2].mxu1 }
 0x27c   : > { %v14292_v32 = vpop.f32.mrb[102].mxu0  ;;  %v11308_v58 = vpop.f32.mrb[3].mxu1  ;;  %11472 = vmatmul.mubr.msk.f32.gmra.mrb[108].mxu1 %vm1781_vm2, %v2486_v13 }
 0x27d   : > { %v11520_v37 = vpop.f32.mrb[103].mxu0  ;;  %11843 = vmatmul.mubr.msk.f32.gmra.mrb[208].mxu0 %vm1781_vm2, %v13880_v19  ;;  %11474 = vmatprep.mubr.msk.f32.mxu1 %vm13164_vm1, %v16895_v59 }
 0x27e   : > { %11845 = vmatprep.mubr.msk.f32.mxu0 %vm13164_vm1, %v16895_v59  ;;  %v2498_v37 = vld [vmem:[#allocation2 + $0x7b] sm:$0xff] }
 0x27f   : > { %v14301_v11 = vpop.f32.mrb[4].mxu1 }
 0x280   : > { %v14303_v2 = vpop.f32.mrb[104].mxu0  ;;  %v11311_v62 = vpop.f32.mrb[5].mxu1  ;;  %11475 = vmatmul.mubr.msk.f32.gmra.mrb[110].mxu1 %vm1781_vm2, %v2487_v3  ;;  %v4157_v3 = vld [vmem:[#allocation2 + $0x94] sm:$0xff] }
 0x281   : > { %v11523_v50 = vpop.f32.mrb[105].mxu0  ;;  %11846 = vmatmul.mubr.msk.f32.gmra.mrb[210].mxu0 %vm1781_vm2, %v13896_v0  ;;  %11477 = vmatprep.mubr.msk.f32.mxu1 %vm13164_vm1, %v16895_v59 }
 0x282   : > { %11848 = vmatprep.mubr.msk.f32.mxu0 %vm13164_vm1, %v16895_v59 }
 0x283   : > { %v14312_v19 = vpop.f32.mrb[6].mxu1 }
 0x284   : > { %v14314_v46 = vpop.f32.mrb[106].mxu0  ;;  %v11314_v34 = vpop.f32.mrb[7].mxu1  ;;  %11478 = vmatmul.mubr.msk.f32.gmra.mrb[112].mxu1 %vm1781_vm2, %v14316_v29 }
 0x285   : > { %v11526_v21 = vpop.f32.mrb[107].mxu0  ;;  %11849 = vmatmul.mubr.msk.f32.gmra.mrb[212].mxu0 %vm1781_vm2, %v13912_v26  ;;  %11480 = vmatprep.mubr.msk.f32.mxu1 %vm13164_vm1, %v16895_v59 }
 0x286   : > { %11851 = vmatprep.mubr.msk.f32.mxu0 %vm13164_vm1, %v16895_v59 }
 0x287   : > { %v14326_v0 = vpop.f32.mrb[8].mxu1 }
 0x288   : > { %v14328_v42 = vpop.f32.mrb[108].mxu0  ;;  %v11317_v60 = vpop.f32.mrb[9].mxu1  ;;  %11481 = vmatmul.mubr.msk.f32.gmra.mrb[114].mxu1 %vm1781_vm2, %v14330_v45 }
 0x289   : > { %v11529_v23 = vpop.f32.mrb[109].mxu0  ;;  %11852 = vmatmul.mubr.msk.f32.gmra.mrb[214].mxu0 %vm1781_vm2, %v13927_v52  ;;  %11483 = vmatprep.mubr.msk.f32.mxu1 %vm13164_vm1, %v16895_v59  ;;  %v2499_v60 = vld [vmem:[#allocation2 + $0x83] sm:$0xff] }
 0x28a   : > { %11854 = vmatprep.mubr.msk.f32.mxu0 %vm13164_vm1, %v16895_v59  ;;  %v4158_v23 = vld [vmem:[#allocation2 + $0x9c] sm:$0xff] }
 0x28b   : > { %v14340_v26 = vpop.f32.mrb[10].mxu1 }
 0x28c   : > { %v14342_v31 = vpop.f32.mrb[110].mxu0  ;;  %v11320_v16 = vpop.f32.mrb[11].mxu1  ;;  %11484 = vmatmul.mubr.msk.f32.gmra.mrb[116].mxu1 %vm1781_vm2, %v2490_v1 }
 0x28d   : > { %v11532_v6 = vpop.f32.mrb[111].mxu0  ;;  %11855 = vmatmul.mubr.msk.f32.gmra.mrb[216].mxu0 %vm1781_vm2, %v13940_v53  ;;  %11486 = vmatprep.mubr.msk.f32.mxu1 %vm13164_vm1, %v16895_v59 }
 0x28e   : > { %11857 = vmatprep.mubr.msk.f32.mxu0 %vm13164_vm1, %v16895_v59  ;;  %v2957_v6 = vld [vmem:[#allocation2 + $0xe] sm:$0xff] }
 0x28f   : > { %v14351_v52 = vpop.f32.mrb[12].mxu1 }
 0x290   : > { %v14353_v10 = vpop.f32.mrb[112].mxu0  ;;  %v11323_v28 = vpop.f32.mrb[13].mxu1  ;;  %11487 = vmatmul.mubr.msk.f32.gmra.mrb[118].mxu1 %vm1781_vm2, %v2491_v12 }
 0x291   : > { %v11535_v36 = vpop.f32.mrb[113].mxu0  ;;  %11858 = vmatmul.mubr.msk.f32.gmra.mrb[218].mxu0 %vm1781_vm2, %v13952_v17  ;;  %11489 = vmatprep.mubr.msk.f32.mxu1 %vm13164_vm1, %v16895_v59 }
 0x292   : > { %11860 = vmatprep.mubr.msk.f32.mxu0 %vm13164_vm1, %v16895_v59  ;;  %v4616_v36 = vld [vmem:[#allocation2 + $0x1e] sm:$0xff] }
 0x293   : > { %v14362_v53 = vpop.f32.mrb[14].mxu1 }
 0x294   : > { %v14364_v43 = vpop.f32.mrb[114].mxu0  ;;  %v11326_v47 = vpop.f32.mrb[15].mxu1  ;;  %11490 = vmatmul.mubr.msk.f32.gmra.mrb[120].mxu1 %vm1781_vm2, %v2492_v41  ;;  %v10110_v41 = vld [vmem:[%s16889_s3 + $0x38] sm:$0xff] }
 0x295   : > { %v11538_v54 = vpop.f32.mrb[115].mxu0  ;;  %11861 = vmatmul.mubr.msk.f32.gmra.mrb[220].mxu0 %vm1781_vm2, %v13964_v25  ;;  %11492 = vmatprep.mubr.msk.f32.mxu1 %vm13164_vm1, %v16895_v59  ;;  %v10236_v47 = vld [vmem:[%s16889_s3 + $0x70] sm:$0xff] }
 0x296   : > { %11863 = vmatprep.mubr.msk.f32.mxu0 %vm13164_vm1, %v16895_v59 }
 0x297   : > { %v14373_v17 = vpop.f32.mrb[16].mxu1 }
 0x298   : > { %v14375_v7 = vpop.f32.mrb[116].mxu0  ;;  %v11329_v22 = vpop.f32.mrb[17].mxu1  ;;  %11493 = vmatmul.mubr.msk.f32.gmra.mrb[122].mxu1 %vm1781_vm2, %v2493_v63 }
 0x299   : > { %v11541_v38 = vpop.f32.mrb[117].mxu0  ;;  %11864 = vmatmul.mubr.msk.f32.gmra.mrb[222].mxu0 %vm1781_vm2, %v13976_v44  ;;  %11495 = vmatprep.mubr.msk.f32.mxu1 %vm13164_vm1, %v16895_v59 }
 0x29a   : > { %11866 = vmatprep.mubr.msk.f32.mxu0 %vm13164_vm1, %v16895_v59 }
 0x29b   : > { %v14384_v25 = vpop.f32.mrb[18].mxu1 }
 0x29c   : > { %v14386_v14 = vpop.f32.mrb[118].mxu0  ;;  %v11332_v8 = vpop.f32.mrb[19].mxu1  ;;  %11496 = vmatmul.mubr.msk.f32.gmra.mrb[124].mxu1 %vm1781_vm2, %v2494_v20  ;;  %v2958_v20 = vld [vmem:[#allocation2 + $0x16] sm:$0xff] }
 0x29d   : > { %v11544_v57 = vpop.f32.mrb[119].mxu0  ;;  %11867 = vmatmul.mubr.msk.f32.gmra.mrb[224].mxu0 %vm1781_vm2, %v13988_v55  ;;  %11498 = vmatprep.mubr.msk.f32.mxu1 %vm13164_vm1, %v16895_v59  ;;  %v4617_v8 = vld [vmem:[#allocation2 + $0x26] sm:$0xff] }
 0x29e   : > { %11869 = vmatprep.mubr.msk.f32.mxu0 %vm13164_vm1, %v16895_v59 }
 0x29f   : > { %v14395_v44 = vpop.f32.mrb[20].mxu1 }
 0x2a0   : > { %v14397_v49 = vpop.f32.mrb[120].mxu0  ;;  %v11335_v33 = vpop.f32.mrb[21].mxu1  ;;  %11499 = vmatmul.mubr.msk.f32.gmra.mrb[126].mxu1 %vm1781_vm2, %v2495_v56 }
 0x2a1   : > { %v11547_v15 = vpop.f32.mrb[121].mxu0  ;;  %11870 = vmatmul.mubr.msk.f32.gmra.mrb[226].mxu0 %vm1781_vm2, %v14000_v39  ;;  %11501 = vmatprep.mubr.msk.f32.mxu1 %vm13164_vm1, %v16895_v59 }
 0x2a2   : > { %11872 = vmatprep.mubr.msk.f32.mxu0 %vm13164_vm1, %v16895_v59 }
 0x2a3   : > { %v14406_v55 = vpop.f32.mrb[22].mxu1 }
 0x2a4   : > { %v14408_v61 = vpop.f32.mrb[122].mxu0  ;;  %v11338_v18 = vpop.f32.mrb[23].mxu1  ;;  %11502 = vmatmul.mubr.msk.f32.gmra.mrb[128].mxu1 %vm1781_vm2, %v2496_v51  ;;  %v4618_v51 = vld [vmem:[#allocation2 + $0x2e] sm:$0xff] }
 0x2a5   : > { %v11550_v5 = vpop.f32.mrb[123].mxu0  ;;  %11873 = vmatmul.mubr.msk.f32.gmra.mrb[228].mxu0 %vm1781_vm2, %v14012_v40  ;;  %11504 = vmatprep.mubr.msk.f32.mxu1 %vm13164_vm1, %v16895_v59 }
 0x2a6   : > { %11875 = vmatprep.mubr.msk.f32.mxu0 %vm13164_vm1, %v16895_v59 }
 0x2a7   : > { %v14417_v39 = vpop.f32.mrb[24].mxu1 }
 0x2a8   : > { %v14419_v27 = vpop.f32.mrb[124].mxu0  ;;  %v11341_v35 = vpop.f32.mrb[25].mxu1  ;;  %11505 = vmatmul.mubr.msk.f32.gmra.mrb[130].mxu1 %vm1781_vm2, %v2497_v4 }
 0x2a9   : > { %v11553_v13 = vpop.f32.mrb[125].mxu0  ;;  %11876 = vmatmul.mubr.msk.f32.gmra.mrb[230].mxu0 %vm1781_vm2, %v4156_v30  ;;  %11507 = vmatprep.mubr.msk.f32.mxu1 %vm13164_vm1, %v16895_v59 }
 0x2aa   : > { %11878 = vmatprep.mubr.msk.f32.mxu0 %vm13164_vm1, %v16895_v59  ;;  %v4619_v13 = vld [vmem:[#allocation2 + $0x36] sm:$0xff] }
 0x2ab   : > { %v14427_v40 = vpop.f32.mrb[26].mxu1 }
 0x2ac   : > { %v14429_v58 = vpop.f32.mrb[126].mxu0  ;;  %v11344_v62 = vpop.f32.mrb[27].mxu1  ;;  %11508 = vmatmul.mubr.msk.f32.gmra.mrb[132].mxu1 %vm1781_vm2, %v2498_v37 }
 0x2ad   : > { %v11556_v50 = vpop.f32.mrb[127].mxu0  ;;  %11879 = vmatmul.mubr.msk.f32.gmra.mrb[232].mxu0 %vm1781_vm2, %v4157_v3  ;;  %11510 = vmatprep.mubr.msk.f32.mxu1 %vm13164_vm1, %v16895_v59 }
 0x2ae   : > { %11881 = vmatprep.mubr.msk.f32.mxu0 %vm13164_vm1, %v16895_v59 }
 0x2af   : > { %v14437_v34 = vpop.f32.mrb[28].mxu1 }
 0x2b0   : > { %v14439_v21 = vpop.f32.mrb[128].mxu0  ;;  %v11347_v1 = vpop.f32.mrb[29].mxu1  ;;  %11511 = vmatmul.mubr.msk.f32.gmra.mrb[134].mxu1 %vm1781_vm2, %v2499_v60  ;;  %v4620_v60 = vld [vmem:[#allocation2 + $0x3e] sm:$0xff] }
 0x2b1   : > { %v11559_v16 = vpop.f32.mrb[129].mxu0  ;;  %11882 = vmatmul.mubr.msk.f32.gmra.mrb[234].mxu0 %vm1781_vm2, %v4158_v23  ;;  %11568 = vmatprep.mubr.msk.f32.mxu1 %vm13164_vm1, %v16895_v59 }
 0x2b2   : > { %11939 = vmatprep.mubr.msk.f32.mxu0 %vm13164_vm1, %v16895_v59 }
 0x2b3   : > { %v14447_v12 = vpop.f32.mrb[30].mxu1 }
 0x2b4   : > { %v14449_v28 = vpop.f32.mrb[130].mxu0  ;;  %v11350_v54 = vpop.f32.mrb[31].mxu1  ;;  %11569 = vmatmul.mubr.msk.f32.vlgmr.msra.gmra.mrb[136].mxu1 %vm1781_vm2, %v2957_v6 }
 0x2b5   : > { %v11562_v63 = vpop.f32.mrb[131].mxu0  ;;  %11940 = vmatmul.mubr.msk.f32.vlgmr.msra.gmra.mrb[236].mxu0 %vm1781_vm2, %v4616_v36  ;;  %11571 = vmatprep.mubr.msk.f32.mxu1 %vm13164_vm1, %v16895_v59 }
 0x2b6   : > { %11942 = vmatprep.mubr.msk.f32.mxu0 %vm13164_vm1, %v16895_v59  ;;  %11673 = vmatpush3.msra.mxu1 %v10110_v41 }
 0x2b7   : > { %12044 = vmatpush3.msra.mxu0 %v10236_v47  ;;  %v14463_v22 = vpop.f32.mrb[32].mxu1  ;;  %11778 = vmatprep.subr.mxu1 %v16895_v59 }
 0x2b8   : > { %v14465_v38 = vpop.f32.mrb[132].mxu0  ;;  %12149 = vmatprep.subr.mxu0 %v16895_v59  ;;  %v11353_v57 = vpop.f32.mrb[33].mxu1  ;;  %11572 = vmatmul.mubr.msk.f32.gmra.mrb[138].mxu1 %vm1781_vm2, %v2958_v20  ;;  %v4622_v20 = vld [vmem:[#allocation2 + $0x4e] sm:$0xff] }
 0x2b9   : > { %v11565_v56 = vpop.f32.mrb[133].mxu0  ;;  %11943 = vmatmul.mubr.msk.f32.gmra.mrb[238].mxu0 %vm1781_vm2, %v4617_v8  ;;  %11574 = vmatprep.mubr.msk.f32.mxu1 %vm13164_vm1, %v16895_v59 }
 0x2ba   : > { %11945 = vmatprep.mubr.msk.f32.mxu0 %vm13164_vm1, %v16895_v59 }
 0x2bb   : > { %v2162_v33 = vpop.f32.mrb[34].mxu1 }
 0x2bc   : > { %v14475_v15 = vpop.f32.mrb[134].mxu0  ;;  %v14478_v18 = vadd.f32 %v2162_v33, %v14279_v9  ;;  %v11358_v5 = vpop.f32.mrb[35].mxu1  ;;  %11575 = vmatmul.mubr.msk.f32.gmra.mrb[140].mxu1 %vm1781_vm2, %v4616_v36  ;;  %v4621_v36 = vld [vmem:[#allocation2 + $0x46] sm:$0xff] }
 0x2bd   : > { %v11623_v4 = vpop.f32.mrb[135].mxu0  ;;  %11946 = vmatmul.mubr.msk.f32.gmra.mrb[240].mxu0 %vm1781_vm2, %v4618_v51  ;;  %11577 = vmatprep.mubr.msk.f32.mxu1 %vm13164_vm1, %v16895_v59 }
 0x2be   : > { %11948 = vmatprep.mubr.msk.f32.mxu0 %vm13164_vm1, %v16895_v59 }
 0x2bf   : > { %v2167_v30 = vpop.f32.mrb[36].mxu1 }
 0x2c0   : > { %v14486_v35 = vpop.f32.mrb[136].mxu0  ;;  %v14489_v37 = vadd.f32 %v2167_v30, %v14290_v48  ;;  %v11361_v9 = vpop.f32.mrb[37].mxu1  ;;  %11578 = vmatmul.mubr.msk.f32.gmra.mrb[142].mxu1 %vm1781_vm2, %v4617_v8 }
 0x2c1   : > { %v11626_v3 = vpop.f32.mrb[137].mxu0  ;;  %11949 = vmatmul.mubr.msk.f32.gmra.mrb[242].mxu0 %vm1781_vm2, %v4619_v13  ;;  %11580 = vmatprep.mubr.msk.f32.mxu1 %vm13164_vm1, %v16895_v59  ;;  %v4624_v9 = vld [vmem:[#allocation2 + $0x5e] sm:$0xff] }
 0x2c2   : > { %11951 = vmatprep.mubr.msk.f32.mxu0 %vm13164_vm1, %v16895_v59 }
 0x2c3   : > { %v2172_v62 = vpop.f32.mrb[38].mxu1 }
 0x2c4   : > { %v14497_v50 = vpop.f32.mrb[138].mxu0  ;;  %v14500_v23 = vadd.f32 %v2172_v62, %v14301_v11  ;;  %v11364_v48 = vpop.f32.mrb[39].mxu1  ;;  %11581 = vmatmul.mubr.msk.f32.gmra.mrb[144].mxu1 %vm1781_vm2, %v4618_v51  ;;  %v4623_v51 = vld [vmem:[#allocation2 + $0x56] sm:$0xff] }
 0x2c5   : > { %v11629_v1 = vpop.f32.mrb[139].mxu0  ;;  %11952 = vmatmul.mubr.msk.f32.gmra.mrb[244].mxu0 %vm1781_vm2, %v4620_v60  ;;  %11583 = vmatprep.mubr.msk.f32.mxu1 %vm13164_vm1, %v16895_v59 }
 0x2c6   : > { %11954 = vmatprep.mubr.msk.f32.mxu0 %vm13164_vm1, %v16895_v59  ;;  %v4625_v1 = vld [vmem:[#allocation2 + $0x66] sm:$0xff] }
 0x2c7   : > { %v2177_v16 = vpop.f32.mrb[40].mxu1 }
 0x2c8   : > { %v14508_v6 = vpop.f32.mrb[140].mxu0  ;;  %v14511_v41 = vadd.f32 %v2177_v16, %v14312_v19  ;;  %v11367_v11 = vpop.f32.mrb[41].mxu1  ;;  %11584 = vmatmul.mubr.msk.f32.gmra.mrb[146].mxu1 %vm1781_vm2, %v4619_v13 }
 0x2c9   : > { %v11632_v47 = vpop.f32.mrb[141].mxu0  ;;  %11955 = vmatmul.mubr.msk.f32.gmra.mrb[246].mxu0 %vm1781_vm2, %v4621_v36  ;;  %11586 = vmatprep.mubr.msk.f32.mxu1 %vm13164_vm1, %v16895_v59 }
 0x2ca   : > { %11957 = vmatprep.mubr.msk.f32.mxu0 %vm13164_vm1, %v16895_v59 }
 0x2cb   : > { %v2182_v54 = vpop.f32.mrb[42].mxu1 }
 0x2cc   : > { %v14519_v63 = vpop.f32.mrb[142].mxu0  ;;  %v14522_v8 = vadd.f32 %v2182_v54, %v14326_v0  ;;  %v11370_v19 = vpop.f32.mrb[43].mxu1  ;;  %11587 = vmatmul.mubr.msk.f32.gmra.mrb[148].mxu1 %vm1781_vm2, %v4620_v60  ;;  %v4626_v54 = vld [vmem:[#allocation2 + $0x6e] sm:$0xff] }
 0x2cd   : > { %v11635_v57 = vpop.f32.mrb[143].mxu0  ;;  %11958 = vmatmul.mubr.msk.f32.gmra.mrb[248].mxu0 %vm1781_vm2, %v4622_v20  ;;  %11589 = vmatprep.mubr.msk.f32.mxu1 %vm13164_vm1, %v16895_v59 }
 0x2ce   : > { %11960 = vmatprep.mubr.msk.f32.mxu0 %vm13164_vm1, %v16895_v59 }
 0x2cf   : > { %v2187_v56 = vpop.f32.mrb[44].mxu1 }
 0x2d0   : > { %v14530_v33 = vpop.f32.mrb[144].mxu0  ;;  %v14533_v5 = vadd.f32 %v2187_v56, %v14340_v26  ;;  %v11373_v0 = vpop.f32.mrb[45].mxu1  ;;  %11590 = vmatmul.mubr.msk.f32.gmra.mrb[150].mxu1 %vm1781_vm2, %v4621_v36 }
 0x2d1   : > { %v11638_v4 = vpop.f32.mrb[145].mxu0  ;;  %11961 = vmatmul.mubr.msk.f32.gmra.mrb[250].mxu0 %vm1781_vm2, %v4623_v51  ;;  %11592 = vmatprep.mubr.msk.f32.mxu1 %vm13164_vm1, %v16895_v59 }
 0x2d2   : > { %11963 = vmatprep.mubr.msk.f32.mxu0 %vm13164_vm1, %v16895_v59 }
 0x2d3   : > { %v2192_v30 = vpop.f32.mrb[46].mxu1 }
 0x2d4   : > { %v14541_v13 = vpop.f32.mrb[146].mxu0  ;;  %v14544_v3 = vadd.f32 %v2192_v30, %v14351_v52  ;;  %v11376_v26 = vpop.f32.mrb[47].mxu1  ;;  %11593 = vmatmul.mubr.msk.f32.gmra.mrb[152].mxu1 %vm1781_vm2, %v4622_v20 }
 0x2d5   : > { %v11641_v62 = vpop.f32.mrb[147].mxu0  ;;  %11964 = vmatmul.mubr.msk.f32.gmra.mrb[252].mxu0 %vm1781_vm2, %v4624_v9  ;;  %11595 = vmatprep.mubr.msk.f32.mxu1 %vm13164_vm1, %v16895_v59  ;;  %v4628_v26 = vld [vmem:[#allocation2 + $0x7e] sm:$0xff] }
 0x2d6   : > { %11966 = vmatprep.mubr.msk.f32.mxu0 %vm13164_vm1, %v16895_v59 }
 0x2d7   : > { %v2197_v60 = vpop.f32.mrb[48].mxu1 }
 0x2d8   : > { %v14552_v48 = vpop.f32.mrb[148].mxu0  ;;  %v14555_v16 = vadd.f32 %v2197_v60, %v14362_v53  ;;  %v11379_v52 = vpop.f32.mrb[49].mxu1  ;;  %11596 = vmatmul.mubr.msk.f32.gmra.mrb[154].mxu1 %vm1781_vm2, %v4623_v51  ;;  %v4627_v51 = vld [vmem:[#allocation2 + $0x76] sm:$0xff] }
 0x2d9   : > { %v11644_v36 = vpop.f32.mrb[149].mxu0  ;;  %11967 = vmatmul.mubr.msk.f32.gmra.mrb[254].mxu0 %vm1781_vm2, %v4625_v1  ;;  %11598 = vmatprep.mubr.msk.f32.mxu1 %vm13164_vm1, %v16895_v59 }
 0x2da   : > { %11969 = vmatprep.mubr.msk.f32.mxu0 %vm13164_vm1, %v16895_v59  ;;  %v4629_v36 = vld [vmem:[#allocation2 + $0x86] sm:$0xff] }
 0x2db   : > { %v2202_v11 = vpop.f32.mrb[50].mxu1 }
 0x2dc   : > { %v14563_v47 = vpop.f32.mrb[150].mxu0  ;;  %v14566_v20 = vadd.f32 %v2202_v11, %v14373_v17  ;;  %v11382_v53 = vpop.f32.mrb[51].mxu1  ;;  %11599 = vmatmul.mubr.msk.f32.gmra.mrb[156].mxu1 %vm1781_vm2, %v4624_v9 }
 0x2dd   : > { %v11647_v19 = vpop.f32.mrb[151].mxu0  ;;  %11970 = vmatmul.mubr.msk.f32.gmra.mrb[0].mxu0 %vm1781_vm2, %v4626_v54  ;;  %11601 = vmatprep.mubr.msk.f32.mxu1 %vm13164_vm1, %v16895_v59 }
 0x2de   : > { %11972 = vmatprep.mubr.msk.f32.mxu0 %vm13164_vm1, %v16895_v59 }
 0x2df   : > { %v2207_v57 = vpop.f32.mrb[52].mxu1 }
 0x2e0   : > { %v14574_v56 = vpop.f32.mrb[152].mxu0  ;;  %v14577_v0 = vadd.f32 %v2207_v57, %v14384_v25  ;;  %v11385_v17 = vpop.f32.mrb[53].mxu1  ;;  %11602 = vmatmul.mubr.msk.f32.gmra.mrb[158].mxu1 %vm1781_vm2, %v4625_v1  ;;  %v4630_v57 = vld [vmem:[#allocation2 + $0x8e] sm:$0xff] }
 0x2e1   : > { %v11650_v4 = vpop.f32.mrb[153].mxu0  ;;  %11973 = vmatmul.mubr.msk.f32.gmra.mrb[2].mxu0 %vm1781_vm2, %v4627_v51  ;;  %11604 = vmatprep.mubr.msk.f32.mxu1 %vm13164_vm1, %v16895_v59 }
 0x2e2   : > { %11975 = vmatprep.mubr.msk.f32.mxu0 %vm13164_vm1, %v16895_v59 }
 0x2e3   : > { %v2212_v30 = vpop.f32.mrb[54].mxu1 }
 0x2e4   : > { %v14585_v9 = vpop.f32.mrb[154].mxu0  ;;  %v14588_v62 = vadd.f32 %v2212_v30, %v14395_v44  ;;  %v11388_v25 = vpop.f32.mrb[55].mxu1  ;;  %11605 = vmatmul.mubr.msk.f32.gmra.mrb[160].mxu1 %vm1781_vm2, %v4626_v54 }
 0x2e5   : > { %v11653_v60 = vpop.f32.mrb[155].mxu0  ;;  %11976 = vmatmul.mubr.msk.f32.gmra.mrb[4].mxu0 %vm1781_vm2, %v4628_v26  ;;  %11607 = vmatprep.mubr.msk.f32.mxu1 %vm13164_vm1, %v16895_v59  ;;  %v4631_v25 = vld [vmem:[#allocation2 + $0x96] sm:$0xff] }
 0x2e6   : > { %11978 = vmatprep.mubr.msk.f32.mxu0 %vm13164_vm1, %v16895_v59 }
 0x2e7   : > { %v2217_v1 = vpop.f32.mrb[56].mxu1 }
 0x2e8   : > { %v14596_v52 = vpop.f32.mrb[156].mxu0  ;;  %v14599_v11 = vadd.f32 %v2217_v1, %v14406_v55  ;;  %v11391_v44 = vpop.f32.mrb[57].mxu1  ;;  %11608 = vmatmul.mubr.msk.f32.gmra.mrb[162].mxu1 %vm1781_vm2, %v4627_v51 }
 0x2e9   : > { %v11656_v54 = vpop.f32.mrb[157].mxu0  ;;  %11979 = vmatmul.mubr.msk.f32.gmra.mrb[6].mxu0 %vm1781_vm2, %v4629_v36  ;;  %11610 = vmatprep.mubr.msk.f32.mxu1 %vm13164_vm1, %v16895_v59 }
 0x2ea   : > { %11981 = vmatprep.mubr.msk.f32.mxu0 %vm13164_vm1, %v16895_v59  ;;  %v4632_v54 = vld [vmem:[#allocation2 + $0x9e] sm:$0xff] }
 0x2eb   : > { %v2222_v53 = vpop.f32.mrb[58].mxu1 }
 0x2ec   : > { %v14607_v19 = vpop.f32.mrb[158].mxu0  ;;  %v14610_v17 = vadd.f32 %v2222_v53, %v14417_v39  ;;  %v11394_v55 = vpop.f32.mrb[59].mxu1  ;;  %11611 = vmatmul.mubr.msk.f32.gmra.mrb[164].mxu1 %vm1781_vm2, %v4628_v26 }
 0x2ed   : > { %v11659_v51 = vpop.f32.mrb[159].mxu0  ;;  %11982 = vmatmul.mubr.msk.f32.gmra.mrb[8].mxu0 %vm1781_vm2, %v4630_v57  ;;  %11613 = vmatprep.mubr.msk.f32.mxu1 %vm13164_vm1, %v16895_v59  ;;  %v3431_v55 = vld [vmem:[#allocation2 + $0x10] sm:$0xff] }
 0x2ee   : > { %11984 = vmatprep.mubr.msk.f32.mxu0 %vm13164_vm1, %v16895_v59 }
 0x2ef   : > { %v2227_v4 = vpop.f32.mrb[60].mxu1 }
 0x2f0   : > { %v14618_v30 = vpop.f32.mrb[160].mxu0  ;;  %v14621_v60 = vadd.f32 %v2227_v4, %v14427_v40  ;;  %v11397_v39 = vpop.f32.mrb[61].mxu1  ;;  %11614 = vmatmul.mubr.msk.f32.gmra.mrb[166].mxu1 %vm1781_vm2, %v4629_v36 }
 0x2f1   : > { %v11662_v26 = vpop.f32.mrb[161].mxu0  ;;  %11985 = vmatmul.mubr.msk.f32.gmra.mrb[10].mxu0 %vm1781_vm2, %v4631_v25  ;;  %11616 = vmatprep.mubr.msk.f32.mxu1 %vm13164_vm1, %v16895_v59  ;;  %v5090_v25 = vld [vmem:[#allocation2 + $0x20] sm:$0xff] }
 0x2f2   : > { %11987 = vmatprep.mubr.msk.f32.mxu0 %vm13164_vm1, %v16895_v59 }
 0x2f3   : > { %v2232_v1 = vpop.f32.mrb[62].mxu1 }
 0x2f4   : > { %v14629_v44 = vpop.f32.mrb[162].mxu0  ;;  %v14632_v53 = vadd.f32 %v2232_v1, %v14437_v34  ;;  %v11400_v40 = vpop.f32.mrb[63].mxu1  ;;  %11617 = vmatmul.mubr.msk.f32.gmra.mrb[168].mxu1 %vm1781_vm2, %v4630_v57  ;;  %v10146_v34 = vld [vmem:[%s16889_s3 + $0x48] sm:$0xff]  ;;  %v10272_v57 = vld [vmem:[%s16889_s3 + $0x80] sm:$0xff] }
 0x2f5   : > { %v11665_v36 = vpop.f32.mrb[163].mxu0  ;;  %11988 = vmatmul.mubr.msk.f32.gmra.mrb[12].mxu0 %vm1781_vm2, %v4632_v54  ;;  %11674 = vmatprep.mubr.msk.f32.mxu1 %vm13164_vm1, %v16895_v59 }
 0x2f6   : > { %12045 = vmatprep.mubr.msk.f32.mxu0 %vm13164_vm1, %v16895_v59  ;;  %v3432_v36 = vld [vmem:[#allocation2 + $0x18] sm:$0xff] }
 0x2f7   : > { %v2237_v51 = vpop.f32.mrb[64].mxu1 }
 0x2f8   : > { %v14640_v4 = vpop.f32.mrb[164].mxu0  ;;  %v14649_v39 = vadd.f32 %v2237_v51, %v14447_v12  ;;  %v11403_v26 = vpop.f32.mrb[65].mxu1  ;;  %11675 = vmatmul.mubr.msk.f32.vlgmr.msra.gmra.mrb[170].mxu1 %vm1781_vm2, %v3431_v55  ;;  %v5091_v12 = vld [vmem:[#allocation2 + $0x28] sm:$0xff] }
 0x2f9   : > { %v11668_v1 = vpop.f32.mrb[165].mxu0  ;;  %12046 = vmatmul.mubr.msk.f32.vlgmr.msra.gmra.mrb[14].mxu0 %vm1781_vm2, %v5090_v25  ;;  %11677 = vmatprep.mubr.msk.f32.mxu1 %vm13164_vm1, %v16895_v59 }
 0x2fa   : > { %12048 = vmatprep.mubr.msk.f32.mxu0 %vm13164_vm1, %v16895_v59  ;;  %11779 = vmatpush3.msra.mxu1 %v10146_v34  ;;  %v5092_v1 = vld [vmem:[#allocation2 + $0x30] sm:$0xff] }
 0x2fb   : > { %12150 = vmatpush3.msra.mxu0 %v10272_v57  ;;  %v2242_v54 = vpop.f32.mrb[66].mxu1  ;;  %11884 = vmatprep.subr.mxu1 %v16895_v59 }
 0x2fc   : > { %v14657_v40 = vpop.f32.mrb[166].mxu0  ;;  %12255 = vmatprep.subr.mxu0 %v16895_v59  ;;  %v14662_v55 = vadd.f32 %v2242_v54, %v14463_v22  ;;  %v11406_v51 = vpop.f32.mrb[67].mxu1  ;;  %11678 = vmatmul.mubr.msk.f32.gmra.mrb[172].mxu1 %vm1781_vm2, %v3432_v36 }
 0x2fd   : > { %16897 = vst [vmem:[#allocation3_spill] sm:$0xff] %v14657_v40  ;;  %v11671_v26 = vpop.f32.mrb[167].mxu0  ;;  %12049 = vmatmul.mubr.msk.f32.gmra.mrb[16].mxu0 %vm1781_vm2, %v5091_v12  ;;  %11680 = vmatprep.mubr.msk.f32.mxu1 %vm13164_vm1, %v16895_v59 }
 0x2fe   : > { %12051 = vmatprep.mubr.msk.f32.mxu0 %vm13164_vm1, %v16895_v59  ;;  %v5093_v26 = vld [vmem:[#allocation2 + $0x38] sm:$0xff] }
 0x2ff   : > { %v2382_v34 = vpop.f32.mrb[68].mxu1 }
 0x300   : > { %v14670_v57 = vpop.f32.mrb[168].mxu0  ;;  %v14673_v40 = vadd.f32 %v2382_v34, %v14478_v18  ;;  %v11411_v22 = vpop.f32.mrb[69].mxu1  ;;  %11681 = vmatmul.mubr.msk.f32.gmra.mrb[174].mxu1 %vm1781_vm2, %v5090_v25 }
 0x301   : > { %16898 = vst [vmem:[#allocation4_spill] sm:$0xff] %v14670_v57  ;;  %v11729_v54 = vpop.f32.mrb[169].mxu0  ;;  %12052 = vmatmul.mubr.msk.f32.gmra.mrb[18].mxu0 %vm1781_vm2, %v5092_v1  ;;  %11683 = vmatprep.mubr.msk.f32.mxu1 %vm13164_vm1, %v16895_v59 }
 0x302   : > { %12054 = vmatprep.mubr.msk.f32.mxu0 %vm13164_vm1, %v16895_v59  ;;  %v5094_v54 = vld [vmem:[#allocation2 + $0x40] sm:$0xff] }
 0x303   : > { %v2387_v36 = vpop.f32.mrb[70].mxu1 }
 0x304   : > { %v14681_v51 = vpop.f32.mrb[170].mxu0  ;;  %v14684_v57 = vadd.f32 %v2387_v36, %v14489_v37  ;;  %v11414_v18 = vpop.f32.mrb[71].mxu1  ;;  %11684 = vmatmul.mubr.msk.f32.gmra.mrb[176].mxu1 %vm1781_vm2, %v5091_v12 }
 0x305   : > { %16899 = vst [vmem:[#allocation5_spill] sm:$0xff] %v14681_v51  ;;  %v11732_v25 = vpop.f32.mrb[171].mxu0  ;;  %12055 = vmatmul.mubr.msk.f32.gmra.mrb[20].mxu0 %vm1781_vm2, %v5093_v26  ;;  %11686 = vmatprep.mubr.msk.f32.mxu1 %vm13164_vm1, %v16895_v59 }
 0x306   : > { %12057 = vmatprep.mubr.msk.f32.mxu0 %vm13164_vm1, %v16895_v59  ;;  %v5095_v25 = vld [vmem:[#allocation2 + $0x48] sm:$0xff] }
 0x307   : > { %v2392_v34 = vpop.f32.mrb[72].mxu1 }
 0x308   : > { %v14692_v22 = vpop.f32.mrb[172].mxu0  ;;  %v14695_v51 = vadd.f32 %v2392_v34, %v14500_v23  ;;  %v11417_v37 = vpop.f32.mrb[73].mxu1  ;;  %11687 = vmatmul.mubr.msk.f32.gmra.mrb[178].mxu1 %vm1781_vm2, %v5092_v1 }
 0x309   : > { %16900 = vst [vmem:[#allocation6_spill] sm:$0xff] %v14692_v22  ;;  %v11735_v12 = vpop.f32.mrb[173].mxu0  ;;  %12058 = vmatmul.mubr.msk.f32.gmra.mrb[22].mxu0 %vm1781_vm2, %v5094_v54  ;;  %11689 = vmatprep.mubr.msk.f32.mxu1 %vm13164_vm1, %v16895_v59 }
 0x30a   : > { %12060 = vmatprep.mubr.msk.f32.mxu0 %vm13164_vm1, %v16895_v59  ;;  %v5096_v12 = vld [vmem:[#allocation2 + $0x50] sm:$0xff] }
 0x30b   : > { %v2397_v36 = vpop.f32.mrb[74].mxu1 }
 0x30c   : > { %v14703_v18 = vpop.f32.mrb[174].mxu0  ;;  %v14706_v22 = vadd.f32 %v2397_v36, %v14511_v41  ;;  %v11420_v23 = vpop.f32.mrb[75].mxu1  ;;  %11690 = vmatmul.mubr.msk.f32.gmra.mrb[180].mxu1 %vm1781_vm2, %v5093_v26 }
 0x30d   : > { %16901 = vst [vmem:[#allocation7_spill] sm:$0xff] %v14703_v18  ;;  %v11738_v1 = vpop.f32.mrb[175].mxu0  ;;  %12061 = vmatmul.mubr.msk.f32.gmra.mrb[24].mxu0 %vm1781_vm2, %v5095_v25  ;;  %11692 = vmatprep.mubr.msk.f32.mxu1 %vm13164_vm1, %v16895_v59 }
 0x30e   : > { %12063 = vmatprep.mubr.msk.f32.mxu0 %vm13164_vm1, %v16895_v59  ;;  %v5097_v1 = vld [vmem:[#allocation2 + $0x58] sm:$0xff] }
 0x30f   : > { %v2402_v34 = vpop.f32.mrb[76].mxu1 }
 0x310   : > { %v14714_v37 = vpop.f32.mrb[176].mxu0  ;;  %v14717_v18 = vadd.f32 %v2402_v34, %v14522_v8  ;;  %v11423_v41 = vpop.f32.mrb[77].mxu1  ;;  %11693 = vmatmul.mubr.msk.f32.gmra.mrb[182].mxu1 %vm1781_vm2, %v5094_v54 }
 0x311   : > { %16902 = vst [vmem:[#allocation8_spill] sm:$0xff] %v14714_v37  ;;  %v11741_v26 = vpop.f32.mrb[177].mxu0  ;;  %12064 = vmatmul.mubr.msk.f32.gmra.mrb[26].mxu0 %vm1781_vm2, %v5096_v12  ;;  %11695 = vmatprep.mubr.msk.f32.mxu1 %vm13164_vm1, %v16895_v59 }
 0x312   : > { %12066 = vmatprep.mubr.msk.f32.mxu0 %vm13164_vm1, %v16895_v59  ;;  %v5098_v26 = vld [vmem:[#allocation2 + $0x60] sm:$0xff] }
 0x313   : > { %v2407_v36 = vpop.f32.mrb[78].mxu1 }
 0x314   : > { %v14725_v23 = vpop.f32.mrb[178].mxu0  ;;  %v14728_v37 = vadd.f32 %v2407_v36, %v14533_v5  ;;  %v11426_v8 = vpop.f32.mrb[79].mxu1  ;;  %11696 = vmatmul.mubr.msk.f32.gmra.mrb[184].mxu1 %vm1781_vm2, %v5095_v25 }
 0x315   : > { %16903 = vst [vmem:[#allocation9_spill] sm:$0xff] %v14725_v23  ;;  %v11744_v54 = vpop.f32.mrb[179].mxu0  ;;  %12067 = vmatmul.mubr.msk.f32.gmra.mrb[28].mxu0 %vm1781_vm2, %v5097_v1  ;;  %11698 = vmatprep.mubr.msk.f32.mxu1 %vm13164_vm1, %v16895_v59 }
 0x316   : > { %12069 = vmatprep.mubr.msk.f32.mxu0 %vm13164_vm1, %v16895_v59  ;;  %v5099_v54 = vld [vmem:[#allocation2 + $0x68] sm:$0xff] }
 0x317   : > { %v2412_v34 = vpop.f32.mrb[80].mxu1 }
 0x318   : > { %v14736_v41 = vpop.f32.mrb[180].mxu0  ;;  %v14739_v23 = vadd.f32 %v2412_v34, %v14544_v3  ;;  %v11429_v5 = vpop.f32.mrb[81].mxu1  ;;  %11699 = vmatmul.mubr.msk.f32.gmra.mrb[186].mxu1 %vm1781_vm2, %v5096_v12 }
 0x319   : > { %16904 = vst [vmem:[#allocation10_spill] sm:$0xff] %v14736_v41  ;;  %v11747_v25 = vpop.f32.mrb[181].mxu0  ;;  %12070 = vmatmul.mubr.msk.f32.gmra.mrb[30].mxu0 %vm1781_vm2, %v5098_v26  ;;  %11701 = vmatprep.mubr.msk.f32.mxu1 %vm13164_vm1, %v16895_v59 }
 0x31a   : > { %12072 = vmatprep.mubr.msk.f32.mxu0 %vm13164_vm1, %v16895_v59  ;;  %v5100_v25 = vld [vmem:[#allocation2 + $0x70] sm:$0xff] }
 0x31b   : > { %v2417_v36 = vpop.f32.mrb[82].mxu1 }
 0x31c   : > { %v14747_v8 = vpop.f32.mrb[182].mxu0  ;;  %v14750_v41 = vadd.f32 %v2417_v36, %v14555_v16  ;;  %v11432_v3 = vpop.f32.mrb[83].mxu1  ;;  %11702 = vmatmul.mubr.msk.f32.gmra.mrb[188].mxu1 %vm1781_vm2, %v5097_v1 }
 0x31d   : > { %16905 = vst [vmem:[#allocation11_spill] sm:$0xff] %v14747_v8  ;;  %v11750_v12 = vpop.f32.mrb[183].mxu0  ;;  %12073 = vmatmul.mubr.msk.f32.gmra.mrb[32].mxu0 %vm1781_vm2, %v5099_v54  ;;  %11704 = vmatprep.mubr.msk.f32.mxu1 %vm13164_vm1, %v16895_v59 }
 0x31e   : > { %12075 = vmatprep.mubr.msk.f32.mxu0 %vm13164_vm1, %v16895_v59  ;;  %v5101_v12 = vld [vmem:[#allocation2 + $0x78] sm:$0xff] }
 0x31f   : > { %v2422_v34 = vpop.f32.mrb[84].mxu1 }
 0x320   : > { %v14758_v5 = vpop.f32.mrb[184].mxu0  ;;  %v14761_v8 = vadd.f32 %v2422_v34, %v14566_v20  ;;  %v11435_v16 = vpop.f32.mrb[85].mxu1  ;;  %11705 = vmatmul.mubr.msk.f32.gmra.mrb[190].mxu1 %vm1781_vm2, %v5098_v26 }
 0x321   : > { %16906 = vst [vmem:[#allocation12_spill] sm:$0xff] %v14758_v5  ;;  %v11753_v1 = vpop.f32.mrb[185].mxu0  ;;  %12076 = vmatmul.mubr.msk.f32.gmra.mrb[34].mxu0 %vm1781_vm2, %v5100_v25  ;;  %11707 = vmatprep.mubr.msk.f32.mxu1 %vm13164_vm1, %v16895_v59 }
 0x322   : > { %12078 = vmatprep.mubr.msk.f32.mxu0 %vm13164_vm1, %v16895_v59  ;;  %v5102_v1 = vld [vmem:[#allocation2 + $0x80] sm:$0xff] }
 0x323   : > { %v2427_v36 = vpop.f32.mrb[86].mxu1 }
 0x324   : > { %v14769_v3 = vpop.f32.mrb[186].mxu0  ;;  %v14772_v5 = vadd.f32 %v2427_v36, %v14577_v0  ;;  %v11438_v20 = vpop.f32.mrb[87].mxu1  ;;  %11708 = vmatmul.mubr.msk.f32.gmra.mrb[192].mxu1 %vm1781_vm2, %v5099_v54 }
 0x325   : > { %16907 = vst [vmem:[#allocation13_spill] sm:$0xff] %v14769_v3  ;;  %v11756_v26 = vpop.f32.mrb[187].mxu0  ;;  %12079 = vmatmul.mubr.msk.f32.gmra.mrb[36].mxu0 %vm1781_vm2, %v5101_v12  ;;  %11710 = vmatprep.mubr.msk.f32.mxu1 %vm13164_vm1, %v16895_v59 }
 0x326   : > { %12081 = vmatprep.mubr.msk.f32.mxu0 %vm13164_vm1, %v16895_v59  ;;  %v5103_v26 = vld [vmem:[#allocation2 + $0x88] sm:$0xff] }
 0x327   : > { %v2432_v34 = vpop.f32.mrb[88].mxu1 }
 0x328   : > { %v14780_v16 = vpop.f32.mrb[188].mxu0  ;;  %v14783_v3 = vadd.f32 %v2432_v34, %v14588_v62  ;;  %v11441_v0 = vpop.f32.mrb[89].mxu1  ;;  %11711 = vmatmul.mubr.msk.f32.gmra.mrb[194].mxu1 %vm1781_vm2, %v5100_v25 }
 0x329   : > { %16908 = vst [vmem:[#allocation14_spill] sm:$0xff] %v14780_v16  ;;  %v11759_v54 = vpop.f32.mrb[189].mxu0  ;;  %12082 = vmatmul.mubr.msk.f32.gmra.mrb[38].mxu0 %vm1781_vm2, %v5102_v1  ;;  %11713 = vmatprep.mubr.msk.f32.mxu1 %vm13164_vm1, %v16895_v59 }
 0x32a   : > { %12084 = vmatprep.mubr.msk.f32.mxu0 %vm13164_vm1, %v16895_v59  ;;  %v5104_v54 = vld [vmem:[#allocation2 + $0x90] sm:$0xff] }
 0x32b   : > { %v2437_v36 = vpop.f32.mrb[90].mxu1 }
 0x32c   : > { %v14791_v20 = vpop.f32.mrb[190].mxu0  ;;  %v14794_v16 = vadd.f32 %v2437_v36, %v14599_v11  ;;  %v11444_v62 = vpop.f32.mrb[91].mxu1  ;;  %11714 = vmatmul.mubr.msk.f32.gmra.mrb[196].mxu1 %vm1781_vm2, %v5101_v12 }
 0x32d   : > { %16909 = vst [vmem:[#allocation15_spill] sm:$0xff] %v14791_v20  ;;  %v11762_v25 = vpop.f32.mrb[191].mxu0  ;;  %12085 = vmatmul.mubr.msk.f32.gmra.mrb[40].mxu0 %vm1781_vm2, %v5103_v26  ;;  %11716 = vmatprep.mubr.msk.f32.mxu1 %vm13164_vm1, %v16895_v59 }
 0x32e   : > { %12087 = vmatprep.mubr.msk.f32.mxu0 %vm13164_vm1, %v16895_v59  ;;  %v5105_v25 = vld [vmem:[#allocation2 + $0x98] sm:$0xff] }
 0x32f   : > { %v2442_v34 = vpop.f32.mrb[92].mxu1 }
 0x330   : > { %v14802_v0 = vpop.f32.mrb[192].mxu0  ;;  %v14805_v20 = vadd.f32 %v2442_v34, %v14610_v17  ;;  %v11447_v11 = vpop.f32.mrb[93].mxu1  ;;  %11717 = vmatmul.mubr.msk.f32.gmra.mrb[198].mxu1 %vm1781_vm2, %v5102_v1 }
 0x331   : > { %16910 = vst [vmem:[#allocation16_spill] sm:$0xff] %v14802_v0  ;;  %v11765_v12 = vpop.f32.mrb[193].mxu0  ;;  %12088 = vmatmul.mubr.msk.f32.gmra.mrb[42].mxu0 %vm1781_vm2, %v5104_v54  ;;  %11719 = vmatprep.mubr.msk.f32.mxu1 %vm13164_vm1, %v16895_v59 }
 0x332   : > { %12090 = vmatprep.mubr.msk.f32.mxu0 %vm13164_vm1, %v16895_v59  ;;  %v5106_v12 = vld [vmem:[#allocation2 + $0xa0] sm:$0xff] }
 0x333   : > { %v2447_v36 = vpop.f32.mrb[94].mxu1 }
 0x334   : > { %v14813_v62 = vpop.f32.mrb[194].mxu0  ;;  %v14816_v0 = vadd.f32 %v2447_v36, %v14621_v60  ;;  %v11450_v17 = vpop.f32.mrb[95].mxu1  ;;  %11720 = vmatmul.mubr.msk.f32.gmra.mrb[200].mxu1 %vm1781_vm2, %v5103_v26 }
 0x335   : > { %16911 = vst [vmem:[#allocation17_spill] sm:$0xff] %v14813_v62  ;;  %v11768_v1 = vpop.f32.mrb[195].mxu0  ;;  %12091 = vmatmul.mubr.msk.f32.gmra.mrb[44].mxu0 %vm1781_vm2, %v5105_v25  ;;  %11722 = vmatprep.mubr.msk.f32.mxu1 %vm13164_vm1, %v16895_v59  ;;  %v3905_v17 = vld [vmem:[#allocation2 + $0x12] sm:$0xff] }
 0x336   : > { %12093 = vmatprep.mubr.msk.f32.mxu0 %vm13164_vm1, %v16895_v59 }
 0x337   : > { %v2452_v34 = vpop.f32.mrb[96].mxu1 }
 0x338   : > { %v14824_v11 = vpop.f32.mrb[196].mxu0  ;;  %v14827_v62 = vadd.f32 %v2452_v34, %v14632_v53  ;;  %v11453_v60 = vpop.f32.mrb[97].mxu1  ;;  %11723 = vmatmul.mubr.msk.f32.gmra.mrb[202].mxu1 %vm1781_vm2, %v5104_v54  ;;  %v10182_v53 = vld [vmem:[%s16889_s3 + $0x58] sm:$0xff]  ;;  %v10308_v54 = vld [vmem:[%s16889_s3 + $0x90] sm:$0xff] }
 0x339   : > { %v11771_v26 = vpop.f32.mrb[197].mxu0  ;;  %12094 = vmatmul.mubr.msk.f32.gmra.mrb[46].mxu0 %vm1781_vm2, %v5106_v12  ;;  %11780 = vmatprep.mubr.msk.f32.mxu1 %vm13164_vm1, %v16895_v59 }
 0x33a   : > { %12151 = vmatprep.mubr.msk.f32.mxu0 %vm13164_vm1, %v16895_v59 }
 0x33b   : > { %v2457_v36 = vpop.f32.mrb[98].mxu1 }
 0x33c   : > { %v14835_v25 = vpop.f32.mrb[198].mxu0  ;;  %v14844_v1 = vadd.f32 %v2457_v36, %v14649_v39  ;;  %v11456_v34 = vpop.f32.mrb[99].mxu1  ;;  %11781 = vmatmul.mubr.msk.f32.vlgmr.msra.gmra.mrb[204].mxu1 %vm1781_vm2, %v3905_v17  ;;  %v3906_v39 = vld [vmem:[#allocation2 + $0x1a] sm:$0xff] }
 0x33d   : > { %v11774_v12 = vpop.f32.mrb[199].mxu0  ;;  %12152 = vmatmul.mubr.msk.f32.vlgmr.msra.gmra.mrb[48].mxu0 %vm1781_vm2, %v14316_v29  ;;  %11783 = vmatprep.mubr.msk.f32.mxu1 %vm13164_vm1, %v16895_v59  ;;  %v3907_v34 = vld [vmem:[#allocation2 + $0x22] sm:$0xff] }
 0x33e   : > { %12154 = vmatprep.mubr.msk.f32.mxu0 %vm13164_vm1, %v16895_v59  ;;  %11885 = vmatpush3.msra.mxu1 %v10182_v53  ;;  %v5566_v12 = vld [vmem:[#allocation2 + $0x3b] sm:$0xff] }
 0x33f   : > { %12256 = vmatpush3.msra.mxu0 %v10308_v54  ;;  %v2462_v60 = vpop.f32.mrb[100].mxu1  ;;  %11990 = vmatprep.subr.mxu1 %v16895_v59 }
 0x340   : > { %v14853_v26 = vpop.f32.mrb[200].mxu0  ;;  %12361 = vmatprep.subr.mxu0 %v16895_v59  ;;  %v14858_v36 = vadd.f32 %v2462_v60, %v14662_v55  ;;  %v11459_v29 = vpop.f32.mrb[101].mxu1  ;;  %11784 = vmatmul.mubr.msk.f32.gmra.mrb[206].mxu1 %vm1781_vm2, %v3906_v39 }
 0x341   : > { %v11777_v17 = vpop.f32.mrb[201].mxu0  ;;  %12155 = vmatmul.mubr.msk.f32.gmra.mrb[50].mxu0 %vm1781_vm2, %v14330_v45  ;;  %11786 = vmatprep.mubr.msk.f32.mxu1 %vm13164_vm1, %v16895_v59 }
 0x342   : > { %12157 = vmatprep.mubr.msk.f32.mxu0 %vm13164_vm1, %v16895_v59 }
 0x343   : > { %v2619_v53 = vpop.f32.mrb[102].mxu1 }
 0x344   : > { %v14867_v54 = vpop.f32.mrb[202].mxu0  ;;  %v2703_v55 = vadd.f32 %v2619_v53, %v14673_v40  ;;  %v11464_v60 = vpop.f32.mrb[103].mxu1  ;;  %11787 = vmatmul.mubr.msk.f32.gmra.mrb[208].mxu1 %vm1781_vm2, %v3907_v34  ;;  %v5567_v40 = vld [vmem:[#allocation2 + $0x43] sm:$0xff] }
 0x345   : > { %16912 = vst [vmem:[#allocation18_spill] sm:$0xff] %v14867_v54  ;;  %v11835_v39 = vpop.f32.mrb[203].mxu0  ;;  %12158 = vmatmul.mubr.msk.f32.gmra.mrb[52].mxu0 %vm1781_vm2, %v5566_v12  ;;  %11789 = vmatprep.mubr.msk.f32.mxu1 %vm13164_vm1, %v16895_v59  ;;  %v3908_v54 = vld [vmem:[#allocation2 + $0x2a] sm:$0xff] }
 0x346   : > { %12160 = vmatprep.mubr.msk.f32.mxu0 %vm13164_vm1, %v16895_v59  ;;  %v14877_v45 = vadd.f32 %v14281_v24, %v2703_v55  ;;  %v3909_v39 = vld [vmem:[#allocation2 + $0x32] sm:$0xff] }
 0x347   : > { %v2624_v29 = vpop.f32.mrb[104].mxu1 }
 0x348   : > { %v14879_v17 = vpop.f32.mrb[204].mxu0  ;;  %v2704_v53 = vadd.f32 %v2624_v29, %v14684_v57  ;;  %v11467_v34 = vpop.f32.mrb[105].mxu1  ;;  %11790 = vmatmul.mubr.msk.f32.gmra.mrb[210].mxu1 %vm1781_vm2, %v3908_v54  ;;  %v5568_v57 = vld [vmem:[#allocation2 + $0x4b] sm:$0xff] }
 0x349   : > { %v11838_v12 = vpop.f32.mrb[205].mxu0  ;;  %12161 = vmatmul.mubr.msk.f32.gmra.mrb[54].mxu0 %vm1781_vm2, %v5567_v40  ;;  %11792 = vmatprep.mubr.msk.f32.mxu1 %vm13164_vm1, %v16895_v59 }
 0x34a   : > { %12163 = vmatprep.mubr.msk.f32.mxu0 %vm13164_vm1, %v16895_v59  ;;  %v14889_v24 = vadd.f32 %v14292_v32, %v2704_v53  ;;  %v3910_v12 = vld [vmem:[#allocation2 + $0x3a] sm:$0xff] }
 0x34b   : > { %v2629_v55 = vpop.f32.mrb[106].mxu1 }
 0x34c   : > { %v14891_v60 = vpop.f32.mrb[206].mxu0  ;;  %v2705_v29 = vadd.f32 %v2629_v55, %v14695_v51  ;;  %v11470_v54 = vpop.f32.mrb[107].mxu1  ;;  %11793 = vmatmul.mubr.msk.f32.gmra.mrb[212].mxu1 %vm1781_vm2, %v3909_v39  ;;  %v5569_v51 = vld [vmem:[#allocation2 + $0x53] sm:$0xff] }
 0x34d   : > { %v11841_v40 = vpop.f32.mrb[207].mxu0  ;;  %12164 = vmatmul.mubr.msk.f32.gmra.mrb[56].mxu0 %vm1781_vm2, %v5568_v57  ;;  %11795 = vmatprep.mubr.msk.f32.mxu1 %vm13164_vm1, %v16895_v59 }
 0x34e   : > { %12166 = vmatprep.mubr.msk.f32.mxu0 %vm13164_vm1, %v16895_v59  ;;  %v14901_v32 = vadd.f32 %v14303_v2, %v2705_v29  ;;  %v3911_v40 = vld [vmem:[#allocation2 + $0x42] sm:$0xff] }
 0x34f   : > { %v2634_v53 = vpop.f32.mrb[108].mxu1 }
 0x350   : > { %v14903_v34 = vpop.f32.mrb[208].mxu0  ;;  %v2706_v55 = vadd.f32 %v2634_v53, %v14706_v22  ;;  %v11473_v39 = vpop.f32.mrb[109].mxu1  ;;  %11796 = vmatmul.mubr.msk.f32.gmra.mrb[214].mxu1 %vm1781_vm2, %v3910_v12  ;;  %v5570_v22 = vld [vmem:[#allocation2 + $0x5b] sm:$0xff] }
 0x351   : > { %v11844_v57 = vpop.f32.mrb[209].mxu0  ;;  %12167 = vmatmul.mubr.msk.f32.gmra.mrb[58].mxu0 %vm1781_vm2, %v5569_v51  ;;  %11798 = vmatprep.mubr.msk.f32.mxu1 %vm13164_vm1, %v16895_v59 }
 0x352   : > { %12169 = vmatprep.mubr.msk.f32.mxu0 %vm13164_vm1, %v16895_v59  ;;  %v14913_v2 = vadd.f32 %v14314_v46, %v2706_v55  ;;  %v3912_v57 = vld [vmem:[#allocation2 + $0x4a] sm:$0xff] }
 0x353   : > { %v2639_v29 = vpop.f32.mrb[110].mxu1 }
 0x354   : > { %v14915_v54 = vpop.f32.mrb[210].mxu0  ;;  %v2707_v53 = vadd.f32 %v2639_v29, %v14717_v18  ;;  %v11476_v12 = vpop.f32.mrb[111].mxu1  ;;  %11799 = vmatmul.mubr.msk.f32.gmra.mrb[216].mxu1 %vm1781_vm2, %v3911_v40  ;;  %v5571_v18 = vld [vmem:[#allocation2 + $0x63] sm:$0xff] }
 0x355   : > { %v11847_v51 = vpop.f32.mrb[211].mxu0  ;;  %12170 = vmatmul.mubr.msk.f32.gmra.mrb[60].mxu0 %vm1781_vm2, %v5570_v22  ;;  %11801 = vmatprep.mubr.msk.f32.mxu1 %vm13164_vm1, %v16895_v59 }
 0x356   : > { %12172 = vmatprep.mubr.msk.f32.mxu0 %vm13164_vm1, %v16895_v59  ;;  %v14925_v46 = vadd.f32 %v14328_v42, %v2707_v53  ;;  %v3913_v51 = vld [vmem:[#allocation2 + $0x52] sm:$0xff] }
 0x357   : > { %v2644_v55 = vpop.f32.mrb[112].mxu1 }
 0x358   : > { %v14927_v39 = vpop.f32.mrb[212].mxu0  ;;  %v2708_v29 = vadd.f32 %v2644_v55, %v14728_v37  ;;  %v11479_v40 = vpop.f32.mrb[113].mxu1  ;;  %11802 = vmatmul.mubr.msk.f32.gmra.mrb[218].mxu1 %vm1781_vm2, %v3912_v57  ;;  %v5572_v37 = vld [vmem:[#allocation2 + $0x6b] sm:$0xff] }
 0x359   : > { %v11850_v22 = vpop.f32.mrb[213].mxu0  ;;  %12173 = vmatmul.mubr.msk.f32.gmra.mrb[62].mxu0 %vm1781_vm2, %v5571_v18  ;;  %11804 = vmatprep.mubr.msk.f32.mxu1 %vm13164_vm1, %v16895_v59 }
 0x35a   : > { %12175 = vmatprep.mubr.msk.f32.mxu0 %vm13164_vm1, %v16895_v59  ;;  %v14937_v42 = vadd.f32 %v14342_v31, %v2708_v29  ;;  %v3914_v22 = vld [vmem:[#allocation2 + $0x5a] sm:$0xff] }
 0x35b   : > { %v2649_v53 = vpop.f32.mrb[114].mxu1 }
 0x35c   : > { %v14939_v12 = vpop.f32.mrb[214].mxu0  ;;  %v2709_v55 = vadd.f32 %v2649_v53, %v14739_v23  ;;  %v11482_v57 = vpop.f32.mrb[115].mxu1  ;;  %11805 = vmatmul.mubr.msk.f32.gmra.mrb[220].mxu1 %vm1781_vm2, %v3913_v51  ;;  %v5573_v23 = vld [vmem:[#allocation2 + $0x73] sm:$0xff] }
 0x35d   : > { %v11853_v18 = vpop.f32.mrb[215].mxu0  ;;  %12176 = vmatmul.mubr.msk.f32.gmra.mrb[64].mxu0 %vm1781_vm2, %v5572_v37  ;;  %11807 = vmatprep.mubr.msk.f32.mxu1 %vm13164_vm1, %v16895_v59 }
 0x35e   : > { %12178 = vmatprep.mubr.msk.f32.mxu0 %vm13164_vm1, %v16895_v59  ;;  %v14949_v31 = vadd.f32 %v14353_v10, %v2709_v55  ;;  %v3915_v18 = vld [vmem:[#allocation2 + $0x62] sm:$0xff] }
 0x35f   : > { %v2654_v29 = vpop.f32.mrb[116].mxu1 }
 0x360   : > { %v14951_v40 = vpop.f32.mrb[216].mxu0  ;;  %v2710_v53 = vadd.f32 %v2654_v29, %v14750_v41  ;;  %v11485_v51 = vpop.f32.mrb[117].mxu1  ;;  %11808 = vmatmul.mubr.msk.f32.gmra.mrb[222].mxu1 %vm1781_vm2, %v3914_v22  ;;  %v5574_v41 = vld [vmem:[#allocation2 + $0x7b] sm:$0xff] }
 0x361   : > { %v11856_v37 = vpop.f32.mrb[217].mxu0  ;;  %12179 = vmatmul.mubr.msk.f32.gmra.mrb[66].mxu0 %vm1781_vm2, %v5573_v23  ;;  %11810 = vmatprep.mubr.msk.f32.mxu1 %vm13164_vm1, %v16895_v59 }
 0x362   : > { %12181 = vmatprep.mubr.msk.f32.mxu0 %vm13164_vm1, %v16895_v59  ;;  %v14961_v10 = vadd.f32 %v14364_v43, %v2710_v53  ;;  %v3916_v37 = vld [vmem:[#allocation2 + $0x6a] sm:$0xff] }
 0x363   : > { %v2659_v55 = vpop.f32.mrb[118].mxu1 }
 0x364   : > { %v14963_v57 = vpop.f32.mrb[218].mxu0  ;;  %v2711_v29 = vadd.f32 %v2659_v55, %v14761_v8  ;;  %v11488_v22 = vpop.f32.mrb[119].mxu1  ;;  %11811 = vmatmul.mubr.msk.f32.gmra.mrb[224].mxu1 %vm1781_vm2, %v3915_v18  ;;  %v5575_v8 = vld [vmem:[#allocation2 + $0x83] sm:$0xff] }
 0x365   : > { %v11859_v23 = vpop.f32.mrb[219].mxu0  ;;  %12182 = vmatmul.mubr.msk.f32.gmra.mrb[68].mxu0 %vm1781_vm2, %v5574_v41  ;;  %11813 = vmatprep.mubr.msk.f32.mxu1 %vm13164_vm1, %v16895_v59 }
 0x366   : > { %12184 = vmatprep.mubr.msk.f32.mxu0 %vm13164_vm1, %v16895_v59  ;;  %v14973_v43 = vadd.f32 %v14375_v7, %v2711_v29  ;;  %v3917_v23 = vld [vmem:[#allocation2 + $0x72] sm:$0xff] }
 0x367   : > { %v2664_v53 = vpop.f32.mrb[120].mxu1 }
 0x368   : > { %v14975_v51 = vpop.f32.mrb[220].mxu0  ;;  %v2712_v55 = vadd.f32 %v2664_v53, %v14772_v5  ;;  %v11491_v18 = vpop.f32.mrb[121].mxu1  ;;  %11814 = vmatmul.mubr.msk.f32.gmra.mrb[226].mxu1 %vm1781_vm2, %v3916_v37  ;;  %v5576_v5 = vld [vmem:[#allocation2 + $0x8b] sm:$0xff] }
 0x369   : > { %v11862_v41 = vpop.f32.mrb[221].mxu0  ;;  %12185 = vmatmul.mubr.msk.f32.gmra.mrb[70].mxu0 %vm1781_vm2, %v5575_v8  ;;  %11816 = vmatprep.mubr.msk.f32.mxu1 %vm13164_vm1, %v16895_v59 }
 0x36a   : > { %12187 = vmatprep.mubr.msk.f32.mxu0 %vm13164_vm1, %v16895_v59  ;;  %v14985_v7 = vadd.f32 %v14386_v14, %v2712_v55  ;;  %v3918_v41 = vld [vmem:[#allocation2 + $0x7a] sm:$0xff] }
 0x36b   : > { %v2669_v29 = vpop.f32.mrb[122].mxu1 }
 0x36c   : > { %v14987_v22 = vpop.f32.mrb[222].mxu0  ;;  %v2713_v53 = vadd.f32 %v2669_v29, %v14783_v3  ;;  %v11494_v37 = vpop.f32.mrb[123].mxu1  ;;  %11817 = vmatmul.mubr.msk.f32.gmra.mrb[228].mxu1 %vm1781_vm2, %v3917_v23  ;;  %v5577_v3 = vld [vmem:[#allocation2 + $0x93] sm:$0xff] }
 0x36d   : > { %v11865_v8 = vpop.f32.mrb[223].mxu0  ;;  %12188 = vmatmul.mubr.msk.f32.gmra.mrb[72].mxu0 %vm1781_vm2, %v5576_v5  ;;  %11819 = vmatprep.mubr.msk.f32.mxu1 %vm13164_vm1, %v16895_v59 }
 0x36e   : > { %12190 = vmatprep.mubr.msk.f32.mxu0 %vm13164_vm1, %v16895_v59  ;;  %v14997_v14 = vadd.f32 %v14397_v49, %v2713_v53  ;;  %v3919_v8 = vld [vmem:[#allocation2 + $0x82] sm:$0xff] }
 0x36f   : > { %v2674_v55 = vpop.f32.mrb[124].mxu1 }
 0x370   : > { %v14999_v18 = vpop.f32.mrb[224].mxu0  ;;  %v2714_v29 = vadd.f32 %v2674_v55, %v14794_v16  ;;  %v11497_v23 = vpop.f32.mrb[125].mxu1  ;;  %11820 = vmatmul.mubr.msk.f32.gmra.mrb[230].mxu1 %vm1781_vm2, %v3918_v41  ;;  %v5578_v16 = vld [vmem:[#allocation2 + $0x9b] sm:$0xff] }
 0x371   : > { %v11868_v5 = vpop.f32.mrb[225].mxu0  ;;  %12191 = vmatmul.mubr.msk.f32.gmra.mrb[74].mxu0 %vm1781_vm2, %v5577_v3  ;;  %11822 = vmatprep.mubr.msk.f32.mxu1 %vm13164_vm1, %v16895_v59 }
 0x372   : > { %12193 = vmatprep.mubr.msk.f32.mxu0 %vm13164_vm1, %v16895_v59  ;;  %v15009_v49 = vadd.f32 %v14408_v61, %v2714_v29  ;;  %v3920_v5 = vld [vmem:[#allocation2 + $0x8a] sm:$0xff] }
 0x373   : > { %v2679_v53 = vpop.f32.mrb[126].mxu1 }
 0x374   : > { %v15011_v37 = vpop.f32.mrb[226].mxu0  ;;  %v2715_v55 = vadd.f32 %v2679_v53, %v14805_v20  ;;  %v11500_v41 = vpop.f32.mrb[127].mxu1  ;;  %11823 = vmatmul.mubr.msk.f32.gmra.mrb[232].mxu1 %vm1781_vm2, %v3919_v8  ;;  %v5579_v20 = vld [vmem:[#allocation2 + $0xa3] sm:$0xff] }
 0x375   : > { %v11871_v3 = vpop.f32.mrb[227].mxu0  ;;  %12194 = vmatmul.mubr.msk.f32.gmra.mrb[76].mxu0 %vm1781_vm2, %v5578_v16  ;;  %11825 = vmatprep.mubr.msk.f32.mxu1 %vm13164_vm1, %v16895_v59 }
 0x376   : > { %12196 = vmatprep.mubr.msk.f32.mxu0 %vm13164_vm1, %v16895_v59  ;;  %v15021_v61 = vadd.f32 %v14419_v27, %v2715_v55  ;;  %v3921_v3 = vld [vmem:[#allocation2 + $0x92] sm:$0xff] }
 0x377   : > { %v2684_v29 = vpop.f32.mrb[128].mxu1 }
 0x378   : > { %v15023_v23 = vpop.f32.mrb[228].mxu0  ;;  %v2716_v53 = vadd.f32 %v2684_v29, %v14816_v0  ;;  %v11503_v8 = vpop.f32.mrb[129].mxu1  ;;  %11826 = vmatmul.mubr.msk.f32.gmra.mrb[234].mxu1 %vm1781_vm2, %v3920_v5  ;;  %v5580_v0 = vld [vmem:[#allocation2 + $0xab] sm:$0xff] }
 0x379   : > { %v11874_v16 = vpop.f32.mrb[229].mxu0  ;;  %12197 = vmatmul.mubr.msk.f32.gmra.mrb[78].mxu0 %vm1781_vm2, %v5579_v20  ;;  %11828 = vmatprep.mubr.msk.f32.mxu1 %vm13164_vm1, %v16895_v59 }
 0x37a   : > { %12199 = vmatprep.mubr.msk.f32.mxu0 %vm13164_vm1, %v16895_v59  ;;  %v15033_v27 = vadd.f32 %v14429_v58, %v2716_v53  ;;  %v4379_v58 = vld [vmem:[#allocation2 + $0x1d] sm:$0xff] }
 0x37b   : > { %v2689_v55 = vpop.f32.mrb[130].mxu1 }
 0x37c   : > { %v15035_v41 = vpop.f32.mrb[230].mxu0  ;;  %v2717_v29 = vadd.f32 %v2689_v55, %v14827_v62  ;;  %v11506_v5 = vpop.f32.mrb[131].mxu1  ;;  %11829 = vmatmul.mubr.msk.f32.gmra.mrb[236].mxu1 %vm1781_vm2, %v3921_v3  ;;  %v6038_v62 = vld [vmem:[#allocation2 + $0x2d] sm:$0xff]  ;;  %v10344_v3 = vld [vmem:[%s16889_s3 + $0xa0] sm:$0xff] }
 0x37d   : > { %v11877_v20 = vpop.f32.mrb[231].mxu0  ;;  %12200 = vmatmul.mubr.msk.f32.gmra.mrb[80].mxu0 %vm1781_vm2, %v5580_v0  ;;  %11886 = vmatprep.mubr.msk.f32.mxu1 %vm13164_vm1, %v16895_v59  ;;  %v10218_v55 = vld [vmem:[%s16889_s3 + $0x68] sm:$0xff] }
 0x37e   : > { %12257 = vmatprep.mubr.msk.f32.mxu0 %vm13164_vm1, %v16895_v59  ;;  %v15045_v53 = vadd.f32 %v14439_v21, %v2717_v29 }
 0x37f   : > { %v2694_v8 = vpop.f32.mrb[132].mxu1 }
 0x380   : > { %v15047_v16 = vpop.f32.mrb[232].mxu0  ;;  %v2718_v0 = vadd.f32 %v2694_v8, %v14844_v1  ;;  %v11509_v5 = vpop.f32.mrb[133].mxu1  ;;  %11887 = vmatmul.mubr.msk.f32.vlgmr.msra.gmra.mrb[238].mxu1 %vm1781_vm2, %v4379_v58  ;;  %v4380_v1 = vld [vmem:[#allocation2 + $0x25] sm:$0xff]  ;;  %v6039_v8 = vld [vmem:[#allocation2 + $0x35] sm:$0xff] }
 0x381   : > { %16913 = vst [vmem:[#allocation19_spill] sm:$0xff] %v15047_v16  ;;  %v11880_v20 = vpop.f32.mrb[233].mxu0  ;;  %12258 = vmatmul.mubr.msk.f32.vlgmr.msra.gmra.mrb[82].mxu0 %vm1781_vm2, %v6038_v62  ;;  %11889 = vmatprep.mubr.msk.f32.mxu1 %vm13164_vm1, %v16895_v59 }
 0x382   : > { %12260 = vmatprep.mubr.msk.f32.mxu0 %vm13164_vm1, %v16895_v59  ;;  %11991 = vmatpush3.msra.mxu1 %v10218_v55  ;;  %v15063_v21 = vadd.f32 %v14449_v28, %v2718_v0  ;;  %v6040_v0 = vld [vmem:[#allocation2 + $0x3d] sm:$0xff] }
 0x383   : > { %12362 = vmatpush3.msra.mxu0 %v10344_v3  ;;  %v2699_v29 = vpop.f32.mrb[134].mxu1  ;;  %12096 = vmatprep.subr.mxu1 %v16895_v59 }
 0x384   : > { %v15065_v16 = vpop.f32.mrb[234].mxu0  ;;  %12467 = vmatprep.subr.mxu0 %v16895_v59  ;;  %v2719_v58 = vadd.f32 %v2699_v29, %v14858_v36  ;;  %v11512_v5 = vpop.f32.mrb[135].mxu1  ;;  %11890 = vmatmul.mubr.msk.f32.gmra.mrb[240].mxu1 %vm1781_vm2, %v4380_v1 }
 0x385   : > { %v11883_v20 = vpop.f32.mrb[235].mxu0  ;;  %12261 = vmatmul.mubr.msk.f32.gmra.mrb[84].mxu0 %vm1781_vm2, %v6039_v8  ;;  %11892 = vmatprep.mubr.msk.f32.mxu1 %vm13164_vm1, %v16895_v59 }
 0x386   : > { %12263 = vmatprep.mubr.msk.f32.mxu0 %vm13164_vm1, %v16895_v59  ;;  %v15077_v28 = vadd.f32 %v14465_v38, %v2719_v58  ;;  %v6041_v20 = vld [vmem:[#allocation2 + $0x45] sm:$0xff] }
 0x387   : > { %v3093_v55 = vpop.f32.mrb[136].mxu1 }
 0x388   : > { %v15079_v3 = vpop.f32.mrb[236].mxu0  ;;  %v3177_v36 = vadd.f32 %v3093_v55, %v14877_v45  ;;  %v11570_v29 = vpop.f32.mrb[137].mxu1  ;;  %11893 = vmatmul.mubr.msk.f32.gmra.mrb[242].mxu1 %vm1781_vm2, %v6038_v62 }
 0x389   : > { %v11941_v1 = vpop.f32.mrb[237].mxu0  ;;  %12264 = vmatmul.mubr.msk.f32.gmra.mrb[86].mxu0 %vm1781_vm2, %v6040_v0  ;;  %11895 = vmatprep.mubr.msk.f32.mxu1 %vm13164_vm1, %v16895_v59 }
 0x38a   : > { %12266 = vmatprep.mubr.msk.f32.mxu0 %vm13164_vm1, %v16895_v59  ;;  %v15089_v38 = vadd.f32 %v14475_v15, %v3177_v36  ;;  %v6042_v1 = vld [vmem:[#allocation2 + $0x4d] sm:$0xff] }
 0x38b   : > { %v3098_v58 = vpop.f32.mrb[138].mxu1 }
 0x38c   : > { %v15091_v5 = vpop.f32.mrb[238].mxu0  ;;  %v3178_v45 = vadd.f32 %v3098_v58, %v14889_v24  ;;  %v11573_v55 = vpop.f32.mrb[139].mxu1  ;;  %11896 = vmatmul.mubr.msk.f32.gmra.mrb[244].mxu1 %vm1781_vm2, %v6039_v8 }
 0x38d   : > { %v11944_v62 = vpop.f32.mrb[239].mxu0  ;;  %12267 = vmatmul.mubr.msk.f32.gmra.mrb[88].mxu0 %vm1781_vm2, %v6041_v20  ;;  %11898 = vmatprep.mubr.msk.f32.mxu1 %vm13164_vm1, %v16895_v59 }
 0x38e   : > { %12269 = vmatprep.mubr.msk.f32.mxu0 %vm13164_vm1, %v16895_v59  ;;  %v15101_v15 = vadd.f32 %v14486_v35, %v3178_v45  ;;  %v6043_v62 = vld [vmem:[#allocation2 + $0x55] sm:$0xff] }
 0x38f   : > { %v3103_v36 = vpop.f32.mrb[140].mxu1 }
 0x390   : > { %v15103_v29 = vpop.f32.mrb[240].mxu0  ;;  %v3179_v24 = vadd.f32 %v3103_v36, %v14901_v32  ;;  %v11576_v58 = vpop.f32.mrb[141].mxu1  ;;  %11899 = vmatmul.mubr.msk.f32.gmra.mrb[246].mxu1 %vm1781_vm2, %v6040_v0 }
 0x391   : > { %v11947_v8 = vpop.f32.mrb[241].mxu0  ;;  %12270 = vmatmul.mubr.msk.f32.gmra.mrb[90].mxu0 %vm1781_vm2, %v6042_v1  ;;  %11901 = vmatprep.mubr.msk.f32.mxu1 %vm13164_vm1, %v16895_v59 }
 0x392   : > { %12272 = vmatprep.mubr.msk.f32.mxu0 %vm13164_vm1, %v16895_v59  ;;  %v15113_v35 = vadd.f32 %v14497_v50, %v3179_v24  ;;  %v6044_v8 = vld [vmem:[#allocation2 + $0x5d] sm:$0xff] }
 0x393   : > { %v3108_v45 = vpop.f32.mrb[142].mxu1 }
 0x394   : > { %v15115_v55 = vpop.f32.mrb[242].mxu0  ;;  %v3180_v32 = vadd.f32 %v3108_v45, %v14913_v2  ;;  %v11579_v36 = vpop.f32.mrb[143].mxu1  ;;  %11902 = vmatmul.mubr.msk.f32.gmra.mrb[248].mxu1 %vm1781_vm2, %v6041_v20 }
 0x395   : > { %v11950_v0 = vpop.f32.mrb[243].mxu0  ;;  %12273 = vmatmul.mubr.msk.f32.gmra.mrb[92].mxu0 %vm1781_vm2, %v6043_v62  ;;  %11904 = vmatprep.mubr.msk.f32.mxu1 %vm13164_vm1, %v16895_v59 }
 0x396   : > { %12275 = vmatprep.mubr.msk.f32.mxu0 %vm13164_vm1, %v16895_v59  ;;  %v15125_v50 = vadd.f32 %v14508_v6, %v3180_v32  ;;  %v6045_v0 = vld [vmem:[#allocation2 + $0x65] sm:$0xff] }
 0x397   : > { %v3113_v24 = vpop.f32.mrb[144].mxu1 }
 0x398   : > { %v15127_v58 = vpop.f32.mrb[244].mxu0  ;;  %v3181_v2 = vadd.f32 %v3113_v24, %v14925_v46  ;;  %v11582_v45 = vpop.f32.mrb[145].mxu1  ;;  %11905 = vmatmul.mubr.msk.f32.gmra.mrb[250].mxu1 %vm1781_vm2, %v6042_v1 }
 0x399   : > { %v11953_v20 = vpop.f32.mrb[245].mxu0  ;;  %12276 = vmatmul.mubr.msk.f32.gmra.mrb[94].mxu0 %vm1781_vm2, %v6044_v8  ;;  %11907 = vmatprep.mubr.msk.f32.mxu1 %vm13164_vm1, %v16895_v59 }
 0x39a   : > { %12278 = vmatprep.mubr.msk.f32.mxu0 %vm13164_vm1, %v16895_v59  ;;  %v15137_v6 = vadd.f32 %v14519_v63, %v3181_v2  ;;  %v6046_v20 = vld [vmem:[#allocation2 + $0x6d] sm:$0xff] }
 0x39b   : > { %v3118_v32 = vpop.f32.mrb[146].mxu1 }
 0x39c   : > { %v15139_v36 = vpop.f32.mrb[246].mxu0  ;;  %v3182_v46 = vadd.f32 %v3118_v32, %v14937_v42  ;;  %v11585_v24 = vpop.f32.mrb[147].mxu1  ;;  %11908 = vmatmul.mubr.msk.f32.gmra.mrb[252].mxu1 %vm1781_vm2, %v6043_v62 }
 0x39d   : > { %v11956_v1 = vpop.f32.mrb[247].mxu0  ;;  %12279 = vmatmul.mubr.msk.f32.gmra.mrb[96].mxu0 %vm1781_vm2, %v6045_v0  ;;  %11910 = vmatprep.mubr.msk.f32.mxu1 %vm13164_vm1, %v16895_v59 }
 0x39e   : > { %12281 = vmatprep.mubr.msk.f32.mxu0 %vm13164_vm1, %v16895_v59  ;;  %v15149_v63 = vadd.f32 %v14530_v33, %v3182_v46  ;;  %v6047_v1 = vld [vmem:[#allocation2 + $0x75] sm:$0xff] }
 0x39f   : > { %v3123_v2 = vpop.f32.mrb[148].mxu1 }
 0x3a0   : > { %v15151_v45 = vpop.f32.mrb[248].mxu0  ;;  %v3183_v42 = vadd.f32 %v3123_v2, %v14949_v31  ;;  %v11588_v32 = vpop.f32.mrb[149].mxu1  ;;  %11911 = vmatmul.mubr.msk.f32.gmra.mrb[254].mxu1 %vm1781_vm2, %v6044_v8 }
 0x3a1   : > { %v11959_v62 = vpop.f32.mrb[249].mxu0  ;;  %12282 = vmatmul.mubr.msk.f32.gmra.mrb[98].mxu0 %vm1781_vm2, %v6046_v20  ;;  %11913 = vmatprep.mubr.msk.f32.mxu1 %vm13164_vm1, %v16895_v59 }
 0x3a2   : > { %12284 = vmatprep.mubr.msk.f32.mxu0 %vm13164_vm1, %v16895_v59  ;;  %v15161_v33 = vadd.f32 %v14541_v13, %v3183_v42  ;;  %v6048_v62 = vld [vmem:[#allocation2 + $0x7d] sm:$0xff] }
 0x3a3   : > { %v3128_v46 = vpop.f32.mrb[150].mxu1 }
 0x3a4   : > { %v15163_v24 = vpop.f32.mrb[250].mxu0  ;;  %v3184_v31 = vadd.f32 %v3128_v46, %v14961_v10  ;;  %v11591_v2 = vpop.f32.mrb[151].mxu1  ;;  %11914 = vmatmul.mubr.msk.f32.gmra.mrb[0].mxu1 %vm1781_vm2, %v6045_v0 }
 0x3a5   : > { %v11962_v8 = vpop.f32.mrb[251].mxu0  ;;  %12285 = vmatmul.mubr.msk.f32.gmra.mrb[100].mxu0 %vm1781_vm2, %v6047_v1  ;;  %11916 = vmatprep.mubr.msk.f32.mxu1 %vm13164_vm1, %v16895_v59 }
 0x3a6   : > { %12287 = vmatprep.mubr.msk.f32.mxu0 %vm13164_vm1, %v16895_v59  ;;  %v15173_v13 = vadd.f32 %v14552_v48, %v3184_v31  ;;  %v6049_v8 = vld [vmem:[#allocation2 + $0x85] sm:$0xff] }
 0x3a7   : > { %v3133_v42 = vpop.f32.mrb[152].mxu1 }
 0x3a8   : > { %v15175_v32 = vpop.f32.mrb[252].mxu0  ;;  %v3185_v10 = vadd.f32 %v3133_v42, %v14973_v43  ;;  %v11594_v46 = vpop.f32.mrb[153].mxu1  ;;  %11917 = vmatmul.mubr.msk.f32.gmra.mrb[2].mxu1 %vm1781_vm2, %v6046_v20 }
 0x3a9   : > { %v11965_v0 = vpop.f32.mrb[253].mxu0  ;;  %12288 = vmatmul.mubr.msk.f32.gmra.mrb[102].mxu0 %vm1781_vm2, %v6048_v62  ;;  %11919 = vmatprep.mubr.msk.f32.mxu1 %vm13164_vm1, %v16895_v59 }
 0x3aa   : > { %12290 = vmatprep.mubr.msk.f32.mxu0 %vm13164_vm1, %v16895_v59  ;;  %v15185_v48 = vadd.f32 %v14563_v47, %v3185_v10  ;;  %v6050_v0 = vld [vmem:[#allocation2 + $0x8d] sm:$0xff] }
 0x3ab   : > { %v3138_v31 = vpop.f32.mrb[154].mxu1 }
 0x3ac   : > { %v15187_v2 = vpop.f32.mrb[254].mxu0  ;;  %v3186_v43 = vadd.f32 %v3138_v31, %v14985_v7  ;;  %v11597_v42 = vpop.f32.mrb[155].mxu1  ;;  %11920 = vmatmul.mubr.msk.f32.gmra.mrb[4].mxu1 %vm1781_vm2, %v6047_v1 }
 0x3ad   : > { %v11968_v20 = vpop.f32.mrb[255].mxu0  ;;  %12291 = vmatmul.mubr.msk.f32.gmra.mrb[104].mxu0 %vm1781_vm2, %v6049_v8  ;;  %11922 = vmatprep.mubr.msk.f32.mxu1 %vm13164_vm1, %v16895_v59 }
 0x3ae   : > { %12293 = vmatprep.mubr.msk.f32.mxu0 %vm13164_vm1, %v16895_v59  ;;  %v15197_v47 = vadd.f32 %v14574_v56, %v3186_v43  ;;  %v6051_v20 = vld [vmem:[#allocation2 + $0x95] sm:$0xff] }
 0x3af   : > { %v3143_v10 = vpop.f32.mrb[156].mxu1 }
 0x3b0   : > { %v15199_v46 = vpop.f32.mrb[0].mxu0  ;;  %v3187_v7 = vadd.f32 %v3143_v10, %v14997_v14  ;;  %v11600_v31 = vpop.f32.mrb[157].mxu1  ;;  %11923 = vmatmul.mubr.msk.f32.gmra.mrb[6].mxu1 %vm1781_vm2, %v6048_v62 }
 0x3b1   : > { %v11971_v1 = vpop.f32.mrb[1].mxu0  ;;  %12294 = vmatmul.mubr.msk.f32.gmra.mrb[106].mxu0 %vm1781_vm2, %v6050_v0  ;;  %11925 = vmatprep.mubr.msk.f32.mxu1 %vm13164_vm1, %v16895_v59 }
 0x3b2   : > { %12296 = vmatprep.mubr.msk.f32.mxu0 %vm13164_vm1, %v16895_v59  ;;  %v15209_v56 = vadd.f32 %v14585_v9, %v3187_v7  ;;  %v6052_v1 = vld [vmem:[#allocation2 + $0x9d] sm:$0xff] }
 0x3b3   : > { %v3148_v43 = vpop.f32.mrb[158].mxu1 }
 0x3b4   : > { %v15211_v42 = vpop.f32.mrb[2].mxu0  ;;  %v3188_v14 = vadd.f32 %v3148_v43, %v15009_v49  ;;  %v11603_v10 = vpop.f32.mrb[159].mxu1  ;;  %11926 = vmatmul.mubr.msk.f32.gmra.mrb[8].mxu1 %vm1781_vm2, %v6049_v8 }
 0x3b5   : > { %v11974_v62 = vpop.f32.mrb[3].mxu0  ;;  %12297 = vmatmul.mubr.msk.f32.gmra.mrb[108].mxu0 %vm1781_vm2, %v6051_v20  ;;  %11928 = vmatprep.mubr.msk.f32.mxu1 %vm13164_vm1, %v16895_v59 }
 0x3b6   : > { %12299 = vmatprep.mubr.msk.f32.mxu0 %vm13164_vm1, %v16895_v59  ;;  %v15221_v9 = vadd.f32 %v14596_v52, %v3188_v14  ;;  %v6053_v62 = vld [vmem:[#allocation2 + $0xa5] sm:$0xff] }
 0x3b7   : > { %v3153_v7 = vpop.f32.mrb[160].mxu1 }
 0x3b8   : > { %v15223_v31 = vpop.f32.mrb[4].mxu0  ;;  %v3189_v49 = vadd.f32 %v3153_v7, %v15021_v61  ;;  %v11606_v43 = vpop.f32.mrb[161].mxu1  ;;  %11929 = vmatmul.mubr.msk.f32.gmra.mrb[10].mxu1 %vm1781_vm2, %v6050_v0 }
 0x3b9   : > { %v11977_v8 = vpop.f32.mrb[5].mxu0  ;;  %12300 = vmatmul.mubr.msk.f32.gmra.mrb[110].mxu0 %vm1781_vm2, %v6052_v1  ;;  %11931 = vmatprep.mubr.msk.f32.mxu1 %vm13164_vm1, %v16895_v59 }
 0x3ba   : > { %12302 = vmatprep.mubr.msk.f32.mxu0 %vm13164_vm1, %v16895_v59  ;;  %v15233_v52 = vadd.f32 %v14607_v19, %v3189_v49  ;;  %v6054_v8 = vld [vmem:[#allocation2 + $0xad] sm:$0xff] }
 0x3bb   : > { %v3158_v14 = vpop.f32.mrb[162].mxu1 }
 0x3bc   : > { %v15235_v10 = vpop.f32.mrb[6].mxu0  ;;  %v3190_v61 = vadd.f32 %v3158_v14, %v15033_v27  ;;  %v11609_v7 = vpop.f32.mrb[163].mxu1  ;;  %11932 = vmatmul.mubr.msk.f32.gmra.mrb[12].mxu1 %vm1781_vm2, %v6051_v20 }
 0x3bd   : > { %v11980_v0 = vpop.f32.mrb[7].mxu0  ;;  %12303 = vmatmul.mubr.msk.f32.gmra.mrb[112].mxu0 %vm1781_vm2, %v6053_v62  ;;  %11934 = vmatprep.mubr.msk.f32.mxu1 %vm13164_vm1, %v16895_v59 }
 0x3be   : > { %12305 = vmatprep.mubr.msk.f32.mxu0 %vm13164_vm1, %v16895_v59  ;;  %v15245_v19 = vadd.f32 %v14618_v30, %v3190_v61  ;;  %v4853_v30 = vld [vmem:[#allocation2 + $0x1f] sm:$0xff]  ;;  %v10380_v0 = vld [vmem:[%s16889_s3 + $0xb0] sm:$0xff] }
 0x3bf   : > { %v3163_v49 = vpop.f32.mrb[164].mxu1 }
 0x3c0   : > { %v15247_v43 = vpop.f32.mrb[8].mxu0  ;;  %v3191_v27 = vadd.f32 %v3163_v49, %v15045_v53  ;;  %v11612_v14 = vpop.f32.mrb[165].mxu1  ;;  %11935 = vmatmul.mubr.msk.f32.gmra.mrb[14].mxu1 %vm1781_vm2, %v6052_v1  ;;  %v6512_v53 = vld [vmem:[#allocation2 + $0x38] sm:$0xff] }
 0x3c1   : > { %v11983_v20 = vpop.f32.mrb[9].mxu0  ;;  %12306 = vmatmul.mubr.msk.f32.gmra.mrb[114].mxu0 %vm1781_vm2, %v6054_v8  ;;  %11992 = vmatprep.mubr.msk.f32.mxu1 %vm13164_vm1, %v16895_v59  ;;  %v10254_v1 = vld [vmem:[%s16889_s3 + $0x78] sm:$0xff] }
 0x3c2   : > { %12363 = vmatprep.mubr.msk.f32.mxu0 %vm13164_vm1, %v16895_v59  ;;  %v15257_v62 = vadd.f32 %v14629_v44, %v3191_v27 }
 0x3c3   : > { %v3168_v61 = vpop.f32.mrb[166].mxu1 }
 0x3c4   : > { %v15259_v7 = vpop.f32.mrb[10].mxu0  ;;  %v3192_v49 = vadd.f32 %v3168_v61, %v15063_v21  ;;  %v11615_v8 = vpop.f32.mrb[167].mxu1  ;;  %11993 = vmatmul.mubr.msk.f32.vlgmr.msra.gmra.mrb[16].mxu1 %vm1781_vm2, %v4853_v30  ;;  %v4854_v21 = vld [vmem:[#allocation2 + $0x27] sm:$0xff] }
 0x3c5   : > { %v11986_v14 = vpop.f32.mrb[11].mxu0  ;;  %12364 = vmatmul.mubr.msk.f32.vlgmr.msra.gmra.mrb[116].mxu0 %vm1781_vm2, %v6512_v53  ;;  %11995 = vmatprep.mubr.msk.f32.mxu1 %vm13164_vm1, %v16895_v59  ;;  %v6513_v61 = vld [vmem:[#allocation2 + $0x40] sm:$0xff] }
 0x3c6   : > { %12366 = vmatprep.mubr.msk.f32.mxu0 %vm13164_vm1, %v16895_v59  ;;  %12097 = vmatpush3.msra.mxu1 %v10254_v1  ;;  %v15275_v44 = vadd.f32 %v14640_v4, %v3192_v49  ;;  %v16914_v4 = vld [vmem:[#allocation3_spill] sm:$0xff] }
 0x3c7   : > { %12468 = vmatpush3.msra.mxu0 %v10380_v0  ;;  %v3173_v27 = vpop.f32.mrb[168].mxu1  ;;  %12202 = vmatprep.subr.mxu1 %v16895_v59  ;;  %v4855_v14 = vld [vmem:[#allocation2 + $0x2f] sm:$0xff] }
 0x3c8   : > { %v15277_v20 = vpop.f32.mrb[12].mxu0  ;;  %12573 = vmatprep.subr.mxu0 %v16895_v59  ;;  %v3193_v30 = vadd.f32 %v3173_v27, %v15077_v28  ;;  %v11618_v53 = vpop.f32.mrb[169].mxu1  ;;  %11996 = vmatmul.mubr.msk.f32.gmra.mrb[18].mxu1 %vm1781_vm2, %v4854_v21  ;;  %v6514_v28 = vld [vmem:[#allocation2 + $0x48] sm:$0xff] }
 0x3c9   : > { %v11989_v8 = vpop.f32.mrb[13].mxu0  ;;  %12367 = vmatmul.mubr.msk.f32.gmra.mrb[118].mxu0 %vm1781_vm2, %v6513_v61  ;;  %11998 = vmatprep.mubr.msk.f32.mxu1 %vm13164_vm1, %v16895_v59  ;;  %v16916_v61 = vld [vmem:[#allocation4_spill] sm:$0xff] }
 0x3ca   : > { %12369 = vmatprep.mubr.msk.f32.mxu0 %vm13164_vm1, %v16895_v59  ;;  %v15289_v1 = vadd.f32 %v16914_v4, %v3193_v30 }
 0x3cb   : > { %v3567_v0 = vpop.f32.mrb[170].mxu1 }
 0x3cc   : > { %v15291_v49 = vpop.f32.mrb[14].mxu0  ;;  %v3651_v27 = vadd.f32 %v3567_v0, %v15089_v38  ;;  %v11676_v53 = vpop.f32.mrb[171].mxu1  ;;  %11999 = vmatmul.mubr.msk.f32.gmra.mrb[20].mxu1 %vm1781_vm2, %v4855_v14  ;;  %v6515_v38 = vld [vmem:[#allocation2 + $0x50] sm:$0xff] }
 0x3cd   : > { %16915 = vst [vmem:[#allocation3_spill] sm:$0xff] %v15291_v49  ;;  %v12047_v21 = vpop.f32.mrb[15].mxu0  ;;  %12370 = vmatmul.mubr.msk.f32.gmra.mrb[120].mxu0 %vm1781_vm2, %v6514_v28  ;;  %12001 = vmatprep.mubr.msk.f32.mxu1 %vm13164_vm1, %v16895_v59  ;;  %v4856_v49 = vld [vmem:[#allocation2 + $0x37] sm:$0xff] }
 0x3ce   : > { %12372 = vmatprep.mubr.msk.f32.mxu0 %vm13164_vm1, %v16895_v59  ;;  %v15301_v30 = vadd.f32 %v16916_v61, %v3651_v27  ;;  %v16918_v27 = vld [vmem:[#allocation5_spill] sm:$0xff] }
 0x3cf   : > { %v3572_v8 = vpop.f32.mrb[172].mxu1 }
 0x3d0   : > { %v15303_v4 = vpop.f32.mrb[16].mxu0  ;;  %v3652_v0 = vadd.f32 %v3572_v8, %v15101_v15  ;;  %v11679_v14 = vpop.f32.mrb[173].mxu1  ;;  %12002 = vmatmul.mubr.msk.f32.gmra.mrb[22].mxu1 %vm1781_vm2, %v4856_v49  ;;  %v6516_v15 = vld [vmem:[#allocation2 + $0x58] sm:$0xff] }
 0x3d1   : > { %16917 = vst [vmem:[#allocation4_spill] sm:$0xff] %v15303_v4  ;;  %v12050_v28 = vpop.f32.mrb[17].mxu0  ;;  %12373 = vmatmul.mubr.msk.f32.gmra.mrb[122].mxu0 %vm1781_vm2, %v6515_v38  ;;  %12004 = vmatprep.mubr.msk.f32.mxu1 %vm13164_vm1, %v16895_v59  ;;  %v4857_v4 = vld [vmem:[#allocation2 + $0x3f] sm:$0xff] }
 0x3d2   : > { %12375 = vmatprep.mubr.msk.f32.mxu0 %vm13164_vm1, %v16895_v59  ;;  %v15313_v53 = vadd.f32 %v16918_v27, %v3652_v0  ;;  %v16920_v0 = vld [vmem:[#allocation6_spill] sm:$0xff] }
 0x3d3   : > { %v3577_v21 = vpop.f32.mrb[174].mxu1 }
 0x3d4   : > { %v15315_v61 = vpop.f32.mrb[18].mxu0  ;;  %v3653_v8 = vadd.f32 %v3577_v21, %v15113_v35  ;;  %v11682_v49 = vpop.f32.mrb[175].mxu1  ;;  %12005 = vmatmul.mubr.msk.f32.gmra.mrb[24].mxu1 %vm1781_vm2, %v4857_v4  ;;  %v6517_v35 = vld [vmem:[#allocation2 + $0x60] sm:$0xff] }
 0x3d5   : > { %16919 = vst [vmem:[#allocation5_spill] sm:$0xff] %v15315_v61  ;;  %v12053_v38 = vpop.f32.mrb[19].mxu0  ;;  %12376 = vmatmul.mubr.msk.f32.gmra.mrb[124].mxu0 %vm1781_vm2, %v6516_v15  ;;  %12007 = vmatprep.mubr.msk.f32.mxu1 %vm13164_vm1, %v16895_v59  ;;  %v4858_v61 = vld [vmem:[#allocation2 + $0x47] sm:$0xff] }
 0x3d6   : > { %12378 = vmatprep.mubr.msk.f32.mxu0 %vm13164_vm1, %v16895_v59  ;;  %v15325_v14 = vadd.f32 %v16920_v0, %v3653_v8  ;;  %v16922_v8 = vld [vmem:[#allocation7_spill] sm:$0xff] }
 0x3d7   : > { %v3582_v28 = vpop.f32.mrb[176].mxu1 }
 0x3d8   : > { %v15327_v27 = vpop.f32.mrb[20].mxu0  ;;  %v3654_v21 = vadd.f32 %v3582_v28, %v15125_v50  ;;  %v11685_v4 = vpop.f32.mrb[177].mxu1  ;;  %12008 = vmatmul.mubr.msk.f32.gmra.mrb[26].mxu1 %vm1781_vm2, %v4858_v61  ;;  %v6518_v50 = vld [vmem:[#allocation2 + $0x68] sm:$0xff] }
 0x3d9   : > { %16921 = vst [vmem:[#allocation6_spill] sm:$0xff] %v15327_v27  ;;  %v12056_v15 = vpop.f32.mrb[21].mxu0  ;;  %12379 = vmatmul.mubr.msk.f32.gmra.mrb[126].mxu0 %vm1781_vm2, %v6517_v35  ;;  %12010 = vmatprep.mubr.msk.f32.mxu1 %vm13164_vm1, %v16895_v59  ;;  %v4859_v27 = vld [vmem:[#allocation2 + $0x4f] sm:$0xff] }
 0x3da   : > { %12381 = vmatprep.mubr.msk.f32.mxu0 %vm13164_vm1, %v16895_v59  ;;  %v15337_v49 = vadd.f32 %v16922_v8, %v3654_v21  ;;  %v16924_v21 = vld [vmem:[#allocation8_spill] sm:$0xff] }
 0x3db   : > { %v3587_v38 = vpop.f32.mrb[178].mxu1 }
 0x3dc   : > { %v15339_v0 = vpop.f32.mrb[22].mxu0  ;;  %v3655_v28 = vadd.f32 %v3587_v38, %v15137_v6  ;;  %v11688_v61 = vpop.f32.mrb[179].mxu1  ;;  %12011 = vmatmul.mubr.msk.f32.gmra.mrb[28].mxu1 %vm1781_vm2, %v4859_v27  ;;  %v6519_v6 = vld [vmem:[#allocation2 + $0x70] sm:$0xff] }
 0x3dd   : > { %16923 = vst [vmem:[#allocation7_spill] sm:$0xff] %v15339_v0  ;;  %v12059_v35 = vpop.f32.mrb[23].mxu0  ;;  %12382 = vmatmul.mubr.msk.f32.gmra.mrb[128].mxu0 %vm1781_vm2, %v6518_v50  ;;  %12013 = vmatprep.mubr.msk.f32.mxu1 %vm13164_vm1, %v16895_v59  ;;  %v4860_v0 = vld [vmem:[#allocation2 + $0x57] sm:$0xff] }
 0x3de   : > { %12384 = vmatprep.mubr.msk.f32.mxu0 %vm13164_vm1, %v16895_v59  ;;  %v15349_v4 = vadd.f32 %v16924_v21, %v3655_v28  ;;  %v16926_v28 = vld [vmem:[#allocation9_spill] sm:$0xff] }
 0x3df   : > { %v3592_v15 = vpop.f32.mrb[180].mxu1 }
 0x3e0   : > { %v15351_v8 = vpop.f32.mrb[24].mxu0  ;;  %v3656_v38 = vadd.f32 %v3592_v15, %v15149_v63  ;;  %v11691_v27 = vpop.f32.mrb[181].mxu1  ;;  %12014 = vmatmul.mubr.msk.f32.gmra.mrb[30].mxu1 %vm1781_vm2, %v4860_v0  ;;  %v6520_v63 = vld [vmem:[#allocation2 + $0x78] sm:$0xff] }
 0x3e1   : > { %16925 = vst [vmem:[#allocation8_spill] sm:$0xff] %v15351_v8  ;;  %v12062_v50 = vpop.f32.mrb[25].mxu0  ;;  %12385 = vmatmul.mubr.msk.f32.gmra.mrb[130].mxu0 %vm1781_vm2, %v6519_v6  ;;  %12016 = vmatprep.mubr.msk.f32.mxu1 %vm13164_vm1, %v16895_v59  ;;  %v4861_v8 = vld [vmem:[#allocation2 + $0x5f] sm:$0xff] }
 0x3e2   : > { %12387 = vmatprep.mubr.msk.f32.mxu0 %vm13164_vm1, %v16895_v59  ;;  %v15361_v61 = vadd.f32 %v16926_v28, %v3656_v38  ;;  %v16928_v38 = vld [vmem:[#allocation10_spill] sm:$0xff] }
 0x3e3   : > { %v3597_v35 = vpop.f32.mrb[182].mxu1 }
 0x3e4   : > { %v15363_v21 = vpop.f32.mrb[26].mxu0  ;;  %v3657_v15 = vadd.f32 %v3597_v35, %v15161_v33  ;;  %v11694_v0 = vpop.f32.mrb[183].mxu1  ;;  %12017 = vmatmul.mubr.msk.f32.gmra.mrb[32].mxu1 %vm1781_vm2, %v4861_v8  ;;  %v6521_v33 = vld [vmem:[#allocation2 + $0x80] sm:$0xff] }
 0x3e5   : > { %16927 = vst [vmem:[#allocation9_spill] sm:$0xff] %v15363_v21  ;;  %v12065_v6 = vpop.f32.mrb[27].mxu0  ;;  %12388 = vmatmul.mubr.msk.f32.gmra.mrb[132].mxu0 %vm1781_vm2, %v6520_v63  ;;  %12019 = vmatprep.mubr.msk.f32.mxu1 %vm13164_vm1, %v16895_v59  ;;  %v4862_v21 = vld [vmem:[#allocation2 + $0x67] sm:$0xff] }
 0x3e6   : > { %12390 = vmatprep.mubr.msk.f32.mxu0 %vm13164_vm1, %v16895_v59  ;;  %v15373_v27 = vadd.f32 %v16928_v38, %v3657_v15  ;;  %v16930_v15 = vld [vmem:[#allocation11_spill] sm:$0xff] }
 0x3e7   : > { %v3602_v50 = vpop.f32.mrb[184].mxu1 }
 0x3e8   : > { %v15375_v28 = vpop.f32.mrb[28].mxu0  ;;  %v3658_v35 = vadd.f32 %v3602_v50, %v15173_v13  ;;  %v11697_v8 = vpop.f32.mrb[185].mxu1  ;;  %12020 = vmatmul.mubr.msk.f32.gmra.mrb[34].mxu1 %vm1781_vm2, %v4862_v21  ;;  %v6522_v13 = vld [vmem:[#allocation2 + $0x88] sm:$0xff] }
 0x3e9   : > { %16929 = vst [vmem:[#allocation10_spill] sm:$0xff] %v15375_v28  ;;  %v12068_v63 = vpop.f32.mrb[29].mxu0  ;;  %12391 = vmatmul.mubr.msk.f32.gmra.mrb[134].mxu0 %vm1781_vm2, %v6521_v33  ;;  %12022 = vmatprep.mubr.msk.f32.mxu1 %vm13164_vm1, %v16895_v59  ;;  %v4863_v28 = vld [vmem:[#allocation2 + $0x6f] sm:$0xff] }
 0x3ea   : > { %12393 = vmatprep.mubr.msk.f32.mxu0 %vm13164_vm1, %v16895_v59  ;;  %v15385_v0 = vadd.f32 %v16930_v15, %v3658_v35  ;;  %v16932_v35 = vld [vmem:[#allocation12_spill] sm:$0xff] }
 0x3eb   : > { %v3607_v6 = vpop.f32.mrb[186].mxu1 }
 0x3ec   : > { %v15387_v38 = vpop.f32.mrb[30].mxu0  ;;  %v3659_v50 = vadd.f32 %v3607_v6, %v15185_v48  ;;  %v11700_v21 = vpop.f32.mrb[187].mxu1  ;;  %12023 = vmatmul.mubr.msk.f32.gmra.mrb[36].mxu1 %vm1781_vm2, %v4863_v28  ;;  %v6523_v48 = vld [vmem:[#allocation2 + $0x90] sm:$0xff] }
 0x3ed   : > { %16931 = vst [vmem:[#allocation11_spill] sm:$0xff] %v15387_v38  ;;  %v12071_v33 = vpop.f32.mrb[31].mxu0  ;;  %12394 = vmatmul.mubr.msk.f32.gmra.mrb[136].mxu0 %vm1781_vm2, %v6522_v13  ;;  %12025 = vmatprep.mubr.msk.f32.mxu1 %vm13164_vm1, %v16895_v59  ;;  %v4864_v38 = vld [vmem:[#allocation2 + $0x77] sm:$0xff] }
 0x3ee   : > { %12396 = vmatprep.mubr.msk.f32.mxu0 %vm13164_vm1, %v16895_v59  ;;  %v15397_v8 = vadd.f32 %v16932_v35, %v3659_v50  ;;  %v16934_v50 = vld [vmem:[#allocation13_spill] sm:$0xff] }
 0x3ef   : > { %v3612_v63 = vpop.f32.mrb[188].mxu1 }
 0x3f0   : > { %v15399_v15 = vpop.f32.mrb[32].mxu0  ;;  %v3660_v6 = vadd.f32 %v3612_v63, %v15197_v47  ;;  %v11703_v28 = vpop.f32.mrb[189].mxu1  ;;  %12026 = vmatmul.mubr.msk.f32.gmra.mrb[38].mxu1 %vm1781_vm2, %v4864_v38  ;;  %v6524_v47 = vld [vmem:[#allocation2 + $0x98] sm:$0xff] }
 0x3f1   : > { %16933 = vst [vmem:[#allocation12_spill] sm:$0xff] %v15399_v15  ;;  %v12074_v13 = vpop.f32.mrb[33].mxu0  ;;  %12397 = vmatmul.mubr.msk.f32.gmra.mrb[138].mxu0 %vm1781_vm2, %v6523_v48  ;;  %12028 = vmatprep.mubr.msk.f32.mxu1 %vm13164_vm1, %v16895_v59  ;;  %v4865_v15 = vld [vmem:[#allocation2 + $0x7f] sm:$0xff] }
 0x3f2   : > { %12399 = vmatprep.mubr.msk.f32.mxu0 %vm13164_vm1, %v16895_v59  ;;  %v15409_v21 = vadd.f32 %v16934_v50, %v3660_v6  ;;  %v16936_v6 = vld [vmem:[#allocation14_spill] sm:$0xff] }
 0x3f3   : > { %v3617_v33 = vpop.f32.mrb[190].mxu1 }
 0x3f4   : > { %v15411_v35 = vpop.f32.mrb[34].mxu0  ;;  %v3661_v63 = vadd.f32 %v3617_v33, %v15209_v56  ;;  %v11706_v38 = vpop.f32.mrb[191].mxu1  ;;  %12029 = vmatmul.mubr.msk.f32.gmra.mrb[40].mxu1 %vm1781_vm2, %v4865_v15  ;;  %v6525_v56 = vld [vmem:[#allocation2 + $0xa0] sm:$0xff] }
 0x3f5   : > { %16935 = vst [vmem:[#allocation13_spill] sm:$0xff] %v15411_v35  ;;  %v12077_v48 = vpop.f32.mrb[35].mxu0  ;;  %12400 = vmatmul.mubr.msk.f32.gmra.mrb[140].mxu0 %vm1781_vm2, %v6524_v47  ;;  %12031 = vmatprep.mubr.msk.f32.mxu1 %vm13164_vm1, %v16895_v59  ;;  %v4866_v35 = vld [vmem:[#allocation2 + $0x87] sm:$0xff] }
 0x3f6   : > { %12402 = vmatprep.mubr.msk.f32.mxu0 %vm13164_vm1, %v16895_v59  ;;  %v15421_v28 = vadd.f32 %v16936_v6, %v3661_v63  ;;  %v16938_v63 = vld [vmem:[#allocation15_spill] sm:$0xff] }
 0x3f7   : > { %v3622_v13 = vpop.f32.mrb[192].mxu1 }
 0x3f8   : > { %v15423_v50 = vpop.f32.mrb[36].mxu0  ;;  %v3662_v33 = vadd.f32 %v3622_v13, %v15221_v9  ;;  %v11709_v15 = vpop.f32.mrb[193].mxu1  ;;  %12032 = vmatmul.mubr.msk.f32.gmra.mrb[42].mxu1 %vm1781_vm2, %v4866_v35  ;;  %v6526_v9 = vld [vmem:[#allocation2 + $0xa8] sm:$0xff] }
 0x3f9   : > { %16937 = vst [vmem:[#allocation14_spill] sm:$0xff] %v15423_v50  ;;  %v12080_v47 = vpop.f32.mrb[37].mxu0  ;;  %12403 = vmatmul.mubr.msk.f32.gmra.mrb[142].mxu0 %vm1781_vm2, %v6525_v56  ;;  %12034 = vmatprep.mubr.msk.f32.mxu1 %vm13164_vm1, %v16895_v59  ;;  %v4867_v50 = vld [vmem:[#allocation2 + $0x8f] sm:$0xff] }
 0x3fa   : > { %12405 = vmatprep.mubr.msk.f32.mxu0 %vm13164_vm1, %v16895_v59  ;;  %v15433_v38 = vadd.f32 %v16938_v63, %v3662_v33  ;;  %v16940_v33 = vld [vmem:[#allocation16_spill] sm:$0xff] }
 0x3fb   : > { %v3627_v48 = vpop.f32.mrb[194].mxu1 }
 0x3fc   : > { %v15435_v6 = vpop.f32.mrb[38].mxu0  ;;  %v3663_v13 = vadd.f32 %v3627_v48, %v15233_v52  ;;  %v11712_v35 = vpop.f32.mrb[195].mxu1  ;;  %12035 = vmatmul.mubr.msk.f32.gmra.mrb[44].mxu1 %vm1781_vm2, %v4867_v50  ;;  %v6527_v52 = vld [vmem:[#allocation2 + $0xb0] sm:$0xff] }
 0x3fd   : > { %16939 = vst [vmem:[#allocation15_spill] sm:$0xff] %v15435_v6  ;;  %v12083_v56 = vpop.f32.mrb[39].mxu0  ;;  %12406 = vmatmul.mubr.msk.f32.gmra.mrb[144].mxu0 %vm1781_vm2, %v6526_v9  ;;  %12037 = vmatprep.mubr.msk.f32.mxu1 %vm13164_vm1, %v16895_v59  ;;  %v4868_v6 = vld [vmem:[#allocation2 + $0x97] sm:$0xff] }
 0x3fe   : > { %12408 = vmatprep.mubr.msk.f32.mxu0 %vm13164_vm1, %v16895_v59  ;;  %v15445_v15 = vadd.f32 %v16940_v33, %v3663_v13  ;;  %v16942_v13 = vld [vmem:[#allocation17_spill] sm:$0xff] }
 0x3ff   : > { %v3632_v47 = vpop.f32.mrb[196].mxu1 }
 0x400   : > { %v15447_v63 = vpop.f32.mrb[40].mxu0  ;;  %v3664_v48 = vadd.f32 %v3632_v47, %v15245_v19  ;;  %v11715_v50 = vpop.f32.mrb[197].mxu1  ;;  %12038 = vmatmul.mubr.msk.f32.gmra.mrb[46].mxu1 %vm1781_vm2, %v4868_v6  ;;  %v6528_v19 = vld [vmem:[#allocation2 + $0xb8] sm:$0xff] }
 0x401   : > { %16941 = vst [vmem:[#allocation16_spill] sm:$0xff] %v15447_v63  ;;  %v12086_v9 = vpop.f32.mrb[41].mxu0  ;;  %12409 = vmatmul.mubr.msk.f32.gmra.mrb[146].mxu0 %vm1781_vm2, %v6527_v52  ;;  %12040 = vmatprep.mubr.msk.f32.mxu1 %vm13164_vm1, %v16895_v59  ;;  %v4869_v63 = vld [vmem:[#allocation2 + $0x9f] sm:$0xff] }
 0x402   : > { %12411 = vmatprep.mubr.msk.f32.mxu0 %vm13164_vm1, %v16895_v59  ;;  %v15457_v35 = vadd.f32 %v16942_v13, %v3664_v48  ;;  %v5327_v48 = vld [vmem:[#allocation2 + $0x2a] sm:$0xff] }
 0x403   : > { %v3637_v56 = vpop.f32.mrb[198].mxu1 }
 0x404   : > { %v15459_v33 = vpop.f32.mrb[42].mxu0  ;;  %v3665_v47 = vadd.f32 %v3637_v56, %v15257_v62  ;;  %v11718_v6 = vpop.f32.mrb[199].mxu1  ;;  %12041 = vmatmul.mubr.msk.f32.gmra.mrb[48].mxu1 %vm1781_vm2, %v4869_v63  ;;  %v6986_v62 = vld [vmem:[#allocation2 + $0x3a] sm:$0xff]  ;;  %v10290_v63 = vld [vmem:[%s16889_s3 + $0x88] sm:$0xff] }
 0x405   : > { %v12089_v52 = vpop.f32.mrb[43].mxu0  ;;  %12412 = vmatmul.mubr.msk.f32.gmra.mrb[148].mxu0 %vm1781_vm2, %v6528_v19  ;;  %12098 = vmatprep.mubr.msk.f32.mxu1 %vm13164_vm1, %v16895_v59  ;;  %v10416_v56 = vld [vmem:[%s16889_s3 + $0xc0] sm:$0xff] }
 0x406   : > { %12469 = vmatprep.mubr.msk.f32.mxu0 %vm13164_vm1, %v16895_v59  ;;  %v15469_v50 = vadd.f32 %v14824_v11, %v3665_v47 }
 0x407   : > { %v3642_v9 = vpop.f32.mrb[200].mxu1 }
 0x408   : > { %v15471_v13 = vpop.f32.mrb[44].mxu0  ;;  %v3666_v19 = vadd.f32 %v3642_v9, %v15275_v44  ;;  %v11721_v6 = vpop.f32.mrb[201].mxu1  ;;  %12099 = vmatmul.mubr.msk.f32.vlgmr.msra.gmra.mrb[50].mxu1 %vm1781_vm2, %v5327_v48  ;;  %v5328_v44 = vld [vmem:[#allocation2 + $0x32] sm:$0xff]  ;;  %v6987_v9 = vld [vmem:[#allocation2 + $0x42] sm:$0xff] }
 0x409   : > { %16943 = vst [vmem:[#allocation17_spill] sm:$0xff] %v15471_v13  ;;  %v12092_v52 = vpop.f32.mrb[45].mxu0  ;;  %12470 = vmatmul.mubr.msk.f32.vlgmr.msra.gmra.mrb[150].mxu0 %vm1781_vm2, %v6986_v62  ;;  %12101 = vmatprep.mubr.msk.f32.mxu1 %vm13164_vm1, %v16895_v59 }
 0x40a   : > { %12472 = vmatprep.mubr.msk.f32.mxu0 %vm13164_vm1, %v16895_v59  ;;  %12203 = vmatpush3.msra.mxu1 %v10290_v63  ;;  %v15487_v11 = vadd.f32 %v14835_v25, %v3666_v19  ;;  %v6988_v19 = vld [vmem:[#allocation2 + $0x4a] sm:$0xff] }
 0x40b   : > { %12574 = vmatpush3.msra.mxu0 %v10416_v56  ;;  %v3647_v47 = vpop.f32.mrb[202].mxu1  ;;  %12308 = vmatprep.subr.mxu1 %v16895_v59 }
 0x40c   : > { %v15489_v13 = vpop.f32.mrb[46].mxu0  ;;  %v3667_v48 = vadd.f32 %v3647_v47, %v15289_v1  ;;  %v11724_v6 = vpop.f32.mrb[203].mxu1  ;;  %12102 = vmatmul.mubr.msk.f32.gmra.mrb[52].mxu1 %vm1781_vm2, %v5328_v44 }
 0x40d   : > { %v12095_v52 = vpop.f32.mrb[47].mxu0  ;;  %12473 = vmatmul.mubr.msk.f32.gmra.mrb[152].mxu0 %vm1781_vm2, %v6987_v9  ;;  %12104 = vmatprep.mubr.msk.f32.mxu1 %vm13164_vm1, %v16895_v59 }
 0x40e   : > { %12475 = vmatprep.mubr.msk.f32.mxu0 %vm13164_vm1, %v16895_v59  ;;  %v15500_v25 = vadd.f32 %v14853_v26, %v3667_v48  ;;  %v16945_v26 = vld [vmem:[#allocation18_spill] sm:$0xff] }
 0x40f   : > { %v4041_v63 = vpop.f32.mrb[204].mxu1 }
 0x410   : > { %v15502_v56 = vpop.f32.mrb[48].mxu0  ;;  %v4125_v1 = vadd.f32 %v4041_v63, %v15301_v30  ;;  %v11782_v47 = vpop.f32.mrb[205].mxu1  ;;  %12105 = vmatmul.mubr.msk.f32.gmra.mrb[54].mxu1 %vm1781_vm2, %v6986_v62 }
 0x411   : > { %16944 = vst [vmem:[#allocation20_spill] sm:$0xff] %v15502_v56  ;;  %v12153_v44 = vpop.f32.mrb[49].mxu0  ;;  %12476 = vmatmul.mubr.msk.f32.gmra.mrb[154].mxu0 %vm1781_vm2, %v6988_v19  ;;  %12107 = vmatprep.mubr.msk.f32.mxu1 %vm13164_vm1, %v16895_v59  ;;  %v6989_v56 = vld [vmem:[#allocation2 + $0x52] sm:$0xff] }
 0x412   : > { %12478 = vmatprep.mubr.msk.f32.mxu0 %vm13164_vm1, %v16895_v59  ;;  %v15512_v48 = vadd.f32 %v16945_v26, %v4125_v1  ;;  %v6990_v26 = vld [vmem:[#allocation2 + $0x5a] sm:$0xff] }
 0x413   : > { %v4046_v6 = vpop.f32.mrb[206].mxu1 }
 0x414   : > { %v15514_v52 = vpop.f32.mrb[50].mxu0  ;;  %v4126_v30 = vadd.f32 %v4046_v6, %v15313_v53  ;;  %v11785_v63 = vpop.f32.mrb[207].mxu1  ;;  %12108 = vmatmul.mubr.msk.f32.gmra.mrb[56].mxu1 %vm1781_vm2, %v6987_v9 }
 0x415   : > { %v12156_v62 = vpop.f32.mrb[51].mxu0  ;;  %12479 = vmatmul.mubr.msk.f32.gmra.mrb[156].mxu0 %vm1781_vm2, %v6989_v56  ;;  %12110 = vmatprep.mubr.msk.f32.mxu1 %vm13164_vm1, %v16895_v59 }
 0x416   : > { %12481 = vmatprep.mubr.msk.f32.mxu0 %vm13164_vm1, %v16895_v59  ;;  %v15524_v1 = vadd.f32 %v14879_v17, %v4126_v30  ;;  %v6991_v62 = vld [vmem:[#allocation2 + $0x62] sm:$0xff] }
 0x417   : > { %v4051_v47 = vpop.f32.mrb[208].mxu1 }
 0x418   : > { %v15526_v44 = vpop.f32.mrb[52].mxu0  ;;  %v4127_v53 = vadd.f32 %v4051_v47, %v15325_v14  ;;  %v11788_v6 = vpop.f32.mrb[209].mxu1  ;;  %12111 = vmatmul.mubr.msk.f32.gmra.mrb[58].mxu1 %vm1781_vm2, %v6988_v19 }
 0x419   : > { %v12159_v9 = vpop.f32.mrb[53].mxu0  ;;  %12482 = vmatmul.mubr.msk.f32.gmra.mrb[158].mxu0 %vm1781_vm2, %v6990_v26  ;;  %12113 = vmatprep.mubr.msk.f32.mxu1 %vm13164_vm1, %v16895_v59 }
 0x41a   : > { %12484 = vmatprep.mubr.msk.f32.mxu0 %vm13164_vm1, %v16895_v59  ;;  %v15536_v17 = vadd.f32 %v14891_v60, %v4127_v53  ;;  %v6992_v9 = vld [vmem:[#allocation2 + $0x6a] sm:$0xff] }
 0x41b   : > { %v4056_v30 = vpop.f32.mrb[210].mxu1 }
 0x41c   : > { %v15538_v63 = vpop.f32.mrb[54].mxu0  ;;  %v4128_v14 = vadd.f32 %v4056_v30, %v15337_v49  ;;  %v11791_v47 = vpop.f32.mrb[211].mxu1  ;;  %12114 = vmatmul.mubr.msk.f32.gmra.mrb[60].mxu1 %vm1781_vm2, %v6989_v56 }
 0x41d   : > { %v12162_v19 = vpop.f32.mrb[55].mxu0  ;;  %12485 = vmatmul.mubr.msk.f32.gmra.mrb[160].mxu0 %vm1781_vm2, %v6991_v62  ;;  %12116 = vmatprep.mubr.msk.f32.mxu1 %vm13164_vm1, %v16895_v59 }
 0x41e   : > { %12487 = vmatprep.mubr.msk.f32.mxu0 %vm13164_vm1, %v16895_v59  ;;  %v15548_v60 = vadd.f32 %v14903_v34, %v4128_v14  ;;  %v6993_v19 = vld [vmem:[#allocation2 + $0x72] sm:$0xff] }
 0x41f   : > { %v4061_v53 = vpop.f32.mrb[212].mxu1 }
 0x420   : > { %v15550_v6 = vpop.f32.mrb[56].mxu0  ;;  %v4129_v49 = vadd.f32 %v4061_v53, %v15349_v4  ;;  %v11794_v30 = vpop.f32.mrb[213].mxu1  ;;  %12117 = vmatmul.mubr.msk.f32.gmra.mrb[62].mxu1 %vm1781_vm2, %v6990_v26 }
 0x421   : > { %v12165_v56 = vpop.f32.mrb[57].mxu0  ;;  %12488 = vmatmul.mubr.msk.f32.gmra.mrb[162].mxu0 %vm1781_vm2, %v6992_v9  ;;  %12119 = vmatprep.mubr.msk.f32.mxu1 %vm13164_vm1, %v16895_v59 }
 0x422   : > { %12490 = vmatprep.mubr.msk.f32.mxu0 %vm13164_vm1, %v16895_v59  ;;  %v15560_v34 = vadd.f32 %v14915_v54, %v4129_v49  ;;  %v6994_v56 = vld [vmem:[#allocation2 + $0x7a] sm:$0xff] }
 0x423   : > { %v4066_v14 = vpop.f32.mrb[214].mxu1 }
 0x424   : > { %v15562_v47 = vpop.f32.mrb[58].mxu0  ;;  %v4130_v4 = vadd.f32 %v4066_v14, %v15361_v61  ;;  %v11797_v53 = vpop.f32.mrb[215].mxu1  ;;  %12120 = vmatmul.mubr.msk.f32.gmra.mrb[64].mxu1 %vm1781_vm2, %v6991_v62 }
 0x425   : > { %v12168_v26 = vpop.f32.mrb[59].mxu0  ;;  %12491 = vmatmul.mubr.msk.f32.gmra.mrb[164].mxu0 %vm1781_vm2, %v6993_v19  ;;  %12122 = vmatprep.mubr.msk.f32.mxu1 %vm13164_vm1, %v16895_v59 }
 0x426   : > { %12493 = vmatprep.mubr.msk.f32.mxu0 %vm13164_vm1, %v16895_v59  ;;  %v15572_v54 = vadd.f32 %v14927_v39, %v4130_v4  ;;  %v6995_v26 = vld [vmem:[#allocation2 + $0x82] sm:$0xff] }
 0x427   : > { %v4071_v49 = vpop.f32.mrb[216].mxu1 }
 0x428   : > { %v15574_v30 = vpop.f32.mrb[60].mxu0  ;;  %v4131_v61 = vadd.f32 %v4071_v49, %v15373_v27  ;;  %v11800_v14 = vpop.f32.mrb[217].mxu1  ;;  %12123 = vmatmul.mubr.msk.f32.gmra.mrb[66].mxu1 %vm1781_vm2, %v6992_v9 }
 0x429   : > { %v12171_v62 = vpop.f32.mrb[61].mxu0  ;;  %12494 = vmatmul.mubr.msk.f32.gmra.mrb[166].mxu0 %vm1781_vm2, %v6994_v56  ;;  %12125 = vmatprep.mubr.msk.f32.mxu1 %vm13164_vm1, %v16895_v59 }
 0x42a   : > { %12496 = vmatprep.mubr.msk.f32.mxu0 %vm13164_vm1, %v16895_v59  ;;  %v15584_v39 = vadd.f32 %v14939_v12, %v4131_v61  ;;  %v6996_v62 = vld [vmem:[#allocation2 + $0x8a] sm:$0xff] }
 0x42b   : > { %v4076_v4 = vpop.f32.mrb[218].mxu1 }
 0x42c   : > { %v15586_v53 = vpop.f32.mrb[62].mxu0  ;;  %v4132_v27 = vadd.f32 %v4076_v4, %v15385_v0  ;;  %v11803_v49 = vpop.f32.mrb[219].mxu1  ;;  %12126 = vmatmul.mubr.msk.f32.gmra.mrb[68].mxu1 %vm1781_vm2, %v6993_v19 }
 0x42d   : > { %v12174_v9 = vpop.f32.mrb[63].mxu0  ;;  %12497 = vmatmul.mubr.msk.f32.gmra.mrb[168].mxu0 %vm1781_vm2, %v6995_v26  ;;  %12128 = vmatprep.mubr.msk.f32.mxu1 %vm13164_vm1, %v16895_v59 }
 0x42e   : > { %12499 = vmatprep.mubr.msk.f32.mxu0 %vm13164_vm1, %v16895_v59  ;;  %v15596_v12 = vadd.f32 %v14951_v40, %v4132_v27  ;;  %v6997_v9 = vld [vmem:[#allocation2 + $0x92] sm:$0xff] }
 0x42f   : > { %v4081_v61 = vpop.f32.mrb[220].mxu1 }
 0x430   : > { %v15598_v14 = vpop.f32.mrb[64].mxu0  ;;  %v4133_v0 = vadd.f32 %v4081_v61, %v15397_v8  ;;  %v11806_v4 = vpop.f32.mrb[221].mxu1  ;;  %12129 = vmatmul.mubr.msk.f32.gmra.mrb[70].mxu1 %vm1781_vm2, %v6994_v56 }
 0x431   : > { %v12177_v19 = vpop.f32.mrb[65].mxu0  ;;  %12500 = vmatmul.mubr.msk.f32.gmra.mrb[170].mxu0 %vm1781_vm2, %v6996_v62  ;;  %12131 = vmatprep.mubr.msk.f32.mxu1 %vm13164_vm1, %v16895_v59 }
 0x432   : > { %12502 = vmatprep.mubr.msk.f32.mxu0 %vm13164_vm1, %v16895_v59  ;;  %v15608_v40 = vadd.f32 %v14963_v57, %v4133_v0  ;;  %v6998_v19 = vld [vmem:[#allocation2 + $0x9a] sm:$0xff] }
 0x433   : > { %v4086_v27 = vpop.f32.mrb[222].mxu1 }
 0x434   : > { %v15610_v49 = vpop.f32.mrb[66].mxu0  ;;  %v4134_v8 = vadd.f32 %v4086_v27, %v15409_v21  ;;  %v11809_v61 = vpop.f32.mrb[223].mxu1  ;;  %12132 = vmatmul.mubr.msk.f32.gmra.mrb[72].mxu1 %vm1781_vm2, %v6995_v26 }
 0x435   : > { %v12180_v56 = vpop.f32.mrb[67].mxu0  ;;  %12503 = vmatmul.mubr.msk.f32.gmra.mrb[172].mxu0 %vm1781_vm2, %v6997_v9  ;;  %12134 = vmatprep.mubr.msk.f32.mxu1 %vm13164_vm1, %v16895_v59 }
 0x436   : > { %12505 = vmatprep.mubr.msk.f32.mxu0 %vm13164_vm1, %v16895_v59  ;;  %v15620_v57 = vadd.f32 %v14975_v51, %v4134_v8  ;;  %v6999_v56 = vld [vmem:[#allocation2 + $0xa2] sm:$0xff] }
 0x437   : > { %v4091_v0 = vpop.f32.mrb[224].mxu1 }
 0x438   : > { %v15622_v4 = vpop.f32.mrb[68].mxu0  ;;  %v4135_v21 = vadd.f32 %v4091_v0, %v15421_v28  ;;  %v11812_v27 = vpop.f32.mrb[225].mxu1  ;;  %12135 = vmatmul.mubr.msk.f32.gmra.mrb[74].mxu1 %vm1781_vm2, %v6996_v62 }
 0x439   : > { %v12183_v26 = vpop.f32.mrb[69].mxu0  ;;  %12506 = vmatmul.mubr.msk.f32.gmra.mrb[174].mxu0 %vm1781_vm2, %v6998_v19  ;;  %12137 = vmatprep.mubr.msk.f32.mxu1 %vm13164_vm1, %v16895_v59 }
 0x43a   : > { %12508 = vmatprep.mubr.msk.f32.mxu0 %vm13164_vm1, %v16895_v59  ;;  %v15632_v51 = vadd.f32 %v14987_v22, %v4135_v21  ;;  %v7000_v26 = vld [vmem:[#allocation2 + $0xaa] sm:$0xff] }
 0x43b   : > { %v4096_v8 = vpop.f32.mrb[226].mxu1 }
 0x43c   : > { %v15634_v61 = vpop.f32.mrb[70].mxu0  ;;  %v4136_v28 = vadd.f32 %v4096_v8, %v15433_v38  ;;  %v11815_v0 = vpop.f32.mrb[227].mxu1  ;;  %12138 = vmatmul.mubr.msk.f32.gmra.mrb[76].mxu1 %vm1781_vm2, %v6997_v9 }
 0x43d   : > { %v12186_v62 = vpop.f32.mrb[71].mxu0  ;;  %12509 = vmatmul.mubr.msk.f32.gmra.mrb[176].mxu0 %vm1781_vm2, %v6999_v56  ;;  %12140 = vmatprep.mubr.msk.f32.mxu1 %vm13164_vm1, %v16895_v59 }
 0x43e   : > { %12511 = vmatprep.mubr.msk.f32.mxu0 %vm13164_vm1, %v16895_v59  ;;  %v15644_v22 = vadd.f32 %v14999_v18, %v4136_v28  ;;  %v7001_v62 = vld [vmem:[#allocation2 + $0xb2] sm:$0xff] }
 0x43f   : > { %v4101_v21 = vpop.f32.mrb[228].mxu1 }
 0x440   : > { %v15646_v27 = vpop.f32.mrb[72].mxu0  ;;  %v4137_v38 = vadd.f32 %v4101_v21, %v15445_v15  ;;  %v11818_v8 = vpop.f32.mrb[229].mxu1  ;;  %12141 = vmatmul.mubr.msk.f32.gmra.mrb[78].mxu1 %vm1781_vm2, %v6998_v19 }
 0x441   : > { %v12189_v9 = vpop.f32.mrb[73].mxu0  ;;  %12512 = vmatmul.mubr.msk.f32.gmra.mrb[178].mxu0 %vm1781_vm2, %v7000_v26  ;;  %12143 = vmatprep.mubr.msk.f32.mxu1 %vm13164_vm1, %v16895_v59 }
 0x442   : > { %12514 = vmatprep.mubr.msk.f32.mxu0 %vm13164_vm1, %v16895_v59  ;;  %v15656_v18 = vadd.f32 %v15011_v37, %v4137_v38  ;;  %v7002_v9 = vld [vmem:[#allocation2 + $0xba] sm:$0xff] }
 0x443   : > { %v4106_v28 = vpop.f32.mrb[230].mxu1 }
 0x444   : > { %v15658_v0 = vpop.f32.mrb[74].mxu0  ;;  %v4138_v15 = vadd.f32 %v4106_v28, %v15457_v35  ;;  %v11821_v21 = vpop.f32.mrb[231].mxu1  ;;  %12144 = vmatmul.mubr.msk.f32.gmra.mrb[80].mxu1 %vm1781_vm2, %v6999_v56 }
 0x445   : > { %v12192_v19 = vpop.f32.mrb[75].mxu0  ;;  %12515 = vmatmul.mubr.msk.f32.gmra.mrb[180].mxu0 %vm1781_vm2, %v7001_v62  ;;  %12146 = vmatprep.mubr.msk.f32.mxu1 %vm13164_vm1, %v16895_v59  ;;  %v5801_v21 = vld [vmem:[#allocation2 + $0x2c] sm:$0xff] }
 0x446   : > { %12517 = vmatprep.mubr.msk.f32.mxu0 %vm13164_vm1, %v16895_v59  ;;  %v15668_v37 = vadd.f32 %v15023_v23, %v4138_v15 }
 0x447   : > { %v4111_v38 = vpop.f32.mrb[232].mxu1 }
 0x448   : > { %v15670_v8 = vpop.f32.mrb[76].mxu0  ;;  %v4139_v35 = vadd.f32 %v4111_v38, %v15469_v50  ;;  %v11824_v28 = vpop.f32.mrb[233].mxu1  ;;  %12147 = vmatmul.mubr.msk.f32.gmra.mrb[82].mxu1 %vm1781_vm2, %v7000_v26  ;;  %v7460_v50 = vld [vmem:[#allocation2 + $0x3c] sm:$0xff] }
 0x449   : > { %v12195_v56 = vpop.f32.mrb[77].mxu0  ;;  %12518 = vmatmul.mubr.msk.f32.gmra.mrb[182].mxu0 %vm1781_vm2, %v7002_v9  ;;  %12204 = vmatprep.mubr.msk.f32.mxu1 %vm13164_vm1, %v16895_v59  ;;  %v10326_v26 = vld [vmem:[%s16889_s3 + $0x98] sm:$0xff] }
 0x44a   : > { %12575 = vmatprep.mubr.msk.f32.mxu0 %vm13164_vm1, %v16895_v59  ;;  %v15680_v23 = vadd.f32 %v15035_v41, %v4139_v35  ;;  %v16946_v41 = vld [vmem:[#allocation19_spill] sm:$0xff] }
 0x44b   : > { %v4116_v62 = vpop.f32.mrb[234].mxu1 }
 0x44c   : > { %v15682_v15 = vpop.f32.mrb[78].mxu0  ;;  %v4140_v19 = vadd.f32 %v4116_v62, %v15487_v11  ;;  %v11827_v38 = vpop.f32.mrb[235].mxu1  ;;  %12205 = vmatmul.mubr.msk.f32.vlgmr.msra.gmra.mrb[84].mxu1 %vm1781_vm2, %v5801_v21  ;;  %v5802_v11 = vld [vmem:[#allocation2 + $0x34] sm:$0xff]  ;;  %v7461_v62 = vld [vmem:[#allocation2 + $0x44] sm:$0xff] }
 0x44d   : > { %v12198_v9 = vpop.f32.mrb[79].mxu0  ;;  %12576 = vmatmul.mubr.msk.f32.vlgmr.msra.gmra.mrb[184].mxu0 %vm1781_vm2, %v7460_v50  ;;  %12207 = vmatprep.mubr.msk.f32.mxu1 %vm13164_vm1, %v16895_v59 }
 0x44e   : > { %12578 = vmatprep.mubr.msk.f32.mxu0 %vm13164_vm1, %v16895_v59  ;;  %12309 = vmatpush3.msra.mxu1 %v10326_v26  ;;  %v15695_v35 = vadd.f32 %v16946_v41, %v4140_v19 }
 0x44f   : > { %v4121_v28 = vpop.f32.mrb[236].mxu1  ;;  %12414 = vmatprep.subr.mxu1 %v16895_v59 }
 0x450   : > { %v15697_v56 = vpop.f32.mrb[80].mxu0  ;;  %v4141_v21 = vadd.f32 %v4121_v28, %v15500_v25  ;;  %v11830_v38 = vpop.f32.mrb[237].mxu1  ;;  %12208 = vmatmul.mubr.msk.f32.gmra.mrb[86].mxu1 %vm1781_vm2, %v5802_v11 }
 0x451   : > { %16947 = vst [vmem:[#allocation18_spill] sm:$0xff] %v15697_v56  ;;  %v12201_v9 = vpop.f32.mrb[81].mxu0  ;;  %12579 = vmatmul.mubr.msk.f32.gmra.mrb[186].mxu0 %vm1781_vm2, %v7461_v62  ;;  %12210 = vmatprep.mubr.msk.f32.mxu1 %vm13164_vm1, %v16895_v59  ;;  %v7462_v56 = vld [vmem:[#allocation2 + $0x4c] sm:$0xff] }
 0x452   : > { %12581 = vmatprep.mubr.msk.f32.mxu0 %vm13164_vm1, %v16895_v59  ;;  %v15708_v26 = vadd.f32 %v15065_v16, %v4141_v21  ;;  %v7463_v9 = vld [vmem:[#allocation2 + $0x54] sm:$0xff] }
 0x453   : > { %v4515_v19 = vpop.f32.mrb[238].mxu1 }
 0x454   : > { %v15710_v41 = vpop.f32.mrb[82].mxu0  ;;  %v4599_v25 = vadd.f32 %v4515_v19, %v15512_v48  ;;  %v11888_v28 = vpop.f32.mrb[239].mxu1  ;;  %12211 = vmatmul.mubr.msk.f32.gmra.mrb[88].mxu1 %vm1781_vm2, %v7460_v50 }
 0x455   : > { %v12259_v11 = vpop.f32.mrb[83].mxu0  ;;  %12582 = vmatmul.mubr.msk.f32.gmra.mrb[188].mxu0 %vm1781_vm2, %v7462_v56  ;;  %12213 = vmatprep.mubr.msk.f32.mxu1 %vm13164_vm1, %v16895_v59 }
 0x456   : > { %12584 = vmatprep.mubr.msk.f32.mxu0 %vm13164_vm1, %v16895_v59  ;;  %v15720_v16 = vadd.f32 %v15079_v3, %v4599_v25  ;;  %v7464_v11 = vld [vmem:[#allocation2 + $0x5c] sm:$0xff] }
 0x457   : > { %v4520_v21 = vpop.f32.mrb[240].mxu1 }
 0x458   : > { %v15722_v38 = vpop.f32.mrb[84].mxu0  ;;  %v4600_v48 = vadd.f32 %v4520_v21, %v15524_v1  ;;  %v11891_v19 = vpop.f32.mrb[241].mxu1  ;;  %12214 = vmatmul.mubr.msk.f32.gmra.mrb[90].mxu1 %vm1781_vm2, %v7461_v62 }
 0x459   : > { %v12262_v50 = vpop.f32.mrb[85].mxu0  ;;  %12585 = vmatmul.mubr.msk.f32.gmra.mrb[190].mxu0 %vm1781_vm2, %v7463_v9  ;;  %12216 = vmatprep.mubr.msk.f32.mxu1 %vm13164_vm1, %v16895_v59 }
 0x45a   : > { %12587 = vmatprep.mubr.msk.f32.mxu0 %vm13164_vm1, %v16895_v59  ;;  %v15732_v3 = vadd.f32 %v15091_v5, %v4600_v48  ;;  %v7465_v50 = vld [vmem:[#allocation2 + $0x64] sm:$0xff] }
 0x45b   : > { %v4525_v25 = vpop.f32.mrb[242].mxu1 }
 0x45c   : > { %v15734_v28 = vpop.f32.mrb[86].mxu0  ;;  %v4601_v1 = vadd.f32 %v4525_v25, %v15536_v17  ;;  %v11894_v21 = vpop.f32.mrb[243].mxu1  ;;  %12217 = vmatmul.mubr.msk.f32.gmra.mrb[92].mxu1 %vm1781_vm2, %v7462_v56 }
 0x45d   : > { %v12265_v62 = vpop.f32.mrb[87].mxu0  ;;  %12588 = vmatmul.mubr.msk.f32.gmra.mrb[192].mxu0 %vm1781_vm2, %v7464_v11  ;;  %12219 = vmatprep.mubr.msk.f32.mxu1 %vm13164_vm1, %v16895_v59 }
 0x45e   : > { %12590 = vmatprep.mubr.msk.f32.mxu0 %vm13164_vm1, %v16895_v59  ;;  %v15744_v5 = vadd.f32 %v15103_v29, %v4601_v1  ;;  %v7466_v62 = vld [vmem:[#allocation2 + $0x6c] sm:$0xff] }
 0x45f   : > { %v4530_v48 = vpop.f32.mrb[244].mxu1 }
 0x460   : > { %v15746_v19 = vpop.f32.mrb[88].mxu0  ;;  %v4602_v17 = vadd.f32 %v4530_v48, %v15548_v60  ;;  %v11897_v25 = vpop.f32.mrb[245].mxu1  ;;  %12220 = vmatmul.mubr.msk.f32.gmra.mrb[94].mxu1 %vm1781_vm2, %v7463_v9 }
 0x461   : > { %v12268_v56 = vpop.f32.mrb[89].mxu0  ;;  %12591 = vmatmul.mubr.msk.f32.gmra.mrb[194].mxu0 %vm1781_vm2, %v7465_v50  ;;  %12222 = vmatprep.mubr.msk.f32.mxu1 %vm13164_vm1, %v16895_v59 }
 0x462   : > { %12593 = vmatprep.mubr.msk.f32.mxu0 %vm13164_vm1, %v16895_v59  ;;  %v15756_v29 = vadd.f32 %v15115_v55, %v4602_v17  ;;  %v7467_v56 = vld [vmem:[#allocation2 + $0x74] sm:$0xff] }
 0x463   : > { %v4535_v1 = vpop.f32.mrb[246].mxu1 }
 0x464   : > { %v15758_v21 = vpop.f32.mrb[90].mxu0  ;;  %v4603_v60 = vadd.f32 %v4535_v1, %v15560_v34  ;;  %v11900_v48 = vpop.f32.mrb[247].mxu1  ;;  %12223 = vmatmul.mubr.msk.f32.gmra.mrb[96].mxu1 %vm1781_vm2, %v7464_v11 }
 0x465   : > { %v12271_v9 = vpop.f32.mrb[91].mxu0  ;;  %12594 = vmatmul.mubr.msk.f32.gmra.mrb[196].mxu0 %vm1781_vm2, %v7466_v62  ;;  %12225 = vmatprep.mubr.msk.f32.mxu1 %vm13164_vm1, %v16895_v59 }
 0x466   : > { %12596 = vmatprep.mubr.msk.f32.mxu0 %vm13164_vm1, %v16895_v59  ;;  %v15768_v55 = vadd.f32 %v15127_v58, %v4603_v60  ;;  %v7468_v9 = vld [vmem:[#allocation2 + $0x7c] sm:$0xff] }
 0x467   : > { %v4540_v17 = vpop.f32.mrb[248].mxu1 }
 0x468   : > { %v15770_v25 = vpop.f32.mrb[92].mxu0  ;;  %v4604_v34 = vadd.f32 %v4540_v17, %v15572_v54  ;;  %v11903_v1 = vpop.f32.mrb[249].mxu1  ;;  %12226 = vmatmul.mubr.msk.f32.gmra.mrb[98].mxu1 %vm1781_vm2, %v7465_v50 }
 0x469   : > { %v12274_v11 = vpop.f32.mrb[93].mxu0  ;;  %12597 = vmatmul.mubr.msk.f32.gmra.mrb[198].mxu0 %vm1781_vm2, %v7467_v56  ;;  %12228 = vmatprep.mubr.msk.f32.mxu1 %vm13164_vm1, %v16895_v59 }
 0x46a   : > { %12599 = vmatprep.mubr.msk.f32.mxu0 %vm13164_vm1, %v16895_v59  ;;  %v15780_v58 = vadd.f32 %v15139_v36, %v4604_v34  ;;  %v7469_v11 = vld [vmem:[#allocation2 + $0x84] sm:$0xff] }
 0x46b   : > { %v4545_v60 = vpop.f32.mrb[250].mxu1 }
 0x46c   : > { %v15782_v48 = vpop.f32.mrb[94].mxu0  ;;  %v4605_v54 = vadd.f32 %v4545_v60, %v15584_v39  ;;  %v11906_v17 = vpop.f32.mrb[251].mxu1  ;;  %12229 = vmatmul.mubr.msk.f32.gmra.mrb[100].mxu1 %vm1781_vm2, %v7466_v62 }
 0x46d   : > { %v12277_v50 = vpop.f32.mrb[95].mxu0  ;;  %12600 = vmatmul.mubr.msk.f32.gmra.mrb[200].mxu0 %vm1781_vm2, %v7468_v9  ;;  %12231 = vmatprep.mubr.msk.f32.mxu1 %vm13164_vm1, %v16895_v59 }
 0x46e   : > { %12602 = vmatprep.mubr.msk.f32.mxu0 %vm13164_vm1, %v16895_v59  ;;  %v15792_v36 = vadd.f32 %v15151_v45, %v4605_v54  ;;  %v7470_v50 = vld [vmem:[#allocation2 + $0x8c] sm:$0xff] }
 0x46f   : > { %v4550_v34 = vpop.f32.mrb[252].mxu1 }
 0x470   : > { %v15794_v1 = vpop.f32.mrb[96].mxu0  ;;  %v4606_v39 = vadd.f32 %v4550_v34, %v15596_v12  ;;  %v11909_v60 = vpop.f32.mrb[253].mxu1  ;;  %12232 = vmatmul.mubr.msk.f32.gmra.mrb[102].mxu1 %vm1781_vm2, %v7467_v56 }
 0x471   : > { %v12280_v62 = vpop.f32.mrb[97].mxu0  ;;  %12603 = vmatmul.mubr.msk.f32.gmra.mrb[202].mxu0 %vm1781_vm2, %v7469_v11  ;;  %12234 = vmatprep.mubr.msk.f32.mxu1 %vm13164_vm1, %v16895_v59 }
 0x472   : > { %12605 = vmatprep.mubr.msk.f32.mxu0 %vm13164_vm1, %v16895_v59  ;;  %v15804_v45 = vadd.f32 %v15163_v24, %v4606_v39  ;;  %v7471_v62 = vld [vmem:[#allocation2 + $0x94] sm:$0xff] }
 0x473   : > { %v4555_v54 = vpop.f32.mrb[254].mxu1 }
 0x474   : > { %v15806_v17 = vpop.f32.mrb[98].mxu0  ;;  %v4607_v12 = vadd.f32 %v4555_v54, %v15608_v40  ;;  %v11912_v34 = vpop.f32.mrb[255].mxu1  ;;  %12235 = vmatmul.mubr.msk.f32.gmra.mrb[104].mxu1 %vm1781_vm2, %v7468_v9 }
 0x475   : > { %v12283_v56 = vpop.f32.mrb[99].mxu0  ;;  %12606 = vmatmul.mubr.msk.f32.gmra.mrb[204].mxu0 %vm1781_vm2, %v7470_v50  ;;  %12237 = vmatprep.mubr.msk.f32.mxu1 %vm13164_vm1, %v16895_v59 }
 0x476   : > { %12608 = vmatprep.mubr.msk.f32.mxu0 %vm13164_vm1, %v16895_v59  ;;  %v15816_v24 = vadd.f32 %v15175_v32, %v4607_v12  ;;  %v7472_v56 = vld [vmem:[#allocation2 + $0x9c] sm:$0xff] }
 0x477   : > { %v4560_v39 = vpop.f32.mrb[0].mxu1 }
 0x478   : > { %v15818_v60 = vpop.f32.mrb[100].mxu0  ;;  %v4608_v40 = vadd.f32 %v4560_v39, %v15620_v57  ;;  %v11915_v54 = vpop.f32.mrb[1].mxu1  ;;  %12238 = vmatmul.mubr.msk.f32.gmra.mrb[106].mxu1 %vm1781_vm2, %v7469_v11 }
 0x479   : > { %v12286_v9 = vpop.f32.mrb[101].mxu0  ;;  %12609 = vmatmul.mubr.msk.f32.gmra.mrb[206].mxu0 %vm1781_vm2, %v7471_v62  ;;  %12240 = vmatprep.mubr.msk.f32.mxu1 %vm13164_vm1, %v16895_v59 }
 0x47a   : > { %12611 = vmatprep.mubr.msk.f32.mxu0 %vm13164_vm1, %v16895_v59  ;;  %v15828_v32 = vadd.f32 %v15187_v2, %v4608_v40  ;;  %v7473_v9 = vld [vmem:[#allocation2 + $0xa4] sm:$0xff] }
 0x47b   : > { %v4565_v12 = vpop.f32.mrb[2].mxu1 }
 0x47c   : > { %v15830_v34 = vpop.f32.mrb[102].mxu0  ;;  %v4609_v57 = vadd.f32 %v4565_v12, %v15632_v51  ;;  %v11918_v39 = vpop.f32.mrb[3].mxu1  ;;  %12241 = vmatmul.mubr.msk.f32.gmra.mrb[108].mxu1 %vm1781_vm2, %v7470_v50 }
 0x47d   : > { %v12289_v11 = vpop.f32.mrb[103].mxu0  ;;  %12612 = vmatmul.mubr.msk.f32.gmra.mrb[208].mxu0 %vm1781_vm2, %v7472_v56  ;;  %12243 = vmatprep.mubr.msk.f32.mxu1 %vm13164_vm1, %v16895_v59 }
 0x47e   : > { %12614 = vmatprep.mubr.msk.f32.mxu0 %vm13164_vm1, %v16895_v59  ;;  %v15840_v2 = vadd.f32 %v15199_v46, %v4609_v57  ;;  %v7474_v11 = vld [vmem:[#allocation2 + $0xac] sm:$0xff] }
 0x47f   : > { %v4570_v40 = vpop.f32.mrb[4].mxu1 }
 0x480   : > { %v15842_v54 = vpop.f32.mrb[104].mxu0  ;;  %v4610_v51 = vadd.f32 %v4570_v40, %v15644_v22  ;;  %v11921_v12 = vpop.f32.mrb[5].mxu1  ;;  %12244 = vmatmul.mubr.msk.f32.gmra.mrb[110].mxu1 %vm1781_vm2, %v7471_v62 }
 0x481   : > { %v12292_v50 = vpop.f32.mrb[105].mxu0  ;;  %12615 = vmatmul.mubr.msk.f32.gmra.mrb[210].mxu0 %vm1781_vm2, %v7473_v9  ;;  %12246 = vmatprep.mubr.msk.f32.mxu1 %vm13164_vm1, %v16895_v59 }
 0x482   : > { %12617 = vmatprep.mubr.msk.f32.mxu0 %vm13164_vm1, %v16895_v59  ;;  %v15852_v46 = vadd.f32 %v15211_v42, %v4610_v51  ;;  %v7475_v50 = vld [vmem:[#allocation2 + $0xb4] sm:$0xff] }
 0x483   : > { %v4575_v57 = vpop.f32.mrb[6].mxu1 }
 0x484   : > { %v15854_v39 = vpop.f32.mrb[106].mxu0  ;;  %v4611_v22 = vadd.f32 %v4575_v57, %v15656_v18  ;;  %v11924_v40 = vpop.f32.mrb[7].mxu1  ;;  %12247 = vmatmul.mubr.msk.f32.gmra.mrb[112].mxu1 %vm1781_vm2, %v7472_v56 }
 0x485   : > { %v12295_v62 = vpop.f32.mrb[107].mxu0  ;;  %12618 = vmatmul.mubr.msk.f32.gmra.mrb[212].mxu0 %vm1781_vm2, %v7474_v11  ;;  %12249 = vmatprep.mubr.msk.f32.mxu1 %vm13164_vm1, %v16895_v59 }
 0x486   : > { %12620 = vmatprep.mubr.msk.f32.mxu0 %vm13164_vm1, %v16895_v59  ;;  %v15864_v42 = vadd.f32 %v15223_v31, %v4611_v22  ;;  %v7476_v62 = vld [vmem:[#allocation2 + $0xbc] sm:$0xff] }
 0x487   : > { %v4580_v51 = vpop.f32.mrb[8].mxu1 }
 0x488   : > { %v15866_v12 = vpop.f32.mrb[108].mxu0  ;;  %v4612_v18 = vadd.f32 %v4580_v51, %v15668_v37  ;;  %v11927_v57 = vpop.f32.mrb[9].mxu1  ;;  %12250 = vmatmul.mubr.msk.f32.gmra.mrb[114].mxu1 %vm1781_vm2, %v7473_v9 }
 0x489   : > { %v12298_v56 = vpop.f32.mrb[109].mxu0  ;;  %12621 = vmatmul.mubr.msk.f32.gmra.mrb[214].mxu0 %vm1781_vm2, %v7475_v50  ;;  %12252 = vmatprep.mubr.msk.f32.mxu1 %vm13164_vm1, %v16895_v59 }
 0x48a   : > { %12623 = vmatprep.mubr.msk.f32.mxu0 %vm13164_vm1, %v16895_v59  ;;  %v15876_v31 = vadd.f32 %v15235_v10, %v4612_v18  ;;  %v10362_v10 = vld [vmem:[%s16889_s3 + $0xa8] sm:$0xff] }
 0x48b   : > { %v4585_v22 = vpop.f32.mrb[10].mxu1 }
 0x48c   : > { %v15878_v40 = vpop.f32.mrb[110].mxu0  ;;  %v4613_v37 = vadd.f32 %v4585_v22, %v15680_v23  ;;  %v11930_v51 = vpop.f32.mrb[11].mxu1  ;;  %12253 = vmatmul.mubr.msk.f32.gmra.mrb[116].mxu1 %vm1781_vm2, %v7474_v11  ;;  %v6275_v11 = vld [vmem:[#allocation2 + $0x2e] sm:$0xff] }
 0x48d   : > { %v12301_v9 = vpop.f32.mrb[111].mxu0  ;;  %12624 = vmatmul.mubr.msk.f32.gmra.mrb[216].mxu0 %vm1781_vm2, %v7476_v62  ;;  %12310 = vmatprep.mubr.msk.f32.mxu1 %vm13164_vm1, %v16895_v59  ;;  %v6276_v51 = vld [vmem:[#allocation2 + $0x36] sm:$0xff] }
 0x48e   : > { %12630 = vmatprep.mubr.msk.f32.mxu0 %vm13164_vm1, %v16895_v59  ;;  %v15891_v50 = vadd.f32 %v15247_v43, %v4613_v37 }
 0x48f   : > { %v4590_v23 = vpop.f32.mrb[12].mxu1 }
 0x490   : > { %v15893_v18 = vpop.f32.mrb[112].mxu0  ;;  %v4614_v57 = vadd.f32 %v4590_v23, %v15695_v35  ;;  %v11933_v56 = vpop.f32.mrb[13].mxu1  ;;  %12311 = vmatmul.mubr.msk.f32.vlgmr.msra.gmra.mrb[118].mxu1 %vm1781_vm2, %v6275_v11 }
 0x491   : > { %v12304_v22 = vpop.f32.mrb[113].mxu0  ;;  %12313 = vmatprep.mubr.msk.f32.mxu1 %vm13164_vm1, %v16895_v59  ;;  %12415 = vmatpush3.msra.mxu1 %v10362_v10 }
 0x492   : > { %v15900_v62 = vadd.f32 %v15259_v7, %v4614_v57  ;;  %12520 = vmatprep.subr.mxu1 %v16895_v59  ;;  %v6277_v57 = vld [vmem:[#allocation2 + $0x3e] sm:$0xff] }
 0x493   : > { %v4595_v43 = vpop.f32.mrb[14].mxu1 }
 0x494   : > { %v15903_v37 = vpop.f32.mrb[114].mxu0  ;;  %v4615_v9 = vadd.f32 %v4595_v43, %v15708_v26  ;;  %v11936_v35 = vpop.f32.mrb[15].mxu1  ;;  %12314 = vmatmul.mubr.msk.f32.gmra.mrb[120].mxu1 %vm1781_vm2, %v6276_v51  ;;  %v16950_v43 = vld [vmem:[#allocation3_spill] sm:$0xff] }
 0x495   : > { %16948 = vst [vmem:[#allocation19_spill] sm:$0xff] %v15903_v37  ;;  %v12307_v23 = vpop.f32.mrb[115].mxu0  ;;  %12316 = vmatprep.mubr.msk.f32.mxu1 %vm13164_vm1, %v16895_v59 }
 0x496   : > { %v15910_v10 = vadd.f32 %v15277_v20, %v4615_v9  ;;  %v6278_v20 = vld [vmem:[#allocation2 + $0x46] sm:$0xff] }
 0x497   : > { %v4989_v7 = vpop.f32.mrb[16].mxu1 }
 0x498   : > { %v15912_v11 = vpop.f32.mrb[116].mxu0  ;;  %v5073_v56 = vadd.f32 %v4989_v7, %v15720_v16  ;;  %v11994_v22 = vpop.f32.mrb[17].mxu1  ;;  %12317 = vmatmul.mubr.msk.f32.gmra.mrb[122].mxu1 %vm1781_vm2, %v6277_v57  ;;  %v16952_v7 = vld [vmem:[#allocation4_spill] sm:$0xff] }
 0x499   : > { %16949 = vst [vmem:[#allocation21_spill] sm:$0xff] %v15912_v11  ;;  %v12365_v26 = vpop.f32.mrb[117].mxu0  ;;  %12319 = vmatprep.mubr.msk.f32.mxu1 %vm13164_vm1, %v16895_v59 }
 0x49a   : > { %v15919_v51 = vadd.f32 %v16950_v43, %v5073_v56  ;;  %v6279_v56 = vld [vmem:[#allocation2 + $0x4e] sm:$0xff] }
 0x49b   : > { %v4994_v35 = vpop.f32.mrb[18].mxu1 }
 0x49c   : > { %v15921_v23 = vpop.f32.mrb[118].mxu0  ;;  %v5074_v9 = vadd.f32 %v4994_v35, %v15732_v3  ;;  %v11997_v11 = vpop.f32.mrb[19].mxu1  ;;  %12320 = vmatmul.mubr.msk.f32.gmra.mrb[124].mxu1 %vm1781_vm2, %v6278_v20 }
 0x49d   : > { %16951 = vst [vmem:[#allocation3_spill] sm:$0xff] %v15921_v23  ;;  %v12368_v16 = vpop.f32.mrb[119].mxu0  ;;  %12322 = vmatprep.mubr.msk.f32.mxu1 %vm13164_vm1, %v16895_v59  ;;  %v16954_v11 = vld [vmem:[#allocation5_spill] sm:$0xff] }
 0x49e   : > { %v15928_v57 = vadd.f32 %v16952_v7, %v5074_v9  ;;  %v6280_v9 = vld [vmem:[#allocation2 + $0x56] sm:$0xff] }
 0x49f   : > { %v4999_v22 = vpop.f32.mrb[20].mxu1 }
 0x4a0   : > { %v15930_v26 = vpop.f32.mrb[120].mxu0  ;;  %v5075_v43 = vadd.f32 %v4999_v22, %v15744_v5  ;;  %v12000_v23 = vpop.f32.mrb[21].mxu1  ;;  %12323 = vmatmul.mubr.msk.f32.gmra.mrb[126].mxu1 %vm1781_vm2, %v6279_v56 }
 0x4a1   : > { %16953 = vst [vmem:[#allocation4_spill] sm:$0xff] %v15930_v26  ;;  %v12371_v3 = vpop.f32.mrb[121].mxu0  ;;  %12325 = vmatprep.mubr.msk.f32.mxu1 %vm13164_vm1, %v16895_v59  ;;  %v16956_v23 = vld [vmem:[#allocation6_spill] sm:$0xff] }
 0x4a2   : > { %v15937_v35 = vadd.f32 %v16954_v11, %v5075_v43  ;;  %v6281_v43 = vld [vmem:[#allocation2 + $0x5e] sm:$0xff] }
 0x4a3   : > { %v5004_v20 = vpop.f32.mrb[22].mxu1 }
 0x4a4   : > { %v15939_v16 = vpop.f32.mrb[122].mxu0  ;;  %v5076_v7 = vadd.f32 %v5004_v20, %v15756_v29  ;;  %v12003_v26 = vpop.f32.mrb[23].mxu1  ;;  %12326 = vmatmul.mubr.msk.f32.gmra.mrb[128].mxu1 %vm1781_vm2, %v6280_v9 }
 0x4a5   : > { %16955 = vst [vmem:[#allocation5_spill] sm:$0xff] %v15939_v16  ;;  %v12374_v5 = vpop.f32.mrb[123].mxu0  ;;  %12328 = vmatprep.mubr.msk.f32.mxu1 %vm13164_vm1, %v16895_v59  ;;  %v16958_v26 = vld [vmem:[#allocation7_spill] sm:$0xff] }
 0x4a6   : > { %v15946_v22 = vadd.f32 %v16956_v23, %v5076_v7  ;;  %v6282_v7 = vld [vmem:[#allocation2 + $0x66] sm:$0xff] }
 0x4a7   : > { %v5009_v56 = vpop.f32.mrb[24].mxu1 }
 0x4a8   : > { %v15948_v3 = vpop.f32.mrb[124].mxu0  ;;  %v5077_v11 = vadd.f32 %v5009_v56, %v15768_v55  ;;  %v12006_v16 = vpop.f32.mrb[25].mxu1  ;;  %12329 = vmatmul.mubr.msk.f32.gmra.mrb[130].mxu1 %vm1781_vm2, %v6281_v43 }
 0x4a9   : > { %16957 = vst [vmem:[#allocation6_spill] sm:$0xff] %v15948_v3  ;;  %v12377_v29 = vpop.f32.mrb[125].mxu0  ;;  %12331 = vmatprep.mubr.msk.f32.mxu1 %vm13164_vm1, %v16895_v59  ;;  %v16960_v16 = vld [vmem:[#allocation8_spill] sm:$0xff] }
 0x4aa   : > { %v15955_v20 = vadd.f32 %v16958_v26, %v5077_v11  ;;  %v6283_v11 = vld [vmem:[#allocation2 + $0x6e] sm:$0xff] }
 0x4ab   : > { %v5014_v9 = vpop.f32.mrb[26].mxu1 }
 0x4ac   : > { %v15957_v5 = vpop.f32.mrb[126].mxu0  ;;  %v5078_v23 = vadd.f32 %v5014_v9, %v15780_v58  ;;  %v12009_v3 = vpop.f32.mrb[27].mxu1  ;;  %12332 = vmatmul.mubr.msk.f32.gmra.mrb[132].mxu1 %vm1781_vm2, %v6282_v7 }
 0x4ad   : > { %16959 = vst [vmem:[#allocation7_spill] sm:$0xff] %v15957_v5  ;;  %v12380_v55 = vpop.f32.mrb[127].mxu0  ;;  %12334 = vmatprep.mubr.msk.f32.mxu1 %vm13164_vm1, %v16895_v59  ;;  %v16962_v3 = vld [vmem:[#allocation9_spill] sm:$0xff] }
 0x4ae   : > { %v15964_v56 = vadd.f32 %v16960_v16, %v5078_v23  ;;  %v6284_v23 = vld [vmem:[#allocation2 + $0x76] sm:$0xff] }
 0x4af   : > { %v5019_v43 = vpop.f32.mrb[28].mxu1 }
 0x4b0   : > { %v15966_v29 = vpop.f32.mrb[128].mxu0  ;;  %v5079_v26 = vadd.f32 %v5019_v43, %v15792_v36  ;;  %v12012_v5 = vpop.f32.mrb[29].mxu1  ;;  %12335 = vmatmul.mubr.msk.f32.gmra.mrb[134].mxu1 %vm1781_vm2, %v6283_v11 }
 0x4b1   : > { %16961 = vst [vmem:[#allocation8_spill] sm:$0xff] %v15966_v29  ;;  %v12383_v58 = vpop.f32.mrb[129].mxu0  ;;  %12337 = vmatprep.mubr.msk.f32.mxu1 %vm13164_vm1, %v16895_v59  ;;  %v16964_v5 = vld [vmem:[#allocation10_spill] sm:$0xff] }
 0x4b2   : > { %v15973_v9 = vadd.f32 %v16962_v3, %v5079_v26  ;;  %v6285_v26 = vld [vmem:[#allocation2 + $0x7e] sm:$0xff] }
 0x4b3   : > { %v5024_v7 = vpop.f32.mrb[30].mxu1 }
 0x4b4   : > { %v15975_v55 = vpop.f32.mrb[130].mxu0  ;;  %v5080_v16 = vadd.f32 %v5024_v7, %v15804_v45  ;;  %v12015_v29 = vpop.f32.mrb[31].mxu1  ;;  %12338 = vmatmul.mubr.msk.f32.gmra.mrb[136].mxu1 %vm1781_vm2, %v6284_v23 }
 0x4b5   : > { %16963 = vst [vmem:[#allocation9_spill] sm:$0xff] %v15975_v55  ;;  %v12386_v36 = vpop.f32.mrb[131].mxu0  ;;  %12340 = vmatprep.mubr.msk.f32.mxu1 %vm13164_vm1, %v16895_v59  ;;  %v16966_v29 = vld [vmem:[#allocation11_spill] sm:$0xff] }
 0x4b6   : > { %v15982_v43 = vadd.f32 %v16964_v5, %v5080_v16  ;;  %v6286_v16 = vld [vmem:[#allocation2 + $0x86] sm:$0xff] }
 0x4b7   : > { %v5029_v11 = vpop.f32.mrb[32].mxu1 }
 0x4b8   : > { %v15984_v58 = vpop.f32.mrb[132].mxu0  ;;  %v5081_v3 = vadd.f32 %v5029_v11, %v15816_v24  ;;  %v12018_v55 = vpop.f32.mrb[33].mxu1  ;;  %12341 = vmatmul.mubr.msk.f32.gmra.mrb[138].mxu1 %vm1781_vm2, %v6285_v26 }
 0x4b9   : > { %16965 = vst [vmem:[#allocation10_spill] sm:$0xff] %v15984_v58  ;;  %v12389_v45 = vpop.f32.mrb[133].mxu0  ;;  %12343 = vmatprep.mubr.msk.f32.mxu1 %vm13164_vm1, %v16895_v59  ;;  %v16968_v55 = vld [vmem:[#allocation12_spill] sm:$0xff] }
 0x4ba   : > { %v15991_v7 = vadd.f32 %v16966_v29, %v5081_v3  ;;  %v6287_v3 = vld [vmem:[#allocation2 + $0x8e] sm:$0xff] }
 0x4bb   : > { %v5034_v23 = vpop.f32.mrb[34].mxu1 }
 0x4bc   : > { %v15993_v36 = vpop.f32.mrb[134].mxu0  ;;  %v5082_v5 = vadd.f32 %v5034_v23, %v15828_v32  ;;  %v12021_v58 = vpop.f32.mrb[35].mxu1  ;;  %12344 = vmatmul.mubr.msk.f32.gmra.mrb[140].mxu1 %vm1781_vm2, %v6286_v16 }
 0x4bd   : > { %16967 = vst [vmem:[#allocation11_spill] sm:$0xff] %v15993_v36  ;;  %v12392_v24 = vpop.f32.mrb[135].mxu0  ;;  %12346 = vmatprep.mubr.msk.f32.mxu1 %vm13164_vm1, %v16895_v59  ;;  %v16970_v58 = vld [vmem:[#allocation13_spill] sm:$0xff] }
 0x4be   : > { %v16000_v11 = vadd.f32 %v16968_v55, %v5082_v5  ;;  %v6288_v5 = vld [vmem:[#allocation2 + $0x96] sm:$0xff] }
 0x4bf   : > { %v5039_v26 = vpop.f32.mrb[36].mxu1 }
 0x4c0   : > { %v16002_v45 = vpop.f32.mrb[136].mxu0  ;;  %v5083_v29 = vadd.f32 %v5039_v26, %v15840_v2  ;;  %v12024_v36 = vpop.f32.mrb[37].mxu1  ;;  %12347 = vmatmul.mubr.msk.f32.gmra.mrb[142].mxu1 %vm1781_vm2, %v6287_v3 }
 0x4c1   : > { %16969 = vst [vmem:[#allocation12_spill] sm:$0xff] %v16002_v45  ;;  %v12395_v32 = vpop.f32.mrb[137].mxu0  ;;  %12349 = vmatprep.mubr.msk.f32.mxu1 %vm13164_vm1, %v16895_v59  ;;  %v16972_v36 = vld [vmem:[#allocation14_spill] sm:$0xff] }
 0x4c2   : > { %v16009_v23 = vadd.f32 %v16970_v58, %v5083_v29  ;;  %v6289_v29 = vld [vmem:[#allocation2 + $0x9e] sm:$0xff] }
 0x4c3   : > { %v5044_v16 = vpop.f32.mrb[38].mxu1 }
 0x4c4   : > { %v16011_v24 = vpop.f32.mrb[138].mxu0  ;;  %v5084_v55 = vadd.f32 %v5044_v16, %v15852_v46  ;;  %v12027_v45 = vpop.f32.mrb[39].mxu1  ;;  %12350 = vmatmul.mubr.msk.f32.gmra.mrb[144].mxu1 %vm1781_vm2, %v6288_v5 }
 0x4c5   : > { %16971 = vst [vmem:[#allocation13_spill] sm:$0xff] %v16011_v24  ;;  %v12398_v2 = vpop.f32.mrb[139].mxu0  ;;  %12352 = vmatprep.mubr.msk.f32.mxu1 %vm13164_vm1, %v16895_v59  ;;  %v16974_v45 = vld [vmem:[#allocation15_spill] sm:$0xff] }
 0x4c6   : > { %v16018_v26 = vadd.f32 %v16972_v36, %v5084_v55  ;;  %v6290_v55 = vld [vmem:[#allocation2 + $0xa6] sm:$0xff] }
 0x4c7   : > { %v5049_v3 = vpop.f32.mrb[40].mxu1 }
 0x4c8   : > { %v16020_v32 = vpop.f32.mrb[140].mxu0  ;;  %v5085_v58 = vadd.f32 %v5049_v3, %v15864_v42  ;;  %v12030_v24 = vpop.f32.mrb[41].mxu1  ;;  %12353 = vmatmul.mubr.msk.f32.gmra.mrb[146].mxu1 %vm1781_vm2, %v6289_v29 }
 0x4c9   : > { %16973 = vst [vmem:[#allocation14_spill] sm:$0xff] %v16020_v32  ;;  %v12401_v46 = vpop.f32.mrb[141].mxu0  ;;  %12355 = vmatprep.mubr.msk.f32.mxu1 %vm13164_vm1, %v16895_v59  ;;  %v16976_v24 = vld [vmem:[#allocation16_spill] sm:$0xff] }
 0x4ca   : > { %v16027_v16 = vadd.f32 %v16974_v45, %v5085_v58  ;;  %v6291_v58 = vld [vmem:[#allocation2 + $0xae] sm:$0xff] }
 0x4cb   : > { %v5054_v5 = vpop.f32.mrb[42].mxu1 }
 0x4cc   : > { %v16029_v2 = vpop.f32.mrb[142].mxu0  ;;  %v5086_v36 = vadd.f32 %v5054_v5, %v15876_v31  ;;  %v12033_v32 = vpop.f32.mrb[43].mxu1  ;;  %12356 = vmatmul.mubr.msk.f32.gmra.mrb[148].mxu1 %vm1781_vm2, %v6290_v55 }
 0x4cd   : > { %16975 = vst [vmem:[#allocation15_spill] sm:$0xff] %v16029_v2  ;;  %v12404_v42 = vpop.f32.mrb[143].mxu0  ;;  %12358 = vmatprep.mubr.msk.f32.mxu1 %vm13164_vm1, %v16895_v59  ;;  %v10398_v32 = vld [vmem:[%s16889_s3 + $0xb8] sm:$0xff] }
 0x4ce   : > { %v16036_v3 = vadd.f32 %v16976_v24, %v5086_v36  ;;  %v6749_v42 = vld [vmem:[#allocation2 + $0x39] sm:$0xff] }
 0x4cf   : > { %v5059_v29 = vpop.f32.mrb[44].mxu1 }
 0x4d0   : > { %v16038_v46 = vpop.f32.mrb[144].mxu0  ;;  %v5087_v45 = vadd.f32 %v5059_v29, %v15891_v50  ;;  %v12036_v2 = vpop.f32.mrb[45].mxu1  ;;  %12359 = vmatmul.mubr.msk.f32.gmra.mrb[150].mxu1 %vm1781_vm2, %v6291_v58  ;;  %v16979_v29 = vld [vmem:[#allocation17_spill] sm:$0xff] }
 0x4d1   : > { %16977 = vst [vmem:[#allocation16_spill] sm:$0xff] %v16038_v46  ;;  %v12407_v31 = vpop.f32.mrb[145].mxu0  ;;  %12416 = vmatprep.mubr.msk.f32.mxu1 %vm13164_vm1, %v16895_v59 }
 0x4d2   : > { %v16048_v5 = vadd.f32 %v15459_v33, %v5087_v45  ;;  %v6750_v45 = vld [vmem:[#allocation2 + $0x41] sm:$0xff] }
 0x4d3   : > { %v5064_v55 = vpop.f32.mrb[46].mxu1 }
 0x4d4   : > { %v16050_v36 = vpop.f32.mrb[146].mxu0  ;;  %v5088_v50 = vadd.f32 %v5064_v55, %v15900_v62  ;;  %v12039_v2 = vpop.f32.mrb[47].mxu1  ;;  %12417 = vmatmul.mubr.msk.f32.vlgmr.msra.gmra.mrb[152].mxu1 %vm1781_vm2, %v6749_v42  ;;  %v6751_v42 = vld [vmem:[#allocation2 + $0x49] sm:$0xff] }
 0x4d5   : > { %16978 = vst [vmem:[#allocation22_spill] sm:$0xff] %v16050_v36  ;;  %v12410_v24 = vpop.f32.mrb[147].mxu0  ;;  %12419 = vmatprep.mubr.msk.f32.mxu1 %vm13164_vm1, %v16895_v59  ;;  %12521 = vmatpush3.msra.mxu1 %v10398_v32 }
 0x4d6   : > { %v16057_v58 = vadd.f32 %v16979_v29, %v5088_v50 }
 0x4d7   : > { %v5069_v31 = vpop.f32.mrb[48].mxu1 }
 0x4d8   : > { %v16059_v33 = vpop.f32.mrb[148].mxu0  ;;  %v5089_v36 = vadd.f32 %v5069_v31, %v15910_v10  ;;  %v12042_v46 = vpop.f32.mrb[49].mxu1  ;;  %12420 = vmatmul.mubr.msk.f32.gmra.mrb[154].mxu1 %vm1781_vm2, %v6750_v45 }
 0x4d9   : > { %v12413_v37 = vpop.f32.mrb[149].mxu0  ;;  %12422 = vmatprep.mubr.msk.f32.mxu1 %vm13164_vm1, %v16895_v59 }
 0x4da   : > { %v16066_v62 = vadd.f32 %v15489_v13, %v5089_v36  ;;  %v16980_v37 = vld [vmem:[#allocation20_spill] sm:$0xff] }
 0x4db   : > { %v5463_v32 = vpop.f32.mrb[50].mxu1  ;;  %v6752_v13 = vld [vmem:[#allocation2 + $0x51] sm:$0xff] }
 0x4dc   : > { %v16068_v55 = vpop.f32.mrb[150].mxu0  ;;  %v5547_v50 = vadd.f32 %v5463_v32, %v15919_v51  ;;  %v12100_v2 = vpop.f32.mrb[51].mxu1  ;;  %12423 = vmatmul.mubr.msk.f32.gmra.mrb[156].mxu1 %vm1781_vm2, %v6751_v42 }
 0x4dd   : > { %v12471_v10 = vpop.f32.mrb[151].mxu0  ;;  %12425 = vmatprep.mubr.msk.f32.mxu1 %vm13164_vm1, %v16895_v59 }
 0x4de   : > { %v16075_v46 = vadd.f32 %v16980_v37, %v5547_v50  ;;  %v6753_v50 = vld [vmem:[#allocation2 + $0x59] sm:$0xff] }
 0x4df   : > { %v5468_v24 = vpop.f32.mrb[52].mxu1 }
 0x4e0   : > { %v16077_v29 = vpop.f32.mrb[152].mxu0  ;;  %v5548_v36 = vadd.f32 %v5468_v24, %v15928_v57  ;;  %v12103_v31 = vpop.f32.mrb[53].mxu1  ;;  %12426 = vmatmul.mubr.msk.f32.gmra.mrb[158].mxu1 %vm1781_vm2, %v6752_v13 }
 0x4e1   : > { %v12474_v51 = vpop.f32.mrb[153].mxu0  ;;  %12428 = vmatprep.mubr.msk.f32.mxu1 %vm13164_vm1, %v16895_v59 }
 0x4e2   : > { %v16084_v45 = vadd.f32 %v15514_v52, %v5548_v36  ;;  %v6754_v52 = vld [vmem:[#allocation2 + $0x61] sm:$0xff] }
 0x4e3   : > { %v5473_v32 = vpop.f32.mrb[54].mxu1 }
 0x4e4   : > { %v16086_v42 = vpop.f32.mrb[154].mxu0  ;;  %v5549_v2 = vadd.f32 %v5473_v32, %v15937_v35  ;;  %v12106_v10 = vpop.f32.mrb[55].mxu1  ;;  %12429 = vmatmul.mubr.msk.f32.gmra.mrb[160].mxu1 %vm1781_vm2, %v6753_v50 }
 0x4e5   : > { %v12477_v57 = vpop.f32.mrb[155].mxu0  ;;  %12431 = vmatprep.mubr.msk.f32.mxu1 %vm13164_vm1, %v16895_v59 }
 0x4e6   : > { %v16093_v37 = vadd.f32 %v15526_v44, %v5549_v2  ;;  %v6755_v44 = vld [vmem:[#allocation2 + $0x69] sm:$0xff] }
 0x4e7   : > { %v5478_v24 = vpop.f32.mrb[56].mxu1 }
 0x4e8   : > { %v16095_v13 = vpop.f32.mrb[156].mxu0  ;;  %v5550_v36 = vadd.f32 %v5478_v24, %v15946_v22  ;;  %v12109_v31 = vpop.f32.mrb[57].mxu1  ;;  %12432 = vmatmul.mubr.msk.f32.gmra.mrb[162].mxu1 %vm1781_vm2, %v6754_v52 }
 0x4e9   : > { %v12480_v35 = vpop.f32.mrb[157].mxu0  ;;  %12434 = vmatprep.mubr.msk.f32.mxu1 %vm13164_vm1, %v16895_v59 }
 0x4ea   : > { %v16102_v51 = vadd.f32 %v15538_v63, %v5550_v36  ;;  %v6756_v63 = vld [vmem:[#allocation2 + $0x71] sm:$0xff] }
 0x4eb   : > { %v5483_v32 = vpop.f32.mrb[58].mxu1 }
 0x4ec   : > { %v16104_v50 = vpop.f32.mrb[158].mxu0  ;;  %v5551_v2 = vadd.f32 %v5483_v32, %v15955_v20  ;;  %v12112_v10 = vpop.f32.mrb[59].mxu1  ;;  %12435 = vmatmul.mubr.msk.f32.gmra.mrb[164].mxu1 %vm1781_vm2, %v6755_v44 }
 0x4ed   : > { %v12483_v22 = vpop.f32.mrb[159].mxu0  ;;  %12437 = vmatprep.mubr.msk.f32.mxu1 %vm13164_vm1, %v16895_v59 }
 0x4ee   : > { %v16111_v57 = vadd.f32 %v15550_v6, %v5551_v2  ;;  %v6757_v6 = vld [vmem:[#allocation2 + $0x79] sm:$0xff] }
 0x4ef   : > { %v5488_v24 = vpop.f32.mrb[60].mxu1 }
 0x4f0   : > { %v16113_v52 = vpop.f32.mrb[160].mxu0  ;;  %v5552_v36 = vadd.f32 %v5488_v24, %v15964_v56  ;;  %v12115_v31 = vpop.f32.mrb[61].mxu1  ;;  %12438 = vmatmul.mubr.msk.f32.gmra.mrb[166].mxu1 %vm1781_vm2, %v6756_v63 }
 0x4f1   : > { %v12486_v20 = vpop.f32.mrb[161].mxu0  ;;  %12440 = vmatprep.mubr.msk.f32.mxu1 %vm13164_vm1, %v16895_v59 }
 0x4f2   : > { %v16120_v35 = vadd.f32 %v15562_v47, %v5552_v36  ;;  %v6758_v47 = vld [vmem:[#allocation2 + $0x81] sm:$0xff] }
 0x4f3   : > { %v5493_v32 = vpop.f32.mrb[62].mxu1 }
 0x4f4   : > { %v16122_v44 = vpop.f32.mrb[162].mxu0  ;;  %v5553_v2 = vadd.f32 %v5493_v32, %v15973_v9  ;;  %v12118_v10 = vpop.f32.mrb[63].mxu1  ;;  %12441 = vmatmul.mubr.msk.f32.gmra.mrb[168].mxu1 %vm1781_vm2, %v6757_v6 }
 0x4f5   : > { %v12489_v56 = vpop.f32.mrb[163].mxu0  ;;  %12443 = vmatprep.mubr.msk.f32.mxu1 %vm13164_vm1, %v16895_v59 }
 0x4f6   : > { %v16129_v22 = vadd.f32 %v15574_v30, %v5553_v2  ;;  %v6759_v30 = vld [vmem:[#allocation2 + $0x89] sm:$0xff] }
 0x4f7   : > { %v5498_v24 = vpop.f32.mrb[64].mxu1 }
 0x4f8   : > { %v16131_v63 = vpop.f32.mrb[164].mxu0  ;;  %v5554_v36 = vadd.f32 %v5498_v24, %v15982_v43  ;;  %v12121_v31 = vpop.f32.mrb[65].mxu1  ;;  %12444 = vmatmul.mubr.msk.f32.gmra.mrb[170].mxu1 %vm1781_vm2, %v6758_v47 }
 0x4f9   : > { %v12492_v9 = vpop.f32.mrb[165].mxu0  ;;  %12446 = vmatprep.mubr.msk.f32.mxu1 %vm13164_vm1, %v16895_v59 }
 0x4fa   : > { %v16138_v20 = vadd.f32 %v15586_v53, %v5554_v36  ;;  %v6760_v53 = vld [vmem:[#allocation2 + $0x91] sm:$0xff] }
 0x4fb   : > { %v5503_v32 = vpop.f32.mrb[66].mxu1 }
 0x4fc   : > { %v16140_v6 = vpop.f32.mrb[166].mxu0  ;;  %v5555_v2 = vadd.f32 %v5503_v32, %v15991_v7  ;;  %v12124_v10 = vpop.f32.mrb[67].mxu1  ;;  %12447 = vmatmul.mubr.msk.f32.gmra.mrb[172].mxu1 %vm1781_vm2, %v6759_v30 }
 0x4fd   : > { %v12495_v43 = vpop.f32.mrb[167].mxu0  ;;  %12449 = vmatprep.mubr.msk.f32.mxu1 %vm13164_vm1, %v16895_v59 }
 0x4fe   : > { %v16147_v56 = vadd.f32 %v15598_v14, %v5555_v2  ;;  %v6761_v14 = vld [vmem:[#allocation2 + $0x99] sm:$0xff] }
 0x4ff   : > { %v5508_v24 = vpop.f32.mrb[68].mxu1 }
 0x500   : > { %v16149_v47 = vpop.f32.mrb[168].mxu0  ;;  %v5556_v36 = vadd.f32 %v5508_v24, %v16000_v11  ;;  %v12127_v31 = vpop.f32.mrb[69].mxu1  ;;  %12450 = vmatmul.mubr.msk.f32.gmra.mrb[174].mxu1 %vm1781_vm2, %v6760_v53 }
 0x501   : > { %v12498_v7 = vpop.f32.mrb[169].mxu0  ;;  %12452 = vmatprep.mubr.msk.f32.mxu1 %vm13164_vm1, %v16895_v59 }
 0x502   : > { %v16156_v9 = vadd.f32 %v15610_v49, %v5556_v36  ;;  %v6762_v49 = vld [vmem:[#allocation2 + $0xa1] sm:$0xff] }
 0x503   : > { %v5513_v32 = vpop.f32.mrb[70].mxu1 }
 0x504   : > { %v16158_v30 = vpop.f32.mrb[170].mxu0  ;;  %v5557_v2 = vadd.f32 %v5513_v32, %v16009_v23  ;;  %v12130_v10 = vpop.f32.mrb[71].mxu1  ;;  %12453 = vmatmul.mubr.msk.f32.gmra.mrb[176].mxu1 %vm1781_vm2, %v6761_v14 }
 0x505   : > { %v12501_v11 = vpop.f32.mrb[171].mxu0  ;;  %12455 = vmatprep.mubr.msk.f32.mxu1 %vm13164_vm1, %v16895_v59 }
 0x506   : > { %v16165_v43 = vadd.f32 %v15622_v4, %v5557_v2  ;;  %v6763_v4 = vld [vmem:[#allocation2 + $0xa9] sm:$0xff] }
 0x507   : > { %v5518_v24 = vpop.f32.mrb[72].mxu1 }
 0x508   : > { %v16167_v53 = vpop.f32.mrb[172].mxu0  ;;  %v5558_v36 = vadd.f32 %v5518_v24, %v16018_v26  ;;  %v12133_v31 = vpop.f32.mrb[73].mxu1  ;;  %12456 = vmatmul.mubr.msk.f32.gmra.mrb[178].mxu1 %vm1781_vm2, %v6762_v49 }
 0x509   : > { %v12504_v23 = vpop.f32.mrb[173].mxu0  ;;  %12458 = vmatprep.mubr.msk.f32.mxu1 %vm13164_vm1, %v16895_v59 }
 0x50a   : > { %v16174_v7 = vadd.f32 %v15634_v61, %v5558_v36  ;;  %v6764_v61 = vld [vmem:[#allocation2 + $0xb1] sm:$0xff] }
 0x50b   : > { %v5523_v32 = vpop.f32.mrb[74].mxu1 }
 0x50c   : > { %v16176_v14 = vpop.f32.mrb[174].mxu0  ;;  %v5559_v2 = vadd.f32 %v5523_v32, %v16027_v16  ;;  %v12136_v10 = vpop.f32.mrb[75].mxu1  ;;  %12459 = vmatmul.mubr.msk.f32.gmra.mrb[180].mxu1 %vm1781_vm2, %v6763_v4 }
 0x50d   : > { %v12507_v26 = vpop.f32.mrb[175].mxu0  ;;  %12461 = vmatprep.mubr.msk.f32.mxu1 %vm13164_vm1, %v16895_v59 }
 0x50e   : > { %v16183_v11 = vadd.f32 %v15646_v27, %v5559_v2  ;;  %v6765_v27 = vld [vmem:[#allocation2 + $0xb9] sm:$0xff] }
 0x50f   : > { %v5528_v24 = vpop.f32.mrb[76].mxu1 }
 0x510   : > { %v16185_v49 = vpop.f32.mrb[176].mxu0  ;;  %v5560_v36 = vadd.f32 %v5528_v24, %v16036_v3  ;;  %v12139_v31 = vpop.f32.mrb[77].mxu1  ;;  %12462 = vmatmul.mubr.msk.f32.gmra.mrb[182].mxu1 %vm1781_vm2, %v6764_v61 }
 0x511   : > { %v12510_v16 = vpop.f32.mrb[177].mxu0  ;;  %12464 = vmatprep.mubr.msk.f32.mxu1 %vm13164_vm1, %v16895_v59 }
 0x512   : > { %v16192_v23 = vadd.f32 %v15658_v0, %v5560_v36  ;;  %v7223_v0 = vld [vmem:[#allocation2 + $0x3b] sm:$0xff] }
 0x513   : > { %v5533_v32 = vpop.f32.mrb[78].mxu1 }
 0x514   : > { %v16194_v4 = vpop.f32.mrb[178].mxu0  ;;  %v5561_v2 = vadd.f32 %v5533_v32, %v16048_v5  ;;  %v12142_v10 = vpop.f32.mrb[79].mxu1  ;;  %12465 = vmatmul.mubr.msk.f32.gmra.mrb[184].mxu1 %vm1781_vm2, %v6765_v27 }
 0x515   : > { %v12513_v3 = vpop.f32.mrb[179].mxu0  ;;  %12522 = vmatprep.mubr.msk.f32.mxu1 %vm13164_vm1, %v16895_v59 }
 0x516   : > { %v16201_v26 = vadd.f32 %v15670_v8, %v5561_v2  ;;  %v7224_v8 = vld [vmem:[#allocation2 + $0x43] sm:$0xff] }
 0x517   : > { %v5538_v24 = vpop.f32.mrb[80].mxu1 }
 0x518   : > { %v16203_v61 = vpop.f32.mrb[180].mxu0  ;;  %v5562_v36 = vadd.f32 %v5538_v24, %v16057_v58  ;;  %v12145_v31 = vpop.f32.mrb[81].mxu1  ;;  %12523 = vmatmul.mubr.msk.f32.vlgmr.msra.gmra.mrb[186].mxu1 %vm1781_vm2, %v7223_v0  ;;  %v16981_v58 = vld [vmem:[#allocation18_spill] sm:$0xff] }
 0x519   : > { %v12516_v16 = vpop.f32.mrb[181].mxu0  ;;  %12525 = vmatprep.mubr.msk.f32.mxu1 %vm13164_vm1, %v16895_v59 }
 0x51a   : > { %v16210_v5 = vadd.f32 %v15682_v15, %v5562_v36  ;;  %v7225_v15 = vld [vmem:[#allocation2 + $0x4b] sm:$0xff] }
 0x51b   : > { %v5543_v32 = vpop.f32.mrb[82].mxu1 }
 0x51c   : > { %v16212_v27 = vpop.f32.mrb[182].mxu0  ;;  %v5563_v2 = vadd.f32 %v5543_v32, %v16066_v62  ;;  %v12148_v10 = vpop.f32.mrb[83].mxu1  ;;  %12526 = vmatmul.mubr.msk.f32.gmra.mrb[188].mxu1 %vm1781_vm2, %v7224_v8 }
 0x51d   : > { %v12519_v3 = vpop.f32.mrb[183].mxu0  ;;  %12528 = vmatprep.mubr.msk.f32.mxu1 %vm13164_vm1, %v16895_v59 }
 0x51e   : > { %v16219_v24 = vadd.f32 %v16981_v58, %v5563_v2  ;;  %v7226_v2 = vld [vmem:[#allocation2 + $0x53] sm:$0xff] }
 0x51f   : > { %v5937_v0 = vpop.f32.mrb[84].mxu1 }
 0x520   : > { %v16221_v31 = vpop.f32.mrb[184].mxu0  ;;  %v6021_v36 = vadd.f32 %v5937_v0, %v16075_v46  ;;  %v12206_v16 = vpop.f32.mrb[85].mxu1  ;;  %12529 = vmatmul.mubr.msk.f32.gmra.mrb[190].mxu1 %vm1781_vm2, %v7225_v15 }
 0x521   : > { %v12577_v62 = vpop.f32.mrb[185].mxu0  ;;  %12531 = vmatprep.mubr.msk.f32.mxu1 %vm13164_vm1, %v16895_v59 }
 0x522   : > { %v16228_v32 = vadd.f32 %v15710_v41, %v6021_v36  ;;  %v7227_v41 = vld [vmem:[#allocation2 + $0x5b] sm:$0xff] }
 0x523   : > { %v5942_v8 = vpop.f32.mrb[86].mxu1 }
 0x524   : > { %v16230_v10 = vpop.f32.mrb[186].mxu0  ;;  %v6022_v3 = vadd.f32 %v5942_v8, %v16084_v45  ;;  %v12209_v58 = vpop.f32.mrb[87].mxu1  ;;  %12532 = vmatmul.mubr.msk.f32.gmra.mrb[192].mxu1 %vm1781_vm2, %v7226_v2 }
 0x525   : > { %v12580_v46 = vpop.f32.mrb[187].mxu0  ;;  %12534 = vmatprep.mubr.msk.f32.mxu1 %vm13164_vm1, %v16895_v59 }
 0x526   : > { %v16237_v0 = vadd.f32 %v15722_v38, %v6022_v3  ;;  %v7228_v38 = vld [vmem:[#allocation2 + $0x63] sm:$0xff] }
 0x527   : > { %v5947_v15 = vpop.f32.mrb[88].mxu1 }
 0x528   : > { %v16239_v16 = vpop.f32.mrb[188].mxu0  ;;  %v6023_v36 = vadd.f32 %v5947_v15, %v16093_v37  ;;  %v12212_v62 = vpop.f32.mrb[89].mxu1  ;;  %12535 = vmatmul.mubr.msk.f32.gmra.mrb[194].mxu1 %vm1781_vm2, %v7227_v41 }
 0x529   : > { %v12583_v45 = vpop.f32.mrb[189].mxu0  ;;  %12537 = vmatprep.mubr.msk.f32.mxu1 %vm13164_vm1, %v16895_v59 }
 0x52a   : > { %v16246_v8 = vadd.f32 %v15734_v28, %v6023_v36  ;;  %v7229_v28 = vld [vmem:[#allocation2 + $0x6b] sm:$0xff] }
 0x52b   : > { %v5952_v2 = vpop.f32.mrb[90].mxu1 }
 0x52c   : > { %v16248_v58 = vpop.f32.mrb[190].mxu0  ;;  %v6024_v3 = vadd.f32 %v5952_v2, %v16102_v51  ;;  %v12215_v46 = vpop.f32.mrb[91].mxu1  ;;  %12538 = vmatmul.mubr.msk.f32.gmra.mrb[196].mxu1 %vm1781_vm2, %v7228_v38 }
 0x52d   : > { %v12586_v37 = vpop.f32.mrb[191].mxu0  ;;  %12540 = vmatprep.mubr.msk.f32.mxu1 %vm13164_vm1, %v16895_v59 }
 0x52e   : > { %v16255_v15 = vadd.f32 %v15746_v19, %v6024_v3  ;;  %v7230_v19 = vld [vmem:[#allocation2 + $0x73] sm:$0xff] }
 0x52f   : > { %v5957_v41 = vpop.f32.mrb[92].mxu1 }
 0x530   : > { %v16257_v62 = vpop.f32.mrb[192].mxu0  ;;  %v6025_v36 = vadd.f32 %v5957_v41, %v16111_v57  ;;  %v12218_v45 = vpop.f32.mrb[93].mxu1  ;;  %12541 = vmatmul.mubr.msk.f32.gmra.mrb[198].mxu1 %vm1781_vm2, %v7229_v28 }
 0x531   : > { %v12589_v51 = vpop.f32.mrb[193].mxu0  ;;  %12543 = vmatprep.mubr.msk.f32.mxu1 %vm13164_vm1, %v16895_v59 }
 0x532   : > { %v16264_v2 = vadd.f32 %v15758_v21, %v6025_v36  ;;  %v7231_v21 = vld [vmem:[#allocation2 + $0x7b] sm:$0xff] }
 0x533   : > { %v5962_v38 = vpop.f32.mrb[94].mxu1 }
 0x534   : > { %v16266_v46 = vpop.f32.mrb[194].mxu0  ;;  %v6026_v3 = vadd.f32 %v5962_v38, %v16120_v35  ;;  %v12221_v37 = vpop.f32.mrb[95].mxu1  ;;  %12544 = vmatmul.mubr.msk.f32.gmra.mrb[200].mxu1 %vm1781_vm2, %v7230_v19 }
 0x535   : > { %v12592_v57 = vpop.f32.mrb[195].mxu0  ;;  %12546 = vmatprep.mubr.msk.f32.mxu1 %vm13164_vm1, %v16895_v59 }
 0x536   : > { %v16273_v41 = vadd.f32 %v15770_v25, %v6026_v3  ;;  %v7232_v25 = vld [vmem:[#allocation2 + $0x83] sm:$0xff] }
 0x537   : > { %v5967_v28 = vpop.f32.mrb[96].mxu1 }
 0x538   : > { %v16275_v45 = vpop.f32.mrb[196].mxu0  ;;  %v6027_v36 = vadd.f32 %v5967_v28, %v16129_v22  ;;  %v12224_v51 = vpop.f32.mrb[97].mxu1  ;;  %12547 = vmatmul.mubr.msk.f32.gmra.mrb[202].mxu1 %vm1781_vm2, %v7231_v21 }
 0x539   : > { %v12595_v35 = vpop.f32.mrb[197].mxu0  ;;  %12549 = vmatprep.mubr.msk.f32.mxu1 %vm13164_vm1, %v16895_v59 }
 0x53a   : > { %v16282_v38 = vadd.f32 %v15782_v48, %v6027_v36  ;;  %v7233_v48 = vld [vmem:[#allocation2 + $0x8b] sm:$0xff] }
 0x53b   : > { %v5972_v19 = vpop.f32.mrb[98].mxu1 }
 0x53c   : > { %v16284_v37 = vpop.f32.mrb[198].mxu0  ;;  %v6028_v3 = vadd.f32 %v5972_v19, %v16138_v20  ;;  %v12227_v57 = vpop.f32.mrb[99].mxu1  ;;  %12550 = vmatmul.mubr.msk.f32.gmra.mrb[204].mxu1 %vm1781_vm2, %v7232_v25 }
 0x53d   : > { %v12598_v22 = vpop.f32.mrb[199].mxu0  ;;  %12552 = vmatprep.mubr.msk.f32.mxu1 %vm13164_vm1, %v16895_v59 }
 0x53e   : > { %v16291_v28 = vadd.f32 %v15794_v1, %v6028_v3  ;;  %v7234_v1 = vld [vmem:[#allocation2 + $0x93] sm:$0xff] }
 0x53f   : > { %v5977_v21 = vpop.f32.mrb[100].mxu1 }
 0x540   : > { %v16293_v51 = vpop.f32.mrb[200].mxu0  ;;  %v6029_v36 = vadd.f32 %v5977_v21, %v16147_v56  ;;  %v12230_v35 = vpop.f32.mrb[101].mxu1  ;;  %12553 = vmatmul.mubr.msk.f32.gmra.mrb[206].mxu1 %vm1781_vm2, %v7233_v48 }
 0x541   : > { %v12601_v20 = vpop.f32.mrb[201].mxu0  ;;  %12555 = vmatprep.mubr.msk.f32.mxu1 %vm13164_vm1, %v16895_v59 }
 0x542   : > { %v16300_v19 = vadd.f32 %v15806_v17, %v6029_v36  ;;  %v7235_v17 = vld [vmem:[#allocation2 + $0x9b] sm:$0xff] }
 0x543   : > { %v5982_v25 = vpop.f32.mrb[102].mxu1 }
 0x544   : > { %v16302_v57 = vpop.f32.mrb[202].mxu0  ;;  %v6030_v3 = vadd.f32 %v5982_v25, %v16156_v9  ;;  %v12233_v22 = vpop.f32.mrb[103].mxu1  ;;  %12556 = vmatmul.mubr.msk.f32.gmra.mrb[208].mxu1 %vm1781_vm2, %v7234_v1 }
 0x545   : > { %v12604_v56 = vpop.f32.mrb[203].mxu0  ;;  %12558 = vmatprep.mubr.msk.f32.mxu1 %vm13164_vm1, %v16895_v59 }
 0x546   : > { %v16309_v21 = vadd.f32 %v15818_v60, %v6030_v3  ;;  %v7236_v60 = vld [vmem:[#allocation2 + $0xa3] sm:$0xff] }
 0x547   : > { %v5987_v48 = vpop.f32.mrb[104].mxu1 }
 0x548   : > { %v16311_v35 = vpop.f32.mrb[204].mxu0  ;;  %v6031_v36 = vadd.f32 %v5987_v48, %v16165_v43  ;;  %v12236_v20 = vpop.f32.mrb[105].mxu1  ;;  %12559 = vmatmul.mubr.msk.f32.gmra.mrb[210].mxu1 %vm1781_vm2, %v7235_v17 }
 0x549   : > { %v12607_v9 = vpop.f32.mrb[205].mxu0  ;;  %12561 = vmatprep.mubr.msk.f32.mxu1 %vm13164_vm1, %v16895_v59 }
 0x54a   : > { %v16318_v25 = vadd.f32 %v15830_v34, %v6031_v36  ;;  %v7237_v34 = vld [vmem:[#allocation2 + $0xab] sm:$0xff] }
 0x54b   : > { %v5992_v1 = vpop.f32.mrb[106].mxu1 }
 0x54c   : > { %v16320_v22 = vpop.f32.mrb[206].mxu0  ;;  %v6032_v3 = vadd.f32 %v5992_v1, %v16174_v7  ;;  %v12239_v56 = vpop.f32.mrb[107].mxu1  ;;  %12562 = vmatmul.mubr.msk.f32.gmra.mrb[212].mxu1 %vm1781_vm2, %v7236_v60 }
 0x54d   : > { %v12610_v43 = vpop.f32.mrb[207].mxu0  ;;  %12564 = vmatprep.mubr.msk.f32.mxu1 %vm13164_vm1, %v16895_v59 }
 0x54e   : > { %v16327_v48 = vadd.f32 %v15842_v54, %v6032_v3  ;;  %v7238_v54 = vld [vmem:[#allocation2 + $0xb3] sm:$0xff] }
 0x54f   : > { %v5997_v17 = vpop.f32.mrb[108].mxu1 }
 0x550   : > { %v16329_v20 = vpop.f32.mrb[208].mxu0  ;;  %v6033_v36 = vadd.f32 %v5997_v17, %v16183_v11  ;;  %v12242_v9 = vpop.f32.mrb[109].mxu1  ;;  %12565 = vmatmul.mubr.msk.f32.gmra.mrb[214].mxu1 %vm1781_vm2, %v7237_v34 }
 0x551   : > { %v12613_v7 = vpop.f32.mrb[209].mxu0  ;;  %12567 = vmatprep.mubr.msk.f32.mxu1 %vm13164_vm1, %v16895_v59 }
 0x552   : > { %v16336_v1 = vadd.f32 %v15854_v39, %v6033_v36  ;;  %v7239_v39 = vld [vmem:[#allocation2 + $0xbb] sm:$0xff] }
 0x553   : > { %v6002_v60 = vpop.f32.mrb[110].mxu1 }
 0x554   : > { %v16338_v56 = vpop.f32.mrb[210].mxu0  ;;  %v6034_v3 = vadd.f32 %v6002_v60, %v16192_v23  ;;  %v12245_v43 = vpop.f32.mrb[111].mxu1  ;;  %12568 = vmatmul.mubr.msk.f32.gmra.mrb[216].mxu1 %vm1781_vm2, %v7238_v54 }
 0x555   : > { %16982 = vst [vmem:[#allocation17_spill] sm:$0xff] %v16338_v56  ;;  %v12616_v11 = vpop.f32.mrb[211].mxu0  ;;  %12570 = vmatprep.mubr.msk.f32.mxu1 %vm13164_vm1, %v16895_v59 }
 0x556   : > { %v16345_v17 = vadd.f32 %v15866_v12, %v6034_v3 }
 0x557   : > { %v6007_v34 = vpop.f32.mrb[112].mxu1 }
 0x558   : > { %v16347_v9 = vpop.f32.mrb[212].mxu0  ;;  %v6035_v36 = vadd.f32 %v6007_v34, %v16201_v26  ;;  %v12248_v7 = vpop.f32.mrb[113].mxu1  ;;  %12571 = vmatmul.mubr.msk.f32.gmra.mrb[218].mxu1 %vm1781_vm2, %v7239_v39 }
 0x559   : > { %16983 = vst [vmem:[#allocation20_spill] sm:$0xff] %v16347_v9  ;;  %v12619_v23 = vpop.f32.mrb[213].mxu0  ;;  %v16986_v7 = vld [vmem:[#allocation19_spill] sm:$0xff] }
 0x55a   : > { %v16352_v60 = vadd.f32 %v15878_v40, %v6035_v36 }
 0x55b   : > { %v6012_v54 = vpop.f32.mrb[114].mxu1 }
 0x55c   : > { %v16354_v43 = vpop.f32.mrb[214].mxu0  ;;  %v6036_v11 = vadd.f32 %v6012_v54, %v16210_v5  ;;  %v12251_v12 = vpop.f32.mrb[115].mxu1  ;;  %v16987_v5 = vld [vmem:[#allocation21_spill] sm:$0xff] }
 0x55d   : > { %16984 = vst [vmem:[#allocation18_spill] sm:$0xff] %v16354_v43  ;;  %v12622_v3 = vpop.f32.mrb[215].mxu0 }
 0x55e   : > { %v16358_v59 = vadd.f32 %v15893_v18, %v6036_v11  ;;  %v16988_v3 = vld [vmem:[#allocation3_spill] sm:$0xff] }
 0x55f   : > { %v6017_v9 = vpop.f32.mrb[116].mxu1 }
 0x560   : > { %v16360_v56 = vpop.f32.mrb[216].mxu0  ;;  %v6037_v26 = vadd.f32 %v6017_v9, %v16219_v24  ;;  %v12254_v34 = vpop.f32.mrb[117].mxu1 }
 0x561   : > { %16985 = vst [vmem:[#allocation23_spill] sm:$0xff] %v16360_v56  ;;  %v12625_v39 = vpop.f32.mrb[217].mxu0 }
 0x562   : > { %v16364_v40 = vadd.f32 %v16986_v7, %v6037_v26  ;;  %v16989_v26 = vld [vmem:[#allocation4_spill] sm:$0xff] }
 0x563   : > { %v6411_v36 = vpop.f32.mrb[118].mxu1 }
 0x564   : > { %v6495_v23 = vadd.f32 %v6411_v36, %v16228_v32  ;;  %v12312_v43 = vpop.f32.mrb[119].mxu1  ;;  %v16990_v36 = vld [vmem:[#allocation5_spill] sm:$0xff] }
 0x566   : > { %v16368_v54 = vadd.f32 %v16987_v5, %v6495_v23 }
 0x567   : > { %v6416_v12 = vpop.f32.mrb[120].mxu1 }
 0x568   : > { %v6496_v18 = vadd.f32 %v6416_v12, %v16237_v0  ;;  %v12315_v11 = vpop.f32.mrb[121].mxu1 }
 0x56a   : > { %v16372_v56 = vadd.f32 %v16988_v3, %v6496_v18  ;;  %v16991_v18 = vld [vmem:[#allocation6_spill] sm:$0xff] }
 0x56b   : > { %v6421_v24 = vpop.f32.mrb[122].mxu1 }
 0x56c   : > { %v6497_v9 = vadd.f32 %v6421_v24, %v16246_v8  ;;  %v12318_v34 = vpop.f32.mrb[123].mxu1 }
 0x56e   : > { %v16376_v39 = vadd.f32 %v16989_v26, %v6497_v9  ;;  %v16992_v9 = vld [vmem:[#allocation7_spill] sm:$0xff] }
 0x56f   : > { %v6426_v7 = vpop.f32.mrb[124].mxu1 }
 0x570   : > { %v6498_v32 = vadd.f32 %v6426_v7, %v16255_v15  ;;  %v12321_v43 = vpop.f32.mrb[125].mxu1 }
 0x572   : > { %v16380_v23 = vadd.f32 %v16990_v36, %v6498_v32  ;;  %v16993_v32 = vld [vmem:[#allocation8_spill] sm:$0xff] }
 0x573   : > { %v6431_v5 = vpop.f32.mrb[126].mxu1 }
 0x574   : > { %v6499_v0 = vadd.f32 %v6431_v5, %v16264_v2  ;;  %v12324_v12 = vpop.f32.mrb[127].mxu1 }
 0x576   : > { %v16384_v11 = vadd.f32 %v16991_v18, %v6499_v0  ;;  %v16994_v0 = vld [vmem:[#allocation9_spill] sm:$0xff] }
 0x577   : > { %v6436_v3 = vpop.f32.mrb[128].mxu1 }
 0x578   : > { %v6500_v8 = vadd.f32 %v6436_v3, %v16273_v41  ;;  %v12327_v24 = vpop.f32.mrb[129].mxu1 }
 0x57a   : > { %v16388_v34 = vadd.f32 %v16992_v9, %v6500_v8  ;;  %v16995_v8 = vld [vmem:[#allocation10_spill] sm:$0xff] }
 0x57b   : > { %v6441_v26 = vpop.f32.mrb[130].mxu1 }
 0x57c   : > { %v6501_v15 = vadd.f32 %v6441_v26, %v16282_v38  ;;  %v12330_v7 = vpop.f32.mrb[131].mxu1 }
 0x57e   : > { %v16392_v43 = vadd.f32 %v16993_v32, %v6501_v15  ;;  %v16996_v15 = vld [vmem:[#allocation11_spill] sm:$0xff] }
 0x57f   : > { %v6446_v36 = vpop.f32.mrb[132].mxu1 }
 0x580   : > { %v6502_v2 = vadd.f32 %v6446_v36, %v16291_v28  ;;  %v12333_v5 = vpop.f32.mrb[133].mxu1 }
 0x582   : > { %v16396_v12 = vadd.f32 %v16994_v0, %v6502_v2  ;;  %v16997_v2 = vld [vmem:[#allocation12_spill] sm:$0xff] }
 0x583   : > { %v6451_v18 = vpop.f32.mrb[134].mxu1 }
 0x584   : > { %v6503_v41 = vadd.f32 %v6451_v18, %v16300_v19  ;;  %v12336_v3 = vpop.f32.mrb[135].mxu1 }
 0x586   : > { %v16400_v24 = vadd.f32 %v16995_v8, %v6503_v41  ;;  %v16998_v41 = vld [vmem:[#allocation13_spill] sm:$0xff] }
 0x587   : > { %v6456_v9 = vpop.f32.mrb[136].mxu1 }
 0x588   : > { %v6504_v38 = vadd.f32 %v6456_v9, %v16309_v21  ;;  %v12339_v26 = vpop.f32.mrb[137].mxu1 }
 0x58a   : > { %v16404_v7 = vadd.f32 %v16996_v15, %v6504_v38  ;;  %v16999_v38 = vld [vmem:[#allocation14_spill] sm:$0xff] }
 0x58b   : > { %v6461_v32 = vpop.f32.mrb[138].mxu1 }
 0x58c   : > { %v6505_v28 = vadd.f32 %v6461_v32, %v16318_v25  ;;  %v12342_v36 = vpop.f32.mrb[139].mxu1 }
 0x58e   : > { %v16408_v5 = vadd.f32 %v16997_v2, %v6505_v28  ;;  %v17000_v28 = vld [vmem:[#allocation15_spill] sm:$0xff] }
 0x58f   : > { %v6466_v0 = vpop.f32.mrb[140].mxu1 }
 0x590   : > { %v6506_v19 = vadd.f32 %v6466_v0, %v16327_v48  ;;  %v12345_v18 = vpop.f32.mrb[141].mxu1 }
 0x592   : > { %v16412_v3 = vadd.f32 %v16998_v41, %v6506_v19  ;;  %v17001_v19 = vld [vmem:[#allocation16_spill] sm:$0xff]  ;;  %v13165_v41 = vmov 0.0|0.0  }
 0x593   : > { %v6471_v8 = vpop.f32.mrb[142].mxu1  ;;  %12809 = vmatprep.subr.bf16.mxu1 %v13165_v41  ;;  %12833 = vmatprep.subr.bf16.mxu0 %v13165_v41 }
 0x594   : > { %v6507_v21 = vadd.f32 %v6471_v8, %v16336_v1  ;;  %v12348_v9 = vpop.f32.mrb[143].mxu1 }
 0x596   : > { %v16416_v26 = vadd.f32 %v16999_v38, %v6507_v21  ;;  %v17002_v21 = vld [vmem:[#allocation22_spill] sm:$0xff] }
 0x597   : > { %v6476_v15 = vpop.f32.mrb[144].mxu1 }
 0x598   : > { %v6508_v25 = vadd.f32 %v6476_v15, %v16345_v17  ;;  %v12351_v32 = vpop.f32.mrb[145].mxu1 }
 0x59a   : > { %v16420_v36 = vadd.f32 %v17000_v28, %v6508_v25 }
 0x59b   : > { %v6481_v2 = vpop.f32.mrb[146].mxu1 }
 0x59c   : > { %v6509_v48 = vadd.f32 %v6481_v2, %v16352_v60  ;;  %v12354_v0 = vpop.f32.mrb[147].mxu1 }
 0x59e   : > { %v16424_v18 = vadd.f32 %v17001_v19, %v6509_v48 }
 0x59f   : > { %v6486_v1 = vpop.f32.mrb[148].mxu1 }
 0x5a0   : > { %v6510_v8 = vadd.f32 %v6486_v1, %v16358_v59  ;;  %v12357_v17 = vpop.f32.mrb[149].mxu1 }
 0x5a2   : > { %v16430_v9 = vadd.f32 %v17002_v21, %v6510_v8 }
 0x5a3   : > { %v6491_v38 = vpop.f32.mrb[150].mxu1 }
 0x5a4   : > { %v6511_v15 = vadd.f32 %v6491_v38, %v16364_v40  ;;  %v12360_v60 = vpop.f32.mrb[151].mxu1 }
 0x5a6   : > { %v16434_v25 = vadd.f32 %v16059_v33, %v6511_v15 }
 0x5a7   : > { %v6885_v32 = vpop.f32.mrb[152].mxu1 }
 0x5a8   : > { %v6969_v28 = vadd.f32 %v6885_v32, %v16368_v54  ;;  %v12418_v2 = vpop.f32.mrb[153].mxu1 }
 0x5aa   : > { %v16438_v48 = vadd.f32 %v16068_v55, %v6969_v28 }
 0x5ab   : > { %v6890_v0 = vpop.f32.mrb[154].mxu1 }
 0x5ac   : > { %v6970_v59 = vadd.f32 %v6890_v0, %v16372_v56  ;;  %v12421_v19 = vpop.f32.mrb[155].mxu1 }
 0x5ae   : > { %v16442_v1 = vadd.f32 %v16077_v29, %v6970_v59 }
 0x5af   : > { %v6895_v8 = vpop.f32.mrb[156].mxu1 }
 0x5b0   : > { %v6971_v40 = vadd.f32 %v6895_v8, %v16376_v39  ;;  %v12424_v17 = vpop.f32.mrb[157].mxu1 }
 0x5b2   : > { %v16446_v33 = vadd.f32 %v16086_v42, %v6971_v40 }
 0x5b3   : > { %v6900_v21 = vpop.f32.mrb[158].mxu1 }
 0x5b4   : > { %v6972_v54 = vadd.f32 %v6900_v21, %v16380_v23  ;;  %v12427_v38 = vpop.f32.mrb[159].mxu1 }
 0x5b6   : > { %v16450_v55 = vadd.f32 %v16095_v13, %v6972_v54 }
 0x5b7   : > { %v6905_v15 = vpop.f32.mrb[160].mxu1 }
 0x5b8   : > { %v6973_v56 = vadd.f32 %v6905_v15, %v16384_v11  ;;  %v12430_v60 = vpop.f32.mrb[161].mxu1 }
 0x5ba   : > { %v16454_v29 = vadd.f32 %v16104_v50, %v6973_v56  ;;  %v7790_v50 = vld [vmem:[%s16891_s5 + $0x8] sm:$0xff] }
 0x5bb   : > { %v6910_v32 = vpop.f32.mrb[162].mxu1  ;;  %10435 = vmatprep.mubr.msk.f32.mxu1 %vm1781_vm2, %v7790_v50 }
 0x5bc   : > { %v6974_v39 = vadd.f32 %v6910_v32, %v16388_v34  ;;  %v12433_v28 = vpop.f32.mrb[163].mxu1 }
 0x5be   : > { %v16458_v42 = vadd.f32 %v16113_v52, %v6974_v39 }
 0x5bf   : > { %v6915_v2 = vpop.f32.mrb[164].mxu1 }
 0x5c0   : > { %v6975_v23 = vadd.f32 %v6915_v2, %v16392_v43  ;;  %v12436_v0 = vpop.f32.mrb[165].mxu1 }
 0x5c2   : > { %v16462_v13 = vadd.f32 %v16122_v44, %v6975_v23 }
 0x5c3   : > { %v6920_v59 = vpop.f32.mrb[166].mxu1 }
 0x5c4   : > { %v6976_v11 = vadd.f32 %v6920_v59, %v16396_v12  ;;  %v12439_v19 = vpop.f32.mrb[167].mxu1 }
 0x5c6   : > { %v16469_v34 = vadd.f32 %v16131_v63, %v6976_v11 }
 0x5c7   : > { %v6925_v52 = vpop.f32.mrb[168].mxu1 }
 0x5c8   : > { %v6977_v43 = vadd.f32 %v6925_v52, %v16400_v24  ;;  %v12442_v8 = vpop.f32.mrb[169].mxu1  ;;  %v10439_v24 = vld [vmem:[%s16892_s6 + $0x10] sm:$0xff] }
 0x5ca   : > { %v16474_v44 = vadd.f32 %v16140_v6, %v6977_v43  ;;  %v10440_v6 = vld [vmem:[%s16892_s6 + $0x18] sm:$0xff] }
 0x5cb   : > { %v6930_v40 = vpop.f32.mrb[170].mxu1  ;;  %v12834_v56 = vpack.c.bf16 %v10440_v6, %v10439_v24 }
 0x5cc   : > { %v6978_v12 = vadd.f32 %v6930_v40, %v16404_v7  ;;  %v12445_v17 = vpop.f32.mrb[171].mxu1 }
 0x5cd   : > { %12835 = vmatpush3.bf16.msra.mxu0 %v12834_v56 }
 0x5ce   : > { %v16478_v21 = vadd.f32 %v16149_v47, %v6978_v12  ;;  %12836 = vmatprep.subr.bf16.mxu0 %v13165_v41 }
 0x5cf   : > { %v6935_v54 = vpop.f32.mrb[172].mxu1 }
 0x5d0   : > { %v6979_v63 = vadd.f32 %v6935_v54, %v16408_v5  ;;  %v12448_v38 = vpop.f32.mrb[173].mxu1 }
 0x5d2   : > { %v16482_v15 = vadd.f32 %v16158_v30, %v6979_v63 }
 0x5d3   : > { %v6940_v7 = vpop.f32.mrb[174].mxu1 }
 0x5d4   : > { %v6980_v47 = vadd.f32 %v6940_v7, %v16412_v3  ;;  %v12451_v60 = vpop.f32.mrb[175].mxu1 }
 0x5d6   : > { %v16492_v5 = vadd.f32 %v16167_v53, %v6980_v47 }
 0x5d7   : > { %v6945_v30 = vpop.f32.mrb[176].mxu1 }
 0x5d8   : > { %v6981_v32 = vadd.f32 %v6945_v30, %v16416_v26  ;;  %v12454_v39 = vpop.f32.mrb[177].mxu1 }
 0x5da   : > { %v16497_v28 = vadd.f32 %v16176_v14, %v6981_v32 }
 0x5db   : > { %v6950_v2 = vpop.f32.mrb[178].mxu1 }
 0x5dc   : > { %v6982_v23 = vadd.f32 %v6950_v2, %v16420_v36  ;;  %v12457_v0 = vpop.f32.mrb[179].mxu1 }
 0x5de   : > { %v16501_v3 = vadd.f32 %v16185_v49, %v6982_v23 }
 0x5df   : > { %v6955_v59 = vpop.f32.mrb[180].mxu1 }
 0x5e0   : > { %v6983_v53 = vadd.f32 %v6955_v59, %v16424_v18  ;;  %v12460_v11 = vpop.f32.mrb[181].mxu1 }
 0x5e2   : > { %v16505_v19 = vadd.f32 %v16194_v4, %v6983_v53  ;;  %v16519_v4 = vld [vmem:[%s16890_s4] ss:$0 sm:$0xff] }
 0x5e3   : > { %v6960_v50 = vpop.f32.mrb[182].mxu1 }
 0x5e4   : > { %v6984_v26 = vadd.f32 %v6960_v50, %v16430_v9  ;;  %v12463_v52 = vpop.f32.mrb[183].mxu1 }
 0x5e6   : > { %v16509_v14 = vadd.f32 %v16203_v61, %v6984_v26 }
 0x5e7   : > { %v6965_v43 = vpop.f32.mrb[184].mxu1 }
 0x5e8   : > { %v6985_v36 = vadd.f32 %v6965_v43, %v16434_v25  ;;  %v12466_v8 = vpop.f32.mrb[185].mxu1 }
 0x5ea   : > { %v16513_v49 = vadd.f32 %v16212_v27, %v6985_v36 }
 0x5eb   : > { %v7359_v40 = vpop.f32.mrb[186].mxu1 }
 0x5ec   : > { %v7443_v18 = vadd.f32 %v7359_v40, %v16438_v48  ;;  %v12524_v12 = vpop.f32.mrb[187].mxu1 }
 0x5ee   : > { %v7680_v9 = vadd.f32 %v16221_v31, %v7443_v18 }
 0x5ef   : > { %v7364_v61 = vpop.f32.mrb[188].mxu1 }
 0x5f0   : > { %v7704_v17 = vadd.f32 %v16519_v4, %v7680_v9  ;;  %v7444_v25 = vadd.f32 %v7364_v61, %v16442_v1  ;;  %v12527_v54 = vpop.f32.mrb[189].mxu1 }
 0x5f2   : > { %v7721_v63 = vmul.f32 0.5, %v7704_v17  ;;  %v7681_v27 = vadd.f32 %v16230_v10, %v7444_v25 }
 0x5f3   : > { %v7369_v38 = vpop.f32.mrb[190].mxu1 }
 0x5f4   : > { %13120 = vtanh.f32 %v7721_v63  ;;  %v7705_v48 = vadd.f32 %v16519_v4, %v7681_v27  ;;  %v7445_v24 = vadd.f32 %v7369_v38, %v16446_v33  ;;  %v12530_v6 = vpop.f32.mrb[191].mxu1 }
 0x5f6   : > { %v7722_v7 = vmul.f32 0.5, %v7705_v48  ;;  %v7682_v56 = vadd.f32 %v16239_v16, %v7445_v24 }
 0x5f7   : > { %v7374_v31 = vpop.f32.mrb[192].mxu1 }
 0x5f8   : > { %13122 = vtanh.f32 %v7722_v7  ;;  %v7706_v47 = vadd.f32 %v16519_v4, %v7682_v56  ;;  %v7446_v1 = vadd.f32 %v7374_v31, %v16450_v55  ;;  %v12533_v60 = vpop.f32.mrb[193].mxu1 }
 0x5fa   : > { %v7723_v30 = vmul.f32 0.5, %v7706_v47  ;;  %v7683_v10 = vadd.f32 %v16248_v58, %v7446_v1 }
 0x5fb   : > { %v7379_v32 = vpop.f32.mrb[194].mxu1 }
 0x5fc   : > { %13124 = vtanh.f32 %v7723_v30  ;;  %v7707_v39 = vadd.f32 %v16519_v4, %v7683_v10  ;;  %v7447_v33 = vadd.f32 %v7379_v32, %v16454_v29  ;;  %v12536_v2 = vpop.f32.mrb[195].mxu1 }
 0x5fe   : > { %v13121_v23 = vpop.eup %13120  ;;  %v7724_v0 = vmul.f32 0.5, %v7707_v39  ;;  %v7684_v16 = vadd.f32 %v16257_v62, %v7447_v33 }
 0x5ff   : > { %v7384_v59 = vpop.f32.mrb[196].mxu1  ;;  %v7755_v50 = vmul.f32 0.5, %v13121_v23 }
 0x600   : > { %13126 = vtanh.f32 %v7724_v0  ;;  %v7708_v53 = vadd.f32 %v16519_v4, %v7684_v16  ;;  %v7448_v55 = vadd.f32 %v7384_v59, %v16458_v42  ;;  %v12539_v11 = vpop.f32.mrb[197].mxu1 }
 0x601   : > { %v7772_v40 = vadd.f32 0.5, %v7755_v50 }
 0x602   : > { %v13123_v58 = vpop.eup %13122  ;;  %v7725_v26 = vmul.f32 0.5, %v7708_v53  ;;  %v7685_v52 = vadd.f32 %v16266_v46, %v7448_v55 }
 0x603   : > { %v7756_v43 = vmul.f32 0.5, %v13123_v58  ;;  %v7389_v36 = vpop.f32.mrb[198].mxu1 }
 0x604   : > { %13128 = vtanh.f32 %v7725_v26  ;;  %v7709_v29 = vadd.f32 %v16519_v4, %v7685_v52  ;;  %v7449_v8 = vadd.f32 %v7389_v36, %v16462_v13  ;;  %v12542_v62 = vpop.f32.mrb[199].mxu1 }
 0x605   : > { %v7773_v18 = vadd.f32 0.5, %v7756_v43 }
 0x606   : > { %v13125_v12 = vpop.eup %13124  ;;  %v7726_v9 = vmul.f32 0.5, %v7709_v29  ;;  %v7686_v42 = vadd.f32 %v16275_v45, %v7449_v8 }
 0x607   : > { %v7394_v61 = vpop.f32.mrb[200].mxu1  ;;  %v12810_v17 = vpack.c.bf16 %v7773_v18, %v7772_v40  ;;  %v7757_v63 = vmul.f32 0.5, %v13125_v12 }
 0x608   : > { %13130 = vtanh.f32 %v7726_v9  ;;  %v7710_v25 = vadd.f32 %v16519_v4, %v7686_v42  ;;  %v7450_v46 = vadd.f32 %v7394_v61, %v16469_v34  ;;  %v12545_v54 = vpop.f32.mrb[201].mxu1 }
 0x609   : > { %12811 = vmatpush1.bf16.msra.mxu1 %v12810_v17  ;;  %v7774_v56 = vadd.f32 0.5, %v7757_v63 }
 0x60a   : > { %v13127_v27 = vpop.eup %13126  ;;  %v7727_v38 = vmul.f32 0.5, %v7710_v25  ;;  %v7687_v13 = vadd.f32 %v16284_v37, %v7450_v46  ;;  %12812 = vmatprep.subr.bf16.mxu1 %v13165_v41 }
 0x60b   : > { %v7758_v48 = vmul.f32 0.5, %v13127_v27  ;;  %v7399_v24 = vpop.f32.mrb[202].mxu1 }
 0x60c   : > { %13132 = vtanh.f32 %v7727_v38  ;;  %v7711_v45 = vadd.f32 %v16519_v4, %v7687_v13  ;;  %v7451_v6 = vadd.f32 %v7399_v24, %v16474_v44  ;;  %v12548_v7 = vpop.f32.mrb[203].mxu1 }
 0x60d   : > { %v7775_v31 = vadd.f32 0.5, %v7758_v48 }
 0x60e   : > { %v13129_v34 = vpop.eup %13128  ;;  %v7728_v47 = vmul.f32 0.5, %v7711_v45  ;;  %v7688_v1 = vadd.f32 %v16293_v51, %v7451_v6 }
 0x60f   : > { %v7404_v60 = vpop.f32.mrb[204].mxu1  ;;  %v12813_v30 = vpack.c.bf16 %v7775_v31, %v7774_v56  ;;  %v7759_v39 = vmul.f32 0.5, %v13129_v34 }
 0x610   : > { %13134 = vtanh.f32 %v7728_v47  ;;  %v7712_v37 = vadd.f32 %v16519_v4, %v7688_v1  ;;  %v7452_v10 = vadd.f32 %v7404_v60, %v16478_v21  ;;  %v12551_v32 = vpop.f32.mrb[205].mxu1  ;;  %v17004_v47 = vld [vmem:[#allocation20_spill] sm:$0xff] }
 0x611   : > { %12814 = vmatpush1.bf16.msra.mxu1 %v12813_v30  ;;  %v7776_v53 = vadd.f32 0.5, %v7759_v39 }
 0x612   : > { %v13131_v33 = vpop.eup %13130  ;;  %v7729_v2 = vmul.f32 0.5, %v7712_v37  ;;  %v7689_v44 = vadd.f32 %v16302_v57, %v7452_v10  ;;  %12815 = vmatprep.subr.bf16.mxu1 %v13165_v41 }
 0x613   : > { %v7760_v23 = vmul.f32 0.5, %v13131_v33  ;;  %v7409_v0 = vpop.f32.mrb[206].mxu1 }
 0x614   : > { %13136 = vtanh.f32 %v7729_v2  ;;  %v7713_v51 = vadd.f32 %v16519_v4, %v7689_v44  ;;  %v7453_v16 = vadd.f32 %v7409_v0, %v16482_v15  ;;  %v12554_v59 = vpop.f32.mrb[207].mxu1 }
 0x615   : > { %v7777_v55 = vadd.f32 0.5, %v7760_v23 }
 0x616   : > { %v13133_v21 = vpop.eup %13132  ;;  %v7730_v11 = vmul.f32 0.5, %v7713_v51  ;;  %v7690_v50 = vadd.f32 %v16311_v35, %v7453_v16 }
 0x617   : > { %v7414_v58 = vpop.f32.mrb[208].mxu1  ;;  %v12816_v26 = vpack.c.bf16 %v7777_v55, %v7776_v53  ;;  %v7761_v36 = vmul.f32 0.5, %v13133_v21 }
 0x618   : > { %13138 = vtanh.f32 %v7730_v11  ;;  %v7714_v57 = vadd.f32 %v16519_v4, %v7690_v50  ;;  %v7454_v52 = vadd.f32 %v7414_v58, %v16492_v5  ;;  %v12557_v43 = vpop.f32.mrb[209].mxu1  ;;  %v17006_v11 = vld [vmem:[#allocation23_spill] sm:$0xff] }
 0x619   : > { %12817 = vmatpush1.bf16.msra.mxu1 %v12816_v26  ;;  %v7778_v9 = vadd.f32 0.5, %v7761_v36 }
 0x61a   : > { %v13135_v29 = vpop.eup %13134  ;;  %v7731_v8 = vmul.f32 0.5, %v7714_v57  ;;  %v7691_v15 = vadd.f32 %v16320_v22, %v7454_v52  ;;  %12818 = vmatprep.subr.bf16.mxu1 %v13165_v41 }
 0x61b   : > { %v7762_v62 = vmul.f32 0.5, %v13135_v29  ;;  %v7419_v40 = vpop.f32.mrb[210].mxu1 }
 0x61c   : > { %13140 = vtanh.f32 %v7731_v8  ;;  %v7715_v35 = vadd.f32 %v16519_v4, %v7691_v15  ;;  %v7455_v18 = vadd.f32 %v7419_v40, %v16497_v28  ;;  %v12560_v12 = vpop.f32.mrb[211].mxu1  ;;  %v17003_v28 = vld [vmem:[#allocation17_spill] sm:$0xff] }
 0x61d   : > { %v7779_v42 = vadd.f32 0.5, %v7762_v62 }
 0x61e   : > { %v13137_v5 = vpop.eup %13136  ;;  %v7732_v61 = vmul.f32 0.5, %v7715_v35  ;;  %v7692_v17 = vadd.f32 %v16329_v20, %v7455_v18 }
 0x61f   : > { %v7424_v25 = vpop.f32.mrb[212].mxu1  ;;  %v12819_v46 = vpack.c.bf16 %v7779_v42, %v7778_v9  ;;  %v7763_v27 = vmul.f32 0.5, %v13137_v5  ;;  %v17007_v5 = vmov 0.0  }
 0x620   : > { %13142 = vtanh.f32 %v7732_v61  ;;  %v7716_v22 = vadd.f32 %v16519_v4, %v7692_v17  ;;  %v7456_v54 = vadd.f32 %v7424_v25, %v16501_v3  ;;  %v12563_v63 = vpop.f32.mrb[213].mxu1  ;;  %v7789_v17 = vld [vmem:[%s16891_s5] sm:$0xff]  ;;  %v7792_v25 = vld [vmem:[%s16891_s5 + $0x18] sm:$0xff] }
 0x621   : > { %12820 = vmatpush1.bf16.msra.mxu1 %v12819_v46  ;;  %v7780_v56 = vadd.f32 0.5, %v7763_v27  ;;  %v7791_v46 = vld [vmem:[%s16891_s5 + $0x10] sm:$0xff]  ;;  %v7796_v63 = vld [vmem:[%s16891_s5 + $0x38] sm:$0x1] }
 0x622   : > { %v13139_v38 = vpop.eup %13138  ;;  %v7733_v13 = vmul.f32 0.5, %v7716_v22  ;;  %v7693_v48 = vadd.f32 %v17003_v28, %v7456_v54  ;;  %12821 = vmatprep.subr.bf16.mxu1 %v13165_v41  ;;  %v7794_v22 = vld [vmem:[%s16891_s5 + $0x28] sm:$0xff]  ;;  %v7793_v54 = vld [vmem:[%s16891_s5 + $0x20] sm:$0xff]  ;;  %v7795_v27 = vld [vmem:[%s16891_s5 + $0x30] sm:$0x1] }
 0x623   : > { %v7764_v24 = vmul.f32 0.5, %v13139_v38  ;;  %v7429_v45 = vpop.f32.mrb[214].mxu1  ;;  %v10449_v38 = vld [vmem:[%s16892_s6 + $0x40] sm:$0xff] }
 0x624   : > { %13144 = vtanh.f32 %v7733_v13  ;;  %v7717_v20 = vadd.f32 %v16519_v4, %v7693_v48  ;;  %v7457_v6 = vadd.f32 %v7429_v45, %v16505_v19  ;;  %v12566_v7 = vpop.f32.mrb[215].mxu1  ;;  %v17005_v19 = vld [vmem:[#allocation18_spill] sm:$0xff]  ;;  %v10450_v13 = vld [vmem:[%s16892_s6 + $0x48] sm:$0xff] }
 0x625   : > { %v7781_v31 = vadd.f32 0.5, %v7764_v24  ;;  %v12846_v28 = vpack.c.bf16 %v10450_v13, %v10449_v38  ;;  %v7894_v48 = vld [vmem:[%s16892_s6] sm:$0xff]  ;;  %v7895_v24 = vld [vmem:[%s16892_s6 + $0x8] sm:$0xff]  ;;  %v10476_v13 = vld [vmem:[%s16892_s6 + $0xd0] sm:$0xff] }
 0x626   : > { %v13141_v3 = vpop.eup %13140  ;;  %v7734_v34 = vmul.f32 0.5, %v7717_v20  ;;  %v7694_v1 = vadd.f32 %v17004_v47, %v7457_v6  ;;  %v10455_v45 = vld [vmem:[%s16892_s6 + $0x60] sm:$0xff]  ;;  %v10456_v20 = vld [vmem:[%s16892_s6 + $0x68] sm:$0xff]  ;;  %v12837_v7 = vpack.c.bf16 %v7895_v24, %v7894_v48 }
 0x627   : > { %v7434_v60 = vpop.f32.mrb[216].mxu1  ;;  %v12822_v30 = vpack.c.bf16 %v7781_v31, %v7780_v56  ;;  %v7765_v39 = vmul.f32 0.5, %v13141_v3  ;;  %v10443_v3 = vld [vmem:[%s16892_s6 + $0x20] sm:$0xff]  ;;  %v12852_v47 = vpack.c.bf16 %v10456_v20, %v10455_v45  ;;  %v10498_v45 = vld [vmem:[%s16892_s6 + $0x148] sm:$0xff] }
 0x628   : > { %13146 = vtanh.f32 %v7734_v34  ;;  %v7718_v37 = vadd.f32 %v16519_v4, %v7694_v1  ;;  %v7458_v10 = vadd.f32 %v7434_v60, %v16509_v14  ;;  %v12569_v32 = vpop.f32.mrb[217].mxu1  ;;  %v10444_v34 = vld [vmem:[%s16892_s6 + $0x28] sm:$0xff]  ;;  %v10461_v60 = vld [vmem:[%s16892_s6 + $0x80] sm:$0xff] }
 0x629   : > { %12823 = vmatpush1.bf16.msra.mxu1 %v12822_v30  ;;  %v7782_v53 = vadd.f32 0.5, %v7765_v39  ;;  %v10462_v30 = vld [vmem:[%s16892_s6 + $0x88] sm:$0xff]  ;;  %v10446_v32 = vld [vmem:[%s16892_s6 + $0x30] sm:$0xff]  ;;  %v10447_v39 = vld [vmem:[%s16892_s6 + $0x38] sm:$0xff] }
 0x62a   : > { %v13143_v33 = vpop.eup %13142  ;;  %v7735_v2 = vmul.f32 0.5, %v7718_v37  ;;  %v7695_v44 = vadd.f32 %v17005_v19, %v7458_v10  ;;  %12824 = vmatprep.subr.bf16.mxu1 %v13165_v41  ;;  %v12840_v37 = vpack.c.bf16 %v10444_v34, %v10443_v3  ;;  %v10497_v24 = vld [vmem:[%s16892_s6 + $0x140] sm:$0xff] }
 0x62b   : > { %v7766_v23 = vmul.f32 0.5, %v13143_v33  ;;  %v7439_v0 = vpop.f32.mrb[218].mxu1  ;;  %v12894_v3 = vpack.c.bf16 %v10498_v45, %v10497_v24  ;;  %v10503_v34 = vld [vmem:[%s16892_s6 + $0x160] sm:$0xff] }
 0x62c   : > { %13148 = vtanh.f32 %v7735_v2  ;;  %v7719_v51 = vadd.f32 %v16519_v4, %v7695_v44  ;;  %v7459_v16 = vadd.f32 %v7439_v0, %v16513_v49  ;;  %v12572_v59 = vpop.f32.mrb[219].mxu1  ;;  %v12858_v2 = vpack.c.bf16 %v10462_v30, %v10461_v60  ;;  %v10467_v44 = vld [vmem:[%s16892_s6 + $0xa0] sm:$0xff] }
 0x62d   : > { %v7783_v55 = vadd.f32 0.5, %v7766_v23  ;;  %v10468_v23 = vld [vmem:[%s16892_s6 + $0xa8] sm:$0xff]  ;;  %v12843_v0 = vpack.c.bf16 %v10447_v39, %v10446_v32  ;;  %v10452_v59 = vld [vmem:[%s16892_s6 + $0x50] sm:$0xff]  ;;  %v10489_v32 = vld [vmem:[%s16892_s6 + $0x118] sm:$0xff] }
 0x62e   : > { %v13145_v14 = vpop.eup %13144  ;;  %v7736_v21 = vmul.f32 0.5, %v7719_v51  ;;  %v7696_v50 = vadd.f32 %v17006_v11, %v7459_v16  ;;  %v10474_v11 = vld [vmem:[%s16892_s6 + $0xc8] sm:$0xff] }
 0x62f   : > { %v12825_v58 = vpack.c.bf16 %v7783_v55, %v7782_v53  ;;  %v7767_v57 = vmul.f32 0.5, %v13145_v14  ;;  %v10453_v53 = vld [vmem:[%s16892_s6 + $0x58] sm:$0xff]  ;;  %v12864_v14 = vpack.c.bf16 %v10468_v23, %v10467_v44 }
 0x630   : > { %13150 = vtanh.f32 %v7736_v21  ;;  %v7720_v26 = vadd.f32 %v16519_v4, %v7696_v50  ;;  %v10473_v21 = vld [vmem:[%s16892_s6 + $0xc0] sm:$0xff]  ;;  %v12849_v50 = vpack.c.bf16 %v10453_v53, %v10452_v59 }
 0x631   : > { %12826 = vmatpush1.bf16.msra.mxu1 %v12825_v58  ;;  %v7784_v49 = vadd.f32 0.5, %v7767_v57  ;;  %v10458_v57 = vld [vmem:[%s16892_s6 + $0x70] sm:$0xff] }
 0x632   : > { %v13147_v52 = vpop.eup %13146  ;;  %v7737_v43 = vmul.f32 0.5, %v7720_v26  ;;  %12827 = vmatprep.subr.bf16.mxu1 %v13165_v41 }
 0x633   : > { %v7768_v36 = vmul.f32 0.5, %v13147_v52  ;;  %v10459_v52 = vld [vmem:[%s16892_s6 + $0x78] sm:$0xff] }
 0x634   : > { %13152 = vtanh.f32 %v7737_v43 }
 0x635   : > { %v7785_v29 = vadd.f32 0.5, %v7768_v36 }
 0x636   : > { %v13149_v8 = vpop.eup %13148 }
 0x637   : > { %v12828_v15 = vpack.c.bf16 %v7785_v29, %v7784_v49  ;;  %v7769_v62 = vmul.f32 0.5, %v13149_v8  ;;  %v12870_v49 = vpack.c.bf16 %v10474_v11, %v10473_v21  ;;  %v10479_v29 = vld [vmem:[%s16892_s6 + $0xe0] sm:$0xff]  ;;  %v10480_v8 = vld [vmem:[%s16892_s6 + $0xe8] sm:$0xff] }
 0x639   : > { %12829 = vmatpush1.bf16.msra.mxu1 %v12828_v15  ;;  %v7786_v18 = vadd.f32 0.5, %v7769_v62  ;;  %v12855_v15 = vpack.c.bf16 %v10459_v52, %v10458_v57 }
 0x63a   : > { %v13151_v40 = vpop.eup %13150  ;;  %12830 = vmatprep.subr.bf16.mxu1 %v13165_v41 }
 0x63b   : > { %v7770_v35 = vmul.f32 0.5, %v13151_v40 }
 0x63d   : > { %v7787_v4 = vadd.f32 0.5, %v7770_v35  ;;  %v10464_v35 = vld [vmem:[%s16892_s6 + $0x90] sm:$0xff] }
 0x63e   : > { %v13153_v12 = vpop.eup %13152 }
 0x63f   : > { %v12831_v9 = vpack.c.bf16 %v7787_v4, %v7786_v18  ;;  %v7771_v42 = vmul.f32 0.5, %v13153_v12  ;;  %v10465_v18 = vld [vmem:[%s16892_s6 + $0x98] sm:$0xff]  ;;  %v12876_v4 = vpack.c.bf16 %v10480_v8, %v10479_v29  ;;  %v10485_v12 = vld [vmem:[%s16892_s6 + $0x100] sm:$0xff] }
 0x641   : > { %12832 = vmatpush1.bf16.msra.mxu1 %v12831_v9  ;;  %v7788_v61 = vadd.f32 0.5, %v7771_v42  ;;  %v10486_v9 = vld [vmem:[%s16892_s6 + $0x108] sm:$0xff]  ;;  %v12861_v42 = vpack.c.bf16 %v10465_v18, %v10464_v35 }
 0x642   : > { %7841 = vmatprep.subr.mxu1 %v17007_v5 }
 0x645   : > { %7842 = vmatpush1.msra.mxu1 %v7788_v61 }
 0x646   : > { %7874 = vmatmul.mubr.f32.vlgmr.msra.gmra.mrb[220].mxu1 %v7789_v17  ;;  %12845 = vmatprep.subr.bf16.mxu1 %v13165_v41 }
 0x647   : > { %10436 = vmatprep.mubr.msk.f32.mxu1 %vm1781_vm2, %v7792_v25  ;;  %12847 = vmatpush3.bf16.msra.mxu1 %v12846_v28  ;;  %v10470_v25 = vld [vmem:[%s16892_s6 + $0xb0] sm:$0xff]  ;;  %v10477_v28 = vld [vmem:[%s16892_s6 + $0xd8] sm:$0xff] }
 0x648   : > { %12851 = vmatprep.subr.bf16.mxu1 %v13165_v41  ;;  %v12873_v20 = vpack.c.bf16 %v10477_v28, %v10476_v13 }
 0x64a   : > { %7879 = vmatmul.mubr.f32.gmra.mrb[222].mxu1 %v7791_v46  ;;  %v10471_v46 = vld [vmem:[%s16892_s6 + $0xb8] sm:$0xff] }
 0x64b   : > { %10437 = vmatprep.mubr.msk.f32.mxu1 %vm1781_vm2, %v7794_v22  ;;  %v12882_v22 = vpack.c.bf16 %v10486_v9, %v10485_v12  ;;  %v12867_v38 = vpack.c.bf16 %v10471_v46, %v10470_v25 }
 0x64e   : > { %7884 = vmatmul.mubr.f32.gmra.mrb[224].mxu1 %v7793_v54 }
 0x64f   : > { %10438 = vmatprep.mubr.msk.f32.mxu1 %vm1781_vm2, %v7796_v63  ;;  %v10491_v63 = vld [vmem:[%s16892_s6 + $0x120] sm:$0xff] }
 0x652   : > { %7889 = vmatmul.mubr.f32.gmra.mrb[226].mxu1 %v7795_v27  ;;  %v10492_v27 = vld [vmem:[%s16892_s6 + $0x128] sm:$0xff] }
 0x653   : > { %12658 = vmatprep.mubr.msk.f32.mxu1 %vm13164_vm1, %v17007_v5  ;;  %v12888_v48 = vpack.c.bf16 %v10492_v27, %v10491_v63 }
 0x719   : > { %v16625_v6 = vpop.f32.mrb[220].mxu1 }
 0x71a   : > { %v7900_v56 = vrot.slane %v16625_v6, 1  ;;  %v8203_v31 = vrot.slane %v16625_v6, 4  ;;  %v7877_v1 = vpop.f32.mrb[221].mxu1  ;;  %v8357_v19 = vrot.slane %v16625_v6, 6  ;;  %v8049_v16 = vrot.slane %v16625_v6, 2 }
 0x71b   : > { %v8126_v26 = vrot.slane %v16625_v6, 3  ;;  %v8280_v62 = vrot.slane %v16625_v6, 5  ;;  %v8434_v61 = vrot.slane %v16625_v6, 7 }
 0x71c   : > { %12631 = vmatmul.mubr.msk.f32.vlgmr.msra.gmra.mrb[218].mxu0 %vm7901_vm3, %v7900_v56  ;;  %12659 = vmatmul.mubr.msk.f32.vlgmr.msra.gmra.mrb[228].mxu1 %vm7901_vm3, %v8203_v31  ;;  %v10483_v56 = vld [vmem:[%s16892_s6 + $0xf8] sm:$0xff] }
 0x71d   : > { %12838 = vmatpush3.bf16.msra.mxu0 %v12837_v7  ;;  %12637 = vmatprep.mubr.msk.f32.mxu0 %vm13164_vm1, %v17007_v5  ;;  %v16645_v10 = vpop.f32.mrb[222].mxu1  ;;  %v10482_v7 = vld [vmem:[%s16892_s6 + $0xf0] sm:$0xff] }
 0x71e   : > { %12839 = vmatprep.subr.bf16.mxu0 %v13165_v41  ;;  %12853 = vmatpush3.bf16.msra.mxu1 %v12852_v47  ;;  %v7882_v33 = vpop.f32.mrb[223].mxu1  ;;  %v8665_v43 = vrot.slane %v16645_v10, 2  ;;  %v8819_v40 = vrot.slane %v16645_v10, 4  ;;  %v8973_v17 = vrot.slane %v16645_v10, 6  ;;  %v8588_v54 = vrot.slane %v16645_v10, 1  ;;  %v10504_v47 = vld [vmem:[%s16892_s6 + $0x168] sm:$0xff] }
 0x71f   : > { %12672 = vmatprep.mubr.msk.f32.mxu1 %vm13164_vm1, %v17007_v5  ;;  %12857 = vmatprep.subr.bf16.mxu1 %v13165_v41  ;;  %v12879_v1 = vpack.c.bf16 %v10483_v56, %v10482_v7  ;;  %v8896_v60 = vrot.slane %v16645_v10, 5  ;;  %v12900_v39 = vpack.c.bf16 %v10504_v47, %v10503_v34  ;;  %v10509_v33 = vld [vmem:[%s16892_s6 + $0x180] sm:$0xff]  ;;  %v9050_v44 = vrot.slane %v16645_v10, 7 }
 0x720   : > { %12638 = vmatmul.mubr.msk.f32.vlgmr.msra.gmra.mrb[220].mxu0 %vm7901_vm3, %v16625_v6  ;;  %v8742_v6 = vrot.slane %v16645_v10, 3 }
 0x721   : > { %12841 = vmatpush3.bf16.msra.mxu0 %v12840_v37  ;;  %12644 = vmatprep.mubr.msk.f32.mxu0 %vm13164_vm1, %v17007_v5  ;;  %v16668_v51 = vpop.f32.mrb[224].mxu1  ;;  %v10488_v37 = vld [vmem:[%s16892_s6 + $0x110] sm:$0xff] }
 0x722   : > { %12842 = vmatprep.subr.bf16.mxu0 %v13165_v41  ;;  %12673 = vmatmul.mubr.msk.f32.vlgmr.msra.gmra.mrb[230].mxu1 %vm7901_vm3, %v8357_v19  ;;  %v7887_v55 = vpop.f32.mrb[225].mxu1  ;;  %v9281_v31 = vrot.slane %v16668_v51, 2  ;;  %v9435_v30 = vrot.slane %v16668_v51, 4  ;;  %v12885_v19 = vpack.c.bf16 %v10489_v32, %v10488_v37  ;;  %v9589_v23 = vrot.slane %v16668_v51, 6 }
 0x723   : > { %12859 = vmatpush3.bf16.msra.mxu1 %v12858_v2  ;;  %12686 = vmatprep.mubr.msk.f32.mxu1 %vm13164_vm1, %v17007_v5  ;;  %v10510_v2 = vld [vmem:[%s16892_s6 + $0x188] sm:$0xff]  ;;  %v10500_v55 = vld [vmem:[%s16892_s6 + $0x150] sm:$0xff]  ;;  %v9358_v11 = vrot.slane %v16668_v51, 3  ;;  %v9512_v52 = vrot.slane %v16668_v51, 5 }
 0x724   : > { %12645 = vmatmul.mubr.msk.f32.vlgmr.msra.gmra.mrb[222].mxu0 %vm7901_vm3, %v8049_v16  ;;  %12863 = vmatprep.subr.bf16.mxu1 %v13165_v41  ;;  %v10495_v16 = vld [vmem:[%s16892_s6 + $0x138] sm:$0xff]  ;;  %v12906_v59 = vpack.c.bf16 %v10510_v2, %v10509_v33 }
 0x725   : > { %12844 = vmatpush3.bf16.msra.mxu0 %v12843_v0  ;;  %12651 = vmatprep.mubr.msk.f32.mxu0 %vm13164_vm1, %v17007_v5  ;;  %v16691_v58 = vpop.f32.mrb[226].mxu1  ;;  %v10494_v0 = vld [vmem:[%s16892_s6 + $0x130] sm:$0xff] }
 0x726   : > { %12848 = vmatprep.subr.bf16.mxu0 %v13165_v41  ;;  %12687 = vmatmul.mubr.msk.f32.vlgmr.msra.gmra.mrb[232].mxu1 %vm7901_vm3, %v16645_v10  ;;  %v7892_v36 = vpop.f32.mrb[227].mxu1  ;;  %v9204_v10 = vrot.slane %v16668_v51, 1  ;;  %v12891_v53 = vpack.c.bf16 %v10495_v16, %v10494_v0 }
 0x727   : > { %12865 = vmatpush3.bf16.msra.mxu1 %v12864_v14  ;;  %12700 = vmatprep.mubr.msk.f32.mxu1 %vm13164_vm1, %v17007_v5  ;;  %v10501_v14 = vld [vmem:[%s16892_s6 + $0x158] sm:$0xff] }
 0x728   : > { %12652 = vmatmul.mubr.msk.f32.vlgmr.msra.gmra.mrb[224].mxu0 %vm7901_vm3, %v8126_v26  ;;  %12869 = vmatprep.subr.bf16.mxu1 %v13165_v41  ;;  %v12897_v21 = vpack.c.bf16 %v10501_v14, %v10500_v55  ;;  %v10507_v26 = vld [vmem:[%s16892_s6 + $0x178] sm:$0xff] }
 0x729   : > { %12850 = vmatpush3.bf16.msra.mxu0 %v12849_v50  ;;  %12665 = vmatprep.mubr.msk.f32.mxu0 %vm13164_vm1, %v17007_v5  ;;  %v10506_v50 = vld [vmem:[%s16892_s6 + $0x170] sm:$0xff] }
 0x72a   : > { %12854 = vmatprep.subr.bf16.mxu0 %v13165_v41  ;;  %12701 = vmatmul.mubr.msk.f32.vlgmr.msra.gmra.mrb[234].mxu1 %vm7901_vm3, %v8665_v43  ;;  %v12903_v57 = vpack.c.bf16 %v10507_v26, %v10506_v50  ;;  %v9666_v43 = vrot.slane %v16668_v51, 7 }
 0x72b   : > { %12871 = vmatpush3.bf16.msra.mxu1 %v12870_v49  ;;  %12714 = vmatprep.mubr.msk.f32.mxu1 %vm13164_vm1, %v17007_v5 }
 0x72c   : > { %12666 = vmatmul.mubr.msk.f32.vlgmr.msra.gmra.mrb[226].mxu0 %vm7901_vm3, %v8280_v62  ;;  %12875 = vmatprep.subr.bf16.mxu1 %v13165_v41 }
 0x72d   : > { %12856 = vmatpush3.bf16.msra.mxu0 %v12855_v15  ;;  %12679 = vmatprep.mubr.msk.f32.mxu0 %vm13164_vm1, %v17007_v5 }
 0x72e   : > { %12860 = vmatprep.subr.bf16.mxu0 %v13165_v41  ;;  %12715 = vmatmul.mubr.msk.f32.vlgmr.msra.gmra.mrb[236].mxu1 %vm7901_vm3, %v8819_v40 }
 0x72f   : > { %12877 = vmatpush3.bf16.msra.mxu1 %v12876_v4  ;;  %12728 = vmatprep.mubr.msk.f32.mxu1 %vm13164_vm1, %v17007_v5 }
 0x730   : > { %12680 = vmatmul.mubr.msk.f32.vlgmr.msra.gmra.mrb[228].mxu0 %vm7901_vm3, %v8434_v61  ;;  %12881 = vmatprep.subr.bf16.mxu1 %v13165_v41 }
 0x731   : > { %12862 = vmatpush3.bf16.msra.mxu0 %v12861_v42  ;;  %12693 = vmatprep.mubr.msk.f32.mxu0 %vm13164_vm1, %v17007_v5 }
 0x732   : > { %12866 = vmatprep.subr.bf16.mxu0 %v13165_v41  ;;  %12729 = vmatmul.mubr.msk.f32.vlgmr.msra.gmra.mrb[238].mxu1 %vm7901_vm3, %v8973_v17 }
 0x733   : > { %12883 = vmatpush3.bf16.msra.mxu1 %v12882_v22  ;;  %12742 = vmatprep.mubr.msk.f32.mxu1 %vm13164_vm1, %v17007_v5 }
 0x734   : > { %12694 = vmatmul.mubr.msk.f32.vlgmr.msra.gmra.mrb[230].mxu0 %vm7901_vm3, %v8588_v54  ;;  %12887 = vmatprep.subr.bf16.mxu1 %v13165_v41 }
 0x735   : > { %12868 = vmatpush3.bf16.msra.mxu0 %v12867_v38  ;;  %12707 = vmatprep.mubr.msk.f32.mxu0 %vm13164_vm1, %v17007_v5 }
 0x736   : > { %12872 = vmatprep.subr.bf16.mxu0 %v13165_v41  ;;  %12743 = vmatmul.mubr.msk.f32.vlgmr.msra.gmra.mrb[240].mxu1 %vm7901_vm3, %v16668_v51 }
 0x737   : > { %12889 = vmatpush3.bf16.msra.mxu1 %v12888_v48  ;;  %12756 = vmatprep.mubr.msk.f32.mxu1 %vm13164_vm1, %v17007_v5 }
 0x738   : > { %12708 = vmatmul.mubr.msk.f32.vlgmr.msra.gmra.mrb[232].mxu0 %vm7901_vm3, %v8742_v6  ;;  %12893 = vmatprep.subr.bf16.mxu1 %v13165_v41 }
 0x739   : > { %12874 = vmatpush3.bf16.msra.mxu0 %v12873_v20  ;;  %12721 = vmatprep.mubr.msk.f32.mxu0 %vm13164_vm1, %v17007_v5 }
 0x73a   : > { %12878 = vmatprep.subr.bf16.mxu0 %v13165_v41  ;;  %12757 = vmatmul.mubr.msk.f32.vlgmr.msra.gmra.mrb[242].mxu1 %vm7901_vm3, %v9281_v31 }
 0x73b   : > { %12895 = vmatpush3.bf16.msra.mxu1 %v12894_v3  ;;  %12770 = vmatprep.mubr.msk.f32.mxu1 %vm13164_vm1, %v17007_v5 }
 0x73c   : > { %12722 = vmatmul.mubr.msk.f32.vlgmr.msra.gmra.mrb[234].mxu0 %vm7901_vm3, %v8896_v60  ;;  %12899 = vmatprep.subr.bf16.mxu1 %v13165_v41 }
 0x73d   : > { %12880 = vmatpush3.bf16.msra.mxu0 %v12879_v1  ;;  %12735 = vmatprep.mubr.msk.f32.mxu0 %vm13164_vm1, %v17007_v5 }
 0x73e   : > { %12884 = vmatprep.subr.bf16.mxu0 %v13165_v41  ;;  %12771 = vmatmul.mubr.msk.f32.vlgmr.msra.gmra.mrb[244].mxu1 %vm7901_vm3, %v9435_v30 }
 0x73f   : > { %12901 = vmatpush3.bf16.msra.mxu1 %v12900_v39  ;;  %12784 = vmatprep.mubr.msk.f32.mxu1 %vm13164_vm1, %v17007_v5 }
 0x740   : > { %12736 = vmatmul.mubr.msk.f32.vlgmr.msra.gmra.mrb[236].mxu0 %vm7901_vm3, %v9050_v44  ;;  %12905 = vmatprep.subr.bf16.mxu1 %v13165_v41 }
 0x741   : > { %12886 = vmatpush3.bf16.msra.mxu0 %v12885_v19  ;;  %12749 = vmatprep.mubr.msk.f32.mxu0 %vm13164_vm1, %v17007_v5 }
 0x742   : > { %12890 = vmatprep.subr.bf16.mxu0 %v13165_v41  ;;  %12785 = vmatmul.mubr.msk.f32.vlgmr.msra.gmra.mrb[246].mxu1 %vm7901_vm3, %v9589_v23 }
 0x743   : > { %12907 = vmatpush3.bf16.msra.mxu1 %v12906_v59  ;;  %12798 = vmatprep.mubr.msk.f32.mxu1 %vm13164_vm1, %v17007_v5 }
 0x744   : > { %12750 = vmatmul.mubr.msk.f32.vlgmr.msra.gmra.mrb[238].mxu0 %vm7901_vm3, %v9204_v10 }
 0x745   : > { %12892 = vmatpush3.bf16.msra.mxu0 %v12891_v53  ;;  %12763 = vmatprep.mubr.msk.f32.mxu0 %vm13164_vm1, %v17007_v5 }
 0x746   : > { %12896 = vmatprep.subr.bf16.mxu0 %v13165_v41  ;;  %12799 = vmatmul.mubr.msk.f32.vlgmr.msra.gmra.mrb[248].mxu1 %vm7901_vm3, %v16691_v58 }
 0x748   : > { %12764 = vmatmul.mubr.msk.f32.vlgmr.msra.gmra.mrb[240].mxu0 %vm7901_vm3, %v9358_v11 }
 0x749   : > { %12898 = vmatpush3.bf16.msra.mxu0 %v12897_v21  ;;  %12777 = vmatprep.mubr.msk.f32.mxu0 %vm13164_vm1, %v17007_v5 }
 0x74a   : > { %12902 = vmatprep.subr.bf16.mxu0 %v13165_v41 }
 0x74c   : > { %12778 = vmatmul.mubr.msk.f32.vlgmr.msra.gmra.mrb[242].mxu0 %vm7901_vm3, %v9512_v52 }
 0x74d   : > { %12904 = vmatpush3.bf16.msra.mxu0 %v12903_v57  ;;  %12791 = vmatprep.mubr.msk.f32.mxu0 %vm13164_vm1, %v17007_v5 }
 0x750   : > { %12792 = vmatmul.mubr.msk.f32.vlgmr.msra.gmra.mrb[244].mxu0 %vm7901_vm3, %v9666_v43 }
 0x7ef   : > { %v7970_v58 = vpop.f32.mrb[218].mxu0  ;;  %v8272_v36 = vpop.f32.mrb[228].mxu1 }
 0x7f0   : > { %v12632_v49 = vpop.f32.mrb[219].mxu0  ;;  %v12660_v29 = vpop.f32.mrb[229].mxu1 }
 0x7f1   : > { %v9819_v49 = vlaneseq }
 0x7f3   : > { %v8042_v8 = vpop.f32.mrb[220].mxu0 }
 0x7f4   : > { %v8043_v15 = vadd.f32 %v8042_v8, %v7970_v58  ;;  %v12639_v62 = vpop.f32.mrb[221].mxu0 }
 0x7f5   : > { %v8426_v40 = vpop.f32.mrb[230].mxu1 }
 0x7f6   : > { %v12674_v35 = vpop.f32.mrb[231].mxu1 }
 0x7f7   : > { %v8118_v41 = vpop.f32.mrb[222].mxu0 }
 0x7f8   : > { %v8122_v18 = vadd.f32 %v8118_v41, %v8043_v15  ;;  %v12646_v4 = vpop.f32.mrb[223].mxu0 }
 0x7f9   : > { %v8580_v12 = vpop.f32.mrb[232].mxu1  ;;  %v9817_v4 = vld [vmem:[%s16893_s7] sm:$0x1] }
 0x7fa   : > { %v12688_v9 = vpop.f32.mrb[233].mxu1 }
 0x7fb   : > { %v8195_v42 = vpop.f32.mrb[224].mxu0 }
 0x7fc   : > { %v8199_v5 = vadd.f32 %v8195_v42, %v8122_v18  ;;  %v12653_v61 = vpop.f32.mrb[225].mxu0 }
 0x7fd   : > { %v8734_v51 = vpop.f32.mrb[234].mxu1 }
 0x7fe   : > { %v8276_v17 = vadd.f32 %v8272_v36, %v8199_v5  ;;  %v12702_v25 = vpop.f32.mrb[235].mxu1 }
 0x7ff   : > { %v8349_v46 = vpop.f32.mrb[226].mxu0 }
 0x800   : > { %v8353_v22 = vadd.f32 %v8349_v46, %v8276_v17  ;;  %v12667_v54 = vpop.f32.mrb[227].mxu0 }
 0x801   : > { %v8888_v63 = vpop.f32.mrb[236].mxu1 }
 0x802   : > { %v8430_v27 = vadd.f32 %v8426_v40, %v8353_v22  ;;  %v12716_v38 = vpop.f32.mrb[237].mxu1  ;;  %v9820_v40 = vshrl.u32 %v9819_v49, 7 }
 0x803   : > { %v8503_v13 = vpop.f32.mrb[228].mxu0 }
 0x804   : > { %v8507_v28 = vadd.f32 %v8503_v13, %v8430_v27  ;;  %v12681_v48 = vpop.f32.mrb[229].mxu0  ;;  %v9821_v9 = vsub.s32 0, %v9820_v40 }
 0x805   : > { %v9042_v24 = vpop.f32.mrb[238].mxu1 }
 0x806   : > { %v8584_v45 = vadd.f32 %v8580_v12, %v8507_v28  ;;  %v12730_v20 = vpop.f32.mrb[239].mxu1 }
 0x807   : > { %v8657_v6 = vpop.f32.mrb[230].mxu0 }
 0x808   : > { %v8661_v7 = vadd.f32 %v8657_v6, %v8584_v45  ;;  %v12695_v56 = vpop.f32.mrb[231].mxu0 }
 0x809   : > { %v9196_v31 = vpop.f32.mrb[240].mxu1 }
 0x80a   : > { %v8738_v3 = vadd.f32 %v8734_v51, %v8661_v7  ;;  %v12744_v34 = vpop.f32.mrb[241].mxu1 }
 0x80b   : > { %v8811_v47 = vpop.f32.mrb[232].mxu0 }
 0x80c   : > { %v8815_v1 = vadd.f32 %v8811_v47, %v8738_v3  ;;  %v12709_v60 = vpop.f32.mrb[233].mxu0 }
 0x80d   : > { %v9350_v30 = vpop.f32.mrb[242].mxu1 }
 0x80e   : > { %v8892_v37 = vadd.f32 %v8888_v63, %v8815_v1  ;;  %v12758_v32 = vpop.f32.mrb[243].mxu1 }
 0x80f   : > { %v8965_v39 = vpop.f32.mrb[234].mxu0 }
 0x810   : > { %v8969_v33 = vadd.f32 %v8965_v39, %v8892_v37  ;;  %v12723_v2 = vpop.f32.mrb[235].mxu0 }
 0x811   : > { %v9504_v19 = vpop.f32.mrb[244].mxu1 }
 0x812   : > { %v9046_v44 = vadd.f32 %v9042_v24, %v8969_v33  ;;  %v12772_v23 = vpop.f32.mrb[245].mxu1 }
 0x813   : > { %v9119_v0 = vpop.f32.mrb[236].mxu0 }
 0x814   : > { %v9123_v16 = vadd.f32 %v9119_v0, %v9046_v44  ;;  %v12737_v59 = vpop.f32.mrb[237].mxu0 }
 0x815   : > { %v9658_v10 = vpop.f32.mrb[246].mxu1 }
 0x816   : > { %v9200_v53 = vadd.f32 %v9196_v31, %v9123_v16  ;;  %v12786_v55 = vpop.f32.mrb[247].mxu1 }
 0x817   : > { %v9273_v14 = vpop.f32.mrb[238].mxu0 }
 0x818   : > { %v9277_v21 = vadd.f32 %v9273_v14, %v9200_v53  ;;  %v12751_v11 = vpop.f32.mrb[239].mxu0 }
 0x819   : > { %v9812_v50 = vpop.f32.mrb[248].mxu1 }
 0x81a   : > { %v9354_v26 = vadd.f32 %v9350_v30, %v9277_v21  ;;  %v12800_v57 = vpop.f32.mrb[249].mxu1 }
 0x81b   : > { %v9427_v52 = vpop.f32.mrb[240].mxu0 }
 0x81c   : > { %v9431_v43 = vadd.f32 %v9427_v52, %v9354_v26  ;;  %v12765_v58 = vpop.f32.mrb[241].mxu0 }
 0x81e   : > { %v9508_v36 = vadd.f32 %v9504_v19, %v9431_v43 }
 0x81f   : > { %v9581_v29 = vpop.f32.mrb[242].mxu0 }
 0x820   : > { %v9585_v8 = vadd.f32 %v9581_v29, %v9508_v36  ;;  %v12779_v15 = vpop.f32.mrb[243].mxu0 }
 0x822   : > { %v9662_v62 = vadd.f32 %v9658_v10, %v9585_v8 }
 0x823   : > { %v9735_v35 = vpop.f32.mrb[244].mxu0 }
 0x824   : > { %v9739_v41 = vadd.f32 %v9735_v35, %v9662_v62  ;;  %v12793_v18 = vpop.f32.mrb[245].mxu0 }
 0x826   : > { %v9816_v12 = vadd.f32 %v9812_v50, %v9739_v41 }
 0x828   : > { %v9818_v42 = vadd.f32 %v9817_v4, %v9816_v12 }
 0x82a   : > { %v9822_v5 = vrot.slane %v9818_v42, %v9821_v9 }
 0x82c   : > { %9823 = vst [vmem:[%s303_s16] sm:$0xff] %v9822_v5 }
 0x82d PF: > { %s18_s27 = sadd.s32 1, %s13161_s27  }
 0x82e   : > { %p15_p4 = scmp.ge.s32.totalorder %s18_s27, 4  }
 0x830   :  { %17 = sbr.rel (!%p15_p4) target bundleno = 1 (0x1), region = 130 }

</bundles_post_ra>
